<compile_context>
chip_gen: v5e
topology: v5e:2x2
jax: 0.10.0
libtpu: 0.0.40
codegen_flags: <defaults>
</compile_context>

<pallas_src>
import functools
import numpy as np
import jax
import jax.numpy as jnp
from jax import lax
from jax.experimental import pallas as pl
from jax.experimental.pallas import tpu as pltpu

_HIGHEST = jax.lax.Precision.HIGHEST


# ---------------------------------------------------------------------------
# Static helpers (host-side constants)
# ---------------------------------------------------------------------------
def _tap_offsets(H, W):
    HW = H * W
    return [(kd - 1) * HW + (kh - 1) * W + (kw - 1)
            for kd in range(3) for kh in range(3) for kw in range(3)]


def _tap_masks(D, H, W):
    """(27, D*H*W) {0,1} masks: mask[k, b] == 1 iff tap k of output voxel b reads
    inside the unpadded volume -> realizes Conv3d padding=1 without materializing pads."""
    d = np.arange(D)[:, None, None]
    h = np.arange(H)[None, :, None]
    w = np.arange(W)[None, None, :]
    masks = np.empty((27, D * H * W), np.float32)
    k = 0
    for kd in range(3):
        for kh in range(3):
            for kw in range(3):
                ok = ((d + kd - 1 >= 0) & (d + kd - 1 < D) &
                      (h + kh - 1 >= 0) & (h + kh - 1 < H) &
                      (w + kw - 1 >= 0) & (w + kw - 1 < W))
                masks[k] = ok.reshape(-1).astype(np.float32)
                k += 1
    return masks


def _pool_selector(D, H, W):
    """(D*H*W, Do*Ho*Wo) one-hot selector picking the even-(d,h,w) lanes, which hold
    each 2x2x2 window max after the shifted-max steps."""
    Do, Ho, Wo = D // 2, H // 2, W // 2
    S = np.zeros((D * H * W, Do * Ho * Wo), np.float32)
    q = 0
    for do in range(Do):
        for ho in range(Ho):
            for wo in range(Wo):
                S[(2 * do) * H * W + (2 * ho) * W + (2 * wo), q] = 1.0
                q += 1
    return S


# ---------------------------------------------------------------------------
# Fused kernel (one batch item per grid step)
# ---------------------------------------------------------------------------
def _luna_block_kernel(x_ref, w1_ref, b1_ref, w2_ref, b2_ref, masks_ref, sel_ref,
                       o_ref, xext_ref, im_ref, *, D, H, W, cin, cc):
    HW = H * W
    L = D * HW
    P = HW + W + 1                       # max |tap offset| == width of the zero bands
    offsets = _tap_offsets(H, W)

    # Zero the extended buffer once per step; all activation writes below only touch
    # columns [P, P+L), so the side bands stay zero for both convs and the pool.
    xext_ref[...] = jnp.zeros_like(xext_ref)

    def conv3x3x3_relu(act, w, b, rows):
        # act: (rows, L)  w: (cc, 27*rows)  b: (cc, 1)  ->  (cc, L)
        xext_ref[0:rows, P:P + L] = act
        # im2col: 27 boundary-masked, statically shifted copies packed along sublanes.
        for k, off in enumerate(offsets):
            shifted = xext_ref[0:rows, P + off:P + off + L]          # ref slice (load)
            im_ref[k * rows:(k + 1) * rows, :] = shifted * masks_ref[k:k + 1, :]
        acc = jnp.dot(w, im_ref[0:27 * rows, :],                      # one MXU matmul
                      preferred_element_type=jnp.float32, precision=_HIGHEST)
        return jnp.maximum(acc + b, 0.0)

    h = conv3x3x3_relu(x_ref[...].astype(jnp.float32),
                       w1_ref[...], b1_ref[...], cin)                 # (cc, L)
    y = conv3x3x3_relu(h, w2_ref[...], b2_ref[...], cc)               # (cc, L)

    # 2x2x2 / stride-2 max-pool on the flat lane layout: shifted maxes put each
    # window's max at its even-(d,h,w) lane; a one-hot selection matmul gathers them.
    xext_ref[0:cc, P:P + L] = y
    m = y
    for off in (1, W, W + 1, HW, HW + 1, HW + W, HW + W + 1):
        m = jnp.maximum(m, xext_ref[0:cc, P + off:P + off + L])
    o_ref[...] = jnp.dot(m, sel_ref[...], preferred_element_type=jnp.float32,
                         precision=_HIGHEST).astype(o_ref.dtype)


# ---------------------------------------------------------------------------
# Wrapper
# ---------------------------------------------------------------------------
def luna_block_forward(x_ncdhw, params):
    """x: (N, C_in, D, H, W) as in PyTorch; params in kernel layout (to_kernel_layout).
    Returns (N, conv_channels, D//2, H//2, W//2), matching LunaBlock.forward."""
    w1, b1, w2, b2 = params
    N, cin, D, H, W = x_ncdhw.shape
    cc = w1.shape[0]
    assert D % 2 == 0 and H % 2 == 0 and W % 2 == 0, "MaxPool3d(2,2) needs even D/H/W"
    L = D * H * W
    Lo = (D // 2) * (H // 2) * (W // 2)
    P = H * W + W + 1
    cmax = max(cin, cc)

    masks = jnp.asarray(_tap_masks(D, H, W))          # (27, L) constant
    sel = jnp.asarray(_pool_selector(D, H, W))        # (L, Lo) constant
    x_flat = x_ncdhw.reshape(N, cin, L)               # free reshape: no transpose, no pad

    kernel = functools.partial(_luna_block_kernel, D=D, H=H, W=W, cin=cin, cc=cc)
    out = pl.pallas_call(
        kernel,
        out_shape=jax.ShapeDtypeStruct((N, cc, Lo), x_ncdhw.dtype),
        grid=(N,),
        in_specs=[
            pl.BlockSpec((None, cin, L), lambda n: (n, 0, 0)),   # x (flat spatial)
            pl.BlockSpec((cc, 27 * cin), lambda n: (0, 0)),      # w1
            pl.BlockSpec((cc, 1), lambda n: (0, 0)),             # b1
            pl.BlockSpec((cc, 27 * cc), lambda n: (0, 0)),       # w2
            pl.BlockSpec((cc, 1), lambda n: (0, 0)),             # b2
            pl.BlockSpec((27, L), lambda n: (0, 0)),             # boundary masks
            pl.BlockSpec((L, Lo), lambda n: (0, 0)),             # pool selector
        ],
        out_specs=pl.BlockSpec((None, cc, Lo), lambda n: (n, 0, 0)),
        scratch_shapes=[
            pltpu.VMEM((cmax, L + 2 * P), jnp.float32),          # zero-extended activation
            pltpu.VMEM((27 * cmax, L), jnp.float32),             # im2col buffer
        ],
        compiler_params=pltpu.CompilerParams(dimension_semantics=("parallel",)),
    )(x_flat, w1, b1, w2, b2, masks, sel)
    return out.reshape(N, cc, D // 2, H // 2, W // 2)


# ---------------------------------------------------------------------------
# Deterministic parameter init (PyTorch Conv3d layout) + kernel-layout conversion
# ---------------------------------------------------------------------------
def init_params(key, in_channels, conv_channels):
    k1, k2, k3, k4 = jax.random.split(key, 4)
    fan1 = in_channels * 27
    fan2 = conv_channels * 27
    # PyTorch layouts: weight (C_out, C_in, 3, 3, 3), bias (C_out,)
    w1_t = jax.random.uniform(k1, (conv_channels, in_channels, 3, 3, 3),
                              jnp.float32, -1.0, 1.0) / np.sqrt(fan1)
    b1_t = jax.random.uniform(k2, (conv_channels,), jnp.float32, -1.0, 1.0) / np.sqrt(fan1)
    w2_t = jax.random.uniform(k3, (conv_channels, conv_channels, 3, 3, 3),
                              jnp.float32, -1.0, 1.0) / np.sqrt(fan2)
    b2_t = jax.random.uniform(k4, (conv_channels,), jnp.float32, -1.0, 1.0) / np.sqrt(fan2)
    return w1_t, b1_t, w2_t, b2_t


def to_kernel_layout(w_t, b_t):
    # (C_out, C_in, kD, kH, kW) -> (C_out, 27*C_in) with column = (kd*9+kh*3+kw)*Cin + ci
    cout, cin = w_t.shape[:2]
    w = jnp.transpose(w_t, (0, 2, 3, 4, 1)).reshape(cout, 27 * cin)
    return w, b_t.reshape(cout, 1)


# ---------------------------------------------------------------------------
# Pure-JAX reference (f32-exact) for verification
# ---------------------------------------------------------------------------
def luna_block_reference(x, w1_t, b1_t, w2_t, b2_t):
    dn = lax.conv_dimension_numbers(x.shape, w1_t.shape, ("NCDHW", "OIDHW", "NCDHW"))

    def conv_relu(h, w, b):
        y = lax.conv_general_dilated(h, w, (1, 1, 1), ((1, 1), (1, 1), (1, 1)),
                                     dimension_numbers=dn, precision=_HIGHEST)
        return jax.nn.relu(y + b[None, :, None, None, None])

    h = conv_relu(x, w1_t, b1_t)
    h = conv_relu(h, w2_t, b2_t)
    return lax.reduce_window(h, -jnp.inf, lax.max,
                             (1, 1, 2, 2, 2), (1, 1, 2, 2, 2), "VALID")


# ---------------------------------------------------------------------------
if __name__ == "__main__":
    N, Cin, Cc = 2, 4, 8            # batch, in_channels, conv_channels
    D = H = W = 8                   # spatial extent (even, for the 2x2x2 pool)

    key = jax.random.PRNGKey(0)
    kx, kp = jax.random.split(key)
    x = jax.random.normal(kx, (N, Cin, D, H, W), jnp.float32)     # PyTorch NCDHW

    w1_t, b1_t, w2_t, b2_t = init_params(kp, Cin, Cc)
    w1, b1 = to_kernel_layout(w1_t, b1_t)
    w2, b2 = to_kernel_layout(w2_t, b2_t)

    out = luna_block_forward(x, (w1, b1, w2, b2))
    out = jax.block_until_ready(out)

    ref = luna_block_reference(x, w1_t, b1_t, w2_t, b2_t)
    assert out.shape == (N, Cc, D // 2, H // 2, W // 2), out.shape
    np.testing.assert_allclose(np.asarray(out), np.asarray(ref), rtol=1e-5, atol=1e-5)

    print("KERNEL_OK")
</pallas_src>

<mosaic_0001>
module attributes {stable_mosaic.version = 11 : i64} {
  func.func @_luna_block_kernel(%arg0: i32, %arg1: memref<1x4x512xf32, #tpu.memory_space<vmem>>, %arg2: memref<8x108xf32, #tpu.memory_space<vmem>>, %arg3: memref<8x1xf32, #tpu.memory_space<vmem>>, %arg4: memref<8x216xf32, #tpu.memory_space<vmem>>, %arg5: memref<8x1xf32, #tpu.memory_space<vmem>>, %arg6: memref<27x512xf32, #tpu.memory_space<vmem>>, %arg7: memref<512x64xf32, #tpu.memory_space<vmem>>, %arg8: memref<1x8x64xf32, #tpu.memory_space<vmem>>, %arg9: memref<8x658xf32, #tpu.memory_space<vmem>>, %arg10: memref<216x512xf32, #tpu.memory_space<vmem>>) attributes {dimension_semantics = [#tpu.dimension_semantics<parallel>], iteration_bounds = array<i64: 2>, scalar_prefetch = 0 : i64, scratch_operands = 2 : i64, tpu.core_type = #tpu.core_type<tc>, window_params = [{transform_indices = @transform_0, window_bounds = array<i64: 1, 4, 512>}, {pipeline_mode = #tpu.pipeline_mode<synchronous>, transform_indices = @transform_1, window_bounds = array<i64: 8, 108>}, {pipeline_mode = #tpu.pipeline_mode<synchronous>, transform_indices = @transform_2, window_bounds = array<i64: 8, 1>}, {pipeline_mode = #tpu.pipeline_mode<synchronous>, transform_indices = @transform_3, window_bounds = array<i64: 8, 216>}, {pipeline_mode = #tpu.pipeline_mode<synchronous>, transform_indices = @transform_4, window_bounds = array<i64: 8, 1>}, {pipeline_mode = #tpu.pipeline_mode<synchronous>, transform_indices = @transform_5, window_bounds = array<i64: 27, 512>}, {pipeline_mode = #tpu.pipeline_mode<synchronous>, transform_indices = @transform_6, window_bounds = array<i64: 512, 64>}, {transform_indices = @transform_7, window_bounds = array<i64: 1, 8, 64>}]} {
    %cst = arith.constant 0.000000e+00 : f32
    %0 = vector.broadcast %cst : f32 to vector<8x658xf32>
    %c0 = arith.constant 0 : index
    %c0_0 = arith.constant 0 : index
    %1 = vector.load %arg9[%c0, %c0_0] : memref<8x658xf32, #tpu.memory_space<vmem>>, vector<8x658xf32>
    tpu.vector_store %arg9[%c0, %c0_0], %0 {strides = array<i32>} : memref<8x658xf32, #tpu.memory_space<vmem>>, vector<8x658xf32>,
    %c0_1 = arith.constant 0 : index
    %c0_2 = arith.constant 0 : index
    %c0_3 = arith.constant 0 : index
    %2 = vector.load %arg1[%c0_1, %c0_2, %c0_3] : memref<1x4x512xf32, #tpu.memory_space<vmem>>, vector<1x4x512xf32>
    %3 = vector.shape_cast %2 : vector<1x4x512xf32> to vector<4x512xf32>
    %c0_4 = arith.constant 0 : index
    %c0_5 = arith.constant 0 : index
    %4 = vector.load %arg2[%c0_4, %c0_5] : memref<8x108xf32, #tpu.memory_space<vmem>>, vector<8x108xf32>
    %c0_6 = arith.constant 0 : index
    %c0_7 = arith.constant 0 : index
    %5 = vector.load %arg3[%c0_6, %c0_7] : memref<8x1xf32, #tpu.memory_space<vmem>>, vector<8x1xf32>
    %c0_8 = arith.constant 0 : index
    %c73 = arith.constant 73 : index
    %6 = vector.load %arg9[%c0_8, %c73] : memref<8x658xf32, #tpu.memory_space<vmem>>, vector<4x512xf32>
    tpu.vector_store %arg9[%c0_8, %c73], %3 {strides = array<i32>} : memref<8x658xf32, #tpu.memory_space<vmem>>, vector<4x512xf32>,
    %c0_9 = arith.constant 0 : index
    %c0_10 = arith.constant 0 : index
    %7 = vector.load %arg9[%c0_9, %c0_10] : memref<8x658xf32, #tpu.memory_space<vmem>>, vector<4x512xf32>
    %c0_11 = arith.constant 0 : index
    %c0_12 = arith.constant 0 : index
    %8 = vector.load %arg6[%c0_11, %c0_12] : memref<27x512xf32, #tpu.memory_space<vmem>>, vector<1x512xf32>
    %9 = vector.broadcast %8 : vector<1x512xf32> to vector<4x512xf32>
    %10 = arith.mulf %7, %9 : vector<4x512xf32>
    %c0_13 = arith.constant 0 : index
    %c0_14 = arith.constant 0 : index
    %11 = vector.load %arg10[%c0_13, %c0_14] : memref<216x512xf32, #tpu.memory_space<vmem>>, vector<4x512xf32>
    tpu.vector_store %arg10[%c0_13, %c0_14], %10 {strides = array<i32>} : memref<216x512xf32, #tpu.memory_space<vmem>>, vector<4x512xf32>,
    %c0_15 = arith.constant 0 : index
    %c1 = arith.constant 1 : index
    %12 = vector.load %arg9[%c0_15, %c1] : memref<8x658xf32, #tpu.memory_space<vmem>>, vector<4x512xf32>
    %c1_16 = arith.constant 1 : index
    %c0_17 = arith.constant 0 : index
    %13 = vector.load %arg6[%c1_16, %c0_17] : memref<27x512xf32, #tpu.memory_space<vmem>>, vector<1x512xf32>
    %14 = vector.broadcast %13 : vector<1x512xf32> to vector<4x512xf32>
    %15 = arith.mulf %12, %14 : vector<4x512xf32>
    %c4 = arith.constant 4 : index
    %c0_18 = arith.constant 0 : index
    %16 = vector.load %arg10[%c4, %c0_18] : memref<216x512xf32, #tpu.memory_space<vmem>>, vector<4x512xf32>
    tpu.vector_store %arg10[%c4, %c0_18], %15 {strides = array<i32>} : memref<216x512xf32, #tpu.memory_space<vmem>>, vector<4x512xf32>,
    %c0_19 = arith.constant 0 : index
    %c2 = arith.constant 2 : index
    %17 = vector.load %arg9[%c0_19, %c2] : memref<8x658xf32, #tpu.memory_space<vmem>>, vector<4x512xf32>
    %c2_20 = arith.constant 2 : index
    %c0_21 = arith.constant 0 : index
    %18 = vector.load %arg6[%c2_20, %c0_21] : memref<27x512xf32, #tpu.memory_space<vmem>>, vector<1x512xf32>
    %19 = vector.broadcast %18 : vector<1x512xf32> to vector<4x512xf32>
    %20 = arith.mulf %17, %19 : vector<4x512xf32>
    %c8 = arith.constant 8 : index
    %c0_22 = arith.constant 0 : index
    %21 = vector.load %arg10[%c8, %c0_22] : memref<216x512xf32, #tpu.memory_space<vmem>>, vector<4x512xf32>
    tpu.vector_store %arg10[%c8, %c0_22], %20 {strides = array<i32>} : memref<216x512xf32, #tpu.memory_space<vmem>>, vector<4x512xf32>,
    %c0_23 = arith.constant 0 : index
    %c8_24 = arith.constant 8 : index
    %22 = vector.load %arg9[%c0_23, %c8_24] : memref<8x658xf32, #tpu.memory_space<vmem>>, vector<4x512xf32>
    %c3 = arith.constant 3 : index
    %c0_25 = arith.constant 0 : index
    %23 = vector.load %arg6[%c3, %c0_25] : memref<27x512xf32, #tpu.memory_space<vmem>>, vector<1x512xf32>
    %24 = vector.broadcast %23 : vector<1x512xf32> to vector<4x512xf32>
    %25 = arith.mulf %22, %24 : vector<4x512xf32>
    %c12 = arith.constant 12 : index
    %c0_26 = arith.constant 0 : index
    %26 = vector.load %arg10[%c12, %c0_26] : memref<216x512xf32, #tpu.memory_space<vmem>>, vector<4x512xf32>
    tpu.vector_store %arg10[%c12, %c0_26], %25 {strides = array<i32>} : memref<216x512xf32, #tpu.memory_space<vmem>>, vector<4x512xf32>,
    %c0_27 = arith.constant 0 : index
    %c9 = arith.constant 9 : index
    %27 = vector.load %arg9[%c0_27, %c9] : memref<8x658xf32, #tpu.memory_space<vmem>>, vector<4x512xf32>
    %c4_28 = arith.constant 4 : index
    %c0_29 = arith.constant 0 : index
    %28 = vector.load %arg6[%c4_28, %c0_29] : memref<27x512xf32, #tpu.memory_space<vmem>>, vector<1x512xf32>
    %29 = vector.broadcast %28 : vector<1x512xf32> to vector<4x512xf32>
    %30 = arith.mulf %27, %29 : vector<4x512xf32>
    %c16 = arith.constant 16 : index
    %c0_30 = arith.constant 0 : index
    %31 = vector.load %arg10[%c16, %c0_30] : memref<216x512xf32, #tpu.memory_space<vmem>>, vector<4x512xf32>
    tpu.vector_store %arg10[%c16, %c0_30], %30 {strides = array<i32>} : memref<216x512xf32, #tpu.memory_space<vmem>>, vector<4x512xf32>,
    %c0_31 = arith.constant 0 : index
    %c10 = arith.constant 10 : index
    %32 = vector.load %arg9[%c0_31, %c10] : memref<8x658xf32, #tpu.memory_space<vmem>>, vector<4x512xf32>
    %c5 = arith.constant 5 : index
    %c0_32 = arith.constant 0 : index
    %33 = vector.load %arg6[%c5, %c0_32] : memref<27x512xf32, #tpu.memory_space<vmem>>, vector<1x512xf32>
    %34 = vector.broadcast %33 : vector<1x512xf32> to vector<4x512xf32>
    %35 = arith.mulf %32, %34 : vector<4x512xf32>
    %c20 = arith.constant 20 : index
    %c0_33 = arith.constant 0 : index
    %36 = vector.load %arg10[%c20, %c0_33] : memref<216x512xf32, #tpu.memory_space<vmem>>, vector<4x512xf32>
    tpu.vector_store %arg10[%c20, %c0_33], %35 {strides = array<i32>} : memref<216x512xf32, #tpu.memory_space<vmem>>, vector<4x512xf32>,
    %c0_34 = arith.constant 0 : index
    %c16_35 = arith.constant 16 : index
    %37 = vector.load %arg9[%c0_34, %c16_35] : memref<8x658xf32, #tpu.memory_space<vmem>>, vector<4x512xf32>
    %c6 = arith.constant 6 : index
    %c0_36 = arith.constant 0 : index
    %38 = vector.load %arg6[%c6, %c0_36] : memref<27x512xf32, #tpu.memory_space<vmem>>, vector<1x512xf32>
    %39 = vector.broadcast %38 : vector<1x512xf32> to vector<4x512xf32>
    %40 = arith.mulf %37, %39 : vector<4x512xf32>
    %c24 = arith.constant 24 : index
    %c0_37 = arith.constant 0 : index
    %41 = vector.load %arg10[%c24, %c0_37] : memref<216x512xf32, #tpu.memory_space<vmem>>, vector<4x512xf32>
    tpu.vector_store %arg10[%c24, %c0_37], %40 {strides = array<i32>} : memref<216x512xf32, #tpu.memory_space<vmem>>, vector<4x512xf32>,
    %c0_38 = arith.constant 0 : index
    %c17 = arith.constant 17 : index
    %42 = vector.load %arg9[%c0_38, %c17] : memref<8x658xf32, #tpu.memory_space<vmem>>, vector<4x512xf32>
    %c7 = arith.constant 7 : index
    %c0_39 = arith.constant 0 : index
    %43 = vector.load %arg6[%c7, %c0_39] : memref<27x512xf32, #tpu.memory_space<vmem>>, vector<1x512xf32>
    %44 = vector.broadcast %43 : vector<1x512xf32> to vector<4x512xf32>
    %45 = arith.mulf %42, %44 : vector<4x512xf32>
    %c28 = arith.constant 28 : index
    %c0_40 = arith.constant 0 : index
    %46 = vector.load %arg10[%c28, %c0_40] : memref<216x512xf32, #tpu.memory_space<vmem>>, vector<4x512xf32>
    tpu.vector_store %arg10[%c28, %c0_40], %45 {strides = array<i32>} : memref<216x512xf32, #tpu.memory_space<vmem>>, vector<4x512xf32>,
    %c0_41 = arith.constant 0 : index
    %c18 = arith.constant 18 : index
    %47 = vector.load %arg9[%c0_41, %c18] : memref<8x658xf32, #tpu.memory_space<vmem>>, vector<4x512xf32>
    %c8_42 = arith.constant 8 : index
    %c0_43 = arith.constant 0 : index
    %48 = vector.load %arg6[%c8_42, %c0_43] : memref<27x512xf32, #tpu.memory_space<vmem>>, vector<1x512xf32>
    %49 = vector.broadcast %48 : vector<1x512xf32> to vector<4x512xf32>
    %50 = arith.mulf %47, %49 : vector<4x512xf32>
    %c32 = arith.constant 32 : index
    %c0_44 = arith.constant 0 : index
    %51 = vector.load %arg10[%c32, %c0_44] : memref<216x512xf32, #tpu.memory_space<vmem>>, vector<4x512xf32>
    tpu.vector_store %arg10[%c32, %c0_44], %50 {strides = array<i32>} : memref<216x512xf32, #tpu.memory_space<vmem>>, vector<4x512xf32>,
    %c0_45 = arith.constant 0 : index
    %c64 = arith.constant 64 : index
    %52 = vector.load %arg9[%c0_45, %c64] : memref<8x658xf32, #tpu.memory_space<vmem>>, vector<4x512xf32>
    %c9_46 = arith.constant 9 : index
    %c0_47 = arith.constant 0 : index
    %53 = vector.load %arg6[%c9_46, %c0_47] : memref<27x512xf32, #tpu.memory_space<vmem>>, vector<1x512xf32>
    %54 = vector.broadcast %53 : vector<1x512xf32> to vector<4x512xf32>
    %55 = arith.mulf %52, %54 : vector<4x512xf32>
    %c36 = arith.constant 36 : index
    %c0_48 = arith.constant 0 : index
    %56 = vector.load %arg10[%c36, %c0_48] : memref<216x512xf32, #tpu.memory_space<vmem>>, vector<4x512xf32>
    tpu.vector_store %arg10[%c36, %c0_48], %55 {strides = array<i32>} : memref<216x512xf32, #tpu.memory_space<vmem>>, vector<4x512xf32>,
    %c0_49 = arith.constant 0 : index
    %c65 = arith.constant 65 : index
    %57 = vector.load %arg9[%c0_49, %c65] : memref<8x658xf32, #tpu.memory_space<vmem>>, vector<4x512xf32>
    %c10_50 = arith.constant 10 : index
    %c0_51 = arith.constant 0 : index
    %58 = vector.load %arg6[%c10_50, %c0_51] : memref<27x512xf32, #tpu.memory_space<vmem>>, vector<1x512xf32>
    %59 = vector.broadcast %58 : vector<1x512xf32> to vector<4x512xf32>
    %60 = arith.mulf %57, %59 : vector<4x512xf32>
    %c40 = arith.constant 40 : index
    %c0_52 = arith.constant 0 : index
    %61 = vector.load %arg10[%c40, %c0_52] : memref<216x512xf32, #tpu.memory_space<vmem>>, vector<4x512xf32>
    tpu.vector_store %arg10[%c40, %c0_52], %60 {strides = array<i32>} : memref<216x512xf32, #tpu.memory_space<vmem>>, vector<4x512xf32>,
    %c0_53 = arith.constant 0 : index
    %c66 = arith.constant 66 : index
    %62 = vector.load %arg9[%c0_53, %c66] : memref<8x658xf32, #tpu.memory_space<vmem>>, vector<4x512xf32>
    %c11 = arith.constant 11 : index
    %c0_54 = arith.constant 0 : index
    %63 = vector.load %arg6[%c11, %c0_54] : memref<27x512xf32, #tpu.memory_space<vmem>>, vector<1x512xf32>
    %64 = vector.broadcast %63 : vector<1x512xf32> to vector<4x512xf32>
    %65 = arith.mulf %62, %64 : vector<4x512xf32>
    %c44 = arith.constant 44 : index
    %c0_55 = arith.constant 0 : index
    %66 = vector.load %arg10[%c44, %c0_55] : memref<216x512xf32, #tpu.memory_space<vmem>>, vector<4x512xf32>
    tpu.vector_store %arg10[%c44, %c0_55], %65 {strides = array<i32>} : memref<216x512xf32, #tpu.memory_space<vmem>>, vector<4x512xf32>,
    %c0_56 = arith.constant 0 : index
    %c72 = arith.constant 72 : index
    %67 = vector.load %arg9[%c0_56, %c72] : memref<8x658xf32, #tpu.memory_space<vmem>>, vector<4x512xf32>
    %c12_57 = arith.constant 12 : index
    %c0_58 = arith.constant 0 : index
    %68 = vector.load %arg6[%c12_57, %c0_58] : memref<27x512xf32, #tpu.memory_space<vmem>>, vector<1x512xf32>
    %69 = vector.broadcast %68 : vector<1x512xf32> to vector<4x512xf32>
    %70 = arith.mulf %67, %69 : vector<4x512xf32>
    %c48 = arith.constant 48 : index
    %c0_59 = arith.constant 0 : index
    %71 = vector.load %arg10[%c48, %c0_59] : memref<216x512xf32, #tpu.memory_space<vmem>>, vector<4x512xf32>
    tpu.vector_store %arg10[%c48, %c0_59], %70 {strides = array<i32>} : memref<216x512xf32, #tpu.memory_space<vmem>>, vector<4x512xf32>,
    %c0_60 = arith.constant 0 : index
    %c73_61 = arith.constant 73 : index
    %72 = vector.load %arg9[%c0_60, %c73_61] : memref<8x658xf32, #tpu.memory_space<vmem>>, vector<4x512xf32>
    %c13 = arith.constant 13 : index
    %c0_62 = arith.constant 0 : index
    %73 = vector.load %arg6[%c13, %c0_62] : memref<27x512xf32, #tpu.memory_space<vmem>>, vector<1x512xf32>
    %74 = vector.broadcast %73 : vector<1x512xf32> to vector<4x512xf32>
    %75 = arith.mulf %72, %74 : vector<4x512xf32>
    %c52 = arith.constant 52 : index
    %c0_63 = arith.constant 0 : index
    %76 = vector.load %arg10[%c52, %c0_63] : memref<216x512xf32, #tpu.memory_space<vmem>>, vector<4x512xf32>
    tpu.vector_store %arg10[%c52, %c0_63], %75 {strides = array<i32>} : memref<216x512xf32, #tpu.memory_space<vmem>>, vector<4x512xf32>,
    %c0_64 = arith.constant 0 : index
    %c74 = arith.constant 74 : index
    %77 = vector.load %arg9[%c0_64, %c74] : memref<8x658xf32, #tpu.memory_space<vmem>>, vector<4x512xf32>
    %c14 = arith.constant 14 : index
    %c0_65 = arith.constant 0 : index
    %78 = vector.load %arg6[%c14, %c0_65] : memref<27x512xf32, #tpu.memory_space<vmem>>, vector<1x512xf32>
    %79 = vector.broadcast %78 : vector<1x512xf32> to vector<4x512xf32>
    %80 = arith.mulf %77, %79 : vector<4x512xf32>
    %c56 = arith.constant 56 : index
    %c0_66 = arith.constant 0 : index
    %81 = vector.load %arg10[%c56, %c0_66] : memref<216x512xf32, #tpu.memory_space<vmem>>, vector<4x512xf32>
    tpu.vector_store %arg10[%c56, %c0_66], %80 {strides = array<i32>} : memref<216x512xf32, #tpu.memory_space<vmem>>, vector<4x512xf32>,
    %c0_67 = arith.constant 0 : index
    %c80 = arith.constant 80 : index
    %82 = vector.load %arg9[%c0_67, %c80] : memref<8x658xf32, #tpu.memory_space<vmem>>, vector<4x512xf32>
    %c15 = arith.constant 15 : index
    %c0_68 = arith.constant 0 : index
    %83 = vector.load %arg6[%c15, %c0_68] : memref<27x512xf32, #tpu.memory_space<vmem>>, vector<1x512xf32>
    %84 = vector.broadcast %83 : vector<1x512xf32> to vector<4x512xf32>
    %85 = arith.mulf %82, %84 : vector<4x512xf32>
    %c60 = arith.constant 60 : index
    %c0_69 = arith.constant 0 : index
    %86 = vector.load %arg10[%c60, %c0_69] : memref<216x512xf32, #tpu.memory_space<vmem>>, vector<4x512xf32>
    tpu.vector_store %arg10[%c60, %c0_69], %85 {strides = array<i32>} : memref<216x512xf32, #tpu.memory_space<vmem>>, vector<4x512xf32>,
    %c0_70 = arith.constant 0 : index
    %c81 = arith.constant 81 : index
    %87 = vector.load %arg9[%c0_70, %c81] : memref<8x658xf32, #tpu.memory_space<vmem>>, vector<4x512xf32>
    %c16_71 = arith.constant 16 : index
    %c0_72 = arith.constant 0 : index
    %88 = vector.load %arg6[%c16_71, %c0_72] : memref<27x512xf32, #tpu.memory_space<vmem>>, vector<1x512xf32>
    %89 = vector.broadcast %88 : vector<1x512xf32> to vector<4x512xf32>
    %90 = arith.mulf %87, %89 : vector<4x512xf32>
    %c64_73 = arith.constant 64 : index
    %c0_74 = arith.constant 0 : index
    %91 = vector.load %arg10[%c64_73, %c0_74] : memref<216x512xf32, #tpu.memory_space<vmem>>, vector<4x512xf32>
    tpu.vector_store %arg10[%c64_73, %c0_74], %90 {strides = array<i32>} : memref<216x512xf32, #tpu.memory_space<vmem>>, vector<4x512xf32>,
    %c0_75 = arith.constant 0 : index
    %c82 = arith.constant 82 : index
    %92 = vector.load %arg9[%c0_75, %c82] : memref<8x658xf32, #tpu.memory_space<vmem>>, vector<4x512xf32>
    %c17_76 = arith.constant 17 : index
    %c0_77 = arith.constant 0 : index
    %93 = vector.load %arg6[%c17_76, %c0_77] : memref<27x512xf32, #tpu.memory_space<vmem>>, vector<1x512xf32>
    %94 = vector.broadcast %93 : vector<1x512xf32> to vector<4x512xf32>
    %95 = arith.mulf %92, %94 : vector<4x512xf32>
    %c68 = arith.constant 68 : index
    %c0_78 = arith.constant 0 : index
    %96 = vector.load %arg10[%c68, %c0_78] : memref<216x512xf32, #tpu.memory_space<vmem>>, vector<4x512xf32>
    tpu.vector_store %arg10[%c68, %c0_78], %95 {strides = array<i32>} : memref<216x512xf32, #tpu.memory_space<vmem>>, vector<4x512xf32>,
    %c0_79 = arith.constant 0 : index
    %c128 = arith.constant 128 : index
    %97 = vector.load %arg9[%c0_79, %c128] : memref<8x658xf32, #tpu.memory_space<vmem>>, vector<4x512xf32>
    %c18_80 = arith.constant 18 : index
    %c0_81 = arith.constant 0 : index
    %98 = vector.load %arg6[%c18_80, %c0_81] : memref<27x512xf32, #tpu.memory_space<vmem>>, vector<1x512xf32>
    %99 = vector.broadcast %98 : vector<1x512xf32> to vector<4x512xf32>
    %100 = arith.mulf %97, %99 : vector<4x512xf32>
    %c72_82 = arith.constant 72 : index
    %c0_83 = arith.constant 0 : index
    %101 = vector.load %arg10[%c72_82, %c0_83] : memref<216x512xf32, #tpu.memory_space<vmem>>, vector<4x512xf32>
    tpu.vector_store %arg10[%c72_82, %c0_83], %100 {strides = array<i32>} : memref<216x512xf32, #tpu.memory_space<vmem>>, vector<4x512xf32>,
    %c0_84 = arith.constant 0 : index
    %c129 = arith.constant 129 : index
    %102 = vector.load %arg9[%c0_84, %c129] : memref<8x658xf32, #tpu.memory_space<vmem>>, vector<4x512xf32>
    %c19 = arith.constant 19 : index
    %c0_85 = arith.constant 0 : index
    %103 = vector.load %arg6[%c19, %c0_85] : memref<27x512xf32, #tpu.memory_space<vmem>>, vector<1x512xf32>
    %104 = vector.broadcast %103 : vector<1x512xf32> to vector<4x512xf32>
    %105 = arith.mulf %102, %104 : vector<4x512xf32>
    %c76 = arith.constant 76 : index
    %c0_86 = arith.constant 0 : index
    %106 = vector.load %arg10[%c76, %c0_86] : memref<216x512xf32, #tpu.memory_space<vmem>>, vector<4x512xf32>
    tpu.vector_store %arg10[%c76, %c0_86], %105 {strides = array<i32>} : memref<216x512xf32, #tpu.memory_space<vmem>>, vector<4x512xf32>,
    %c0_87 = arith.constant 0 : index
    %c130 = arith.constant 130 : index
    %107 = vector.load %arg9[%c0_87, %c130] : memref<8x658xf32, #tpu.memory_space<vmem>>, vector<4x512xf32>
    %c20_88 = arith.constant 20 : index
    %c0_89 = arith.constant 0 : index
    %108 = vector.load %arg6[%c20_88, %c0_89] : memref<27x512xf32, #tpu.memory_space<vmem>>, vector<1x512xf32>
    %109 = vector.broadcast %108 : vector<1x512xf32> to vector<4x512xf32>
    %110 = arith.mulf %107, %109 : vector<4x512xf32>
    %c80_90 = arith.constant 80 : index
    %c0_91 = arith.constant 0 : index
    %111 = vector.load %arg10[%c80_90, %c0_91] : memref<216x512xf32, #tpu.memory_space<vmem>>, vector<4x512xf32>
    tpu.vector_store %arg10[%c80_90, %c0_91], %110 {strides = array<i32>} : memref<216x512xf32, #tpu.memory_space<vmem>>, vector<4x512xf32>,
    %c0_92 = arith.constant 0 : index
    %c136 = arith.constant 136 : index
    %112 = vector.load %arg9[%c0_92, %c136] : memref<8x658xf32, #tpu.memory_space<vmem>>, vector<4x512xf32>
    %c21 = arith.constant 21 : index
    %c0_93 = arith.constant 0 : index
    %113 = vector.load %arg6[%c21, %c0_93] : memref<27x512xf32, #tpu.memory_space<vmem>>, vector<1x512xf32>
    %114 = vector.broadcast %113 : vector<1x512xf32> to vector<4x512xf32>
    %115 = arith.mulf %112, %114 : vector<4x512xf32>
    %c84 = arith.constant 84 : index
    %c0_94 = arith.constant 0 : index
    %116 = vector.load %arg10[%c84, %c0_94] : memref<216x512xf32, #tpu.memory_space<vmem>>, vector<4x512xf32>
    tpu.vector_store %arg10[%c84, %c0_94], %115 {strides = array<i32>} : memref<216x512xf32, #tpu.memory_space<vmem>>, vector<4x512xf32>,
    %c0_95 = arith.constant 0 : index
    %c137 = arith.constant 137 : index
    %117 = vector.load %arg9[%c0_95, %c137] : memref<8x658xf32, #tpu.memory_space<vmem>>, vector<4x512xf32>
    %c22 = arith.constant 22 : index
    %c0_96 = arith.constant 0 : index
    %118 = vector.load %arg6[%c22, %c0_96] : memref<27x512xf32, #tpu.memory_space<vmem>>, vector<1x512xf32>
    %119 = vector.broadcast %118 : vector<1x512xf32> to vector<4x512xf32>
    %120 = arith.mulf %117, %119 : vector<4x512xf32>
    %c88 = arith.constant 88 : index
    %c0_97 = arith.constant 0 : index
    %121 = vector.load %arg10[%c88, %c0_97] : memref<216x512xf32, #tpu.memory_space<vmem>>, vector<4x512xf32>
    tpu.vector_store %arg10[%c88, %c0_97], %120 {strides = array<i32>} : memref<216x512xf32, #tpu.memory_space<vmem>>, vector<4x512xf32>,
    %c0_98 = arith.constant 0 : index
    %c138 = arith.constant 138 : index
    %122 = vector.load %arg9[%c0_98, %c138] : memref<8x658xf32, #tpu.memory_space<vmem>>, vector<4x512xf32>
    %c23 = arith.constant 23 : index
    %c0_99 = arith.constant 0 : index
    %123 = vector.load %arg6[%c23, %c0_99] : memref<27x512xf32, #tpu.memory_space<vmem>>, vector<1x512xf32>
    %124 = vector.broadcast %123 : vector<1x512xf32> to vector<4x512xf32>
    %125 = arith.mulf %122, %124 : vector<4x512xf32>
    %c92 = arith.constant 92 : index
    %c0_100 = arith.constant 0 : index
    %126 = vector.load %arg10[%c92, %c0_100] : memref<216x512xf32, #tpu.memory_space<vmem>>, vector<4x512xf32>
    tpu.vector_store %arg10[%c92, %c0_100], %125 {strides = array<i32>} : memref<216x512xf32, #tpu.memory_space<vmem>>, vector<4x512xf32>,
    %c0_101 = arith.constant 0 : index
    %c144 = arith.constant 144 : index
    %127 = vector.load %arg9[%c0_101, %c144] : memref<8x658xf32, #tpu.memory_space<vmem>>, vector<4x512xf32>
    %c24_102 = arith.constant 24 : index
    %c0_103 = arith.constant 0 : index
    %128 = vector.load %arg6[%c24_102, %c0_103] : memref<27x512xf32, #tpu.memory_space<vmem>>, vector<1x512xf32>
    %129 = vector.broadcast %128 : vector<1x512xf32> to vector<4x512xf32>
    %130 = arith.mulf %127, %129 : vector<4x512xf32>
    %c96 = arith.constant 96 : index
    %c0_104 = arith.constant 0 : index
    %131 = vector.load %arg10[%c96, %c0_104] : memref<216x512xf32, #tpu.memory_space<vmem>>, vector<4x512xf32>
    tpu.vector_store %arg10[%c96, %c0_104], %130 {strides = array<i32>} : memref<216x512xf32, #tpu.memory_space<vmem>>, vector<4x512xf32>,
    %c0_105 = arith.constant 0 : index
    %c145 = arith.constant 145 : index
    %132 = vector.load %arg9[%c0_105, %c145] : memref<8x658xf32, #tpu.memory_space<vmem>>, vector<4x512xf32>
    %c25 = arith.constant 25 : index
    %c0_106 = arith.constant 0 : index
    %133 = vector.load %arg6[%c25, %c0_106] : memref<27x512xf32, #tpu.memory_space<vmem>>, vector<1x512xf32>
    %134 = vector.broadcast %133 : vector<1x512xf32> to vector<4x512xf32>
    %135 = arith.mulf %132, %134 : vector<4x512xf32>
    %c100 = arith.constant 100 : index
    %c0_107 = arith.constant 0 : index
    %136 = vector.load %arg10[%c100, %c0_107] : memref<216x512xf32, #tpu.memory_space<vmem>>, vector<4x512xf32>
    tpu.vector_store %arg10[%c100, %c0_107], %135 {strides = array<i32>} : memref<216x512xf32, #tpu.memory_space<vmem>>, vector<4x512xf32>,
    %c0_108 = arith.constant 0 : index
    %c146 = arith.constant 146 : index
    %137 = vector.load %arg9[%c0_108, %c146] : memref<8x658xf32, #tpu.memory_space<vmem>>, vector<4x512xf32>
    %c26 = arith.constant 26 : index
    %c0_109 = arith.constant 0 : index
    %138 = vector.load %arg6[%c26, %c0_109] : memref<27x512xf32, #tpu.memory_space<vmem>>, vector<1x512xf32>
    %139 = vector.broadcast %138 : vector<1x512xf32> to vector<4x512xf32>
    %140 = arith.mulf %137, %139 : vector<4x512xf32>
    %c104 = arith.constant 104 : index
    %c0_110 = arith.constant 0 : index
    %141 = vector.load %arg10[%c104, %c0_110] : memref<216x512xf32, #tpu.memory_space<vmem>>, vector<4x512xf32>
    tpu.vector_store %arg10[%c104, %c0_110], %140 {strides = array<i32>} : memref<216x512xf32, #tpu.memory_space<vmem>>, vector<4x512xf32>,
    %c0_111 = arith.constant 0 : index
    %c0_112 = arith.constant 0 : index
    %142 = vector.load %arg10[%c0_111, %c0_112] : memref<216x512xf32, #tpu.memory_space<vmem>>, vector<108x512xf32>
    %cst_113 = arith.constant dense<0.000000e+00> : vector<8x512xf32>
    %143 = tpu.matmul %4, %142, %cst_113 {dimension_numbers = #tpu.dot_dimension_numbers<[1], [0], [0], [1], [0, 0, 1, 1], [], []>, precision = #tpu.contract_precision<fp32>} : vector<8x108xf32>, vector<108x512xf32>, vector<8x512xf32> -> vector<8x512xf32>
    %144 = vector.broadcast %5 : vector<8x1xf32> to vector<8x512xf32>
    %145 = arith.addf %143, %144 : vector<8x512xf32>
    %cst_114 = arith.constant 0.000000e+00 : f32
    %146 = vector.broadcast %cst_114 : f32 to vector<8x512xf32>
    %147 = arith.maximumf %145, %146 : vector<8x512xf32>
    %c0_115 = arith.constant 0 : index
    %c0_116 = arith.constant 0 : index
    %148 = vector.load %arg4[%c0_115, %c0_116] : memref<8x216xf32, #tpu.memory_space<vmem>>, vector<8x216xf32>
    %c0_117 = arith.constant 0 : index
    %c0_118 = arith.constant 0 : index
    %149 = vector.load %arg5[%c0_117, %c0_118] : memref<8x1xf32, #tpu.memory_space<vmem>>, vector<8x1xf32>
    %c0_119 = arith.constant 0 : index
    %c73_120 = arith.constant 73 : index
    %150 = vector.load %arg9[%c0_119, %c73_120] : memref<8x658xf32, #tpu.memory_space<vmem>>, vector<8x512xf32>
    tpu.vector_store %arg9[%c0_119, %c73_120], %147 {strides = array<i32>} : memref<8x658xf32, #tpu.memory_space<vmem>>, vector<8x512xf32>,
    %c0_121 = arith.constant 0 : index
    %c0_122 = arith.constant 0 : index
    %151 = vector.load %arg9[%c0_121, %c0_122] : memref<8x658xf32, #tpu.memory_space<vmem>>, vector<8x512xf32>
    %c0_123 = arith.constant 0 : index
    %c0_124 = arith.constant 0 : index
    %152 = vector.load %arg6[%c0_123, %c0_124] : memref<27x512xf32, #tpu.memory_space<vmem>>, vector<1x512xf32>
    %153 = vector.broadcast %152 : vector<1x512xf32> to vector<8x512xf32>
    %154 = arith.mulf %151, %153 : vector<8x512xf32>
    %c0_125 = arith.constant 0 : index
    %c0_126 = arith.constant 0 : index
    %155 = vector.load %arg10[%c0_125, %c0_126] : memref<216x512xf32, #tpu.memory_space<vmem>>, vector<8x512xf32>
    tpu.vector_store %arg10[%c0_125, %c0_126], %154 {strides = array<i32>} : memref<216x512xf32, #tpu.memory_space<vmem>>, vector<8x512xf32>,
    %c0_127 = arith.constant 0 : index
    %c1_128 = arith.constant 1 : index
    %156 = vector.load %arg9[%c0_127, %c1_128] : memref<8x658xf32, #tpu.memory_space<vmem>>, vector<8x512xf32>
    %c1_129 = arith.constant 1 : index
    %c0_130 = arith.constant 0 : index
    %157 = vector.load %arg6[%c1_129, %c0_130] : memref<27x512xf32, #tpu.memory_space<vmem>>, vector<1x512xf32>
    %158 = vector.broadcast %157 : vector<1x512xf32> to vector<8x512xf32>
    %159 = arith.mulf %156, %158 : vector<8x512xf32>
    %c8_131 = arith.constant 8 : index
    %c0_132 = arith.constant 0 : index
    %160 = vector.load %arg10[%c8_131, %c0_132] : memref<216x512xf32, #tpu.memory_space<vmem>>, vector<8x512xf32>
    tpu.vector_store %arg10[%c8_131, %c0_132], %159 {strides = array<i32>} : memref<216x512xf32, #tpu.memory_space<vmem>>, vector<8x512xf32>,
    %c0_133 = arith.constant 0 : index
    %c2_134 = arith.constant 2 : index
    %161 = vector.load %arg9[%c0_133, %c2_134] : memref<8x658xf32, #tpu.memory_space<vmem>>, vector<8x512xf32>
    %c2_135 = arith.constant 2 : index
    %c0_136 = arith.constant 0 : index
    %162 = vector.load %arg6[%c2_135, %c0_136] : memref<27x512xf32, #tpu.memory_space<vmem>>, vector<1x512xf32>
    %163 = vector.broadcast %162 : vector<1x512xf32> to vector<8x512xf32>
    %164 = arith.mulf %161, %163 : vector<8x512xf32>
    %c16_137 = arith.constant 16 : index
    %c0_138 = arith.constant 0 : index
    %165 = vector.load %arg10[%c16_137, %c0_138] : memref<216x512xf32, #tpu.memory_space<vmem>>, vector<8x512xf32>
    tpu.vector_store %arg10[%c16_137, %c0_138], %164 {strides = array<i32>} : memref<216x512xf32, #tpu.memory_space<vmem>>, vector<8x512xf32>,
    %c0_139 = arith.constant 0 : index
    %c8_140 = arith.constant 8 : index
    %166 = vector.load %arg9[%c0_139, %c8_140] : memref<8x658xf32, #tpu.memory_space<vmem>>, vector<8x512xf32>
    %c3_141 = arith.constant 3 : index
    %c0_142 = arith.constant 0 : index
    %167 = vector.load %arg6[%c3_141, %c0_142] : memref<27x512xf32, #tpu.memory_space<vmem>>, vector<1x512xf32>
    %168 = vector.broadcast %167 : vector<1x512xf32> to vector<8x512xf32>
    %169 = arith.mulf %166, %168 : vector<8x512xf32>
    %c24_143 = arith.constant 24 : index
    %c0_144 = arith.constant 0 : index
    %170 = vector.load %arg10[%c24_143, %c0_144] : memref<216x512xf32, #tpu.memory_space<vmem>>, vector<8x512xf32>
    tpu.vector_store %arg10[%c24_143, %c0_144], %169 {strides = array<i32>} : memref<216x512xf32, #tpu.memory_space<vmem>>, vector<8x512xf32>,
    %c0_145 = arith.constant 0 : index
    %c9_146 = arith.constant 9 : index
    %171 = vector.load %arg9[%c0_145, %c9_146] : memref<8x658xf32, #tpu.memory_space<vmem>>, vector<8x512xf32>
    %c4_147 = arith.constant 4 : index
    %c0_148 = arith.constant 0 : index
    %172 = vector.load %arg6[%c4_147, %c0_148] : memref<27x512xf32, #tpu.memory_space<vmem>>, vector<1x512xf32>
    %173 = vector.broadcast %172 : vector<1x512xf32> to vector<8x512xf32>
    %174 = arith.mulf %171, %173 : vector<8x512xf32>
    %c32_149 = arith.constant 32 : index
    %c0_150 = arith.constant 0 : index
    %175 = vector.load %arg10[%c32_149, %c0_150] : memref<216x512xf32, #tpu.memory_space<vmem>>, vector<8x512xf32>
    tpu.vector_store %arg10[%c32_149, %c0_150], %174 {strides = array<i32>} : memref<216x512xf32, #tpu.memory_space<vmem>>, vector<8x512xf32>,
    %c0_151 = arith.constant 0 : index
    %c10_152 = arith.constant 10 : index
    %176 = vector.load %arg9[%c0_151, %c10_152] : memref<8x658xf32, #tpu.memory_space<vmem>>, vector<8x512xf32>
    %c5_153 = arith.constant 5 : index
    %c0_154 = arith.constant 0 : index
    %177 = vector.load %arg6[%c5_153, %c0_154] : memref<27x512xf32, #tpu.memory_space<vmem>>, vector<1x512xf32>
    %178 = vector.broadcast %177 : vector<1x512xf32> to vector<8x512xf32>
    %179 = arith.mulf %176, %178 : vector<8x512xf32>
    %c40_155 = arith.constant 40 : index
    %c0_156 = arith.constant 0 : index
    %180 = vector.load %arg10[%c40_155, %c0_156] : memref<216x512xf32, #tpu.memory_space<vmem>>, vector<8x512xf32>
    tpu.vector_store %arg10[%c40_155, %c0_156], %179 {strides = array<i32>} : memref<216x512xf32, #tpu.memory_space<vmem>>, vector<8x512xf32>,
    %c0_157 = arith.constant 0 : index
    %c16_158 = arith.constant 16 : index
    %181 = vector.load %arg9[%c0_157, %c16_158] : memref<8x658xf32, #tpu.memory_space<vmem>>, vector<8x512xf32>
    %c6_159 = arith.constant 6 : index
    %c0_160 = arith.constant 0 : index
    %182 = vector.load %arg6[%c6_159, %c0_160] : memref<27x512xf32, #tpu.memory_space<vmem>>, vector<1x512xf32>
    %183 = vector.broadcast %182 : vector<1x512xf32> to vector<8x512xf32>
    %184 = arith.mulf %181, %183 : vector<8x512xf32>
    %c48_161 = arith.constant 48 : index
    %c0_162 = arith.constant 0 : index
    %185 = vector.load %arg10[%c48_161, %c0_162] : memref<216x512xf32, #tpu.memory_space<vmem>>, vector<8x512xf32>
    tpu.vector_store %arg10[%c48_161, %c0_162], %184 {strides = array<i32>} : memref<216x512xf32, #tpu.memory_space<vmem>>, vector<8x512xf32>,
    %c0_163 = arith.constant 0 : index
    %c17_164 = arith.constant 17 : index
    %186 = vector.load %arg9[%c0_163, %c17_164] : memref<8x658xf32, #tpu.memory_space<vmem>>, vector<8x512xf32>
    %c7_165 = arith.constant 7 : index
    %c0_166 = arith.constant 0 : index
    %187 = vector.load %arg6[%c7_165, %c0_166] : memref<27x512xf32, #tpu.memory_space<vmem>>, vector<1x512xf32>
    %188 = vector.broadcast %187 : vector<1x512xf32> to vector<8x512xf32>
    %189 = arith.mulf %186, %188 : vector<8x512xf32>
    %c56_167 = arith.constant 56 : index
    %c0_168 = arith.constant 0 : index
    %190 = vector.load %arg10[%c56_167, %c0_168] : memref<216x512xf32, #tpu.memory_space<vmem>>, vector<8x512xf32>
    tpu.vector_store %arg10[%c56_167, %c0_168], %189 {strides = array<i32>} : memref<216x512xf32, #tpu.memory_space<vmem>>, vector<8x512xf32>,
    %c0_169 = arith.constant 0 : index
    %c18_170 = arith.constant 18 : index
    %191 = vector.load %arg9[%c0_169, %c18_170] : memref<8x658xf32, #tpu.memory_space<vmem>>, vector<8x512xf32>
    %c8_171 = arith.constant 8 : index
    %c0_172 = arith.constant 0 : index
    %192 = vector.load %arg6[%c8_171, %c0_172] : memref<27x512xf32, #tpu.memory_space<vmem>>, vector<1x512xf32>
    %193 = vector.broadcast %192 : vector<1x512xf32> to vector<8x512xf32>
    %194 = arith.mulf %191, %193 : vector<8x512xf32>
    %c64_173 = arith.constant 64 : index
    %c0_174 = arith.constant 0 : index
    %195 = vector.load %arg10[%c64_173, %c0_174] : memref<216x512xf32, #tpu.memory_space<vmem>>, vector<8x512xf32>
    tpu.vector_store %arg10[%c64_173, %c0_174], %194 {strides = array<i32>} : memref<216x512xf32, #tpu.memory_space<vmem>>, vector<8x512xf32>,
    %c0_175 = arith.constant 0 : index
    %c64_176 = arith.constant 64 : index
    %196 = vector.load %arg9[%c0_175, %c64_176] : memref<8x658xf32, #tpu.memory_space<vmem>>, vector<8x512xf32>
    %c9_177 = arith.constant 9 : index
    %c0_178 = arith.constant 0 : index
    %197 = vector.load %arg6[%c9_177, %c0_178] : memref<27x512xf32, #tpu.memory_space<vmem>>, vector<1x512xf32>
    %198 = vector.broadcast %197 : vector<1x512xf32> to vector<8x512xf32>
    %199 = arith.mulf %196, %198 : vector<8x512xf32>
    %c72_179 = arith.constant 72 : index
    %c0_180 = arith.constant 0 : index
    %200 = vector.load %arg10[%c72_179, %c0_180] : memref<216x512xf32, #tpu.memory_space<vmem>>, vector<8x512xf32>
    tpu.vector_store %arg10[%c72_179, %c0_180], %199 {strides = array<i32>} : memref<216x512xf32, #tpu.memory_space<vmem>>, vector<8x512xf32>,
    %c0_181 = arith.constant 0 : index
    %c65_182 = arith.constant 65 : index
    %201 = vector.load %arg9[%c0_181, %c65_182] : memref<8x658xf32, #tpu.memory_space<vmem>>, vector<8x512xf32>
    %c10_183 = arith.constant 10 : index
    %c0_184 = arith.constant 0 : index
    %202 = vector.load %arg6[%c10_183, %c0_184] : memref<27x512xf32, #tpu.memory_space<vmem>>, vector<1x512xf32>
    %203 = vector.broadcast %202 : vector<1x512xf32> to vector<8x512xf32>
    %204 = arith.mulf %201, %203 : vector<8x512xf32>
    %c80_185 = arith.constant 80 : index
    %c0_186 = arith.constant 0 : index
    %205 = vector.load %arg10[%c80_185, %c0_186] : memref<216x512xf32, #tpu.memory_space<vmem>>, vector<8x512xf32>
    tpu.vector_store %arg10[%c80_185, %c0_186], %204 {strides = array<i32>} : memref<216x512xf32, #tpu.memory_space<vmem>>, vector<8x512xf32>,
    %c0_187 = arith.constant 0 : index
    %c66_188 = arith.constant 66 : index
    %206 = vector.load %arg9[%c0_187, %c66_188] : memref<8x658xf32, #tpu.memory_space<vmem>>, vector<8x512xf32>
    %c11_189 = arith.constant 11 : index
    %c0_190 = arith.constant 0 : index
    %207 = vector.load %arg6[%c11_189, %c0_190] : memref<27x512xf32, #tpu.memory_space<vmem>>, vector<1x512xf32>
    %208 = vector.broadcast %207 : vector<1x512xf32> to vector<8x512xf32>
    %209 = arith.mulf %206, %208 : vector<8x512xf32>
    %c88_191 = arith.constant 88 : index
    %c0_192 = arith.constant 0 : index
    %210 = vector.load %arg10[%c88_191, %c0_192] : memref<216x512xf32, #tpu.memory_space<vmem>>, vector<8x512xf32>
    tpu.vector_store %arg10[%c88_191, %c0_192], %209 {strides = array<i32>} : memref<216x512xf32, #tpu.memory_space<vmem>>, vector<8x512xf32>,
    %c0_193 = arith.constant 0 : index
    %c72_194 = arith.constant 72 : index
    %211 = vector.load %arg9[%c0_193, %c72_194] : memref<8x658xf32, #tpu.memory_space<vmem>>, vector<8x512xf32>
    %c12_195 = arith.constant 12 : index
    %c0_196 = arith.constant 0 : index
    %212 = vector.load %arg6[%c12_195, %c0_196] : memref<27x512xf32, #tpu.memory_space<vmem>>, vector<1x512xf32>
    %213 = vector.broadcast %212 : vector<1x512xf32> to vector<8x512xf32>
    %214 = arith.mulf %211, %213 : vector<8x512xf32>
    %c96_197 = arith.constant 96 : index
    %c0_198 = arith.constant 0 : index
    %215 = vector.load %arg10[%c96_197, %c0_198] : memref<216x512xf32, #tpu.memory_space<vmem>>, vector<8x512xf32>
    tpu.vector_store %arg10[%c96_197, %c0_198], %214 {strides = array<i32>} : memref<216x512xf32, #tpu.memory_space<vmem>>, vector<8x512xf32>,
    %c0_199 = arith.constant 0 : index
    %c73_200 = arith.constant 73 : index
    %216 = vector.load %arg9[%c0_199, %c73_200] : memref<8x658xf32, #tpu.memory_space<vmem>>, vector<8x512xf32>
    %c13_201 = arith.constant 13 : index
    %c0_202 = arith.constant 0 : index
    %217 = vector.load %arg6[%c13_201, %c0_202] : memref<27x512xf32, #tpu.memory_space<vmem>>, vector<1x512xf32>
    %218 = vector.broadcast %217 : vector<1x512xf32> to vector<8x512xf32>
    %219 = arith.mulf %216, %218 : vector<8x512xf32>
    %c104_203 = arith.constant 104 : index
    %c0_204 = arith.constant 0 : index
    %220 = vector.load %arg10[%c104_203, %c0_204] : memref<216x512xf32, #tpu.memory_space<vmem>>, vector<8x512xf32>
    tpu.vector_store %arg10[%c104_203, %c0_204], %219 {strides = array<i32>} : memref<216x512xf32, #tpu.memory_space<vmem>>, vector<8x512xf32>,
    %c0_205 = arith.constant 0 : index
    %c74_206 = arith.constant 74 : index
    %221 = vector.load %arg9[%c0_205, %c74_206] : memref<8x658xf32, #tpu.memory_space<vmem>>, vector<8x512xf32>
    %c14_207 = arith.constant 14 : index
    %c0_208 = arith.constant 0 : index
    %222 = vector.load %arg6[%c14_207, %c0_208] : memref<27x512xf32, #tpu.memory_space<vmem>>, vector<1x512xf32>
    %223 = vector.broadcast %222 : vector<1x512xf32> to vector<8x512xf32>
    %224 = arith.mulf %221, %223 : vector<8x512xf32>
    %c112 = arith.constant 112 : index
    %c0_209 = arith.constant 0 : index
    %225 = vector.load %arg10[%c112, %c0_209] : memref<216x512xf32, #tpu.memory_space<vmem>>, vector<8x512xf32>
    tpu.vector_store %arg10[%c112, %c0_209], %224 {strides = array<i32>} : memref<216x512xf32, #tpu.memory_space<vmem>>, vector<8x512xf32>,
    %c0_210 = arith.constant 0 : index
    %c80_211 = arith.constant 80 : index
    %226 = vector.load %arg9[%c0_210, %c80_211] : memref<8x658xf32, #tpu.memory_space<vmem>>, vector<8x512xf32>
    %c15_212 = arith.constant 15 : index
    %c0_213 = arith.constant 0 : index
    %227 = vector.load %arg6[%c15_212, %c0_213] : memref<27x512xf32, #tpu.memory_space<vmem>>, vector<1x512xf32>
    %228 = vector.broadcast %227 : vector<1x512xf32> to vector<8x512xf32>
    %229 = arith.mulf %226, %228 : vector<8x512xf32>
    %c120 = arith.constant 120 : index
    %c0_214 = arith.constant 0 : index
    %230 = vector.load %arg10[%c120, %c0_214] : memref<216x512xf32, #tpu.memory_space<vmem>>, vector<8x512xf32>
    tpu.vector_store %arg10[%c120, %c0_214], %229 {strides = array<i32>} : memref<216x512xf32, #tpu.memory_space<vmem>>, vector<8x512xf32>,
    %c0_215 = arith.constant 0 : index
    %c81_216 = arith.constant 81 : index
    %231 = vector.load %arg9[%c0_215, %c81_216] : memref<8x658xf32, #tpu.memory_space<vmem>>, vector<8x512xf32>
    %c16_217 = arith.constant 16 : index
    %c0_218 = arith.constant 0 : index
    %232 = vector.load %arg6[%c16_217, %c0_218] : memref<27x512xf32, #tpu.memory_space<vmem>>, vector<1x512xf32>
    %233 = vector.broadcast %232 : vector<1x512xf32> to vector<8x512xf32>
    %234 = arith.mulf %231, %233 : vector<8x512xf32>
    %c128_219 = arith.constant 128 : index
    %c0_220 = arith.constant 0 : index
    %235 = vector.load %arg10[%c128_219, %c0_220] : memref<216x512xf32, #tpu.memory_space<vmem>>, vector<8x512xf32>
    tpu.vector_store %arg10[%c128_219, %c0_220], %234 {strides = array<i32>} : memref<216x512xf32, #tpu.memory_space<vmem>>, vector<8x512xf32>,
    %c0_221 = arith.constant 0 : index
    %c82_222 = arith.constant 82 : index
    %236 = vector.load %arg9[%c0_221, %c82_222] : memref<8x658xf32, #tpu.memory_space<vmem>>, vector<8x512xf32>
    %c17_223 = arith.constant 17 : index
    %c0_224 = arith.constant 0 : index
    %237 = vector.load %arg6[%c17_223, %c0_224] : memref<27x512xf32, #tpu.memory_space<vmem>>, vector<1x512xf32>
    %238 = vector.broadcast %237 : vector<1x512xf32> to vector<8x512xf32>
    %239 = arith.mulf %236, %238 : vector<8x512xf32>
    %c136_225 = arith.constant 136 : index
    %c0_226 = arith.constant 0 : index
    %240 = vector.load %arg10[%c136_225, %c0_226] : memref<216x512xf32, #tpu.memory_space<vmem>>, vector<8x512xf32>
    tpu.vector_store %arg10[%c136_225, %c0_226], %239 {strides = array<i32>} : memref<216x512xf32, #tpu.memory_space<vmem>>, vector<8x512xf32>,
    %c0_227 = arith.constant 0 : index
    %c128_228 = arith.constant 128 : index
    %241 = vector.load %arg9[%c0_227, %c128_228] : memref<8x658xf32, #tpu.memory_space<vmem>>, vector<8x512xf32>
    %c18_229 = arith.constant 18 : index
    %c0_230 = arith.constant 0 : index
    %242 = vector.load %arg6[%c18_229, %c0_230] : memref<27x512xf32, #tpu.memory_space<vmem>>, vector<1x512xf32>
    %243 = vector.broadcast %242 : vector<1x512xf32> to vector<8x512xf32>
    %244 = arith.mulf %241, %243 : vector<8x512xf32>
    %c144_231 = arith.constant 144 : index
    %c0_232 = arith.constant 0 : index
    %245 = vector.load %arg10[%c144_231, %c0_232] : memref<216x512xf32, #tpu.memory_space<vmem>>, vector<8x512xf32>
    tpu.vector_store %arg10[%c144_231, %c0_232], %244 {strides = array<i32>} : memref<216x512xf32, #tpu.memory_space<vmem>>, vector<8x512xf32>,
    %c0_233 = arith.constant 0 : index
    %c129_234 = arith.constant 129 : index
    %246 = vector.load %arg9[%c0_233, %c129_234] : memref<8x658xf32, #tpu.memory_space<vmem>>, vector<8x512xf32>
    %c19_235 = arith.constant 19 : index
    %c0_236 = arith.constant 0 : index
    %247 = vector.load %arg6[%c19_235, %c0_236] : memref<27x512xf32, #tpu.memory_space<vmem>>, vector<1x512xf32>
    %248 = vector.broadcast %247 : vector<1x512xf32> to vector<8x512xf32>
    %249 = arith.mulf %246, %248 : vector<8x512xf32>
    %c152 = arith.constant 152 : index
    %c0_237 = arith.constant 0 : index
    %250 = vector.load %arg10[%c152, %c0_237] : memref<216x512xf32, #tpu.memory_space<vmem>>, vector<8x512xf32>
    tpu.vector_store %arg10[%c152, %c0_237], %249 {strides = array<i32>} : memref<216x512xf32, #tpu.memory_space<vmem>>, vector<8x512xf32>,
    %c0_238 = arith.constant 0 : index
    %c130_239 = arith.constant 130 : index
    %251 = vector.load %arg9[%c0_238, %c130_239] : memref<8x658xf32, #tpu.memory_space<vmem>>, vector<8x512xf32>
    %c20_240 = arith.constant 20 : index
    %c0_241 = arith.constant 0 : index
    %252 = vector.load %arg6[%c20_240, %c0_241] : memref<27x512xf32, #tpu.memory_space<vmem>>, vector<1x512xf32>
    %253 = vector.broadcast %252 : vector<1x512xf32> to vector<8x512xf32>
    %254 = arith.mulf %251, %253 : vector<8x512xf32>
    %c160 = arith.constant 160 : index
    %c0_242 = arith.constant 0 : index
    %255 = vector.load %arg10[%c160, %c0_242] : memref<216x512xf32, #tpu.memory_space<vmem>>, vector<8x512xf32>
    tpu.vector_store %arg10[%c160, %c0_242], %254 {strides = array<i32>} : memref<216x512xf32, #tpu.memory_space<vmem>>, vector<8x512xf32>,
    %c0_243 = arith.constant 0 : index
    %c136_244 = arith.constant 136 : index
    %256 = vector.load %arg9[%c0_243, %c136_244] : memref<8x658xf32, #tpu.memory_space<vmem>>, vector<8x512xf32>
    %c21_245 = arith.constant 21 : index
    %c0_246 = arith.constant 0 : index
    %257 = vector.load %arg6[%c21_245, %c0_246] : memref<27x512xf32, #tpu.memory_space<vmem>>, vector<1x512xf32>
    %258 = vector.broadcast %257 : vector<1x512xf32> to vector<8x512xf32>
    %259 = arith.mulf %256, %258 : vector<8x512xf32>
    %c168 = arith.constant 168 : index
    %c0_247 = arith.constant 0 : index
    %260 = vector.load %arg10[%c168, %c0_247] : memref<216x512xf32, #tpu.memory_space<vmem>>, vector<8x512xf32>
    tpu.vector_store %arg10[%c168, %c0_247], %259 {strides = array<i32>} : memref<216x512xf32, #tpu.memory_space<vmem>>, vector<8x512xf32>,
    %c0_248 = arith.constant 0 : index
    %c137_249 = arith.constant 137 : index
    %261 = vector.load %arg9[%c0_248, %c137_249] : memref<8x658xf32, #tpu.memory_space<vmem>>, vector<8x512xf32>
    %c22_250 = arith.constant 22 : index
    %c0_251 = arith.constant 0 : index
    %262 = vector.load %arg6[%c22_250, %c0_251] : memref<27x512xf32, #tpu.memory_space<vmem>>, vector<1x512xf32>
    %263 = vector.broadcast %262 : vector<1x512xf32> to vector<8x512xf32>
    %264 = arith.mulf %261, %263 : vector<8x512xf32>
    %c176 = arith.constant 176 : index
    %c0_252 = arith.constant 0 : index
    %265 = vector.load %arg10[%c176, %c0_252] : memref<216x512xf32, #tpu.memory_space<vmem>>, vector<8x512xf32>
    tpu.vector_store %arg10[%c176, %c0_252], %264 {strides = array<i32>} : memref<216x512xf32, #tpu.memory_space<vmem>>, vector<8x512xf32>,
    %c0_253 = arith.constant 0 : index
    %c138_254 = arith.constant 138 : index
    %266 = vector.load %arg9[%c0_253, %c138_254] : memref<8x658xf32, #tpu.memory_space<vmem>>, vector<8x512xf32>
    %c23_255 = arith.constant 23 : index
    %c0_256 = arith.constant 0 : index
    %267 = vector.load %arg6[%c23_255, %c0_256] : memref<27x512xf32, #tpu.memory_space<vmem>>, vector<1x512xf32>
    %268 = vector.broadcast %267 : vector<1x512xf32> to vector<8x512xf32>
    %269 = arith.mulf %266, %268 : vector<8x512xf32>
    %c184 = arith.constant 184 : index
    %c0_257 = arith.constant 0 : index
    %270 = vector.load %arg10[%c184, %c0_257] : memref<216x512xf32, #tpu.memory_space<vmem>>, vector<8x512xf32>
    tpu.vector_store %arg10[%c184, %c0_257], %269 {strides = array<i32>} : memref<216x512xf32, #tpu.memory_space<vmem>>, vector<8x512xf32>,
    %c0_258 = arith.constant 0 : index
    %c144_259 = arith.constant 144 : index
    %271 = vector.load %arg9[%c0_258, %c144_259] : memref<8x658xf32, #tpu.memory_space<vmem>>, vector<8x512xf32>
    %c24_260 = arith.constant 24 : index
    %c0_261 = arith.constant 0 : index
    %272 = vector.load %arg6[%c24_260, %c0_261] : memref<27x512xf32, #tpu.memory_space<vmem>>, vector<1x512xf32>
    %273 = vector.broadcast %272 : vector<1x512xf32> to vector<8x512xf32>
    %274 = arith.mulf %271, %273 : vector<8x512xf32>
    %c192 = arith.constant 192 : index
    %c0_262 = arith.constant 0 : index
    %275 = vector.load %arg10[%c192, %c0_262] : memref<216x512xf32, #tpu.memory_space<vmem>>, vector<8x512xf32>
    tpu.vector_store %arg10[%c192, %c0_262], %274 {strides = array<i32>} : memref<216x512xf32, #tpu.memory_space<vmem>>, vector<8x512xf32>,
    %c0_263 = arith.constant 0 : index
    %c145_264 = arith.constant 145 : index
    %276 = vector.load %arg9[%c0_263, %c145_264] : memref<8x658xf32, #tpu.memory_space<vmem>>, vector<8x512xf32>
    %c25_265 = arith.constant 25 : index
    %c0_266 = arith.constant 0 : index
    %277 = vector.load %arg6[%c25_265, %c0_266] : memref<27x512xf32, #tpu.memory_space<vmem>>, vector<1x512xf32>
    %278 = vector.broadcast %277 : vector<1x512xf32> to vector<8x512xf32>
    %279 = arith.mulf %276, %278 : vector<8x512xf32>
    %c200 = arith.constant 200 : index
    %c0_267 = arith.constant 0 : index
    %280 = vector.load %arg10[%c200, %c0_267] : memref<216x512xf32, #tpu.memory_space<vmem>>, vector<8x512xf32>
    tpu.vector_store %arg10[%c200, %c0_267], %279 {strides = array<i32>} : memref<216x512xf32, #tpu.memory_space<vmem>>, vector<8x512xf32>,
    %c0_268 = arith.constant 0 : index
    %c146_269 = arith.constant 146 : index
    %281 = vector.load %arg9[%c0_268, %c146_269] : memref<8x658xf32, #tpu.memory_space<vmem>>, vector<8x512xf32>
    %c26_270 = arith.constant 26 : index
    %c0_271 = arith.constant 0 : index
    %282 = vector.load %arg6[%c26_270, %c0_271] : memref<27x512xf32, #tpu.memory_space<vmem>>, vector<1x512xf32>
    %283 = vector.broadcast %282 : vector<1x512xf32> to vector<8x512xf32>
    %284 = arith.mulf %281, %283 : vector<8x512xf32>
    %c208 = arith.constant 208 : index
    %c0_272 = arith.constant 0 : index
    %285 = vector.load %arg10[%c208, %c0_272] : memref<216x512xf32, #tpu.memory_space<vmem>>, vector<8x512xf32>
    tpu.vector_store %arg10[%c208, %c0_272], %284 {strides = array<i32>} : memref<216x512xf32, #tpu.memory_space<vmem>>, vector<8x512xf32>,
    %c0_273 = arith.constant 0 : index
    %c0_274 = arith.constant 0 : index
    %286 = vector.load %arg10[%c0_273, %c0_274] : memref<216x512xf32, #tpu.memory_space<vmem>>, vector<216x512xf32>
    %cst_275 = arith.constant dense<0.000000e+00> : vector<8x512xf32>
    %287 = tpu.matmul %148, %286, %cst_275 {dimension_numbers = #tpu.dot_dimension_numbers<[1], [0], [0], [1], [0, 0, 1, 1], [], []>, precision = #tpu.contract_precision<fp32>} : vector<8x216xf32>, vector<216x512xf32>, vector<8x512xf32> -> vector<8x512xf32>
    %288 = vector.broadcast %149 : vector<8x1xf32> to vector<8x512xf32>
    %289 = arith.addf %287, %288 : vector<8x512xf32>
    %cst_276 = arith.constant 0.000000e+00 : f32
    %290 = vector.broadcast %cst_276 : f32 to vector<8x512xf32>
    %291 = arith.maximumf %289, %290 : vector<8x512xf32>
    %c0_277 = arith.constant 0 : index
    %c73_278 = arith.constant 73 : index
    %292 = vector.load %arg9[%c0_277, %c73_278] : memref<8x658xf32, #tpu.memory_space<vmem>>, vector<8x512xf32>
    tpu.vector_store %arg9[%c0_277, %c73_278], %291 {strides = array<i32>} : memref<8x658xf32, #tpu.memory_space<vmem>>, vector<8x512xf32>,
    %c0_279 = arith.constant 0 : index
    %c74_280 = arith.constant 74 : index
    %293 = vector.load %arg9[%c0_279, %c74_280] : memref<8x658xf32, #tpu.memory_space<vmem>>, vector<8x512xf32>
    %294 = arith.maximumf %291, %293 : vector<8x512xf32>
    %c0_281 = arith.constant 0 : index
    %c81_282 = arith.constant 81 : index
    %295 = vector.load %arg9[%c0_281, %c81_282] : memref<8x658xf32, #tpu.memory_space<vmem>>, vector<8x512xf32>
    %296 = arith.maximumf %294, %295 : vector<8x512xf32>
    %c0_283 = arith.constant 0 : index
    %c82_284 = arith.constant 82 : index
    %297 = vector.load %arg9[%c0_283, %c82_284] : memref<8x658xf32, #tpu.memory_space<vmem>>, vector<8x512xf32>
    %298 = arith.maximumf %296, %297 : vector<8x512xf32>
    %c0_285 = arith.constant 0 : index
    %c137_286 = arith.constant 137 : index
    %299 = vector.load %arg9[%c0_285, %c137_286] : memref<8x658xf32, #tpu.memory_space<vmem>>, vector<8x512xf32>
    %300 = arith.maximumf %298, %299 : vector<8x512xf32>
    %c0_287 = arith.constant 0 : index
    %c138_288 = arith.constant 138 : index
    %301 = vector.load %arg9[%c0_287, %c138_288] : memref<8x658xf32, #tpu.memory_space<vmem>>, vector<8x512xf32>
    %302 = arith.maximumf %300, %301 : vector<8x512xf32>
    %c0_289 = arith.constant 0 : index
    %c145_290 = arith.constant 145 : index
    %303 = vector.load %arg9[%c0_289, %c145_290] : memref<8x658xf32, #tpu.memory_space<vmem>>, vector<8x512xf32>
    %304 = arith.maximumf %302, %303 : vector<8x512xf32>
    %c0_291 = arith.constant 0 : index
    %c146_292 = arith.constant 146 : index
    %305 = vector.load %arg9[%c0_291, %c146_292] : memref<8x658xf32, #tpu.memory_space<vmem>>, vector<8x512xf32>
    %306 = arith.maximumf %304, %305 : vector<8x512xf32>
    %c0_293 = arith.constant 0 : index
    %c0_294 = arith.constant 0 : index
    %307 = vector.load %arg7[%c0_293, %c0_294] : memref<512x64xf32, #tpu.memory_space<vmem>>, vector<512x64xf32>
    %cst_295 = arith.constant dense<0.000000e+00> : vector<8x64xf32>
    %308 = tpu.matmul %306, %307, %cst_295 {dimension_numbers = #tpu.dot_dimension_numbers<[1], [0], [0], [1], [0, 0, 1, 1], [], []>, precision = #tpu.contract_precision<fp32>} : vector<8x512xf32>, vector<512x64xf32>, vector<8x64xf32> -> vector<8x64xf32>
    %c0_296 = arith.constant 0 : index
    %c0_297 = arith.constant 0 : index
    %c0_298 = arith.constant 0 : index
    %309 = vector.load %arg8[%c0_296, %c0_297, %c0_298] : memref<1x8x64xf32, #tpu.memory_space<vmem>>, vector<1x8x64xf32>
    %310 = vector.shape_cast %309 : vector<1x8x64xf32> to vector<8x64xf32>
    %311 = vector.shape_cast %308 : vector<8x64xf32> to vector<1x8x64xf32>
    tpu.vector_store %arg8[%c0_296, %c0_297, %c0_298], %311 {strides = array<i32>} : memref<1x8x64xf32, #tpu.memory_space<vmem>>, vector<1x8x64xf32>,
    return
  }
  func.func @transform_0(%arg0: i32) -> (i32, i32, i32) {
    %c0_i32 = arith.constant 0 : i32
    %c0_i32_0 = arith.constant 0 : i32
    %c0_i32_1 = arith.constant 0 : i32
    return %arg0, %c0_i32, %c0_i32_0 : i32, i32, i32
  }
  func.func @transform_1(%arg0: i32) -> (i32, i32) {
    %c0_i32 = arith.constant 0 : i32
    %c0_i32_0 = arith.constant 0 : i32
    %c0_i32_1 = arith.constant 0 : i32
    return %c0_i32, %c0_i32_0 : i32, i32
  }
  func.func @transform_2(%arg0: i32) -> (i32, i32) {
    %c0_i32 = arith.constant 0 : i32
    %c0_i32_0 = arith.constant 0 : i32
    %c0_i32_1 = arith.constant 0 : i32
    return %c0_i32, %c0_i32_0 : i32, i32
  }
  func.func @transform_3(%arg0: i32) -> (i32, i32) {
    %c0_i32 = arith.constant 0 : i32
    %c0_i32_0 = arith.constant 0 : i32
    %c0_i32_1 = arith.constant 0 : i32
    return %c0_i32, %c0_i32_0 : i32, i32
  }
  func.func @transform_4(%arg0: i32) -> (i32, i32) {
    %c0_i32 = arith.constant 0 : i32
    %c0_i32_0 = arith.constant 0 : i32
    %c0_i32_1 = arith.constant 0 : i32
    return %c0_i32, %c0_i32_0 : i32, i32
  }
  func.func @transform_5(%arg0: i32) -> (i32, i32) {
    %c0_i32 = arith.constant 0 : i32
    %c0_i32_0 = arith.constant 0 : i32
    %c0_i32_1 = arith.constant 0 : i32
    return %c0_i32, %c0_i32_0 : i32, i32
  }
  func.func @transform_6(%arg0: i32) -> (i32, i32) {
    %c0_i32 = arith.constant 0 : i32
    %c0_i32_0 = arith.constant 0 : i32
    %c0_i32_1 = arith.constant 0 : i32
    return %c0_i32, %c0_i32_0 : i32, i32
  }
  func.func @transform_7(%arg0: i32) -> (i32, i32, i32) {
    %c0_i32 = arith.constant 0 : i32
    %c0_i32_0 = arith.constant 0 : i32
    %c0_i32_1 = arith.constant 0 : i32
    return %arg0, %c0_i32, %c0_i32_0 : i32, i32, i32
  }
}

</mosaic_0001>

<bundles_post_ra>
// kernel: tpu_custom_call.1
= control target key start
LH: loop header
LB: loop body
LE: loop exit
PB: predicated region body
PF: predicated region fallthrough
CT: control target
= control target key end

     0   :  { %s15810_s0 = inlined_call_operand.vmem [shape: f32[2,4,512], index: 0, kind: input, shape index: {}]   ;;  %s15811_s1 = inlined_call_operand.vmem [shape: f32[8,108], index: 1, kind: input, shape index: {}]   ;;  %s15812_s2 = inlined_call_operand.vmem [shape: f32[8,1], index: 2, kind: input, shape index: {}]   ;;  %s15813_s3 = inlined_call_operand.vmem [shape: f32[8,216], index: 3, kind: input, shape index: {}]   ;;  %s15814_s4 = inlined_call_operand.vmem [shape: f32[8,1], index: 4, kind: input, shape index: {}]   ;;  %s15815_s5 = inlined_call_operand.vmem [shape: f32[27,512], index: 5, kind: input, shape index: {}]   ;;  %s15816_s6 = inlined_call_operand.vmem [shape: f32[512,64], index: 6, kind: input, shape index: {}]   ;;  %s15817_s7 = inlined_call_operand.hbm [shape: f32[2,8,64], index: 7, kind: output, shape index: {}]  }
   0x1   :  { %16142 = sst [smem:[#allocation60_spill]] %s15810_s0 }
   0x2   :  { %16143 = sst [smem:[#allocation61_spill]] %s15811_s1 }
   0x3   :  { %16144 = sst [smem:[#allocation62_spill]] %s15812_s2 }
   0x4   :  { %16145 = sst [smem:[#allocation63_spill]] %s15813_s3 }
   0x5   :  { %16146 = sst [smem:[#allocation64_spill]] %s15814_s4 }
   0x6   :  { %16147 = sst [smem:[#allocation65_spill]] %s15815_s5 }
   0x7   :  { %16148 = sst [smem:[#allocation66_spill]] %s15816_s6 }
   0x8   :  { %16149 = sst [smem:[#allocation67_spill]] %s15817_s7 }
   0x9   :  { %12 = vsyncpa [#allocation5], 0 }
   0xa   :  { %14 = vsyncpa [#allocation5 + $0x1], 0  ;;  %s9441_s24 = smov 0   ;;  %s9443_s25 = smov 0  }
   0xb   :  { %s9445_s26 = smov 0   ;;  %s9447_s27 = smov 0  }
   0xc LB: > { %16150 = sst [smem:[#allocation7_spill]] %s9352_s24  ;;  %s9462_s28 = sadd.s32 4294967295, %s9364_s27   ;;  %s9364_s27 = sphi %s9447_s27, %s16750_s27   ;;  %s9360_s26 = sphi %s9445_s26, %s16753_s26   ;;  %s9356_s25 = sphi %s9443_s25, %s16752_s25   ;;  %s9352_s24 = sphi %s9441_s24, %s16751_s24  }
   0xd   : > { %16151 = sst [smem:[#allocation8_spill]] %s9356_s25  ;;  %s9136_s29 = sadd.s32 4294967294, %s9364_s27  }
   0xe   : > { %16152 = sst [smem:[#allocation9_spill]] %s9360_s26  ;;  %s9466_s30 = sadd.s32 1, %s9364_s27  }
   0xf   : > { %16153 = sst [smem:[#allocation10_spill]] %s9364_s27  ;;  %s179_s8 = sadd.s32 1, %s9360_s26 }
  0x10   : > { %16154 = sst [smem:[#allocation11_spill]] %s9462_s28  ;;  %s176_s9 = ssub.s32 %s9364_s27, %s9466_s30 }
  0x11   : > { %16155 = sst [smem:[#allocation12_spill]] %s9466_s30  ;;  %p189_p0 = scmp.ne.s32.totalorder %s9360_s26, %s9356_s25 }
  0x12   : > { %p177_p1 = scmp.eq.s32.totalorder %s176_s9, 0  ;;  %p190_p2 = scmp.eq.s32.totalorder %s9462_s28, 1 }
  0x13   : > { %p195_p3 = scmp.ne.s32.totalorder %s9356_s25, %s9352_s24  ;;  %p196_p4 = scmp.eq.s32.totalorder %s9136_s29, 1 }
  0x14   : > { %s9477_s10 = scalar_select %p177_p1, %s9360_s26, %s179_s8  }
  0x15   : > { %p9479_p5 = por %p190_p2, %p189_p0  ;;  %p9483_p6 = por %p196_p4, %p195_p3 }
  0x16   : > { %16156 = sst [smem:[#allocation13_spill]] %s9477_s10  ;;  %p9139_p7 = scmp.ge.s32.totalorder %s9364_s27, 1 }
  0x17   : > { %s16157_s11 = scalar_select %p9479_p5, 1, 0 }
  0x18   : > { %s16159_s12 = scalar_select %p9483_p6, 1, 0 }
  0x19   : > { %16158 = sst [smem:[#allocation14_spill]] %s16157_s11  ;;  %p240_p8 = scmp.lt.s32.totalorder %s9364_s27, 3 }
  0x1a   : > { %16160 = sst [smem:[#allocation15_spill]] %s16159_s12 }
  0x1b   : > { %p241_p9 = pnand %p9139_p7, %p240_p8 }
  0x1d   : > { %244 = sbr.rel (%p241_p9) target bundleno = 4175 (0x104f), region = 48 }
  0x22   : > { %p272_p10 = scmp.lt.s32.totalorder %s9462_s28, 1  ;;  %s16161_s0 = sld [smem:[#allocation60_spill]]  ;;  %v9373_v34 = vmov 0.0   ;;  %vm314_vm0 = vcmask 1044040   ;;  %vm305_vm1 = vcmask 596992   ;;  %vm319_vm2 = vcmask 592896  }
  0x23   : > { %s16162_s5 = sld [smem:[#allocation65_spill]]  ;;  %s15883_s20 = smov 1   ;;  %277 = vst [vmem:[#allocation2] sm:$0xff] %v9373_v34  ;;  %vm430_vm3 = vcmask 15360   ;;  %vm559_vm4 = vcmask 72704   ;;  %vm363_vm5 = vcmask 7168  }
  0x24   : > { %s273_s13 = scalar_select %p272_p10, %s9462_s28, 1  ;;  %278 = vst [vmem:[#allocation2 + $0x8] sm:$0xff] %v9373_v34  ;;  %vm492_vm6 = vcmask 64512   ;;  %vm621_vm7 = vcmask 80896   ;;  %vm688_vm8 = vcmask 130048   ;;  %vm459_vm9 = vcmask 1031168  }
  0x25   : > { %s15878_s21 = smov 73   ;;  %s15818_s29 = smov 2   ;;  %279 = vst [vmem:[#allocation2 + $0x10] sm:$0xff] %v9373_v34  ;;  %vm15834_vm10 = vcmask 973824   ;;  %vm15830_vm11 = vcmask 1039360   ;;  %vm15831_vm12 = vcmask 982016  }
  0x26   : > { %s9199_s14 = sshll.u32 %s273_s13, 4  ;;  %s15820_s13 = smov 8   ;;  %280 = vst [vmem:[#allocation2 + $0x18] sm:$0xff] %v9373_v34  ;;  %vm15937_vm13 = vcmask 965632   ;;  %vm15909_vm14 = vcmask 916480   ;;  %vm750_vm15 = vcmask 138240  }
  0x27   : > { %s15887_s16 = smov 9   ;;  %s15930_s19 = smov 10   ;;  %281 = vst [vmem:[#allocation2 + $0x20] sm:$0xff] %v9373_v34 }
  0x28   : > { %s276_s17 = scalar_lea.vmem %s16161_s0, %s9199_s14  ;;  %s15898_s8 = smov 16  }
  0x29   : > { %v285_v0 = vld [vmem:[%s276_s17 + $0x8] sm:$0xff]  ;;  %v284_v1 = vld [vmem:[%s276_s17] sm:$0xff]  ;;  %s15826_s18 = smov 126   ;;  %s15828_s22 = smov 119  }
  0x2a   : > { %292 = vst [vmem:[#allocation1 + $0x10] ss:$2 sm:$0xff] %v285_v0  ;;  %v9143_v2 = vld [vmem:[%s16162_s5 + $0x1] ss:$8 sm:$0xf]  ;;  %s15822_s23 = smov 127  }
  0x2b   : > { %290 = vst [vmem:[#allocation1] ss:$2 sm:$0xff] %v284_v1  ;;  %v351_v3 = vperm.slane %v9143_v2, 0  ;;  %v352_v6 = vperm.slane %v9143_v2, 1  ;;  %v354_v11 = vperm.slane %v9143_v2, 3  ;;  %v353_v12 = vperm.slane %v9143_v2, 2 }
  0x2c   : > { %v9144_v9 = vld [vmem:[%s16162_s5 + $0x2] ss:$8 sm:$0xf]  ;;  %v9145_v13 = vld [vmem:[%s16162_s5 + $0x3] ss:$8 sm:$0xf] }
  0x2d   : > { %355 = vrot.lane.b32.xlu2 %v351_v3, %s15883_s20  ;;  %v419_v10 = vperm.slane %v9144_v9, 1  ;;  %v481_v14 = vperm.slane %v9145_v13, 1  ;;  %v418_v15 = vperm.slane %v9144_v9, 0  ;;  %v420_v16 = vperm.slane %v9144_v9, 2  ;;  %s15824_s9 = smov 120   ;;  %s15832_s14 = smov 118  }
  0x2e   : > { %v9146_v17 = vld [vmem:[%s16162_s5 + $0x4] ss:$8 sm:$0xf]  ;;  %v421_v19 = vperm.slane %v9144_v9, 3  ;;  %v482_v20 = vperm.slane %v9145_v13, 2  ;;  %v480_v23 = vperm.slane %v9145_v13, 0 }
  0x2f   : > { %v548_v18 = vperm.slane %v9146_v17, 1  ;;  %v9147_v21 = vld [vmem:[%s16162_s5 + $0x5] ss:$8 sm:$0xf]  ;;  %v549_v24 = vperm.slane %v9146_v17, 2  ;;  %v483_v27 = vperm.slane %v9145_v13, 3 }
  0x30   : > { %v610_v22 = vperm.slane %v9147_v21, 1  ;;  %v9148_v25 = vld [vmem:[%s16162_s5 + $0x6] ss:$8 sm:$0xf]  ;;  %v611_v28 = vperm.slane %v9147_v21, 2  ;;  %v547_v29 = vperm.slane %v9146_v17, 0 }
  0x31   : > { %v295_v4 = vld.sshfl [vmem:[#allocation1 + $0x10] sm:$0xff pattern:$0x75316420]  ;;  %v296_v7 = vld.sshfl [vmem:[#allocation1 + $0x18] sm:$0xff pattern:$0x75316420] }
  0x32   : > { %301 = vrot.lane.b32.xlu1 %v295_v4, %s15878_s21  ;;  %v293_v5 = vld.sshfl [vmem:[#allocation1] sm:$0xff pattern:$0x75316420]  ;;  %v294_v8 = vld.sshfl [vmem:[#allocation1 + $0x8] sm:$0xff pattern:$0x75316420] }
  0x33   : > { %297 = vrot.lane.b32.xlu0 %v293_v5, %s15878_s21  ;;  %v677_v26 = vperm.slane %v9148_v25, 1  ;;  %v678_v30 = vperm.slane %v9148_v25, 2  ;;  %v550_v31 = vperm.slane %v9146_v17, 3  ;;  %v609_v32 = vperm.slane %v9147_v21, 0  ;;  %s15896_s15 = smov 112   ;;  %s16167_s17 = smov 126  }
  0x34   : > { %v612_v33 = vperm.slane %v9147_v21, 3  ;;  %v676_v35 = vperm.slane %v9148_v25, 0  ;;  %v679_v36 = vperm.slane %v9148_v25, 3  ;;  %v325_v40 = vld [vmem:[%s16162_s5] ss:$8 sm:$0xf] }
  0x35   : > { %357 = vrot.lane.b32.xlu2 %v352_v6, %s15883_s20  ;;  %v327_v41 = vperm.slane %v325_v40, 0  ;;  %v9160_v48 = vld [vmem:[%s16162_s5 + $0x42] ss:$8 sm:$0xf]  ;;  %v330_v52 = vperm.slane %v325_v40, 3  ;;  %v328_v54 = vperm.slane %v325_v40, 1 }
  0x36   : > { %v1449_v51 = vperm.slane %v9160_v48, 3  ;;  %v1448_v53 = vperm.slane %v9160_v48, 2  ;;  %v1446_v56 = vperm.slane %v9160_v48, 0  ;;  %v329_v61 = vperm.slane %v325_v40, 2  ;;  %s16176_s1 = sld [smem:[#allocation61_spill]]  ;;  %s16233_s0 = smov 74  }
  0x37   : > { %v1447_v62 = vperm.slane %v9160_v48, 1  ;;  %s16191_s2 = sld [smem:[#allocation62_spill]]  ;;  %s16236_s10 = smov 72  }
  0x38   : > { %s16238_s30 = smov 18   ;;  %s16239_s12 = smov 64  }
  0x39   : > { %s16241_s27 = smov 10   ;;  %s16242_s11 = smov 16  }
  0x3a   : > { %303 = vrot.lane.b32.xlu1 %v296_v7, %s15878_s21  ;;  %s16243_s7 = smov 9   ;;  %s16245_s24 = smov 82  }
  0x3b   : > { %299 = vrot.lane.b32.xlu0 %v294_v8, %s15878_s21  ;;  %s16252_s26 = smov 54   ;;  %s16254_s28 = smov 55  }
  0x3c   : > { %s16255_s25 = smov 56   ;;  %s16257_s6 = smov 62  }
  0x3d   : > { %424 = vrot.lane.b32.xlu2 %v419_v10, %s15818_s29  ;;  %s16259_s4 = smov 63   ;;  %s16262_s3 = smov 110  }
  0x42   : > { %361 = vrot.lane.b32.xlu1 %v354_v11, %s15883_s20 }
  0x43   : > { %359 = vrot.lane.b32.xlu0 %v353_v12, %s15883_s20 }
  0x45   : > { %486 = vrot.lane.b32.xlu2 %v481_v14, %s15820_s13 }
  0x4a   : > { %422 = vrot.lane.b32.xlu1 %v418_v15, %s15818_s29 }
  0x4b   : > { %426 = vrot.lane.b32.xlu0 %v420_v16, %s15818_s29 }
  0x4d   : > { %553 = vrot.lane.b32.xlu2 %v548_v18, %s15887_s16 }
  0x52   : > { %428 = vrot.lane.b32.xlu1 %v421_v19, %s15818_s29  ;;  %s15885_s29 = smov 111  }
  0x53   : > { %488 = vrot.lane.b32.xlu0 %v482_v20, %s15820_s13 }
  0x55   : > { %615 = vrot.lane.b32.xlu2 %v610_v22, %s15930_s19 }
  0x5a   : > { %484 = vrot.lane.b32.xlu1 %v480_v23, %s15820_s13 }
  0x5b   : > { %555 = vrot.lane.b32.xlu0 %v549_v24, %s15887_s16 }
  0x5d   : > { %682 = vrot.lane.b32.xlu2 %v677_v26, %s15898_s8 }
  0x62   : > { %490 = vrot.lane.b32.xlu1 %v483_v27, %s15820_s13  ;;  %s15932_s13 = smov 17  }
  0x63   : > { %617 = vrot.lane.b32.xlu0 %v611_v28, %s15930_s19 }
  0x6a   : > { %551 = vrot.lane.b32.xlu1 %v547_v29, %s15887_s16 }
  0x6b   : > { %684 = vrot.lane.b32.xlu0 %v678_v30, %s15898_s8 }
  0x72   : > { %557 = vrot.lane.b32.xlu1 %v550_v31, %s15887_s16 }
  0x7a   : > { %613 = vrot.lane.b32.xlu1 %v609_v32, %s15930_s19 }
  0x82   : > { %619 = vrot.lane.b32.xlu1 %v612_v33, %s15930_s19 }
  0x87   : > { %v9545_v37 = vpop.permute.xlu2 %355 }
  0x8a   : > { %680 = vrot.lane.b32.xlu1 %v676_v35, %s15898_s8 }
  0x8f   : > { %v9551_v46 = vpop.permute.xlu2 %357 }
  0x92   : > { %686 = vrot.lane.b32.xlu1 %v679_v36, %s15898_s8 }
  0x97   : > { %v9562_v5 = vpop.permute.xlu2 %424 }
  0x9f   : > { %v9571_v18 = vpop.permute.xlu2 %486 }
  0xa4   : > { %v302_v38 = vpop.permute.xlu1 %301 }
  0xa5   : > { %v298_v39 = vpop.permute.xlu0 %297 }
  0xa6   : > { %315 = vst.msk [vmem:[#allocation2] sm:$0xf] %vm314_vm0, %v298_v39  ;;  %vm282_vm0 = vcmask 146432  }
  0xa7   : > { %v554_v23 = vpop.permute.xlu2 %553  ;;  %283 = vst.msk [vmem:[#allocation2 + $0x28] sm:$0xff] %vm282_vm0, %v9373_v34 }
  0xac   : > { %v304_v42 = vpop.permute.xlu1 %303 }
  0xad   : > { %v321_v43 = vld [vmem:[#allocation2] sm:$0xf]  ;;  %v308_v44 = vsel %vm305_vm1, %v302_v38, %v304_v42  ;;  %320 = vst.msk [vmem:[#allocation2 + $0x20] sm:$0xf] %vm319_vm2, %v304_v42  ;;  %v300_v45 = vpop.permute.xlu0 %299  ;;  %vm784_vm2 = vcmask 908288  }
  0xae   : > { %v335_v47 = vmul.f32 %v327_v41, %v321_v43  ;;  %318 = vst [vmem:[#allocation2 + $0x18] sm:$0xf] %v308_v44  ;;  %v306_v49 = vsel %vm305_vm1, %v298_v39, %v300_v45  ;;  %v307_v50 = vsel %vm305_vm1, %v300_v45, %v302_v38  ;;  %v410_v11 = vld [vmem:[#allocation2] sm:$0xf] }
  0xaf   : > { %316 = vst [vmem:[#allocation2 + $0x8] sm:$0xf] %v306_v49  ;;  %v539_v36 = vld [vmem:[#allocation2] sm:$0xf]  ;;  %v9595_v41 = vpop.permute.xlu2 %615 }
  0xb0   : > { %339 = vst [vmem:[#allocation3 + $0x2b0] sm:$0xf] %v335_v47 }
  0xb1   : > { %317 = vst [vmem:[#allocation2 + $0x10] sm:$0xf] %v307_v50 }
  0xb4   : > { %v1442_v55 = vld [vmem:[#allocation2 + $0x20] sm:$0xf]  ;;  %v9558_v57 = vpop.permute.xlu1 %361 }
  0xb5   : > { %v324_v58 = vld [vmem:[#allocation2 + $0x18] sm:$0xf]  ;;  %v1457_v60 = vmul.f32 %v1449_v51, %v1442_v55  ;;  %v9560_v63 = vpop.permute.xlu0 %359  ;;  %v414_v19 = vld [vmem:[#allocation2 + $0x20] sm:$0xf] }
  0xb6   : > { %v1441_v59 = vld [vmem:[#allocation2 + $0x18] sm:$0xf]  ;;  %v338_v0 = vmul.f32 %v330_v52, %v324_v58  ;;  %v322_v2 = vld [vmem:[#allocation2 + $0x8] sm:$0xf]  ;;  %v365_v29 = vsel %vm363_vm5, %v9551_v46, %v9560_v63  ;;  %v543_v49 = vld [vmem:[#allocation2 + $0x20] sm:$0xf] }
  0xb7   : > { %v1456_v1 = vmul.f32 %v1448_v53, %v1441_v59  ;;  %v1439_v3 = vld [vmem:[#allocation2 + $0x8] sm:$0xf]  ;;  %1461 = vst [vmem:[#allocation3 + $0xb0] sm:$0xf] %v1457_v60  ;;  %v336_v4 = vmul.f32 %v328_v54, %v322_v2  ;;  %v9605_v53 = vpop.permute.xlu2 %682 }
  0xb8   : > { %342 = vst [vmem:[#allocation3 + $0x48] sm:$0xf] %v338_v0  ;;  %v323_v6 = vld [vmem:[#allocation2 + $0x10] sm:$0xf]  ;;  %v1454_v8 = vmul.f32 %v1446_v56, %v1439_v3  ;;  %v411_v56 = vld [vmem:[#allocation2 + $0x8] sm:$0xf] }
  0xb9   : > { %v1440_v7 = vld [vmem:[#allocation2 + $0x10] sm:$0xf]  ;;  %1460 = vst [vmem:[#allocation3 + $0x2d8] sm:$0xf] %v1456_v1  ;;  %v337_v9 = vmul.f32 %v329_v61, %v323_v6  ;;  %v540_v1 = vld [vmem:[#allocation2 + $0x8] sm:$0xf] }
  0xba   : > { %v1455_v10 = vmul.f32 %v1447_v62, %v1440_v7  ;;  %340 = vst [vmem:[#allocation3 + $0xd0] sm:$0xf] %v336_v4  ;;  %v412_v16 = vld [vmem:[#allocation2 + $0x10] sm:$0xf]  ;;  %v347_v6 = vld [vmem:[#allocation2 + $0x20] sm:$0xf] }
  0xbb   : > { %341 = vst [vmem:[#allocation3 + $0x10] sm:$0xf] %v337_v9  ;;  %v541_v27 = vld [vmem:[#allocation2 + $0x10] sm:$0xf]  ;;  %v376_v7 = vmul.f32 %v9558_v57, %v347_v6  ;;  %v668_v9 = vld [vmem:[#allocation2] sm:$0xf] }
  0xbc   : > { %1458 = vst [vmem:[#allocation3 + $0x1d0] sm:$0xf] %v1454_v8  ;;  %v423_v12 = vpop.permute.xlu1 %422  ;;  %v345_v30 = vld [vmem:[#allocation2 + $0x10] sm:$0xf] }
  0xbd   : > { %1459 = vst [vmem:[#allocation3 + $0x1e0] sm:$0xf] %v1455_v10  ;;  %v439_v13 = vmul.f32 %v423_v12, %v410_v11  ;;  %v9564_v14 = vpop.permute.xlu0 %426  ;;  %v374_v31 = vmul.f32 %v365_v29, %v345_v30  ;;  %v474_v38 = vld [vmem:[#allocation2 + $0x10] sm:$0xf]  ;;  %v431_v55 = vsel %vm430_vm3, %v423_v12, %v9562_v5  ;;  %v386_v11 = vrot.slane %v376_v7, 4 }
  0xbe   : > { %v432_v15 = vsel %vm430_vm3, %v9562_v5, %v9564_v14  ;;  %v603_v47 = vld [vmem:[#allocation2 + $0x10] sm:$0xf]  ;;  %v440_v60 = vmul.f32 %v431_v55, %v411_v56  ;;  %v9623_v2 = vld [vmem:[%s16162_s5 + $0x7] ss:$8 sm:$0xf] }
  0xbf   : > { %449 = vrot.lane.b32.xlu2 %v439_v13, %s15826_s18  ;;  %v441_v17 = vmul.f32 %v432_v15, %v412_v16  ;;  %v384_v33 = vrot.slane %v374_v31, 4  ;;  %v670_v61 = vld [vmem:[#allocation2 + $0x10] sm:$0xf]  ;;  %v738_v5 = vperm.slane %v9623_v2, 0  ;;  %v741_v12 = vperm.slane %v9623_v2, 3 }
  0xc0   : > { %v476_v13 = vld [vmem:[#allocation2 + $0x20] sm:$0xf]  ;;  %v669_v56 = vld [vmem:[#allocation2 + $0x8] sm:$0xf] }
  0xc1   : > { %453 = vrot.lane.b32.xlu1 %v441_v17, %s15826_s18  ;;  %v413_v17 = vld [vmem:[#allocation2 + $0x18] sm:$0xf]  ;;  %v343_v31 = vld [vmem:[#allocation2] sm:$0xf] }
  0xc4   : > { %v9573_v20 = vpop.permute.xlu1 %428 }
  0xc5   : > { %v443_v21 = vmul.f32 %v9573_v20, %v414_v19  ;;  %v9576_v22 = vpop.permute.xlu0 %488  ;;  %v433_v16 = vsel %vm430_vm3, %v9564_v14, %v9573_v20  ;;  %v364_v14 = vsel %vm363_vm5, %v9545_v37, %v9551_v46  ;;  %v344_v20 = vld [vmem:[#allocation2 + $0x8] sm:$0xf] }
  0xc6   : > { %v494_v35 = vsel %vm492_vm6, %v9571_v18, %v9576_v22 }
  0xc7   : > { %457 = vrot.lane.b32.xlu0 %v443_v21, %s15826_s18  ;;  %v503_v39 = vmul.f32 %v494_v35, %v474_v38  ;;  %v442_v21 = vmul.f32 %v433_v16, %v413_v17  ;;  %v373_v35 = vmul.f32 %v364_v14, %v344_v20 }
  0xc9   : > { %v513_v44 = vrot.slane %v503_v39, 4  ;;  %v472_v39 = vld [vmem:[#allocation2] sm:$0xf] }
  0xcc   : > { %v9579_v24 = vpop.permute.xlu1 %484 }
  0xcd   : > { %v9581_v25 = vpop.permute.xlu0 %555  ;;  %v501_v46 = vmul.f32 %v9579_v24, %v472_v39 }
  0xce   : > { %v561_v26 = vsel %vm559_vm4, %v554_v23, %v9581_v25 }
  0xcf   : > { %v570_v28 = vmul.f32 %v561_v26, %v541_v27 }
  0xd1   : > { %582 = vrot.lane.b32.xlu1 %v570_v28, %s15828_s22  ;;  %v542_v28 = vld [vmem:[#allocation2 + $0x18] sm:$0xf] }
  0xd4   : > { %v9589_v32 = vpop.permute.xlu1 %490 }
  0xd5   : > { %v9597_v42 = vpop.permute.xlu0 %617  ;;  %v505_v15 = vmul.f32 %v9589_v32, %v476_v13 }
  0xd6   : > { %v623_v45 = vsel %vm621_vm7, %v9595_v41, %v9597_v42 }
  0xd7   : > { %v632_v48 = vmul.f32 %v623_v45, %v603_v47  ;;  %v515_v19 = vrot.slane %v505_v15, 4  ;;  %v511_v45 = vrot.slane %v501_v46, 4  ;;  %v601_v47 = vld [vmem:[#allocation2] sm:$0xf] }
  0xd9   : > { %391 = vrot.lane.b32.xlu1 %v384_v33, %s15822_s23  ;;  %v642_v52 = vrot.slane %v632_v48, 4  ;;  %v372_v33 = vmul.f32 %v9545_v37, %v343_v31 }
  0xdb   : > { %v382_v38 = vrot.slane %v372_v33, 4 }
  0xdc   : > { %v552_v40 = vpop.permute.xlu1 %551 }
  0xdd   : > { %v568_v43 = vmul.f32 %v552_v40, %v539_v36  ;;  %v9607_v54 = vpop.permute.xlu0 %684  ;;  %v560_v0 = vsel %vm559_vm4, %v552_v40, %v554_v23  ;;  %v605_v23 = vld [vmem:[#allocation2 + $0x20] sm:$0xf]  ;;  %v383_v36 = vrot.slane %v373_v35, 4  ;;  %v473_v40 = vld [vmem:[#allocation2 + $0x8] sm:$0xf] }
  0xde   : > { %v690_v58 = vsel %vm688_vm8, %v9605_v53, %v9607_v54  ;;  %v569_v4 = vmul.f32 %v560_v0, %v540_v1  ;;  %v730_v35 = vld [vmem:[#allocation2] sm:$0xf] }
  0xdf   : > { %578 = vrot.lane.b32.xlu2 %v568_v43, %s15828_s22  ;;  %v699_v62 = vmul.f32 %v690_v58, %v670_v61 }
  0xe1   : > { %520 = vrot.lane.b32.xlu1 %v513_v44, %s15824_s9 }
  0xe4   : > { %v558_v50 = vpop.permute.xlu1 %557 }
  0xe5   : > { %v572_v51 = vmul.f32 %v558_v50, %v543_v49  ;;  %v562_v27 = vsel %vm559_vm4, %v9581_v25, %v558_v50  ;;  %v493_v25 = vsel %vm492_vm6, %v9579_v24, %v9571_v18  ;;  %v602_v18 = vld [vmem:[#allocation2 + $0x8] sm:$0xf]  ;;  %v366_v24 = vsel %vm363_vm5, %v9560_v63, %v9558_v57  ;;  %v475_v57 = vld [vmem:[#allocation2 + $0x18] sm:$0xf] }
  0xe6   : > { %v571_v30 = vmul.f32 %v562_v27, %v542_v28  ;;  %v502_v43 = vmul.f32 %v493_v25, %v473_v40 }
  0xe7   : > { %586 = vrot.lane.b32.xlu0 %v572_v51, %s15828_s22 }
  0xe8   : > { %v512_v44 = vrot.slane %v502_v43, 4 }
  0xe9   : > { %649 = vrot.lane.b32.xlu1 %v642_v52, %s15832_s14  ;;  %v346_v52 = vld [vmem:[#allocation2 + $0x18] sm:$0xf] }
  0xec   : > { %v9615_v59 = vpop.permute.xlu1 %613 }
  0xed   : > { %v622_v37 = vsel %vm621_vm7, %v9615_v59, %v9595_v41  ;;  %v630_v48 = vmul.f32 %v9615_v59, %v601_v47  ;;  %v375_v41 = vmul.f32 %v366_v24, %v346_v52  ;;  %v495_v59 = vsel %vm492_vm6, %v9576_v22, %v9589_v32 }
  0xee   : > { %v631_v49 = vmul.f32 %v622_v37, %v602_v18  ;;  %v504_v63 = vmul.f32 %v495_v59, %v475_v57 }
  0xef   : > { %451 = vrot.lane.b32.xlu0 %v440_v60, %s15826_s18  ;;  %v640_v51 = vrot.slane %v630_v48, 4  ;;  %v385_v60 = vrot.slane %v375_v41, 4 }
  0xf0   : > { %v641_v50 = vrot.slane %v631_v49, 4  ;;  %v514_v1 = vrot.slane %v504_v63, 4 }
  0xf1   : > { %711 = vrot.lane.b32.xlu1 %v699_v62, %s15896_s15  ;;  %v672_v62 = vld [vmem:[#allocation2 + $0x20] sm:$0xf] }
  0xf4   : > { %v9625_v3 = vpop.permute.xlu1 %619 }
  0xf5   : > { %v634_v26 = vmul.f32 %v9625_v3, %v605_v23 }
  0xf7   : > { %580 = vrot.lane.b32.xlu0 %v569_v4, %s15828_s22  ;;  %v644_v29 = vrot.slane %v634_v26, 4  ;;  %v604_v4 = vld [vmem:[#allocation2 + $0x18] sm:$0xf] }
  0xf9   : > { %742 = vrot.lane.b32.xlu1 %v738_v5, %s15932_s13  ;;  %v740_v5 = vperm.slane %v9623_v2, 2 }
  0xfc   : > { %v681_v8 = vpop.permute.xlu1 %680 }
  0xfd   : > { %v697_v10 = vmul.f32 %v681_v8, %v668_v9  ;;  %v689_v55 = vsel %vm688_vm8, %v681_v8, %v9605_v53  ;;  %v624_v53 = vsel %vm621_vm7, %v9597_v42, %v9625_v3  ;;  %v671_v9 = vld [vmem:[#allocation2 + $0x18] sm:$0xf] }
  0xfe   : > { %v698_v58 = vmul.f32 %v689_v55, %v669_v56  ;;  %v633_v22 = vmul.f32 %v624_v53, %v604_v4 }
  0xff   : > { %707 = vrot.lane.b32.xlu2 %v697_v10, %s15896_s15  ;;  %395 = vrot.lane.b32.xlu0 %v386_v11, %s15822_s23  ;;  %v739_v11 = vperm.slane %v9623_v2, 1 }
 0x100   : > { %v643_v6 = vrot.slane %v633_v22, 4 }
 0x101   : > { %748 = vrot.lane.b32.xlu1 %v741_v12, %s15932_s13 }
 0x104   : > { %v687_v61 = vpop.permute.xlu1 %686 }
 0x105   : > { %v701_v0 = vmul.f32 %v687_v61, %v672_v62  ;;  %v691_v7 = vsel %vm688_vm8, %v9607_v54, %v687_v61 }
 0x106   : > { %v700_v42 = vmul.f32 %v691_v7, %v671_v9  ;;  %v731_v7 = vld [vmem:[#allocation2 + $0x8] sm:$0xf] }
 0x107   : > { %524 = vrot.lane.b32.xlu0 %v515_v19, %s15824_s9  ;;  %455 = vrot.lane.b32.xlu2 %v442_v21, %s15826_s18  ;;  %s15841_s18 = smov 63  }
 0x10f   : > { %653 = vrot.lane.b32.xlu0 %v644_v29, %s15832_s14  ;;  %584 = vrot.lane.b32.xlu2 %v571_v30, %s15828_s22  ;;  %s15835_s22 = smov 64  }
 0x117   : > { %389 = vrot.lane.b32.xlu0 %v383_v36, %s15822_s23  ;;  %387 = vrot.lane.b32.xlu2 %v382_v38, %s15822_s23 }
 0x119   : > { %v450_v3 = vpop.permute.xlu2 %449 }
 0x11f   : > { %518 = vrot.lane.b32.xlu0 %v512_v44, %s15824_s9  ;;  %516 = vrot.lane.b32.xlu2 %v511_v45, %s15824_s9 }
 0x127   : > { %647 = vrot.lane.b32.xlu0 %v641_v50, %s15832_s14  ;;  %645 = vrot.lane.b32.xlu2 %v640_v51, %s15832_s14 }
 0x12f   : > { %709 = vrot.lane.b32.xlu0 %v698_v58, %s15896_s15  ;;  %393 = vrot.lane.b32.xlu2 %v385_v60, %s15822_s23  ;;  %s15928_s23 = smov 110  }
 0x133   : > { %v454_v32 = vpop.permute.xlu1 %453 }
 0x137   : > { %715 = vrot.lane.b32.xlu0 %v701_v0, %s15896_s15  ;;  %522 = vrot.lane.b32.xlu2 %v514_v1, %s15824_s9  ;;  %s15934_s9 = smov 18  }
 0x139   : > { %v579_v12 = vpop.permute.xlu2 %578  ;;  %v458_v13 = vpop.permute.xlu0 %457 }
 0x13f   : > { %746 = vrot.lane.b32.xlu0 %v740_v5, %s15932_s13  ;;  %651 = vrot.lane.b32.xlu2 %v643_v6, %s15832_s14  ;;  %s15837_s14 = smov 65  }
 0x143   : > { %v583_v8 = vpop.permute.xlu1 %582 }
 0x147   : > { %713 = vrot.lane.b32.xlu2 %v700_v42, %s15896_s15 }
 0x14b   : > { %v392_v10 = vpop.permute.xlu1 %391 }
 0x14f   : > { %744 = vrot.lane.b32.xlu2 %v739_v11, %s15932_s13 }
 0x153   : > { %v521_v15 = vpop.permute.xlu1 %520 }
 0x159   : > { %v9687_v16 = vpop.permute.xlu2 %707  ;;  %v587_v17 = vpop.permute.xlu0 %586 }
 0x15b   : > { %v9689_v19 = vpop.permute.xlu1 %649 }
 0x161   : > { %v456_v54 = vpop.permute.xlu2 %455  ;;  %v452_v21 = vpop.permute.xlu0 %451 }
 0x162   : > { %v462_v23 = vsel %vm459_vm9, %v454_v32, %v456_v54  ;;  %v463_v26 = vsel %vm459_vm9, %v456_v54, %v458_v13  ;;  %v460_v27 = vsel %vm459_vm9, %v450_v3, %v452_v21  ;;  %v461_v2 = vsel %vm459_vm9, %v452_v21, %v454_v32  ;;  %v734_v3 = vld [vmem:[#allocation2 + $0x20] sm:$0xf] }
 0x163   : > { %470 = vst [vmem:[#allocation3 + $0xf8] sm:$0xf] %v462_v23  ;;  %v9695_v28 = vpop.permute.xlu1 %711 }
 0x164   : > { %471 = vst [vmem:[#allocation3 + $0x100] sm:$0xf] %v463_v26  ;;  %v9150_v26 = vld [vmem:[%s16162_s5 + $0x20] ss:$8 sm:$0xf] }
 0x165   : > { %468 = vst [vmem:[#allocation3 + $0x320] sm:$0xf] %v460_v27  ;;  %v807_v27 = vperm.slane %v9150_v26, 2 }
 0x166   : > { %469 = vst [vmem:[#allocation3 + $0x38] sm:$0xf] %v461_v2  ;;  %v806_v2 = vperm.slane %v9150_v26, 1 }
 0x169   : > { %v585_v29 = vpop.permute.xlu2 %584  ;;  %v581_v30 = vpop.permute.xlu0 %580 }
 0x16a   : > { %v591_v31 = vsel %vm15834_vm10, %v583_v8, %v585_v29  ;;  %v592_v14 = vsel %vm15834_vm10, %v585_v29, %v587_v17  ;;  %v589_v20 = vsel %vm15834_vm10, %v579_v12, %v581_v30  ;;  %v590_v33 = vsel %vm15834_vm10, %v581_v30, %v583_v8 }
 0x16b   : > { %599 = vst [vmem:[#allocation3 + $0x138] sm:$0xf] %v591_v31  ;;  %v743_v36 = vpop.permute.xlu1 %742  ;;  %v808_v29 = vperm.slane %v9150_v26, 3  ;;  %vm15840_vm10 = vcmask 531456  }
 0x16c   : > { %600 = vst [vmem:[#allocation3 + $0xf0] sm:$0xf] %v592_v14  ;;  %v759_v38 = vmul.f32 %v743_v36, %v730_v35 }
 0x16d   : > { %597 = vst [vmem:[#allocation3 + $0x80] sm:$0xf] %v589_v20 }
 0x16e   : > { %598 = vst [vmem:[#allocation3 + $0x308] sm:$0xf] %v590_v33  ;;  %v769_v39 = vrot.slane %v759_v38, 4 }
 0x170   : > { %774 = vrot.lane.b32.xlu2 %v769_v39, %s15885_s29 }
 0x171   : > { %v388_v25 = vpop.permute.xlu2 %387  ;;  %v396_v40 = vpop.permute.xlu0 %395 }
 0x173   : > { %v749_v42 = vpop.permute.xlu1 %748 }
 0x179   : > { %v517_v46 = vpop.permute.xlu2 %516  ;;  %v525_v43 = vpop.permute.xlu0 %524 }
 0x181   : > { %v646_v44 = vpop.permute.xlu2 %645  ;;  %v654_v45 = vpop.permute.xlu0 %653 }
 0x189   : > { %v394_v37 = vpop.permute.xlu2 %393  ;;  %v390_v47 = vpop.permute.xlu0 %389 }
 0x18a   : > { %v400_v18 = vsel %vm15830_vm11, %v392_v10, %v394_v37  ;;  %v401_v48 = vsel %vm15830_vm11, %v394_v37, %v396_v40  ;;  %v398_v49 = vsel %vm15830_vm11, %v388_v25, %v390_v47  ;;  %v399_v50 = vsel %vm15830_vm11, %v390_v47, %v392_v10  ;;  %v797_v40 = vld [vmem:[#allocation2] sm:$0xf]  ;;  %v798_v47 = vld [vmem:[#allocation2 + $0x8] sm:$0xf] }
 0x18b   : > { %408 = vst [vmem:[#allocation3 + $0x10] sm:$0xf0] %v400_v18  ;;  %v763_v10 = vmul.f32 %v749_v42, %v734_v3  ;;  %vm845_vm11 = vcmask 900096  }
 0x18c   : > { %409 = vst [vmem:[#allocation3 + $0x48] sm:$0xf0] %v401_v48 }
 0x18d   : > { %406 = vst [vmem:[#allocation3 + $0x2b0] sm:$0xf0] %v398_v49  ;;  %v773_v54 = vrot.slane %v763_v10, 4  ;;  %v9151_v49 = vld [vmem:[%s16162_s5 + $0x21] ss:$8 sm:$0xf] }
 0x18e   : > { %407 = vst [vmem:[#allocation3 + $0xd0] sm:$0xf0] %v399_v50  ;;  %v866_v50 = vperm.slane %v9151_v49, 0 }
 0x191   : > { %v523_v51 = vpop.permute.xlu2 %522  ;;  %v519_v24 = vpop.permute.xlu0 %518 }
 0x192   : > { %v529_v52 = vsel %vm15831_vm12, %v521_v15, %v523_v51  ;;  %v530_v41 = vsel %vm15831_vm12, %v523_v51, %v525_v43  ;;  %v527_v55 = vsel %vm15831_vm12, %v517_v46, %v519_v24  ;;  %v528_v56 = vsel %vm15831_vm12, %v519_v24, %v521_v15  ;;  %v733_v15 = vld [vmem:[#allocation2 + $0x18] sm:$0xf]  ;;  %v801_v51 = vld [vmem:[#allocation2 + $0x20] sm:$0xf] }
 0x193   : > { %537 = vst [vmem:[#allocation3 + $0xf8] sm:$0xf0] %v529_v52  ;;  %vm15839_vm12 = vcmask 523264  }
 0x194   : > { %538 = vst [vmem:[#allocation3 + $0x100] sm:$0xf0] %v530_v41 }
 0x195   : > { %535 = vst [vmem:[#allocation3 + $0x320] sm:$0xf0] %v527_v55  ;;  %v800_v55 = vld [vmem:[#allocation2 + $0x18] sm:$0xf] }
 0x196   : > { %536 = vst [vmem:[#allocation3 + $0x38] sm:$0xf0] %v528_v56 }
 0x199   : > { %v652_v58 = vpop.permute.xlu2 %651  ;;  %v648_v60 = vpop.permute.xlu0 %647 }
 0x19a   : > { %v658_v59 = vsel %vm15937_vm13, %v9689_v19, %v652_v58  ;;  %v659_v57 = vsel %vm15937_vm13, %v652_v58, %v654_v45  ;;  %v656_v63 = vsel %vm15937_vm13, %v646_v44, %v648_v60  ;;  %v657_v61 = vsel %vm15937_vm13, %v648_v60, %v9689_v19  ;;  %v799_v44 = vld [vmem:[#allocation2 + $0x10] sm:$0xf] }
 0x19b   : > { %666 = vst [vmem:[#allocation3 + $0x138] sm:$0xf0] %v658_v59  ;;  %v869_v58 = vperm.slane %v9151_v49, 3  ;;  %v868_v60 = vperm.slane %v9151_v49, 2  ;;  %v867_v59 = vperm.slane %v9151_v49, 1 }
 0x19c   : > { %667 = vst [vmem:[#allocation3 + $0xf0] sm:$0xf0] %v659_v57  ;;  %v925_v49 = vld [vmem:[#allocation2 + $0x8] sm:$0xf] }
 0x19d   : > { %664 = vst [vmem:[#allocation3 + $0x80] sm:$0xf0] %v656_v63 }
 0x19e   : > { %665 = vst [vmem:[#allocation3 + $0x308] sm:$0xf0] %v657_v61 }
 0x1a1   : > { %v714_v62 = vpop.permute.xlu2 %713  ;;  %v710_v0 = vpop.permute.xlu0 %709 }
 0x1a2   : > { %v720_v1 = vsel %vm15909_vm14, %v9695_v28, %v714_v62  ;;  %v718_v53 = vsel %vm15909_vm14, %v9687_v16, %v710_v0  ;;  %v719_v4 = vsel %vm15909_vm14, %v710_v0, %v9695_v28  ;;  %v732_v16 = vld [vmem:[#allocation2 + $0x10] sm:$0xf]  ;;  %v805_v28 = vperm.slane %v9150_v26, 0 }
 0x1a3   : > { %728 = vst [vmem:[#allocation3 + $0x318] sm:$0xf] %v720_v1 }
 0x1a4   : > { %726 = vst [vmem:[#allocation3 + $0x18] sm:$0xf] %v718_v53 }
 0x1a5   : > { %727 = vst [vmem:[#allocation3 + $0x2c8] sm:$0xf] %v719_v4 }
 0x1a9   : > { %v745_v22 = vpop.permute.xlu2 %744  ;;  %v716_v32 = vpop.permute.xlu0 %715 }
 0x1aa   : > { %v751_v5 = vsel %vm750_vm15, %v743_v36, %v745_v22  ;;  %v721_v6 = vsel %vm15909_vm14, %v714_v62, %v716_v32 }
 0x1ab   : > { %729 = vst [vmem:[#allocation3 + $0x20] sm:$0xf] %v721_v6  ;;  %v760_v8 = vmul.f32 %v751_v5, %v731_v7 }
 0x1ad   : > { %v770_v9 = vrot.slane %v760_v8, 4  ;;  %v859_v8 = vld [vmem:[#allocation2 + $0x8] sm:$0xf] }
 0x1af   : > { %776 = vrot.lane.b32.xlu0 %v770_v9, %s15885_s29 }
 0x1b1   : > { %v747_v11 = vpop.permute.xlu0 %746 }
 0x1b2   : > { %v752_v12 = vsel %vm750_vm15, %v745_v22, %v747_v11  ;;  %v753_v13 = vsel %vm750_vm15, %v747_v11, %v749_v42  ;;  %v858_v22 = vld [vmem:[#allocation2] sm:$0xf] }
 0x1b3   : > { %v762_v17 = vmul.f32 %v753_v13, %v733_v15  ;;  %v761_v19 = vmul.f32 %v752_v12, %v732_v16  ;;  %v862_v11 = vld [vmem:[#allocation2 + $0x20] sm:$0xf] }
 0x1b5   : > { %v772_v21 = vrot.slane %v762_v17, 4  ;;  %v771_v23 = vrot.slane %v761_v19, 4  ;;  %v861_v19 = vld [vmem:[#allocation2 + $0x18] sm:$0xf] }
 0x1b7   : > { %782 = vrot.lane.b32.xlu0 %v773_v54, %s15885_s29  ;;  %780 = vrot.lane.b32.xlu2 %v772_v21, %s15885_s29  ;;  %v860_v54 = vld [vmem:[#allocation2 + $0x10] sm:$0xf] }
 0x1b8   : > { %778 = vrot.lane.b32.xlu1 %v771_v23, %s15885_s29 }
 0x1bf   : > { %813 = vrot.lane.b32.xlu0 %v807_v27, %s15934_s9  ;;  %811 = vrot.lane.b32.xlu2 %v806_v2, %s15934_s9 }
 0x1c0   : > { %809 = vrot.lane.b32.xlu1 %v805_v28, %s15934_s9  ;;  %v9152_v28 = vld [vmem:[%s16162_s5 + $0x22] ss:$8 sm:$0xf] }
 0x1c8   : > { %815 = vrot.lane.b32.xlu1 %v808_v29, %s15934_s9  ;;  %v934_v29 = vperm.slane %v9152_v28, 2 }
 0x1ca   : > { %v775_v30 = vpop.permute.xlu2 %774 }
 0x211   : > { %v781_v20 = vpop.permute.xlu2 %780 }
 0x219   : > { %v812_v25 = vpop.permute.xlu2 %811 }
 0x221   : > { %v777_v31 = vpop.permute.xlu0 %776 }
 0x222   : > { %v785_v14 = vsel %vm784_vm2, %v775_v30, %v777_v31  ;;  %v932_v30 = vperm.slane %v9152_v28, 0 }
 0x223   : > { %793 = vst [vmem:[#allocation3 + $0x18] sm:$0xf0] %v785_v14  ;;  %v935_v14 = vperm.slane %v9152_v28, 3 }
 0x229   : > { %v783_v33 = vpop.permute.xlu0 %782 }
 0x22a   : > { %v779_v35 = vpop.permute.xlu1 %778  ;;  %v788_v36 = vsel %vm784_vm2, %v781_v20, %v783_v33 }
 0x22b   : > { %v786_v38 = vsel %vm784_vm2, %v777_v31, %v779_v35  ;;  %v787_v39 = vsel %vm784_vm2, %v779_v35, %v781_v20  ;;  %796 = vst [vmem:[#allocation3 + $0x20] sm:$0xf0] %v788_v36  ;;  %v933_v31 = vperm.slane %v9152_v28, 1 }
 0x22c   : > { %794 = vst [vmem:[#allocation3 + $0x2c8] sm:$0xf0] %v786_v38 }
 0x22d   : > { %795 = vst [vmem:[#allocation3 + $0x318] sm:$0xf0] %v787_v39 }
 0x231   : > { %v814_v34 = vpop.permute.xlu0 %813 }
 0x232   : > { %v810_v46 = vpop.permute.xlu1 %809  ;;  %v818_v43 = vsel %vm282_vm0, %v812_v25, %v814_v34 }
 0x233   : > { %v817_v45 = vsel %vm282_vm0, %v810_v46, %v812_v25  ;;  %v825_v37 = vmul.f32 %v810_v46, %v797_v40  ;;  %v827_v18 = vmul.f32 %v818_v43, %v799_v44  ;;  %v924_v44 = vld [vmem:[#allocation2] sm:$0xf] }
 0x234   : > { %v826_v48 = vmul.f32 %v817_v45, %v798_v47  ;;  %v926_v47 = vld [vmem:[#allocation2 + $0x10] sm:$0xf] }
 0x235   : > { %835 = vrot.lane.b32.xlu2 %v825_v37, %s15928_s23  ;;  %839 = vrot.lane.b32.xlu1 %v827_v18, %s15928_s23 }
 0x236   : > { %837 = vrot.lane.b32.xlu0 %v826_v48, %s15928_s23 }
 0x23a   : > { %v816_v24 = vpop.permute.xlu1 %815 }
 0x23b   : > { %v819_v52 = vsel %vm282_vm0, %v814_v34, %v816_v24  ;;  %v829_v41 = vmul.f32 %v816_v24, %v801_v51  ;;  %v9153_v24 = vld [vmem:[%s16162_s5 + $0x23] ss:$8 sm:$0xf] }
 0x23c   : > { %v828_v56 = vmul.f32 %v819_v52, %v800_v55  ;;  %v994_v52 = vperm.slane %v9153_v24, 0 }
 0x23d   : > { %870 = vrot.lane.b32.xlu1 %v866_v50, %s15835_s22 }
 0x23e   : > { %843 = vrot.lane.b32.xlu0 %v829_v41, %s15928_s23  ;;  %841 = vrot.lane.b32.xlu2 %v828_v56, %s15928_s23  ;;  %v928_v41 = vld [vmem:[#allocation2 + $0x20] sm:$0xf] }
 0x245   : > { %876 = vrot.lane.b32.xlu1 %v869_v58, %s15835_s22 }
 0x246   : > { %874 = vrot.lane.b32.xlu0 %v868_v60, %s15835_s22  ;;  %872 = vrot.lane.b32.xlu2 %v867_v59, %s15835_s22  ;;  %v927_v60 = vld [vmem:[#allocation2 + $0x18] sm:$0xf] }
 0x28f   : > { %v836_v57 = vpop.permute.xlu2 %835 }
 0x298   : > { %v842_v63 = vpop.permute.xlu2 %841 }
 0x2a0   : > { %v873_v4 = vpop.permute.xlu2 %872 }
 0x2a7   : > { %v840_v61 = vpop.permute.xlu1 %839 }
 0x2a8   : > { %v848_v62 = vsel %vm845_vm11, %v840_v61, %v842_v63  ;;  %v838_v0 = vpop.permute.xlu0 %837 }
 0x2a9   : > { %856 = vst [vmem:[#allocation3 + $0x198] sm:$0xf] %v848_v62  ;;  %v846_v1 = vsel %vm845_vm11, %v836_v57, %v838_v0  ;;  %v847_v53 = vsel %vm845_vm11, %v838_v0, %v840_v61  ;;  %v997_v57 = vperm.slane %v9153_v24, 3  ;;  %v995_v61 = vperm.slane %v9153_v24, 1 }
 0x2aa   : > { %854 = vst [vmem:[#allocation3 + $0x2c0] sm:$0xf] %v846_v1 }
 0x2ab   : > { %855 = vst [vmem:[#allocation3 + $0x188] sm:$0xf] %v847_v53 }
 0x2af   : > { %v871_v32 = vpop.permute.xlu1 %870 }
 0x2b0   : > { %v879_v5 = vsel %vm15839_vm12, %v871_v32, %v873_v4  ;;  %v887_v6 = vmul.f32 %v871_v32, %v858_v22  ;;  %v844_v7 = vpop.permute.xlu0 %843 }
 0x2b1   : > { %v849_v9 = vsel %vm845_vm11, %v842_v63, %v844_v7  ;;  %v888_v42 = vmul.f32 %v879_v5, %v859_v8  ;;  %v996_v63 = vperm.slane %v9153_v24, 2  ;;  %v1054_v24 = vld [vmem:[#allocation2 + $0x8] sm:$0xf] }
 0x2b2   : > { %857 = vst [vmem:[#allocation3 + $0x148] sm:$0xf] %v849_v9  ;;  %v897_v3 = vrot.slane %v887_v6, 4  ;;  %v986_v6 = vld [vmem:[#allocation2] sm:$0xf] }
 0x2b3   : > { %v898_v10 = vrot.slane %v888_v42, 4 }
 0x2b4   : > { %902 = vrot.lane.b32.xlu2 %v897_v3, %s15835_s22  ;;  %v987_v3 = vld [vmem:[#allocation2 + $0x8] sm:$0xf] }
 0x2b5   : > { %904 = vrot.lane.b32.xlu0 %v898_v10, %s15835_s22 }
 0x2b7   : > { %v877_v12 = vpop.permute.xlu1 %876 }
 0x2b8   : > { %v891_v13 = vmul.f32 %v877_v12, %v862_v11  ;;  %v875_v15 = vpop.permute.xlu0 %874 }
 0x2b9   : > { %v880_v16 = vsel %vm15839_vm12, %v873_v4, %v875_v15  ;;  %v881_v17 = vsel %vm15839_vm12, %v875_v15, %v877_v12  ;;  %v990_v15 = vld [vmem:[#allocation2 + $0x20] sm:$0xf] }
 0x2ba   : > { %v901_v21 = vrot.slane %v891_v13, 4  ;;  %v890_v23 = vmul.f32 %v881_v17, %v861_v19  ;;  %v889_v26 = vmul.f32 %v880_v16, %v860_v54 }
 0x2bc   : > { %v900_v27 = vrot.slane %v890_v23, 4  ;;  %v899_v2 = vrot.slane %v889_v26, 4  ;;  %v989_v23 = vld [vmem:[#allocation2 + $0x18] sm:$0xf]  ;;  %v988_v26 = vld [vmem:[#allocation2 + $0x10] sm:$0xf] }
 0x2bd   : > { %910 = vrot.lane.b32.xlu0 %v901_v21, %s15835_s22 }
 0x2be   : > { %908 = vrot.lane.b32.xlu2 %v900_v27, %s15835_s22  ;;  %906 = vrot.lane.b32.xlu1 %v899_v2, %s15835_s22  ;;  %s15847_s22 = smov 62  }
 0x2c5   : > { %940 = vrot.lane.b32.xlu0 %v934_v29, %s15837_s14 }
 0x2c6   : > { %936 = vrot.lane.b32.xlu1 %v932_v30, %s15837_s14  ;;  %938 = vrot.lane.b32.xlu2 %v933_v31, %s15837_s14  ;;  %v9154_v31 = vld [vmem:[%s16162_s5 + $0x24] ss:$8 sm:$0xf] }
 0x2ce   : > { %942 = vrot.lane.b32.xlu1 %v935_v14, %s15837_s14  ;;  %s15843_s14 = smov 66   ;;  %v1063_v14 = vperm.slane %v9154_v31, 2 }
 0x30e   : > { %v903_v20 = vpop.permute.xlu2 %902 }
 0x318   : > { %v909_v36 = vpop.permute.xlu2 %908 }
 0x320   : > { %v939_v46 = vpop.permute.xlu2 %938 }
 0x327   : > { %v905_v33 = vpop.permute.xlu0 %904 }
 0x328   : > { %v912_v35 = vsel %vm15839_vm12, %v903_v20, %v905_v33  ;;  %v1061_v20 = vperm.slane %v9154_v31, 0 }
 0x329   : > { %920 = vst [vmem:[#allocation3 + $0x2c0] sm:$0xf0] %v912_v35  ;;  %v1064_v35 = vperm.slane %v9154_v31, 3 }
 0x32f   : > { %v911_v38 = vpop.permute.xlu0 %910 }
 0x330   : > { %v907_v39 = vpop.permute.xlu1 %906  ;;  %v915_v25 = vsel %vm15839_vm12, %v909_v36, %v911_v38 }
 0x331   : > { %v913_v34 = vsel %vm15839_vm12, %v905_v33, %v907_v39  ;;  %v914_v40 = vsel %vm15839_vm12, %v907_v39, %v909_v36  ;;  %923 = vst [vmem:[#allocation3 + $0x148] sm:$0xf0] %v915_v25  ;;  %vm15845_vm12 = vcmask 515072   ;;  %v1062_v33 = vperm.slane %v9154_v31, 1 }
 0x332   : > { %921 = vst [vmem:[#allocation3 + $0x188] sm:$0xf0] %v913_v34 }
 0x333   : > { %922 = vst [vmem:[#allocation3 + $0x198] sm:$0xf0] %v914_v40 }
 0x337   : > { %v941_v43 = vpop.permute.xlu0 %940 }
 0x338   : > { %v937_v45 = vpop.permute.xlu1 %936  ;;  %v946_v37 = vsel %vm15840_vm10, %v939_v46, %v941_v43 }
 0x339   : > { %v945_v18 = vsel %vm15840_vm10, %v937_v45, %v939_v46  ;;  %v953_v48 = vmul.f32 %v937_v45, %v924_v44  ;;  %v955_v50 = vmul.f32 %v946_v37, %v926_v47  ;;  %v1053_v47 = vld [vmem:[#allocation2] sm:$0xf] }
 0x33a   : > { %v954_v51 = vmul.f32 %v945_v18, %v925_v49  ;;  %v1055_v49 = vld [vmem:[#allocation2 + $0x10] sm:$0xf] }
 0x33b   : > { %963 = vrot.lane.b32.xlu2 %v953_v48, %s15841_s18  ;;  %967 = vrot.lane.b32.xlu1 %v955_v50, %s15841_s18 }
 0x33c   : > { %965 = vrot.lane.b32.xlu0 %v954_v51, %s15841_s18 }
 0x340   : > { %v943_v55 = vpop.permute.xlu1 %942 }
 0x341   : > { %v947_v56 = vsel %vm15840_vm10, %v941_v43, %v943_v55  ;;  %v957_v58 = vmul.f32 %v943_v55, %v928_v41  ;;  %vm15846_vm10 = vcmask 539648   ;;  %v9155_v55 = vld [vmem:[%s16162_s5 + $0x25] ss:$8 sm:$0xf] }
 0x342   : > { %v956_v59 = vmul.f32 %v947_v56, %v927_v60  ;;  %v1123_v56 = vperm.slane %v9155_v55, 0 }
 0x343   : > { %998 = vrot.lane.b32.xlu1 %v994_v52, %s15843_s14 }
 0x344   : > { %971 = vrot.lane.b32.xlu0 %v957_v58, %s15841_s18  ;;  %969 = vrot.lane.b32.xlu2 %v956_v59, %s15841_s18  ;;  %s15850_s18 = smov 56   ;;  %v1057_v58 = vld [vmem:[#allocation2 + $0x20] sm:$0xf] }
 0x34b   : > { %1004 = vrot.lane.b32.xlu1 %v997_v57, %s15843_s14 }
 0x34c   : > { %1002 = vrot.lane.b32.xlu0 %v996_v63, %s15843_s14  ;;  %1000 = vrot.lane.b32.xlu2 %v995_v61, %s15843_s14  ;;  %s15852_s14 = smov 72   ;;  %v1056_v63 = vld [vmem:[#allocation2 + $0x18] sm:$0xf] }
 0x395   : > { %v964_v62 = vpop.permute.xlu2 %963 }
 0x39e   : > { %v970_v0 = vpop.permute.xlu2 %969 }
 0x3a6   : > { %v1001_v5 = vpop.permute.xlu2 %1000 }
 0x3ad   : > { %v968_v1 = vpop.permute.xlu1 %967 }
 0x3ae   : > { %v976_v53 = vsel %vm15845_vm12, %v968_v1, %v970_v0  ;;  %v966_v4 = vpop.permute.xlu0 %965 }
 0x3af   : > { %984 = vst [vmem:[#allocation3 + $0x340] sm:$0xf] %v976_v53  ;;  %v974_v22 = vsel %vm15845_vm12, %v964_v62, %v966_v4  ;;  %v975_v32 = vsel %vm15845_vm12, %v966_v4, %v968_v1  ;;  %v1126_v62 = vperm.slane %v9155_v55, 3  ;;  %v1124_v1 = vperm.slane %v9155_v55, 1 }
 0x3b0   : > { %982 = vst [vmem:[#allocation3 + $0x2d0] sm:$0xf] %v974_v22 }
 0x3b1   : > { %983 = vst [vmem:[#allocation3 + $0x268] sm:$0xf] %v975_v32 }
 0x3b5   : > { %v999_v7 = vpop.permute.xlu1 %998 }
 0x3b6   : > { %v1007_v8 = vsel %vm15846_vm10, %v999_v7, %v1001_v5  ;;  %v1015_v9 = vmul.f32 %v999_v7, %v986_v6  ;;  %v972_v42 = vpop.permute.xlu0 %971 }
 0x3b7   : > { %v977_v10 = vsel %vm15845_vm12, %v970_v0, %v972_v42  ;;  %v1016_v11 = vmul.f32 %v1007_v8, %v987_v3  ;;  %vm15849_vm12 = vcmask 506880   ;;  %v1125_v0 = vperm.slane %v9155_v55, 2  ;;  %v1182_v55 = vld [vmem:[#allocation2 + $0x8] sm:$0xf] }
 0x3b8   : > { %985 = vst [vmem:[#allocation3 + $0x110] sm:$0xf] %v977_v10  ;;  %v1025_v12 = vrot.slane %v1015_v9, 4  ;;  %v1115_v9 = vld [vmem:[#allocation2] sm:$0xf] }
 0x3b9   : > { %v1026_v13 = vrot.slane %v1016_v11, 4 }
 0x3ba   : > { %1030 = vrot.lane.b32.xlu2 %v1025_v12, %s15847_s22  ;;  %v1116_v12 = vld [vmem:[#allocation2 + $0x8] sm:$0xf] }
 0x3bb   : > { %1032 = vrot.lane.b32.xlu0 %v1026_v13, %s15847_s22 }
 0x3bd   : > { %v1005_v16 = vpop.permute.xlu1 %1004 }
 0x3be   : > { %v1019_v17 = vmul.f32 %v1005_v16, %v990_v15  ;;  %v1003_v19 = vpop.permute.xlu0 %1002 }
 0x3bf   : > { %v1008_v54 = vsel %vm15846_vm10, %v1001_v5, %v1003_v19  ;;  %v1009_v21 = vsel %vm15846_vm10, %v1003_v19, %v1005_v16  ;;  %vm15855_vm10 = vcmask 588800   ;;  %v1119_v19 = vld [vmem:[#allocation2 + $0x20] sm:$0xf] }
 0x3c0   : > { %v1029_v27 = vrot.slane %v1019_v17, 4  ;;  %v1018_v2 = vmul.f32 %v1009_v21, %v989_v23  ;;  %v1017_v28 = vmul.f32 %v1008_v54, %v988_v26 }
 0x3c2   : > { %v1028_v29 = vrot.slane %v1018_v2, 4  ;;  %v1027_v30 = vrot.slane %v1017_v28, 4  ;;  %v1118_v2 = vld [vmem:[#allocation2 + $0x18] sm:$0xf]  ;;  %v1117_v28 = vld [vmem:[#allocation2 + $0x10] sm:$0xf] }
 0x3c3   : > { %1038 = vrot.lane.b32.xlu0 %v1029_v27, %s15847_s22 }
 0x3c4   : > { %1036 = vrot.lane.b32.xlu2 %v1028_v29, %s15847_s22  ;;  %1034 = vrot.lane.b32.xlu1 %v1027_v30, %s15847_s22  ;;  %s15856_s22 = smov 55  }
 0x3cb   : > { %1069 = vrot.lane.b32.xlu0 %v1063_v14, %s15852_s14 }
 0x3cc   : > { %1065 = vrot.lane.b32.xlu1 %v1061_v20, %s15852_s14  ;;  %1067 = vrot.lane.b32.xlu2 %v1062_v33, %s15852_s14  ;;  %v9156_v33 = vld [vmem:[%s16162_s5 + $0x26] ss:$8 sm:$0xf] }
 0x3d4   : > { %1071 = vrot.lane.b32.xlu1 %v1064_v35, %s15852_s14  ;;  %v1191_v35 = vperm.slane %v9156_v33, 2  ;;  %s15858_s14 = smov 74  }
 0x414   : > { %v1031_v36 = vpop.permute.xlu2 %1030 }
 0x41e   : > { %v1037_v25 = vpop.permute.xlu2 %1036 }
 0x426   : > { %v1068_v45 = vpop.permute.xlu2 %1067 }
 0x42d   : > { %v1033_v38 = vpop.permute.xlu0 %1032 }
 0x42e   : > { %v1041_v39 = vsel %vm15849_vm12, %v1031_v36, %v1033_v38  ;;  %v1189_v36 = vperm.slane %v9156_v33, 0 }
 0x42f   : > { %1049 = vst [vmem:[#allocation3 + $0x2d0] sm:$0xf0] %v1041_v39  ;;  %v1192_v39 = vperm.slane %v9156_v33, 3 }
 0x435   : > { %v1039_v34 = vpop.permute.xlu0 %1038 }
 0x436   : > { %v1035_v40 = vpop.permute.xlu1 %1034  ;;  %v1044_v46 = vsel %vm15849_vm12, %v1037_v25, %v1039_v34 }
 0x437   : > { %v1042_v43 = vsel %vm15849_vm12, %v1033_v38, %v1035_v40  ;;  %v1043_v44 = vsel %vm15849_vm12, %v1035_v40, %v1037_v25  ;;  %1052 = vst [vmem:[#allocation3 + $0x110] sm:$0xf0] %v1044_v46  ;;  %vm15854_vm12 = vcmask 457728   ;;  %v1190_v38 = vperm.slane %v9156_v33, 1 }
 0x438   : > { %1050 = vst [vmem:[#allocation3 + $0x268] sm:$0xf0] %v1042_v43 }
 0x439   : > { %1051 = vst [vmem:[#allocation3 + $0x340] sm:$0xf0] %v1043_v44 }
 0x43d   : > { %v1070_v37 = vpop.permute.xlu0 %1069 }
 0x43e   : > { %v1066_v18 = vpop.permute.xlu1 %1065  ;;  %v1075_v48 = vsel %vm15855_vm10, %v1068_v45, %v1070_v37 }
 0x43f   : > { %v1074_v50 = vsel %vm15855_vm10, %v1066_v18, %v1068_v45  ;;  %v1082_v51 = vmul.f32 %v1066_v18, %v1053_v47  ;;  %v1084_v52 = vmul.f32 %v1075_v48, %v1055_v49  ;;  %v1181_v49 = vld [vmem:[#allocation2] sm:$0xf] }
 0x440   : > { %v1083_v41 = vmul.f32 %v1074_v50, %v1054_v24  ;;  %v1183_v24 = vld [vmem:[#allocation2 + $0x10] sm:$0xf] }
 0x441   : > { %1092 = vrot.lane.b32.xlu2 %v1082_v51, %s15850_s18  ;;  %1096 = vrot.lane.b32.xlu1 %v1084_v52, %s15850_s18 }
 0x442   : > { %1094 = vrot.lane.b32.xlu0 %v1083_v41, %s15850_s18 }
 0x446   : > { %v1072_v60 = vpop.permute.xlu1 %1071 }
 0x447   : > { %v1076_v59 = vsel %vm15855_vm10, %v1070_v37, %v1072_v60  ;;  %v1086_v57 = vmul.f32 %v1072_v60, %v1057_v58  ;;  %vm15861_vm10 = vcmask 605184   ;;  %v9157_v60 = vld [vmem:[%s16162_s5 + $0x27] ss:$8 sm:$0xf] }
 0x448   : > { %v1085_v61 = vmul.f32 %v1076_v59, %v1056_v63  ;;  %v1251_v59 = vperm.slane %v9157_v60, 0 }
 0x449   : > { %1127 = vrot.lane.b32.xlu1 %v1123_v56, %s15878_s21 }
 0x44a   : > { %1100 = vrot.lane.b32.xlu0 %v1086_v57, %s15850_s18  ;;  %1098 = vrot.lane.b32.xlu2 %v1085_v61, %s15850_s18  ;;  %s15862_s18 = smov 54   ;;  %v1185_v57 = vld [vmem:[#allocation2 + $0x20] sm:$0xf] }
 0x451   : > { %1133 = vrot.lane.b32.xlu1 %v1126_v62, %s15878_s21 }
 0x452   : > { %1131 = vrot.lane.b32.xlu0 %v1125_v0, %s15878_s21  ;;  %1129 = vrot.lane.b32.xlu2 %v1124_v1, %s15878_s21  ;;  %v1184_v0 = vld [vmem:[#allocation2 + $0x18] sm:$0xf]  ;;  %s16164_s21 = smov 2  }
 0x49b   : > { %v1093_v53 = vpop.permute.xlu2 %1092 }
 0x4a4   : > { %v1099_v4 = vpop.permute.xlu2 %1098 }
 0x4ac   : > { %v1130_v8 = vpop.permute.xlu2 %1129 }
 0x4b3   : > { %v1097_v22 = vpop.permute.xlu1 %1096 }
 0x4b4   : > { %v1105_v32 = vsel %vm15854_vm12, %v1097_v22, %v1099_v4  ;;  %v1095_v5 = vpop.permute.xlu0 %1094 }
 0x4b5   : > { %1113 = vst [vmem:[#allocation3 + $0x8] sm:$0xf] %v1105_v32  ;;  %v1103_v6 = vsel %vm15854_vm12, %v1093_v53, %v1095_v5  ;;  %v1104_v7 = vsel %vm15854_vm12, %v1095_v5, %v1097_v22  ;;  %v1254_v53 = vperm.slane %v9157_v60, 3  ;;  %v1252_v22 = vperm.slane %v9157_v60, 1 }
 0x4b6   : > { %1111 = vst [vmem:[#allocation3 + $0x190] sm:$0xf] %v1103_v6 }
 0x4b7   : > { %1112 = vst [vmem:[#allocation3 + $0x250] sm:$0xf] %v1104_v7 }
 0x4bb   : > { %v1128_v42 = vpop.permute.xlu1 %1127 }
 0x4bc   : > { %v1135_v3 = vsel %vm305_vm1, %v1128_v42, %v1130_v8  ;;  %v1143_v10 = vmul.f32 %v1128_v42, %v1115_v9  ;;  %v1101_v11 = vpop.permute.xlu0 %1100 }
 0x4bd   : > { %v1106_v13 = vsel %vm15854_vm12, %v1099_v4, %v1101_v11  ;;  %v1144_v15 = vmul.f32 %v1135_v3, %v1116_v12  ;;  %vm15860_vm12 = vcmask 449536   ;;  %v1253_v4 = vperm.slane %v9157_v60, 2  ;;  %v1311_v60 = vld [vmem:[#allocation2 + $0x8] sm:$0xf] }
 0x4be   : > { %1114 = vst [vmem:[#allocation3 + $0x120] sm:$0xf] %v1106_v13  ;;  %v1153_v16 = vrot.slane %v1143_v10, 4  ;;  %v1243_v10 = vld [vmem:[#allocation2] sm:$0xf] }
 0x4bf   : > { %v1154_v17 = vrot.slane %v1144_v15, 4 }
 0x4c0   : > { %1158 = vrot.lane.b32.xlu2 %v1153_v16, %s15856_s22  ;;  %v1244_v16 = vld [vmem:[#allocation2 + $0x8] sm:$0xf] }
 0x4c1   : > { %1160 = vrot.lane.b32.xlu0 %v1154_v17, %s15856_s22 }
 0x4c3   : > { %v1134_v54 = vpop.permute.xlu1 %1133 }
 0x4c4   : > { %v1147_v21 = vmul.f32 %v1134_v54, %v1119_v19  ;;  %v1132_v23 = vpop.permute.xlu0 %1131 }
 0x4c5   : > { %v1136_v26 = vsel %vm305_vm1, %v1130_v8, %v1132_v23  ;;  %v1137_v27 = vsel %vm305_vm1, %v1132_v23, %v1134_v54  ;;  %v1247_v23 = vld [vmem:[#allocation2 + $0x20] sm:$0xf] }
 0x4c6   : > { %v1157_v29 = vrot.slane %v1147_v21, 4  ;;  %v1146_v30 = vmul.f32 %v1137_v27, %v1118_v2  ;;  %v1145_v31 = vmul.f32 %v1136_v26, %v1117_v28 }
 0x4c8   : > { %v1156_v14 = vrot.slane %v1146_v30, 4  ;;  %v1155_v20 = vrot.slane %v1145_v31, 4  ;;  %v1246_v30 = vld [vmem:[#allocation2 + $0x18] sm:$0xf]  ;;  %v1245_v31 = vld [vmem:[#allocation2 + $0x10] sm:$0xf] }
 0x4c9   : > { %1166 = vrot.lane.b32.xlu0 %v1157_v29, %s15856_s22 }
 0x4ca   : > { %1164 = vrot.lane.b32.xlu2 %v1156_v14, %s15856_s22  ;;  %1162 = vrot.lane.b32.xlu1 %v1155_v20, %s15856_s22  ;;  %s15870_s22 = smov 48  }
 0x4d1   : > { %1197 = vrot.lane.b32.xlu0 %v1191_v35, %s15858_s14 }
 0x4d2   : > { %1193 = vrot.lane.b32.xlu1 %v1189_v36, %s15858_s14  ;;  %1195 = vrot.lane.b32.xlu2 %v1190_v38, %s15858_s14  ;;  %v9158_v38 = vld [vmem:[%s16162_s5 + $0x40] ss:$8 sm:$0xf] }
 0x4da   : > { %1199 = vrot.lane.b32.xlu1 %v1192_v39, %s15858_s14  ;;  %s15864_s14 = smov 80   ;;  %v1320_v39 = vperm.slane %v9158_v38, 2 }
 0x51a   : > { %v1159_v25 = vpop.permute.xlu2 %1158 }
 0x524   : > { %v1165_v46 = vpop.permute.xlu2 %1164 }
 0x52c   : > { %v1196_v18 = vpop.permute.xlu2 %1195 }
 0x533   : > { %v1161_v34 = vpop.permute.xlu0 %1160 }
 0x534   : > { %v1169_v40 = vsel %vm15860_vm12, %v1159_v25, %v1161_v34  ;;  %v1318_v25 = vperm.slane %v9158_v38, 0 }
 0x535   : > { %1177 = vst [vmem:[#allocation3 + $0x190] sm:$0xf0] %v1169_v40  ;;  %v1321_v40 = vperm.slane %v9158_v38, 3 }
 0x53b   : > { %v1167_v43 = vpop.permute.xlu0 %1166 }
 0x53c   : > { %v1163_v44 = vpop.permute.xlu1 %1162  ;;  %v1172_v45 = vsel %vm15860_vm12, %v1165_v46, %v1167_v43 }
 0x53d   : > { %v1170_v37 = vsel %vm15860_vm12, %v1161_v34, %v1163_v44  ;;  %v1171_v47 = vsel %vm15860_vm12, %v1163_v44, %v1165_v46  ;;  %1180 = vst [vmem:[#allocation3 + $0x120] sm:$0xf0] %v1172_v45  ;;  %vm15866_vm12 = vcmask 441344   ;;  %v1319_v34 = vperm.slane %v9158_v38, 1 }
 0x53e   : > { %1178 = vst [vmem:[#allocation3 + $0x250] sm:$0xf0] %v1170_v37 }
 0x53f   : > { %1179 = vst [vmem:[#allocation3 + $0x8] sm:$0xf0] %v1171_v47 }
 0x543   : > { %v1198_v48 = vpop.permute.xlu0 %1197 }
 0x544   : > { %v1194_v50 = vpop.permute.xlu1 %1193  ;;  %v1203_v51 = vsel %vm15861_vm10, %v1196_v18, %v1198_v48 }
 0x545   : > { %v1202_v52 = vsel %vm15861_vm10, %v1194_v50, %v1196_v18  ;;  %v1210_v41 = vmul.f32 %v1194_v50, %v1181_v49  ;;  %v1212_v56 = vmul.f32 %v1203_v51, %v1183_v24  ;;  %v1310_v24 = vld [vmem:[#allocation2] sm:$0xf] }
 0x546   : > { %v1211_v58 = vmul.f32 %v1202_v52, %v1182_v55  ;;  %v1312_v55 = vld [vmem:[#allocation2 + $0x10] sm:$0xf] }
 0x547   : > { %1220 = vrot.lane.b32.xlu2 %v1210_v41, %s15862_s18  ;;  %1224 = vrot.lane.b32.xlu1 %v1212_v56, %s15862_s18 }
 0x548   : > { %1222 = vrot.lane.b32.xlu0 %v1211_v58, %s15862_s18 }
 0x54c   : > { %v1200_v63 = vpop.permute.xlu1 %1199 }
 0x54d   : > { %v1204_v61 = vsel %vm15861_vm10, %v1198_v48, %v1200_v63  ;;  %v1214_v62 = vmul.f32 %v1200_v63, %v1185_v57  ;;  %vm15867_vm10 = vcmask 654336   ;;  %v9159_v63 = vld [vmem:[%s16162_s5 + $0x41] ss:$8 sm:$0xf] }
 0x54e   : > { %v1213_v1 = vmul.f32 %v1204_v61, %v1184_v0  ;;  %v1380_v61 = vperm.slane %v9159_v63, 0 }
 0x54f   : > { %1255 = vrot.lane.b32.xlu1 %v1251_v59, %s15864_s14 }
 0x550   : > { %1228 = vrot.lane.b32.xlu0 %v1214_v62, %s15862_s18  ;;  %1226 = vrot.lane.b32.xlu2 %v1213_v1, %s15862_s18  ;;  %s15874_s18 = smov 47   ;;  %v1314_v62 = vld [vmem:[#allocation2 + $0x20] sm:$0xf] }
 0x557   : > { %1261 = vrot.lane.b32.xlu1 %v1254_v53, %s15864_s14 }
 0x558   : > { %1259 = vrot.lane.b32.xlu0 %v1253_v4, %s15864_s14  ;;  %1257 = vrot.lane.b32.xlu2 %v1252_v22, %s15864_s14  ;;  %s15868_s14 = smov 81   ;;  %v1313_v4 = vld [vmem:[#allocation2 + $0x18] sm:$0xf] }
 0x5a1   : > { %v1221_v32 = vpop.permute.xlu2 %1220 }
 0x5aa   : > { %v1227_v5 = vpop.permute.xlu2 %1226 }
 0x5b2   : > { %v1258_v3 = vpop.permute.xlu2 %1257 }
 0x5b9   : > { %v1225_v6 = vpop.permute.xlu1 %1224 }
 0x5ba   : > { %v1233_v7 = vsel %vm15866_vm12, %v1225_v6, %v1227_v5  ;;  %v1223_v8 = vpop.permute.xlu0 %1222 }
 0x5bb   : > { %1241 = vst [vmem:[#allocation3 + $0x280] sm:$0xf] %v1233_v7  ;;  %v1231_v9 = vsel %vm15866_vm12, %v1221_v32, %v1223_v8  ;;  %v1232_v42 = vsel %vm15866_vm12, %v1223_v8, %v1225_v6  ;;  %v1383_v32 = vperm.slane %v9159_v63, 3  ;;  %v1381_v6 = vperm.slane %v9159_v63, 1 }
 0x5bc   : > { %1239 = vst [vmem:[#allocation3 + $0x1d8] sm:$0xf] %v1231_v9 }
 0x5bd   : > { %1240 = vst [vmem:[#allocation3 + $0x248] sm:$0xf] %v1232_v42 }
 0x5c1   : > { %v1256_v11 = vpop.permute.xlu1 %1255 }
 0x5c2   : > { %v1264_v12 = vsel %vm15867_vm10, %v1256_v11, %v1258_v3  ;;  %v1272_v13 = vmul.f32 %v1256_v11, %v1243_v10  ;;  %v1229_v15 = vpop.permute.xlu0 %1228 }
 0x5c3   : > { %v1234_v17 = vsel %vm15866_vm12, %v1227_v5, %v1229_v15  ;;  %v1273_v19 = vmul.f32 %v1264_v12, %v1244_v16  ;;  %vm15873_vm12 = vcmask 392192   ;;  %v1382_v5 = vperm.slane %v9159_v63, 2  ;;  %v1373_v16 = vld [vmem:[#allocation2 + $0x8] sm:$0xf] }
 0x5c4   : > { %1242 = vst [vmem:[#allocation3 + $0x260] sm:$0xf] %v1234_v17  ;;  %v1282_v54 = vrot.slane %v1272_v13, 4  ;;  %v1372_v13 = vld [vmem:[#allocation2] sm:$0xf] }
 0x5c5   : > { %v1283_v21 = vrot.slane %v1273_v19, 4  ;;  %v9984_v63 = vld [vmem:[%s16162_s5 + $0x44] ss:$8 sm:$0xf] }
 0x5c6   : > { %1287 = vrot.lane.b32.xlu2 %v1282_v54, %s15870_s22 }
 0x5c7   : > { %1289 = vrot.lane.b32.xlu0 %v1283_v21, %s15870_s22 }
 0x5c9   : > { %v1262_v26 = vpop.permute.xlu1 %1261 }
 0x5ca   : > { %v1276_v27 = vmul.f32 %v1262_v26, %v1247_v23  ;;  %v1260_v2 = vpop.permute.xlu0 %1259 }
 0x5cb   : > { %v1265_v28 = vsel %vm15867_vm10, %v1258_v3, %v1260_v2  ;;  %v1266_v29 = vsel %vm15867_vm10, %v1260_v2, %v1262_v26  ;;  %vm15872_vm10 = vcmask 662528   ;;  %v1376_v2 = vld [vmem:[#allocation2 + $0x20] sm:$0xf] }
 0x5cc   : > { %v1286_v14 = vrot.slane %v1276_v27, 4  ;;  %v1275_v20 = vmul.f32 %v1266_v29, %v1246_v30  ;;  %v1274_v33 = vmul.f32 %v1265_v28, %v1245_v31  ;;  %v1374_v31 = vld [vmem:[#allocation2 + $0x10] sm:$0xf] }
 0x5ce   : > { %v1285_v35 = vrot.slane %v1275_v20, 4  ;;  %v1284_v36 = vrot.slane %v1274_v33, 4 }
 0x5cf   : > { %1295 = vrot.lane.b32.xlu0 %v1286_v14, %s15870_s22  ;;  %v1375_v14 = vld [vmem:[#allocation2 + $0x18] sm:$0xf] }
 0x5d0   : > { %1293 = vrot.lane.b32.xlu2 %v1285_v35, %s15870_s22  ;;  %1291 = vrot.lane.b32.xlu1 %v1284_v36, %s15870_s22  ;;  %s15876_s22 = smov 82  }
 0x5d7   : > { %1326 = vrot.lane.b32.xlu0 %v1320_v39, %s15868_s14 }
 0x5d8   : > { %1322 = vrot.lane.b32.xlu1 %v1318_v25, %s15868_s14  ;;  %1324 = vrot.lane.b32.xlu2 %v1319_v34, %s15868_s14  ;;  %v9161_v34 = vld [vmem:[%s16162_s5 + $0x43] ss:$8 sm:$0xf] }
 0x5e0   : > { %1328 = vrot.lane.b32.xlu1 %v1321_v40, %s15868_s14  ;;  %s15880_s14 = smov 46   ;;  %v1472_v40 = vperm.slane %v9161_v34, 2 }
 0x620   : > { %v1288_v46 = vpop.permute.xlu2 %1287 }
 0x62a   : > { %v1294_v45 = vpop.permute.xlu2 %1293 }
 0x632   : > { %v1325_v50 = vpop.permute.xlu2 %1324 }
 0x639   : > { %v1290_v43 = vpop.permute.xlu0 %1289 }
 0x63a   : > { %v1298_v44 = vsel %vm15873_vm12, %v1288_v46, %v1290_v43  ;;  %v1471_v46 = vperm.slane %v9161_v34, 1 }
 0x63b   : > { %1306 = vst [vmem:[#allocation3 + $0x1d8] sm:$0xf0] %v1298_v44  ;;  %v9931_v44 = vld [vmem:[%s16162_s5 + $0x62] ss:$8 sm:$0xf] }
 0x641   : > { %v1296_v37 = vpop.permute.xlu0 %1295 }
 0x642   : > { %v1292_v47 = vpop.permute.xlu1 %1291  ;;  %v1301_v18 = vsel %vm15873_vm12, %v1294_v45, %v1296_v37  ;;  %v1910_v37 = vperm.slane %v9931_v44, 0 }
 0x643   : > { %v1299_v48 = vsel %vm15873_vm12, %v1290_v43, %v1292_v47  ;;  %v1300_v49 = vsel %vm15873_vm12, %v1292_v47, %v1294_v45  ;;  %1309 = vst [vmem:[#allocation3 + $0x260] sm:$0xf0] %v1301_v18  ;;  %vm15890_vm12 = vcmask 670720   ;;  %v1470_v43 = vperm.slane %v9161_v34, 0 }
 0x644   : > { %1307 = vst [vmem:[#allocation3 + $0x248] sm:$0xf0] %v1299_v48  ;;  %v1911_v45 = vperm.slane %v9931_v44, 1  ;;  %v1473_v47 = vperm.slane %v9161_v34, 3 }
 0x645   : > { %1308 = vst [vmem:[#allocation3 + $0x280] sm:$0xf0] %v1300_v49  ;;  %v9941_v18 = vld [vmem:[%s16162_s5 + $0x47] ss:$8 sm:$0xf] }
 0x646   : > { %v9946_v48 = vld [vmem:[%s16162_s5 + $0x61] ss:$8 sm:$0xf]  ;;  %v1720_v49 = vperm.slane %v9941_v18, 0 }
 0x649   : > { %v1327_v51 = vpop.permute.xlu0 %1326 }
 0x64a   : > { %v1323_v52 = vpop.permute.xlu1 %1322  ;;  %v1332_v41 = vsel %vm15872_vm10, %v1325_v50, %v1327_v51 }
 0x64b   : > { %v1331_v56 = vsel %vm15872_vm10, %v1323_v52, %v1325_v50  ;;  %v1339_v58 = vmul.f32 %v1323_v52, %v1310_v24  ;;  %v1341_v59 = vmul.f32 %v1332_v41, %v1312_v55  ;;  %v1846_v50 = vperm.slane %v9946_v48, 1  ;;  %v9957_v24 = vld [vmem:[%s16162_s5 + $0x60] ss:$8 sm:$0xf] }
 0x64c   : > { %v1340_v57 = vmul.f32 %v1331_v56, %v1311_v60  ;;  %v1786_v52 = vperm.slane %v9957_v24, 1  ;;  %v1785_v41 = vperm.slane %v9957_v24, 0  ;;  %v1721_v55 = vperm.slane %v9941_v18, 1  ;;  %v9968_v56 = vld [vmem:[%s16162_s5 + $0x46] ss:$8 sm:$0xf] }
 0x64d   : > { %1349 = vrot.lane.b32.xlu2 %v1339_v58, %s15874_s18  ;;  %1353 = vrot.lane.b32.xlu1 %v1341_v59, %s15874_s18  ;;  %v9973_v58 = vld [vmem:[%s16162_s5 + $0x45] ss:$8 sm:$0xf]  ;;  %v1660_v60 = vperm.slane %v9968_v56, 0 }
 0x64e   : > { %1351 = vrot.lane.b32.xlu0 %v1340_v57, %s15874_s18  ;;  %v1596_v59 = vperm.slane %v9973_v58, 1  ;;  %v1595_v57 = vperm.slane %v9973_v58, 0 }
 0x652   : > { %v1329_v0 = vpop.permute.xlu1 %1328 }
 0x653   : > { %v1333_v1 = vsel %vm15872_vm10, %v1327_v51, %v1329_v0  ;;  %v1343_v53 = vmul.f32 %v1329_v0, %v1314_v62  ;;  %vm15882_vm10 = vcmask 384000   ;;  %v1845_v51 = vperm.slane %v9946_v48, 0 }
 0x654   : > { %v1342_v22 = vmul.f32 %v1333_v1, %v1313_v4  ;;  %v1535_v62 = vperm.slane %v9984_v63, 0  ;;  %v1661_v0 = vperm.slane %v9968_v56, 1  ;;  %v1722_v1 = vperm.slane %v9941_v18, 2 }
 0x655   : > { %1384 = vrot.lane.b32.xlu1 %v1380_v61, %s15876_s22  ;;  %v1536_v61 = vperm.slane %v9984_v63, 1  ;;  %v1912_v4 = vperm.slane %v9931_v44, 2 }
 0x656   : > { %1357 = vrot.lane.b32.xlu0 %v1343_v53, %s15874_s18  ;;  %1355 = vrot.lane.b32.xlu2 %v1342_v22, %s15874_s18  ;;  %s16163_s18 = smov 8   ;;  %v1847_v53 = vperm.slane %v9946_v48, 2  ;;  %v1662_v22 = vperm.slane %v9968_v56, 2 }
 0x65d   : > { %1390 = vrot.lane.b32.xlu1 %v1383_v32, %s15876_s22  ;;  %v1597_v32 = vperm.slane %v9973_v58, 2 }
 0x65e   : > { %1388 = vrot.lane.b32.xlu0 %v1382_v5, %s15876_s22  ;;  %1386 = vrot.lane.b32.xlu2 %v1381_v6, %s15876_s22  ;;  %v1787_v5 = vperm.slane %v9957_v24, 2  ;;  %v1537_v6 = vperm.slane %v9984_v63, 2  ;;  %s16165_s22 = smov 118  }
 0x6a7   : > { %v1350_v7 = vpop.permute.xlu2 %1349 }
 0x6b0   : > { %v1356_v8 = vpop.permute.xlu2 %1355 }
 0x6b8   : > { %v1387_v12 = vpop.permute.xlu2 %1386 }
 0x6bf   : > { %v1354_v9 = vpop.permute.xlu1 %1353 }
 0x6c0   : > { %v1362_v42 = vsel %vm15882_vm10, %v1354_v9, %v1356_v8  ;;  %v1352_v3 = vpop.permute.xlu0 %1351 }
 0x6c1   : > { %1370 = vst [vmem:[#allocation3 + $0xc0] sm:$0xf] %v1362_v42  ;;  %v1360_v10 = vsel %vm15882_vm10, %v1350_v7, %v1352_v3  ;;  %v1361_v11 = vsel %vm15882_vm10, %v1352_v3, %v1354_v9  ;;  %v1902_v3 = vld [vmem:[#allocation2 + $0x8] sm:$0xf] }
 0x6c2   : > { %1368 = vst [vmem:[#allocation3 + $0x158] sm:$0xf] %v1360_v10 }
 0x6c3   : > { %1369 = vst [vmem:[#allocation3 + $0x180] sm:$0xf] %v1361_v11 }
 0x6c7   : > { %v1385_v15 = vpop.permute.xlu1 %1384 }
 0x6c8   : > { %v1393_v17 = vsel %vm15890_vm12, %v1385_v15, %v1387_v12  ;;  %v1401_v19 = vmul.f32 %v1385_v15, %v1372_v13  ;;  %v1358_v54 = vpop.permute.xlu0 %1357 }
 0x6c9   : > { %v1402_v21 = vmul.f32 %v1393_v17, %v1373_v16  ;;  %v1363_v23 = vsel %vm15882_vm10, %v1356_v8, %v1358_v54  ;;  %vm15889_vm10 = vcmask 375808  }
 0x6ca   : > { %v1411_v26 = vrot.slane %v1401_v19, 4  ;;  %1371 = vst [vmem:[#allocation3 + $0x60] sm:$0xf] %v1363_v23  ;;  %v1777_v23 = vld [vmem:[#allocation2 + $0x8] sm:$0xf] }
 0x6cb   : > { %v1412_v27 = vrot.slane %v1402_v21, 4 }
 0x6cc   : > { %1416 = vrot.lane.b32.xlu2 %v1411_v26, %s15880_s14 }
 0x6cd   : > { %1418 = vrot.lane.b32.xlu0 %v1412_v27, %s15880_s14 }
 0x6cf   : > { %v1391_v28 = vpop.permute.xlu1 %1390 }
 0x6d0   : > { %v1405_v29 = vmul.f32 %v1391_v28, %v1376_v2  ;;  %v1389_v30 = vpop.permute.xlu0 %1388 }
 0x6d1   : > { %v1394_v20 = vsel %vm15890_vm12, %v1387_v12, %v1389_v30  ;;  %v1395_v33 = vsel %vm15890_vm12, %v1389_v30, %v1391_v28  ;;  %v1903_v30 = vld [vmem:[#allocation2 + $0x10] sm:$0xf]  ;;  %vm16171_vm12 = vcmask 973824  }
 0x6d2   : > { %v1415_v35 = vrot.slane %v1405_v29, 4  ;;  %v1403_v36 = vmul.f32 %v1394_v20, %v1374_v31  ;;  %v1404_v38 = vmul.f32 %v1395_v33, %v1375_v14  ;;  %v1837_v33 = vld [vmem:[#allocation2 + $0x8] sm:$0xf] }
 0x6d4   : > { %v1413_v39 = vrot.slane %v1403_v36, 4  ;;  %v1414_v25 = vrot.slane %v1404_v38, 4  ;;  %v1838_v36 = vld [vmem:[#allocation2 + $0x10] sm:$0xf] }
 0x6d5   : > { %1424 = vrot.lane.b32.xlu0 %v1415_v35, %s15880_s14 }
 0x6d6   : > { %1422 = vrot.lane.b32.xlu2 %v1414_v25, %s15880_s14  ;;  %1420 = vrot.lane.b32.xlu1 %v1413_v39, %s15880_s14  ;;  %s16166_s14 = smov 119  }
 0x6dd   : > { %1478 = vrot.lane.b32.xlu0 %v1472_v40, %s15883_s20 }
 0x6de   : > { %1476 = vrot.lane.b32.xlu2 %v1471_v46, %s15883_s20  ;;  %1474 = vrot.lane.b32.xlu1 %v1470_v43, %s15883_s20  ;;  %v1712_v43 = vld [vmem:[#allocation2 + $0x8] sm:$0xf] }
 0x6e5   : > { %1916 = vrot.lane.b32.xlu0 %v1911_v45, %s15934_s9 }
 0x6e6   : > { %1914 = vrot.lane.b32.xlu2 %v1910_v37, %s15934_s9  ;;  %1480 = vrot.lane.b32.xlu1 %v1473_v47, %s15883_s20  ;;  %s16168_s20 = smov 120  }
 0x6ed   : > { %1724 = vrot.lane.b32.xlu0 %v1720_v49, %s15930_s19  ;;  %v1778_v49 = vld [vmem:[#allocation2 + $0x10] sm:$0xf] }
 0x6ee   : > { %1851 = vrot.lane.b32.xlu2 %v1846_v50, %s15932_s13  ;;  %1849 = vrot.lane.b32.xlu1 %v1845_v51, %s15932_s13 }
 0x6f5   : > { %1791 = vrot.lane.b32.xlu0 %v1786_v52, %s15898_s8 }
 0x6f6   : > { %1789 = vrot.lane.b32.xlu2 %v1785_v41, %s15898_s8  ;;  %1726 = vrot.lane.b32.xlu1 %v1721_v55, %s15930_s19  ;;  %v1652_v41 = vld [vmem:[#allocation2 + $0x8] sm:$0xf] }
 0x6fd   : > { %1664 = vrot.lane.b32.xlu0 %v1660_v60, %s15887_s16 }
 0x6fe   : > { %1601 = vrot.lane.b32.xlu2 %v1596_v59, %s16163_s18  ;;  %1599 = vrot.lane.b32.xlu1 %v1595_v57, %s16163_s18 }
 0x705   : > { %1541 = vrot.lane.b32.xlu0 %v1536_v61, %s16164_s21 }
 0x706   : > { %1539 = vrot.lane.b32.xlu2 %v1535_v62, %s16164_s21  ;;  %1666 = vrot.lane.b32.xlu1 %v1661_v0, %s15887_s16  ;;  %v1527_v62 = vld [vmem:[#allocation2 + $0x8] sm:$0xf] }
 0x70d   : > { %1728 = vrot.lane.b32.xlu0 %v1722_v1, %s15930_s19  ;;  %v1713_v1 = vld [vmem:[#allocation2 + $0x10] sm:$0xf] }
 0x70e   : > { %1853 = vrot.lane.b32.xlu2 %v1847_v53, %s15932_s13  ;;  %1918 = vrot.lane.b32.xlu1 %v1912_v4, %s15934_s9 }
 0x715   : > { %1668 = vrot.lane.b32.xlu0 %v1662_v22, %s15887_s16  ;;  %v1588_v22 = vld [vmem:[#allocation2 + $0x10] sm:$0xf] }
 0x716   : > { %1603 = vrot.lane.b32.xlu2 %v1597_v32, %s16163_s18  ;;  %1793 = vrot.lane.b32.xlu1 %v1787_v5, %s15898_s8 }
 0x71e   : > { %1543 = vrot.lane.b32.xlu1 %v1537_v6, %s16164_s21 }
 0x726   : > { %v1417_v7 = vpop.permute.xlu2 %1416 }
 0x730   : > { %v1423_v8 = vpop.permute.xlu2 %1422 }
 0x738   : > { %v10006_v9 = vpop.permute.xlu2 %1476 }
 0x73f   : > { %v1419_v42 = vpop.permute.xlu0 %1418 }
 0x740   : > { %v1915_v10 = vpop.permute.xlu2 %1914  ;;  %v1427_v11 = vsel %vm15889_vm10, %v1417_v7, %v1419_v42  ;;  %v1653_v7 = vld [vmem:[#allocation2 + $0x10] sm:$0xf] }
 0x741   : > { %v1930_v12 = vmul.f32 %v1915_v10, %v1902_v3  ;;  %1435 = vst [vmem:[#allocation3 + $0x158] sm:$0xf0] %v1427_v11 }
 0x743   : > { %1940 = vrot.lane.b32.xlu2 %v1930_v12, %s15928_s23 }
 0x747   : > { %v1425_v13 = vpop.permute.xlu0 %1424 }
 0x748   : > { %v10010_v15 = vpop.permute.xlu2 %1851  ;;  %v1421_v16 = vpop.permute.xlu1 %1420  ;;  %v1430_v17 = vsel %vm15889_vm10, %v1423_v8, %v1425_v13  ;;  %v1463_v13 = vld [vmem:[#allocation2 + $0x10] sm:$0xf] }
 0x749   : > { %v1428_v19 = vsel %vm15889_vm10, %v1419_v42, %v1421_v16  ;;  %v1429_v54 = vsel %vm15889_vm10, %v1421_v16, %v1423_v8  ;;  %1438 = vst [vmem:[#allocation3 + $0x60] sm:$0xf0] %v1430_v17  ;;  %v1528_v17 = vld [vmem:[#allocation2 + $0x10] sm:$0xf]  ;;  %vm2027_vm10 = vcmask 1043456  }
 0x74a   : > { %1436 = vst [vmem:[#allocation3 + $0x180] sm:$0xf0] %v1428_v19  ;;  %v1913_v19 = vperm.slane %v9931_v44, 3  ;;  %v1462_v44 = vld [vmem:[#allocation2 + $0x8] sm:$0xf] }
 0x74b   : > { %1437 = vst [vmem:[#allocation3 + $0xc0] sm:$0xf0] %v1429_v54 }
 0x74f   : > { %v10015_v21 = vpop.permute.xlu0 %1478 }
 0x750   : > { %v1790_v26 = vpop.permute.xlu2 %1789  ;;  %v10017_v27 = vpop.permute.xlu1 %1474 }
 0x751   : > { %v1805_v2 = vmul.f32 %v1790_v26, %v1777_v23  ;;  %v1482_v11 = vsel %vm363_vm5, %v10017_v27, %v10006_v9 }
 0x752   : > { %v1491_v16 = vmul.f32 %v1482_v11, %v1463_v13 }
 0x753   : > { %1815 = vrot.lane.b32.xlu1 %v1805_v2, %s15896_s15 }
 0x754   : > { %v1501_v23 = vrot.slane %v1491_v16, 4 }
 0x757   : > { %v10020_v28 = vpop.permute.xlu0 %1916 }
 0x758   : > { %v10022_v29 = vpop.permute.xlu1 %1480  ;;  %v1922_v31 = vsel %vm282_vm0, %v1915_v10, %v10020_v28  ;;  %v10031_v46 = vpop.permute.xlu2 %1601 }
 0x759   : > { %v1931_v14 = vmul.f32 %v1922_v31, %v1903_v30  ;;  %v1848_v30 = vperm.slane %v9946_v48, 3 }
 0x75b   : > { %1942 = vrot.lane.b32.xlu0 %v1931_v14, %s15928_s23  ;;  %v1598_v14 = vperm.slane %v9973_v58, 3 }
 0x75f   : > { %v1725_v20 = vpop.permute.xlu0 %1724 }
 0x760   : > { %v1850_v35 = vpop.permute.xlu1 %1849  ;;  %v1740_v37 = vmul.f32 %v1725_v20, %v1712_v43  ;;  %v1540_v57 = vpop.permute.xlu2 %1539 }
 0x761   : > { %v1857_v38 = vsel %vm750_vm15, %v1850_v35, %v10010_v15  ;;  %v1865_v39 = vmul.f32 %v1850_v35, %v1837_v33  ;;  %v1555_v0 = vmul.f32 %v1540_v57, %v1527_v62  ;;  %v1490_v33 = vmul.f32 %v10017_v27, %v1462_v44 }
 0x762   : > { %v1866_v25 = vmul.f32 %v1857_v38, %v1838_v36  ;;  %v1750_v52 = vrot.slane %v1740_v37, 4  ;;  %v1723_v36 = vperm.slane %v9941_v18, 3  ;;  %v1788_v18 = vperm.slane %v9957_v24, 3  ;;  %v1654_v37 = vld [vmem:[#allocation2 + $0x18] sm:$0xf] }
 0x763   : > { %v1875_v34 = vrot.slane %v1865_v39, 4  ;;  %v1500_v58 = vrot.slane %v1490_v33, 4  ;;  %v1904_v39 = vld [vmem:[#allocation2 + $0x18] sm:$0xf] }
 0x764   : > { %v1876_v40 = vrot.slane %v1866_v25, 4 }
 0x765   : > { %1880 = vrot.lane.b32.xlu0 %v1875_v34, %s15885_s29  ;;  %v1663_v34 = vperm.slane %v9968_v56, 3  ;;  %v1589_v56 = vld [vmem:[#allocation2 + $0x18] sm:$0xf] }
 0x766   : > { %1882 = vrot.lane.b32.xlu1 %v1876_v40, %s15885_s29  ;;  %s16169_s29 = smov 127  }
 0x767   : > { %v10033_v45 = vpop.permute.xlu0 %1791 }
 0x768   : > { %v10035_v47 = vpop.permute.xlu1 %1726  ;;  %v1797_v50 = vsel %vm688_vm8, %v1790_v26, %v10033_v45  ;;  %v1587_v26 = vld [vmem:[#allocation2 + $0x8] sm:$0xf]  ;;  %v10073_v38 = vpop.permute.xlu2 %1853 }
 0x769   : > { %v1806_v51 = vmul.f32 %v1797_v50, %v1778_v49  ;;  %v1732_v61 = vsel %vm621_vm7, %v1725_v20, %v10035_v47 }
 0x76a   : > { %v1741_v53 = vmul.f32 %v1732_v61, %v1713_v1 }
 0x76b   : > { %1817 = vrot.lane.b32.xlu2 %v1806_v51, %s15896_s15 }
 0x76c   : > { %v1751_v6 = vrot.slane %v1741_v53, 4 }
 0x76e   : > { %1755 = vrot.lane.b32.xlu1 %v1750_v52, %s16165_s22  ;;  %v1779_v52 = vld [vmem:[#allocation2 + $0x18] sm:$0xf] }
 0x76f   : > { %v1665_v55 = vpop.permute.xlu0 %1664 }
 0x770   : > { %v1600_v60 = vpop.permute.xlu1 %1599  ;;  %v1680_v59 = vmul.f32 %v1665_v55, %v1652_v41  ;;  %v10087_v43 = vpop.permute.xlu2 %1603  ;;  %v1538_v41 = vperm.slane %v9984_v63, 3 }
 0x771   : > { %v1607_v4 = vsel %vm492_vm6, %v1600_v60, %v10031_v46  ;;  %v1615_v2 = vmul.f32 %v1600_v60, %v1587_v26  ;;  %v1608_v50 = vsel %vm492_vm6, %v10031_v46, %v10087_v43  ;;  %v1858_v46 = vsel %vm750_vm15, %v10010_v15, %v10073_v38  ;;  %v1464_v15 = vld [vmem:[#allocation2 + $0x18] sm:$0xf] }
 0x772   : > { %v1616_v32 = vmul.f32 %v1607_v4, %v1588_v22  ;;  %v1617_v51 = vmul.f32 %v1608_v50, %v1589_v56 }
 0x773   : > { %1690 = vrot.lane.b32.xlu2 %v1680_v59, %s16166_s14  ;;  %v1625_v31 = vrot.slane %v1615_v2, 4 }
 0x774   : > { %v1626_v10 = vrot.slane %v1616_v32, 4  ;;  %v1627_v59 = vrot.slane %v1617_v51, 4  ;;  %v1529_v32 = vld [vmem:[#allocation2 + $0x18] sm:$0xf] }
 0x776   : > { %1565 = vrot.lane.b32.xlu1 %v1555_v0, %s16167_s17 }
 0x777   : > { %v10048_v3 = vpop.permute.xlu0 %1541 }
 0x778   : > { %v1667_v5 = vpop.permute.xlu1 %1666  ;;  %v1547_v12 = vsel %vm430_vm3, %v1540_v57, %v10048_v3  ;;  %v1839_v57 = vld [vmem:[#allocation2 + $0x18] sm:$0xf] }
 0x779   : > { %v1672_v8 = vsel %vm559_vm4, %v1665_v55, %v1667_v5  ;;  %v1556_v54 = vmul.f32 %v1547_v12, %v1528_v17  ;;  %v1867_v62 = vmul.f32 %v1858_v46, %v1839_v57 }
 0x77a   : > { %v1681_v42 = vmul.f32 %v1672_v8, %v1653_v7 }
 0x77b   : > { %1757 = vrot.lane.b32.xlu2 %v1751_v6, %s16165_s22  ;;  %v1877_v0 = vrot.slane %v1867_v62, 4 }
 0x77c   : > { %1692 = vrot.lane.b32.xlu0 %v1681_v42, %s16166_s14 }
 0x77e   : > { %1632 = vrot.lane.b32.xlu1 %v1626_v10, %s16168_s20 }
 0x77f   : > { %v10065_v20 = vpop.permute.xlu0 %1728 }
 0x780   : > { %v10069_v35 = vpop.permute.xlu1 %1918  ;;  %v1733_v60 = vsel %vm621_vm7, %v10035_v47, %v10065_v20  ;;  %v1483_v47 = vsel %vm363_vm5, %v10006_v9, %v10015_v21 }
 0x781   : > { %v1923_v48 = vsel %vm282_vm0, %v10020_v28, %v10069_v35  ;;  %v1492_v53 = vmul.f32 %v1483_v47, %v1464_v15 }
 0x782   : > { %v1932_v25 = vmul.f32 %v1923_v48, %v1904_v39  ;;  %v1840_v39 = vld [vmem:[#allocation2 + $0x20] sm:$0xf] }
 0x783   : > { %1567 = vrot.lane.b32.xlu2 %v1556_v54, %s16167_s17  ;;  %v1502_v22 = vrot.slane %v1492_v53, 4 }
 0x784   : > { %1920 = vrot.lane.b32.xlu0 %v1913_v19, %s15934_s9  ;;  %s16249_s9 = smov 48  }
 0x786   : > { %1507 = vrot.lane.b32.xlu1 %v1501_v23, %s16169_s29 }
 0x787   : > { %v10080_v27 = vpop.permute.xlu0 %1668 }
 0x788   : > { %v1673_v40 = vsel %vm559_vm4, %v1667_v5, %v10080_v27  ;;  %v10089_v28 = vpop.permute.xlu1 %1793 }
 0x789   : > { %v1682_v49 = vmul.f32 %v1673_v40, %v1654_v37  ;;  %v1798_v24 = vsel %vm688_vm8, %v10033_v45, %v10089_v28  ;;  %v1714_v45 = vld [vmem:[#allocation2 + $0x18] sm:$0xf] }
 0x78a   : > { %v1807_v55 = vmul.f32 %v1798_v24, %v1779_v52  ;;  %v1742_v61 = vmul.f32 %v1733_v60, %v1714_v45  ;;  %v1905_v60 = vld [vmem:[#allocation2 + $0x20] sm:$0xf] }
 0x78b   : > { %1855 = vrot.lane.b32.xlu2 %v1848_v30, %s15932_s13  ;;  %s16237_s13 = smov 65  }
 0x78c   : > { %1630 = vrot.lane.b32.xlu0 %v1625_v31, %s16168_s20  ;;  %v1752_v63 = vrot.slane %v1742_v61, 4 }
 0x78e   : > { %1605 = vrot.lane.b32.xlu1 %v1598_v14, %s16163_s18 }
 0x790   : > { %v10114_v1 = vpop.permute.xlu1 %1543 }
 0x791   : > { %v1548_v4 = vsel %vm430_vm3, %v10048_v3, %v10114_v1 }
 0x792   : > { %v1557_v5 = vmul.f32 %v1548_v4, %v1529_v32 }
 0x793   : > { %1730 = vrot.lane.b32.xlu2 %v1723_v36, %s15930_s19  ;;  %s16228_s19 = smov 1  }
 0x794   : > { %1505 = vrot.lane.b32.xlu0 %v1500_v58, %s16169_s29 }
 0x796   : > { %1944 = vrot.lane.b32.xlu1 %v1932_v25, %s15928_s23 }
 0x79b   : > { %1670 = vrot.lane.b32.xlu2 %v1663_v34, %s15887_s16  ;;  %s16170_s16 = smov 111  }
 0x79c   : > { %1795 = vrot.lane.b32.xlu0 %v1788_v18, %s15898_s8  ;;  %s16227_s8 = smov 73  }
 0x79d   : > { %v1941_v9 = vpop.permute.xlu2 %1940 }
 0x79e   : > { %1694 = vrot.lane.b32.xlu1 %v1682_v49, %s16166_s14 }
 0x7a3   : > { %1819 = vrot.lane.b32.xlu2 %v1807_v55, %s15896_s15 }
 0x7a4   : > { %1545 = vrot.lane.b32.xlu0 %v1538_v41, %s16164_s21 }
 0x7a6   : > { %1634 = vrot.lane.b32.xlu1 %v1627_v59, %s16168_s20 }
 0x7ab   : > { %1759 = vrot.lane.b32.xlu2 %v1752_v63, %s16165_s22 }
 0x7ac   : > { %1884 = vrot.lane.b32.xlu0 %v1877_v0, %s16170_s16 }
 0x7b3   : > { %1509 = vrot.lane.b32.xlu2 %v1502_v22, %s16169_s29  ;;  %v1655_v22 = vld [vmem:[#allocation2 + $0x20] sm:$0xf] }
 0x7b4   : > { %1569 = vrot.lane.b32.xlu0 %v1557_v5, %s16167_s17 }
 0x7c5   : > { %v1816_v6 = vpop.permute.xlu1 %1815  ;;  %v10122_v7 = vpop.permute.xlu2 %1817 }
 0x7c6   : > { %v1825_v8 = vsel %vm15909_vm14, %v1816_v6, %v10122_v7  ;;  %v1590_v6 = vld [vmem:[#allocation2 + $0x20] sm:$0xf] }
 0x7c7   : > { %1833 = vst [vmem:[#allocation3 + $0x2b8] sm:$0xf] %v1825_v8 }
 0x7cd   : > { %v1691_v42 = vpop.permute.xlu2 %1690  ;;  %v10126_v10 = vpop.permute.xlu0 %1942 }
 0x7ce   : > { %v1950_v3 = vsel %vm845_vm11, %v1941_v9, %v10126_v10 }
 0x7cf   : > { %1958 = vst [vmem:[#allocation3 + $0x2e8] sm:$0xf] %v1950_v3 }
 0x7d5   : > { %v10130_v11 = vpop.permute.xlu2 %1757 }
 0x7d6   : > { %v2014_v12 = vld [vmem:[#allocation3 + $0x2e8] sm:$0xf] }
 0x7d7   : > { %v1881_v13 = vpop.permute.xlu0 %1880  ;;  %v2029_v16 = vsel %vm2027_vm10, %v2014_v12, 0 }
 0x7d8   : > { %v10133_v17 = vpop.permute.xlu1 %1882  ;;  %v10135_v19 = vand.u32 4294901760, %v2029_v16 }
 0x7d9   : > { %v1890_v54 = vsel %vm784_vm2, %v1881_v13, %v10133_v17 }
 0x7da   : > { %1898 = vst [vmem:[#allocation3 + $0x2b8] sm:$0xf0] %v1890_v54  ;;  %2043 = vmatpush.msra.mxu0 %v10135_v19  ;;  %2223 = vmatpush.msra.mxu3 %v10135_v19  ;;  %v10142_v23 = vsub.f32 %v2029_v16, %v10135_v19 }
 0x7dc   : > { %2174 = vmatpush.msra.mxu2 %v10142_v23  ;;  %v2083_v26 = vand.u32 4294901760, %v10142_v23 }
 0x7dd   : > { %v10146_v2 = vpop.permute.xlu2 %1567 }
 0x7de   : > { %v2084_v30 = vsub.f32 %v10142_v23, %v2083_v26 }
 0x7e0   : > { %v1756_v31 = vpop.permute.xlu1 %1755  ;;  %v2085_v14 = vand.u32 4294901760, %v2084_v30 }
 0x7e1   : > { %v1765_v44 = vsel %vm15937_vm13, %v1756_v31, %v10130_v11  ;;  %v2010_v33 = vld [vmem:[#allocation3 + $0x2b8] sm:$0xff] }
 0x7e2   : > { %1773 = vst [vmem:[#allocation3 + $0x1c8] sm:$0xf0] %v1765_v44  ;;  %2086 = vmatpush.msra.mxu1 %v2085_v14  ;;  %v10153_v36 = vand.u32 4294901760, %v2010_v33  ;;  %v1994_v31 = vld [vmem:[#allocation3 + $0x158] sm:$0xff] }
 0x7e3   : > { %v1990_v14 = vld [vmem:[#allocation3 + $0x1d8] sm:$0xff] }
 0x7e4   : > { %2045 = vmatpush.msra.mxu0 %v10153_v36  ;;  %2225 = vmatpush.msra.mxu3 %v10153_v36  ;;  %v10158_v48 = vsub.f32 %v2010_v33, %v10153_v36  ;;  %v1781_v44 = vld [vmem:[#allocation2 + $0x28] sm:$0xf] }
 0x7e5   : > { %v10160_v58 = vpop.permute.xlu2 %1855 }
 0x7e6   : > { %v1859_v25 = vsel %vm750_vm15, %v10073_v38, %v10160_v58  ;;  %2177 = vmatpush.msra.mxu2 %v10158_v48  ;;  %v2089_v34 = vand.u32 4294901760, %v10158_v48 }
 0x7e7   : > { %v1868_v18 = vmul.f32 %v1859_v25, %v1840_v39  ;;  %v10238_v39 = vand.u32 4294901760, %v1994_v31 }
 0x7e8   : > { %v1566_v40 = vpop.permute.xlu1 %1565  ;;  %v2090_v37 = vsub.f32 %v10158_v48, %v2089_v34 }
 0x7e9   : > { %v1878_v49 = vrot.slane %v1868_v18, 4  ;;  %v1575_v50 = vsel %vm459_vm9, %v1566_v40, %v10146_v2 }
 0x7ea   : > { %1583 = vst [vmem:[#allocation3 + $0x1a8] sm:$0xf] %v1575_v50  ;;  %v2091_v24 = vand.u32 4294901760, %v2090_v37  ;;  %v1982_v50 = vld [vmem:[#allocation3 + $0x2d0] sm:$0xff] }
 0x7eb   : > { %1886 = vrot.lane.b32.xlu2 %v1878_v49, %s16170_s16  ;;  %v10247_v49 = vand.u32 4294901760, %v1990_v14 }
 0x7ec   : > { %2092 = vmatpush.msra.mxu1 %v2091_v24  ;;  %v1780_v24 = vld [vmem:[#allocation2 + $0x20] sm:$0xf] }
 0x7ed   : > { %v10173_v38 = vpop.permute.xlu2 %1730 }
 0x7ee   : > { %v10175_v56 = vpop.permute.xlu0 %1692 }
 0x7ef   : > { %v1700_v51 = vsel %vm16171_vm12, %v1691_v42, %v10175_v56  ;;  %vm16172_vm12 = vcmask 982016  }
 0x7f0   : > { %1708 = vst [vmem:[#allocation3 + $0x1c8] sm:$0xf] %v1700_v51  ;;  %v10179_v52 = vpop.permute.xlu1 %1632 }
 0x7f5   : > { %v10181_v41 = vpop.permute.xlu2 %1670 }
 0x7f6   : > { %v10183_v55 = vpop.permute.xlu0 %1920 }
 0x7f7   : > { %v1924_v46 = vsel %vm282_vm0, %v10069_v35, %v10183_v55  ;;  %v2006_v59 = vld [vmem:[#allocation3 + $0x1c8] sm:$0xff]  ;;  %v1674_v35 = vsel %vm559_vm4, %v10080_v27, %v10181_v41 }
 0x7f8   : > { %v1933_v45 = vmul.f32 %v1924_v46, %v1905_v60  ;;  %v1508_v57 = vpop.permute.xlu1 %1507  ;;  %v10188_v61 = vand.u32 4294901760, %v2006_v59  ;;  %v1683_v9 = vmul.f32 %v1674_v35, %v1655_v22 }
 0x7fa   : > { %2047 = vmatpush.msra.mxu0 %v10188_v61  ;;  %2227 = vmatpush.msra.mxu3 %v10188_v61  ;;  %v10193_v62 = vsub.f32 %v2006_v59, %v10188_v61 }
 0x7fb   : > { %1946 = vrot.lane.b32.xlu0 %v1933_v45, %s15928_s23 }
 0x7fc   : > { %2180 = vmatpush.msra.mxu2 %v10193_v62  ;;  %v2095_v63 = vand.u32 4294901760, %v10193_v62 }
 0x7fd   : > { %v10198_v47 = vpop.permute.xlu2 %1819 }
 0x7fe   : > { %v1826_v0 = vsel %vm15909_vm14, %v10122_v7, %v10198_v47  ;;  %v1631_v15 = vpop.permute.xlu0 %1630  ;;  %v2096_v53 = vsub.f32 %v10193_v62, %v2095_v63  ;;  %v1531_v62 = vld [vmem:[#allocation2 + $0x28] sm:$0xf] }
 0x7ff   : > { %1834 = vst [vmem:[#allocation3 + $0x228] sm:$0xf] %v1826_v0  ;;  %v1640_v4 = vsel %vm16172_vm12, %v1631_v15, %v10179_v52  ;;  %vm16173_vm12 = vcmask 1039360   ;;  %v10258_v15 = vsub.f32 %v1994_v31, %v10238_v39 }
 0x800   : > { %1648 = vst [vmem:[#allocation3 + $0x1a8] sm:$0xf0] %v1640_v4  ;;  %v10211_v32 = vpop.permute.xlu1 %1605  ;;  %v2097_v5 = vand.u32 4294901760, %v2096_v53  ;;  %v10263_v4 = vand.u32 4294901760, %v1982_v50 }
 0x801   : > { %v1609_v27 = vsel %vm492_vm6, %v10087_v43, %v10211_v32 }
 0x802   : > { %2098 = vmatpush.msra.mxu1 %v2097_v5  ;;  %v1618_v7 = vmul.f32 %v1609_v27, %v1590_v6  ;;  %v10270_v5 = vsub.f32 %v1990_v14, %v10247_v49  ;;  %v1716_v27 = vld [vmem:[#allocation2 + $0x28] sm:$0xf]  ;;  %v1734_v6 = vsel %vm621_vm7, %v10065_v20, %v10173_v38 }
 0x803   : > { %1696 = vrot.lane.b32.xlu0 %v1683_v9, %s16166_s14  ;;  %v1978_v9 = vld [vmem:[#allocation3 + $0x2c0] sm:$0xff]  ;;  %v1744_v31 = vmul.f32 %v10173_v38, %v1716_v27 }
 0x804   : > { %v1628_v54 = vrot.slane %v1618_v7, 4  ;;  %v10287_v20 = vand.u32 4294901760, %v1978_v9 }
 0x805   : > { %v10217_v8 = vpop.permute.xlu2 %1759 }
 0x806   : > { %v1766_v42 = vsel %vm15937_vm13, %v10130_v11, %v10217_v8  ;;  %v1506_v3 = vpop.permute.xlu0 %1505 }
 0x807   : > { %1774 = vst [vmem:[#allocation3 + $0x1c0] sm:$0xf0] %v1766_v42  ;;  %v1515_v12 = vsel %vm16173_vm12, %v1506_v3, %v1508_v57  ;;  %v2002_v13 = vld [vmem:[#allocation3 + $0x1a8] sm:$0xff]  ;;  %v15894_v42 = vand.u32 4294901760, %v10258_v15 }
 0x808   : > { %1523 = vst [vmem:[#allocation3 + $0x1d0] sm:$0xf0] %v1515_v12  ;;  %v10223_v16 = vpop.permute.xlu1 %1944  ;;  %v10225_v43 = vand.u32 4294901760, %v2002_v13  ;;  %v1715_v12 = vld [vmem:[#allocation2 + $0x20] sm:$0xf] }
 0x809   : > { %v1951_v30 = vsel %vm845_vm11, %v10126_v10, %v10223_v16  ;;  %v1986_v10 = vld [vmem:[#allocation3 + $0x190] sm:$0xff] }
 0x80a   : > { %1959 = vst [vmem:[#allocation3 + $0x208] sm:$0xf] %v1951_v30  ;;  %2049 = vmatpush.msra.mxu0 %v10225_v43  ;;  %2229 = vmatpush.msra.mxu3 %v10225_v43  ;;  %v10233_v11 = vsub.f32 %v2002_v13, %v10225_v43  ;;  %v10251_v59 = vand.u32 4294901760, %v1986_v10  ;;  %v10290_v13 = vsub.f32 %v1982_v50, %v10263_v4 }
 0x80b   : > { %1636 = vrot.lane.b32.xlu0 %v1628_v54, %s16168_s20  ;;  %v1974_v54 = vld [vmem:[#allocation3 + $0x18] sm:$0xff]  ;;  %v1743_v30 = vmul.f32 %v1734_v6, %v1715_v12  ;;  %v1754_v6 = vrot.slane %v1744_v31, 4 }
 0x80c   : > { %2183 = vmatpush.msra.mxu2 %v10233_v11  ;;  %v15903_v33 = vand.u32 4294901760, %v10233_v11  ;;  %v10281_v7 = vsub.f32 %v1986_v10, %v10251_v59  ;;  %v15892_v10 = vand.u32 4294901760, %v10270_v5  ;;  %v1466_v31 = vld [vmem:[#allocation2 + $0x28] sm:$0xf] }
 0x80d   : > { %v10240_v25 = vpop.permute.xlu2 %1509  ;;  %v1753_v27 = vrot.slane %v1743_v30, 4 }
 0x80e   : > { %v1516_v18 = vsel %vm16173_vm12, %v1508_v57, %v10240_v25  ;;  %v1796_v40 = vpop.permute.xlu0 %1795  ;;  %v2102_v37 = vsub.f32 %v10233_v11, %v15903_v33  ;;  %vm16174_vm12 = vcmask 973824   ;;  %v2120_v12 = vsub.f32 %v10270_v5, %v15892_v10 }
 0x80f   : > { %1524 = vst [vmem:[#allocation3 + $0x1e0] sm:$0xf0] %v1516_v18  ;;  %v1799_v51 = vsel %vm688_vm8, %v10089_v28, %v1796_v40  ;;  %v1809_v60 = vmul.f32 %v1796_v40, %v1781_v44  ;;  %v1998_v46 = vld [vmem:[#allocation3 + $0x1d0] sm:$0xff]  ;;  %v1970_v18 = vld [vmem:[#allocation3 + $0x80] sm:$0xff] }
 0x810   : > { %v1808_v45 = vmul.f32 %v1799_v51, %v1780_v24  ;;  %v10253_v35 = vpop.permute.xlu1 %1694  ;;  %v10255_v57 = vand.u32 4294901760, %v1998_v46  ;;  %v2103_v0 = vand.u32 4294901760, %v2102_v37  ;;  %v1530_v37 = vld [vmem:[#allocation2 + $0x20] sm:$0xf]  ;;  %v2114_v51 = vsub.f32 %v10258_v15, %v15894_v42 }
 0x811   : > { %v1701_v53 = vsel %vm16174_vm12, %v10175_v56, %v10253_v35  ;;  %v2015_v28 = vld [vmem:[#allocation3 + $0x208] sm:$0xf]  ;;  %vm16175_vm12 = vcmask 982016  }
 0x812   : > { %1709 = vst [vmem:[#allocation3 + $0x1c0] sm:$0xf] %v1701_v53  ;;  %2051 = vmatpush.msra.mxu0 %v10255_v57  ;;  %2104 = vmatpush.msra.mxu1 %v2103_v0  ;;  %v10267_v22 = vsub.f32 %v1998_v46, %v10255_v57  ;;  %v2032_v3 = vsel %vm2027_vm10, %v2015_v28, 0  ;;  %v15891_v46 = vand.u32 4294901760, %v10281_v7  ;;  %v10322_v53 = vsub.f32 %v1978_v9, %v10287_v20 }
 0x813   : > { %2231 = vmatpush.msra.mxu3 %v10255_v57  ;;  %1823 = vrot.lane.b32.xlu0 %v1809_v60, %s15896_s15  ;;  %v10305_v38 = vand.u32 4294901760, %v2032_v3  ;;  %v10313_v60 = vand.u32 4294901760, %v1974_v54  ;;  %v10324_v28 = vand.u32 4294901760, %v1970_v18 }
 0x814   : > { %1821 = vrot.lane.b32.xlu1 %v1808_v45, %s15896_s15  ;;  %2053 = vmatpush.msra.mxu0 %v10238_v39  ;;  %v15900_v56 = vand.u32 4294901760, %v10267_v22  ;;  %v1966_v45 = vld [vmem:[#allocation3 + $0x320] sm:$0xff]  ;;  %s16250_s15 = smov 81  }
 0x815   : > { %2186 = vmatpush.msra.mxu2 %v10267_v22  ;;  %2233 = vmatpush.msra.mxu3 %v10238_v39  ;;  %v10333_v9 = vand.u32 4294901760, %v1966_v45  ;;  %v10336_v30 = vsub.f32 %v2032_v3, %v10305_v38 }
 0x816   : > { %2055 = vmatpush.msra.mxu0 %v10247_v49  ;;  %v10294_v14 = vpop.permute.xlu0 %1545  ;;  %v2108_v44 = vsub.f32 %v10267_v22, %v15900_v56  ;;  %v1841_v56 = vld [vmem:[#allocation2 + $0x28] sm:$0xf] }
 0x817   : > { %2189 = vmatpush.msra.mxu2 %v10258_v15  ;;  %2235 = vmatpush.msra.mxu3 %v10247_v49  ;;  %v1549_v40 = vsel %vm430_vm3, %v10114_v1, %v10294_v14  ;;  %v15901_v10 = vand.u32 4294901760, %v10336_v30 }
 0x818   : > { %v10307_v50 = vpop.permute.xlu1 %1634  ;;  %2057 = vmatpush.msra.mxu0 %v10251_v59  ;;  %v2109_v24 = vand.u32 4294901760, %v2108_v44  ;;  %v1558_v0 = vmul.f32 %v1549_v40, %v1530_v37  ;;  %v1962_v44 = vld [vmem:[#allocation3 + $0x2b0] sm:$0xff]  ;;  %v2115_v40 = vand.u32 4294901760, %v2114_v51  ;;  %v2126_v37 = vsub.f32 %v10281_v7, %v15891_v46 }
 0x819   : > { %v1641_v1 = vsel %vm16175_vm12, %v10179_v52, %v10307_v50  ;;  %2192 = vmatpush.msra.mxu2 %v10270_v5  ;;  %2237 = vmatpush.msra.mxu3 %v10251_v59  ;;  %v15893_v52 = vand.u32 4294901760, %v10290_v13  ;;  %v10351_v3 = vand.u32 4294901760, %v1962_v44  ;;  %v2121_v51 = vand.u32 4294901760, %v2120_v12 }
 0x81a   : > { %1649 = vst [vmem:[#allocation3 + $0x230] sm:$0xf0] %v1641_v1  ;;  %2059 = vmatpush.msra.mxu0 %v10263_v4  ;;  %2110 = vmatpush.msra.mxu1 %v2109_v24  ;;  %v10344_v24 = vsub.f32 %v1974_v54, %v10313_v60  ;;  %v1484_v1 = vsel %vm363_vm5, %v10015_v21, %v10022_v29  ;;  %vm2023_vm12 = vcmask 883712  }
 0x81b   : > { %2195 = vmatpush.msra.mxu2 %v10281_v7  ;;  %2239 = vmatpush.msra.mxu3 %v10263_v4  ;;  %v2132_v54 = vsub.f32 %v10290_v13, %v15893_v52  ;;  %v10361_v21 = vsub.f32 %v1970_v18, %v10324_v28  ;;  %v1494_v46 = vmul.f32 %v10022_v29, %v1466_v31  ;;  %v2007_v52 = vld [vmem:[#allocation3 + $0x1c0] sm:$0xff]  ;;  %v2127_v29 = vand.u32 4294901760, %v2126_v37  ;;  %v1906_v31 = vld [vmem:[#allocation2 + $0x28] sm:$0xf] }
 0x81c   : > { %1763 = vrot.lane.b32.xlu0 %v1754_v6, %s16165_s22  ;;  %1761 = vrot.lane.b32.xlu1 %v1753_v27, %s16165_s22  ;;  %v15895_v27 = vand.u32 4294901760, %v10322_v53  ;;  %v15902_v18 = vand.u32 4294901760, %v10344_v24 }
 0x81d   : > { %1571 = vrot.lane.b32.xlu2 %v1558_v0, %s16167_s17  ;;  %2061 = vmatpush.msra.mxu0 %v10287_v20  ;;  %v1465_v0 = vld [vmem:[#allocation2 + $0x20] sm:$0xf]  ;;  %v15904_v37 = vand.u32 4294901760, %v10361_v21 }
 0x81e   : > { %2116 = vmatpush.msra.mxu1 %v2115_v40  ;;  %2198 = vmatpush.msra.mxu2 %v10290_v13  ;;  %v10355_v6 = vpop.permute.xlu0 %1884  ;;  %v10370_v40 = vsub.f32 %v1966_v45, %v10333_v9  ;;  %v1493_v42 = vmul.f32 %v1484_v1, %v1465_v0  ;;  %v10381_v45 = vsub.f32 %v1962_v44, %v10351_v3  ;;  %v2133_v1 = vand.u32 4294901760, %v2132_v54  ;;  %v286_v54 = vld [vmem:[%s16176_s1] sm:$0xff]  ;;  %s16234_s1 = smov 80  }
 0x81f   : > { %2241 = vmatpush.msra.mxu3 %v10287_v20  ;;  %2063 = vmatpush.msra.mxu0 %v10313_v60  ;;  %v1891_v12 = vsel %vm784_vm2, %v10133_v17, %v10355_v6  ;;  %v2138_v17 = vsub.f32 %v10322_v53, %v15895_v27  ;;  %v1504_v0 = vrot.slane %v1494_v46, 4  ;;  %v2144_v46 = vsub.f32 %v10344_v24, %v15902_v18 }
 0x820   : > { %2122 = vmatpush.msra.mxu1 %v2121_v51  ;;  %2201 = vmatpush.msra.mxu2 %v10322_v53  ;;  %1899 = vst [vmem:[#allocation3 + $0x228] sm:$0xf0] %v1891_v12  ;;  %v10385_v51 = vand.u32 4294901760, %v2007_v52  ;;  %v2399_v12 = vsub.f32 %v10336_v30, %v15901_v10  ;;  %v15905_v44 = vand.u32 4294901760, %v10370_v40  ;;  %v1503_v27 = vrot.slane %v1493_v42, 4 }
 0x821   : > { %2243 = vmatpush.msra.mxu3 %v10313_v60  ;;  %2065 = vmatpush.msra.mxu0 %v10324_v28  ;;  %v2139_v42 = vand.u32 4294901760, %v2138_v17  ;;  %v2150_v10 = vsub.f32 %v10361_v21, %v15904_v37 }
 0x822   : > { %2128 = vmatpush.msra.mxu1 %v2127_v29  ;;  %2204 = vmatpush.msra.mxu2 %v10344_v24  ;;  %v1934_v29 = vmul.f32 %v10183_v55, %v1906_v31  ;;  %v2161_v55 = vand.u32 4294901760, %v10381_v45  ;;  %v2025_v31 = vsel %vm2023_vm12, %v286_v54, 0  ;;  %v10412_v18 = vsub.f32 %v2007_v52, %v10385_v51 }
 0x823   : > { %2245 = vmatpush.msra.mxu3 %v10324_v28  ;;  %2067 = vmatpush.msra.mxu0 %v10333_v9  ;;  %v10414_v33 = vand.u32 4294901760, %v2025_v31  ;;  %v2400_v17 = vand.u32 4294901760, %v2399_v12  ;;  %v2145_v54 = vand.u32 4294901760, %v2144_v46  ;;  %v2156_v52 = vsub.f32 %v10370_v40, %v15905_v44  ;;  %v1999_v12 = vld [vmem:[#allocation3 + $0x1e0] sm:$0xff] }
 0x824   : > { %2134 = vmatpush.msra.mxu1 %v2133_v1  ;;  %2207 = vmatpush.msra.mxu2 %v10361_v21  ;;  %v10444_v23 = vand.u32 4294901760, %v1999_v12  ;;  %vm16192_vm12 = vcmask 973824  }
 0x825   : > { %2247 = vmatpush.msra.mxu3 %v10333_v9  ;;  %1513 = vrot.lane.b32.xlu0 %v1504_v0, %s16169_s29  ;;  %v10439_v44 = vsub.f32 %v2025_v31, %v10414_v33  ;;  %v1591_v31 = vld [vmem:[#allocation2 + $0x28] sm:$0xf] }
 0x826   : > { %1511 = vrot.lane.b32.xlu1 %v1503_v27, %s16169_s29  ;;  %1948 = vrot.lane.b32.xlu2 %v1934_v29, %s15928_s23  ;;  %v10406_v1 = vpop.permute.xlu0 %1569  ;;  %v1869_v29 = vmul.f32 %v10160_v58, %v1841_v56  ;;  %v1656_v58 = vld [vmem:[#allocation2 + $0x28] sm:$0xf]  ;;  %v2151_v56 = vand.u32 4294901760, %v2150_v10  ;;  %s16240_s23 = smov 17  }
 0x827   : > { %2069 = vmatpush.msra.mxu0 %v10351_v3  ;;  %2140 = vmatpush.msra.mxu1 %v2139_v42  ;;  %v1576_v27 = vsel %vm459_vm9, %v10146_v2, %v10406_v1  ;;  %v2011_v0 = vld [vmem:[#allocation3 + $0x228] sm:$0xff]  ;;  %v2162_v2 = vsub.f32 %v10381_v45, %v2161_v55  ;;  %v15906_v42 = vand.u32 4294901760, %v10412_v18 }
 0x828   : > { %2210 = vmatpush.msra.mxu2 %v10370_v40  ;;  %2249 = vmatpush.msra.mxu3 %v10351_v3  ;;  %1584 = vst [vmem:[#allocation3 + $0x230] sm:$0xf] %v1576_v27  ;;  %v10426_v37 = vand.u32 4294901760, %v2011_v0  ;;  %v1995_v27 = vld [vmem:[#allocation3 + $0x180] sm:$0xff] }
 0x829   : > { %2262 = vmatpush.msrb.mxu0 %v2083_v26  ;;  %2146 = vmatpush.msra.mxu1 %v2145_v54  ;;  %v1879_v26 = vrot.slane %v1869_v29, 4  ;;  %v10452_v48 = vand.u32 4294901760, %v1995_v27  ;;  %v2163_v29 = vand.u32 4294901760, %v2162_v2 }
 0x82a   : > { %2401 = vmatpush.msrb.mxu3 %v2400_v17  ;;  %2213 = vmatpush.msra.mxu2 %v10381_v45  ;;  %v10435_v46 = vsub.f32 %v2011_v0, %v10426_v37  ;;  %v2157_v17 = vand.u32 4294901760, %v2156_v52  ;;  %v1684_v0 = vmul.f32 %v10181_v41, %v1656_v58  ;;  %v2411_v41 = vsub.f32 %v10412_v18, %v15906_v42 }
 0x82b   : > { %2266 = vmatpush.msrb.mxu0 %v2089_v34  ;;  %2152 = vmatpush.msra.mxu1 %v2151_v56  ;;  %v1991_v34 = vld [vmem:[#allocation3 + $0x248] sm:$0xff]  ;;  %v10465_v58 = vsub.f32 %v1999_v12, %v10444_v23  ;;  %v1619_v42 = vmul.f32 %v10211_v32, %v1591_v31  ;;  %v1559_v12 = vmul.f32 %v10294_v14, %v1531_v62  ;;  %v16179_v32 = vand.u32 4294901760, %v10258_v15 }
 0x82c   : > { %2358 = vmatpush.msrb.mxu2 %v10305_v38  ;;  %v2404_v10 = vand.u32 4294901760, %v10435_v46  ;;  %v10493_v31 = vand.u32 4294901760, %v10439_v44  ;;  %v16180_v62 = vand.u32 4294901760, %v10270_v5  ;;  %v16181_v5 = vand.u32 4294901760, %v10281_v7 }
 0x82d   : > { %2216 = vmatmul.f32.vlgmr.msra.gmra.mxu2 %v10439_v44  ;;  %2270 = vmatpush.msrb.mxu0 %v2095_v63  ;;  %v16177_v63 = vand.u32 4294901760, %v10233_v11  ;;  %v10477_v11 = vsub.f32 %v1995_v27, %v10452_v48  ;;  %v1979_v27 = vld [vmem:[#allocation3 + $0x188] sm:$0xff]  ;;  %v1629_v15 = vrot.slane %v1619_v42, 4 }
 0x82e   : > { %2360 = vmatpush.msrb.mxu2 %v10426_v37  ;;  %2158 = vmatpush.msra.mxu1 %v2157_v17  ;;  %v2405_v54 = vsub.f32 %v10435_v46, %v2404_v10  ;;  %v1987_v17 = vld [vmem:[#allocation3 + $0x250] sm:$0xff]  ;;  %v10515_v42 = vand.u32 4294901760, %v1979_v27 }
 0x82f   : > { %1888 = vrot.lane.b32.xlu1 %v1879_v26, %s16170_s16  ;;  %1698 = vrot.lane.b32.xlu2 %v1684_v0, %s16166_s14  ;;  %v2003_v52 = vld [vmem:[#allocation3 + $0x230] sm:$0xff]  ;;  %v10470_v26 = vand.u32 4294901760, %v1991_v34  ;;  %v16178_v0 = vand.u32 4294901760, %v10267_v22  ;;  %v10487_v22 = vand.u32 4294901760, %v1987_v17 }
 0x830   : > { %2274 = vmatpush.msrb.mxu0 %v16177_v63  ;;  %2164 = vmatpush.msra.mxu1 %v2163_v29  ;;  %v10468_v2 = vand.u32 4294901760, %v2003_v52  ;;  %v2406_v56 = vand.u32 4294901760, %v2405_v54  ;;  %v2412_v29 = vand.u32 4294901760, %v2411_v41  ;;  %v1983_v63 = vld [vmem:[#allocation3 + $0x268] sm:$0xff] }
 0x831   : > { %2362 = vmatpush.msrb.mxu2 %v10385_v51  ;;  %v10496_v41 = vsub.f32 %v1991_v34, %v10470_v26  ;;  %v1975_v34 = vld [vmem:[#allocation3 + $0x2c8] sm:$0xff]  ;;  %2166 = vmatmul.f32.vlgmr.msra.gmra.mxu1 %v10414_v33 }
 0x832   : > { %2278 = vmatpush.msrb.mxu0 %v16178_v0  ;;  %2323 = vmatpush.msrb.mxu1 %v10135_v19  ;;  %v10482_v54 = vsub.f32 %v2003_v52, %v10468_v2  ;;  %v15908_v19 = vand.u32 4294901760, %v10465_v58  ;;  %v15907_v52 = vand.u32 4294901760, %v10477_v11  ;;  %v10518_v0 = vsub.f32 %v1987_v17, %v10487_v22 }
 0x833   : > { %2364 = vmatpush.msrb.mxu2 %v10468_v2  ;;  %2407 = vmatpush.msrb.mxu3 %v2406_v56  ;;  %v2434_v7 = vand.u32 4294901760, %v10496_v41  ;;  %v10530_v17 = vand.u32 4294901760, %v1975_v34 }
 0x834   : > { %2282 = vmatpush.msrb.mxu0 %v16179_v32  ;;  %2325 = vmatpush.msrb.mxu1 %v10153_v36  ;;  %v2416_v14 = vand.u32 4294901760, %v10482_v54  ;;  %v10501_v36 = vand.u32 4294901760, %v1983_v63  ;;  %v1971_v32 = vld [vmem:[#allocation3 + $0x308] sm:$0xff] }
 0x835   : > { %2366 = vmatpush.msrb.mxu2 %v10444_v23  ;;  %2413 = vmatpush.msrb.mxu3 %v2412_v29  ;;  %v2073_v29 = vsub.f32 %v10439_v44, %v10493_v31 }
 0x836   : > { %2286 = vmatpush.msrb.mxu0 %v16180_v62  ;;  %2327 = vmatpush.msrb.mxu1 %v10188_v61  ;;  %v2417_v56 = vsub.f32 %v10482_v54, %v2416_v14  ;;  %v2423_v61 = vsub.f32 %v10465_v58, %v15908_v19  ;;  %v2429_v62 = vsub.f32 %v10477_v11, %v15907_v52  ;;  %v2440_v52 = vand.u32 4294901760, %v10518_v0 }
 0x837   : > { %1573 = vrot.lane.b32.xlu1 %v1559_v12, %s16167_s17  ;;  %2368 = vmatpush.msrb.mxu2 %v10452_v48  ;;  %v10544_v19 = vsub.f32 %v1979_v27, %v10515_v42 }
 0x838   : > { %1638 = vrot.lane.b32.xlu2 %v1629_v15, %s16168_s20  ;;  %2290 = vmatpush.msrb.mxu0 %v16181_v5  ;;  %v2418_v12 = vand.u32 4294901760, %v2417_v56  ;;  %v16182_v15 = vand.u32 4294901760, %v10290_v13  ;;  %v1967_v56 = vld [vmem:[#allocation3 + $0x38] sm:$0xff]  ;;  %v16183_v5 = vand.u32 4294901760, %v10322_v53  ;;  %v2424_v13 = vand.u32 4294901760, %v2423_v61 }
 0x839   : > { %2329 = vmatpush.msrb.mxu1 %v10225_v43  ;;  %2370 = vmatpush.msrb.mxu2 %v10470_v26  ;;  %v10533_v43 = vsub.f32 %v1983_v63, %v10501_v36  ;;  %v2435_v53 = vsub.f32 %v10496_v41, %v2434_v7  ;;  %v1963_v63 = vld [vmem:[#allocation3 + $0xd0] sm:$0xff]  ;;  %v16184_v61 = vand.u32 4294901760, %v10344_v24  ;;  %v2441_v24 = vsub.f32 %v10518_v0, %v2440_v52 }
 0x83a   : > { %2294 = vmatpush.msrb.mxu0 %v16182_v15  ;;  %2419 = vmatpush.msrb.mxu3 %v2418_v12  ;;  %v10540_v15 = vand.u32 4294901760, %v1971_v32  ;;  %v2430_v12 = vand.u32 4294901760, %v2429_v62  ;;  %v10568_v62 = vand.u32 4294901760, %v1963_v63 }
 0x83b   : > { %2331 = vmatpush.msrb.mxu1 %v10255_v57  ;;  %2372 = vmatpush.msrb.mxu2 %v10487_v22  ;;  %v10548_v57 = vand.u32 4294901760, %v2073_v29  ;;  %v2446_v27 = vand.u32 4294901760, %v10533_v43  ;;  %v16185_v29 = vand.u32 4294901760, %v10361_v21  ;;  %v16186_v21 = vand.u32 4294901760, %v10370_v40 }
 0x83c   : > { %2298 = vmatpush.msrb.mxu0 %v16183_v5  ;;  %2425 = vmatpush.msrb.mxu3 %v2424_v13  ;;  %v10555_v5 = vand.u32 4294901760, %v1967_v56  ;;  %v2452_v13 = vand.u32 4294901760, %v10544_v19 }
 0x83d   : > { %2333 = vmatpush.msrb.mxu1 %v10238_v39  ;;  %2374 = vmatpush.msrb.mxu2 %v10501_v36  ;;  %v10559_v39 = vsub.f32 %v1975_v34, %v10530_v17  ;;  %v2447_v34 = vsub.f32 %v10533_v43, %v2446_v27 }
 0x83e   : > { %2302 = vmatpush.msrb.mxu0 %v16184_v61  ;;  %2431 = vmatpush.msrb.mxu3 %v2430_v12  ;;  %v10572_v61 = vsub.f32 %v1971_v32, %v10540_v15  ;;  %v2453_v40 = vsub.f32 %v10544_v19, %v2452_v13 }
 0x83f   : > { %2335 = vmatpush.msrb.mxu1 %v10247_v49  ;;  %2376 = vmatpush.msrb.mxu2 %v10515_v42  ;;  %v2436_v49 = vand.u32 4294901760, %v2435_v53  ;;  %v2458_v12 = vand.u32 4294901760, %v10559_v39  ;;  %v10595_v53 = vsub.f32 %v1963_v63, %v10568_v62 }
 0x840   : > { %2306 = vmatpush.msrb.mxu0 %v16185_v29  ;;  %v10584_v29 = vsub.f32 %v1967_v56, %v10555_v5  ;;  %v2464_v32 = vand.u32 4294901760, %v10572_v61  ;;  %v2454_v63 = vand.u32 4294901760, %v2453_v40  ;;  %2253 = vmatmul.f32.vlgmr.msra.gmra.mxu3 %v10493_v31 }
 0x841   : > { %2337 = vmatpush.msrb.mxu1 %v10251_v59  ;;  %2075 = vmatmul.f32.vlgmr.msra.gmra.mxu0 %v10548_v57  ;;  %v2442_v59 = vand.u32 4294901760, %v2441_v24 }
 0x842   : > { %2310 = vmatpush.msrb.mxu0 %v16186_v21  ;;  %2378 = vmatpush.msrb.mxu2 %v10530_v17  ;;  %v2470_v56 = vand.u32 4294901760, %v10584_v29  ;;  %v2465_v24 = vsub.f32 %v10572_v61, %v2464_v32 }
 0x843   : > { %2339 = vmatpush.msrb.mxu1 %v10263_v4  ;;  %2437 = vmatpush.msrb.mxu3 %v2436_v49  ;;  %v2448_v4 = vand.u32 4294901760, %v2447_v34  ;;  %v2476_v49 = vand.u32 4294901760, %v10595_v53 }
 0x844   : > { %2314 = vmatpush.msrb.mxu0 %v2161_v55  ;;  %2380 = vmatpush.msrb.mxu2 %v10540_v15  ;;  %v2459_v55 = vsub.f32 %v10559_v39, %v2458_v12  ;;  %v2471_v21 = vsub.f32 %v10584_v29, %v2470_v56 }
 0x845   : > { %2341 = vmatpush.msrb.mxu1 %v10287_v20  ;;  %2443 = vmatpush.msrb.mxu3 %v2442_v59  ;;  %v10600_v45 = vpop.permute.xlu2 %1886  ;;  %v2477_v34 = vsub.f32 %v10595_v53, %v2476_v49 }
 0x846   : > { %2489 = vmatpush.msra.mxu0 %v10336_v30  ;;  %2382 = vmatpush.msrb.mxu2 %v10555_v5  ;;  %v1892_v20 = vsel %vm784_vm2, %v10355_v6, %v10600_v45  ;;  %v2460_v6 = vand.u32 4294901760, %v2459_v55 }
 0x847   : > { %2343 = vmatpush.msrb.mxu1 %v10313_v60  ;;  %2449 = vmatpush.msrb.mxu3 %v2448_v4  ;;  %1900 = vst [vmem:[#allocation3 + $0x178] sm:$0xf0] %v1892_v20  ;;  %v16187_v60 = vand.u32 4294901760, %v10336_v30  ;;  %v2472_v30 = vand.u32 4294901760, %v2471_v21 }
 0x848   : > { %2492 = vmatpush.msra.mxu0 %v10435_v46  ;;  %2384 = vmatpush.msrb.mxu2 %v10568_v62  ;;  %v2478_v46 = vand.u32 4294901760, %v2477_v34 }
 0x849   : > { %2345 = vmatpush.msrb.mxu1 %v10324_v28  ;;  %2455 = vmatpush.msrb.mxu3 %v2454_v63  ;;  %v2466_v28 = vand.u32 4294901760, %v2465_v24  ;;  %v1996_v24 = vld [vmem:[#allocation3 + $0xc0] sm:$0xff] }
 0x84a   : > { %2495 = vmatpush.msra.mxu0 %v10412_v18  ;;  %2577 = vmatpush.msra.mxu2 %v16187_v60  ;;  %v10769_v21 = vand.u32 4294901760, %v1996_v24 }
 0x84b   : > { %2347 = vmatpush.msrb.mxu1 %v10333_v9  ;;  %2461 = vmatpush.msrb.mxu3 %v2460_v6  ;;  %v16188_v9 = vand.u32 4294901760, %v10412_v18  ;;  %v16190_v18 = vand.u32 4294901760, %v10477_v11  ;;  %v1992_v6 = vld [vmem:[#allocation3 + $0x280] sm:$0xff] }
 0x84c   : > { %2498 = vmatpush.msra.mxu0 %v10482_v54  ;;  %2581 = vmatpush.msra.mxu2 %v2404_v10 }
 0x84d   : > { %2349 = vmatpush.msrb.mxu1 %v10351_v3  ;;  %2467 = vmatpush.msrb.mxu3 %v2466_v28  ;;  %v16189_v3 = vand.u32 4294901760, %v10465_v58  ;;  %v1988_v28 = vld [vmem:[#allocation3 + $0x8] sm:$0xff] }
 0x84e   : > { %2501 = vmatpush.msra.mxu0 %v10465_v58  ;;  %2585 = vmatpush.msra.mxu2 %v16188_v9  ;;  %v1984_v9 = vld [vmem:[#allocation3 + $0x340] sm:$0xff] }
 0x84f   : > { %2538 = vmatpush.msra.mxu1 %v10305_v38  ;;  %2473 = vmatpush.msrb.mxu3 %v2472_v30  ;;  %v10776_v30 = vand.u32 4294901760, %v1992_v6 }
 0x850   : > { %2504 = vmatpush.msra.mxu0 %v10477_v11  ;;  %2589 = vmatpush.msra.mxu2 %v2416_v14 }
 0x851   : > { %2540 = vmatpush.msra.mxu1 %v10426_v37  ;;  %2479 = vmatpush.msrb.mxu3 %v2478_v46 }
 0x852   : > { %2507 = vmatpush.msra.mxu0 %v10496_v41  ;;  %2593 = vmatpush.msra.mxu2 %v16189_v3 }
 0x853   : > { %2542 = vmatpush.msra.mxu1 %v10385_v51  ;;  %2638 = vmatpush.msra.mxu3 %v10305_v38  ;;  %v9400_v38 = vmov 0  }
 0x854   : > { %2510 = vmatpush.msra.mxu0 %v10518_v0  ;;  %2597 = vmatpush.msra.mxu2 %v16190_v18 }
 0x855   : > { %2544 = vmatpush.msra.mxu1 %v10468_v2  ;;  %2640 = vmatpush.msra.mxu3 %v10426_v37  ;;  %v287_v37 = vld [vmem:[%s16191_s2] sm:$0xff]  ;;  %s16235_s2 = smov 66  }
 0x856   : > { %2513 = vmatpush.msra.mxu0 %v10533_v43  ;;  %2601 = vmatpush.msra.mxu2 %v2434_v7 }
 0x857   : > { %2546 = vmatpush.msra.mxu1 %v10444_v23  ;;  %2642 = vmatpush.msra.mxu3 %v10385_v51 }
 0x858   : > { %2516 = vmatpush.msra.mxu0 %v10544_v19  ;;  %2605 = vmatpush.msra.mxu2 %v2440_v52 }
 0x859   : > { %2548 = vmatpush.msra.mxu1 %v10452_v48  ;;  %2644 = vmatpush.msra.mxu3 %v10468_v2 }
 0x85a   : > { %2519 = vmatpush.msra.mxu0 %v10559_v39  ;;  %2609 = vmatpush.msra.mxu2 %v2446_v27 }
 0x85b   : > { %2550 = vmatpush.msra.mxu1 %v10470_v26  ;;  %2646 = vmatpush.msra.mxu3 %v10444_v23 }
 0x85c   : > { %2522 = vmatpush.msra.mxu0 %v10572_v61  ;;  %2613 = vmatpush.msra.mxu2 %v2452_v13 }
 0x85d   : > { %2552 = vmatpush.msra.mxu1 %v10487_v22  ;;  %2648 = vmatpush.msra.mxu3 %v10452_v48 }
 0x85e   : > { %2525 = vmatpush.msra.mxu0 %v10584_v29  ;;  %2617 = vmatpush.msra.mxu2 %v2458_v12 }
 0x85f   : > { %2554 = vmatpush.msra.mxu1 %v10501_v36  ;;  %2650 = vmatpush.msra.mxu3 %v10470_v26 }
 0x860   : > { %2528 = vmatpush.msra.mxu0 %v10595_v53  ;;  %2390 = vmatmul.f32.vlgmr.msrb.gmra.mxu2 %v10548_v57 }
 0x861   : > { %2556 = vmatpush.msra.mxu1 %v10515_v42  ;;  %2621 = vmatpush.msra.mxu2 %v2464_v32 }
 0x862   : > { %2652 = vmatpush.msra.mxu3 %v10487_v22  ;;  %2316 = vmatmul.f32.vlgmr.msrb.gmra.mxu0 %v10414_v33 }
 0x863   : > { %2558 = vmatpush.msra.mxu1 %v10530_v17  ;;  %2625 = vmatpush.msra.mxu2 %v2470_v56 }
 0x864   : > { %2654 = vmatpush.msra.mxu3 %v10501_v36  ;;  %2351 = vmatmul.f32.vlgmr.msrb.gmra.mxu1 %v10414_v33 }
 0x865   : > { %2560 = vmatpush.msra.mxu1 %v10540_v15  ;;  %2629 = vmatpush.msra.mxu2 %v2476_v49 }
 0x866   : > { %2656 = vmatpush.msra.mxu3 %v10515_v42  ;;  %9274 = vset.pattern.permute.xlu1 %v9400_v38 }
 0x867   : > { %2562 = vmatpush.msra.mxu1 %v10555_v5  ;;  %2481 = vmatmul.f32.vlgmr.msrb.gmra.mxu3 %v10414_v33 }
 0x868   : > { %2658 = vmatpush.msra.mxu3 %v10530_v17  ;;  %2631 = vmatmul.f32.vlgmr.msra.gmra.mxu2 %v10414_v33 }
 0x869   : > { %2564 = vmatpush.msra.mxu1 %v10568_v62  ;;  %2020 = vperm.xlu1 %9274, %v287_v37   ;;  %v10784_v37 = vand.u32 4294901760, %v1988_v28 }
 0x86a   : > { %9275 = vset.pattern.permute.xlu0 %v9400_v38  ;;  %2660 = vmatpush.msra.mxu3 %v10540_v15  ;;  %v10782_v38 = vsub.f32 %v1996_v24, %v10769_v21 }
 0x86b   : > { %2531 = vmatmul.f32.vlgmr.msra.gmra.mxu0 %v10439_v44 }
 0x86c   : > { %2662 = vmatpush.msra.mxu3 %v10555_v5  ;;  %2568 = vmatmul.f32.vlgmr.msra.gmra.mxu1 %v10493_v31 }
 0x86d   : > { %v1947_v51 = vpop.permute.xlu0 %1946 }
 0x86e   : > { %2664 = vmatpush.msra.mxu3 %v10568_v62  ;;  %v1952_v23 = vsel %vm845_vm11, %v10223_v16, %v1947_v51 }
 0x86f   : > { %2666 = vmatmul.f32.vlgmr.msra.gmra.mxu3 %v10414_v33  ;;  %1960 = vst [vmem:[#allocation3 + $0x2f8] sm:$0xf] %v1952_v23 }
 0x875   : > { %v1697_v10 = vpop.permute.xlu0 %1696 }
 0x876   : > { %v1702_v48 = vsel %vm16192_vm12, %v10253_v35, %v1697_v10  ;;  %v2016_v58 = vld [vmem:[#allocation3 + $0x2f8] sm:$0xf]  ;;  %vm16193_vm12 = vcmask 982016  }
 0x877   : > { %v10709_v2 = vpop.permute.xlu2 %1571  ;;  %1710 = vst [vmem:[#allocation3 + $0x298] sm:$0xf] %v1702_v48  ;;  %v2035_v26 = vsel %vm2027_vm10, %v2016_v58, 0  ;;  %v10788_v48 = vand.u32 4294901760, %v1984_v9  ;;  %v1980_v58 = vld [vmem:[#allocation3 + $0x198] sm:$0xff] }
 0x878   : > { %v1577_v11 = vsel %vm459_vm9, %v10406_v1, %v10709_v2  ;;  %v10715_v54 = vand.u32 4294901760, %v2035_v26 }
 0x879   : > { %1585 = vst [vmem:[#allocation3 + $0x328] sm:$0xf] %v1577_v11  ;;  %v10793_v11 = vsub.f32 %v1992_v6, %v10776_v30 }
 0x87a   : > { %2673 = vmatpush.msrb.mxu0 %v10715_v54  ;;  %2853 = vmatpush.msrb.mxu3 %v10715_v54  ;;  %v10720_v16 = vsub.f32 %v2035_v26, %v10715_v54 }
 0x87c   : > { %2804 = vmatpush.msrb.mxu2 %v10720_v16  ;;  %v2713_v35 = vand.u32 4294901760, %v10720_v16 }
 0x87d   : > { %v1637_v22 = vpop.permute.xlu0 %1636 }
 0x87e   : > { %v1642_v19 = vsel %vm16193_vm12, %v10307_v50, %v1637_v22  ;;  %v2714_v1 = vsub.f32 %v10720_v16, %v2713_v35  ;;  %vm16194_vm12 = vcmask 973824  }
 0x87f   : > { %1650 = vst [vmem:[#allocation3 + $0x328] sm:$0xf0] %v1642_v19 }
 0x880   : > { %v1949_v14 = vpop.permute.xlu2 %1948  ;;  %v2715_v41 = vand.u32 4294901760, %v2714_v1  ;;  %v10802_v1 = vsub.f32 %v1988_v28, %v10784_v37 }
 0x881   : > { %v1953_v36 = vsel %vm845_vm11, %v1947_v51, %v1949_v14  ;;  %v10804_v14 = vand.u32 4294901760, %v1980_v58 }
 0x882   : > { %1961 = vst [vmem:[#allocation3 + $0xa8] sm:$0xf] %v1953_v36  ;;  %2716 = vmatpush.msrb.mxu1 %v2715_v41  ;;  %v15915_v41 = vand.u32 4294901760, %v10782_v38  ;;  %v1976_v36 = vld [vmem:[#allocation3 + $0x318] sm:$0xff] }
 0x885   : > { %v1824_v52 = vpop.permute.xlu0 %1823 }
 0x886   : > { %v1822_v42 = vpop.permute.xlu1 %1821 }
 0x887   : > { %v1827_v0 = vsel %vm15909_vm14, %v10198_v47, %v1822_v42  ;;  %v1828_v7 = vsel %vm15909_vm14, %v1822_v42, %v1824_v52  ;;  %v2004_v47 = vld [vmem:[#allocation3 + $0x328] sm:$0xff]  ;;  %vm16195_vm14 = vcmask 982016   ;;  %v1972_v52 = vld [vmem:[#allocation3 + $0x138] sm:$0xff]  ;;  %v10808_v42 = vsub.f32 %v1984_v9, %v10788_v48 }
 0x888   : > { %1835 = vst [vmem:[#allocation3 + $0x178] sm:$0xf] %v1827_v0 }
 0x889   : > { %v1699_v50 = vpop.permute.xlu2 %1698  ;;  %1836 = vst [vmem:[#allocation3 + $0x200] sm:$0xf] %v1828_v7  ;;  %v2017_v51 = vld [vmem:[#allocation3 + $0xa8] sm:$0xf]  ;;  %v15913_v7 = vand.u32 4294901760, %v10793_v11 }
 0x88a   : > { %v1703_v17 = vsel %vm16194_vm12, %v1697_v10, %v1699_v50  ;;  %v2038_v19 = vsel %vm2027_vm10, %v2017_v51, 0  ;;  %v1968_v50 = vld [vmem:[#allocation3 + $0xf8] sm:$0xff]  ;;  %vm15936_vm10 = vcmask 1048136  }
 0x88b   : > { %1711 = vst [vmem:[#allocation3 + $0x310] sm:$0xf] %v1703_v17  ;;  %v10814_v17 = vand.u32 4294901760, %v2038_v19 }
 0x88d   : > { %v10845_v24 = vsub.f32 %v2038_v19, %v10814_v17 }
 0x88e   : > { %v1762_v43 = vpop.permute.xlu1 %1761  ;;  %v1764_v15 = vpop.permute.xlu0 %1763 }
 0x88f   : > { %v1767_v5 = vsel %vm15937_vm13, %v10217_v8, %v1762_v43  ;;  %v1768_v27 = vsel %vm15937_vm13, %v1762_v43, %v1764_v15  ;;  %v2012_v39 = vld [vmem:[#allocation3 + $0x178] sm:$0xff]  ;;  %v10745_v8 = vand.u32 4294901760, %v2004_v47  ;;  %v10817_v43 = vand.u32 4294901760, %v1976_v36 }
 0x890   : > { %1775 = vst [vmem:[#allocation3 + $0x298] sm:$0xf0] %v1767_v5  ;;  %v10737_v62 = vand.u32 4294901760, %v2012_v39  ;;  %v10819_v15 = vand.u32 4294901760, %v1972_v52  ;;  %v15914_v19 = vand.u32 4294901760, %v10845_v24 }
 0x891   : > { %1776 = vst [vmem:[#allocation3 + $0x310] sm:$0xf0] %v1768_v27  ;;  %v10753_v53 = vsub.f32 %v2004_v47, %v10745_v8  ;;  %v10830_v47 = vsub.f32 %v1980_v58, %v10804_v14  ;;  %v10851_v6 = vsub.f32 %v1976_v36, %v10817_v43  ;;  %v1997_v36 = vld [vmem:[#allocation3 + $0x60] sm:$0xff] }
 0x892   : > { %v1639_v13 = vpop.permute.xlu2 %1638  ;;  %2675 = vmatpush.msrb.mxu0 %v10737_v62  ;;  %2855 = vmatpush.msrb.mxu3 %v10737_v62  ;;  %v10743_v12 = vsub.f32 %v2012_v39, %v10737_v62  ;;  %16198 = vst [vmem:[#allocation16_spill] sm:$0xff] %v10819_v15  ;;  %v2744_v39 = vsub.f32 %v10782_v38, %v15915_v41 }
 0x893   : > { %v1643_v61 = vsel %vm16195_vm14, %v1637_v22, %v1639_v13  ;;  %vm16196_vm14 = vcmask 1039360   ;;  %v15917_v60 = vand.u32 4294901760, %v10753_v53  ;;  %v15912_v13 = vand.u32 4294901760, %v10802_v1 }
 0x894   : > { %1651 = vst [vmem:[#allocation3 + $0x290] sm:$0xf0] %v1643_v61  ;;  %2807 = vmatpush.msrb.mxu2 %v10743_v12  ;;  %v15921_v29 = vand.u32 4294901760, %v10743_v12  ;;  %vm16197_vm12 = vmmov %vm16196_vm14  ;;  %v1964_v61 = vld [vmem:[#allocation3 + $0x10] sm:$0xff]  ;;  %v2745_v9 = vand.u32 4294901760, %v2744_v39 }
 0x895   : > { %v2732_v46 = vsub.f32 %v10753_v53, %v15917_v60  ;;  %v10853_v28 = vand.u32 4294901760, %v1964_v61 }
 0x896   : > { %v2720_v59 = vsub.f32 %v10743_v12, %v15921_v29 }
 0x897   : > { %v1514_v40 = vpop.permute.xlu0 %1513  ;;  %v2008_v32 = vld [vmem:[#allocation3 + $0x298] sm:$0xff]  ;;  %v2733_v22 = vand.u32 4294901760, %v2732_v46  ;;  %16200 = vst [vmem:[#allocation18_spill] sm:$0xff] %v10853_v28  ;;  %v2756_v46 = vsub.f32 %v10802_v1, %v15912_v13 }
 0x898   : > { %v1512_v4 = vpop.permute.xlu1 %1511  ;;  %v10755_v55 = vand.u32 4294901760, %v2008_v32  ;;  %v2721_v56 = vand.u32 4294901760, %v2720_v59  ;;  %v2009_v59 = vld [vmem:[#allocation3 + $0x310] sm:$0xff] }
 0x899   : > { %v1517_v20 = vsel %vm16196_vm14, %v10240_v25, %v1512_v4  ;;  %v1518_v63 = vsel %vm16197_vm12, %v1512_v4, %v1514_v40  ;;  %v15911_v4 = vand.u32 4294901760, %v10808_v42  ;;  %v2757_v39 = vand.u32 4294901760, %v2756_v46  ;;  %vm16229_vm14 = vmmov %vm16197_vm12 }
 0x89a   : > { %1525 = vst [vmem:[#allocation3 + $0x2d8] sm:$0xf0] %v1517_v20  ;;  %2677 = vmatpush.msrb.mxu0 %v10755_v55  ;;  %2722 = vmatpush.msrb.mxu1 %v2721_v56  ;;  %v10762_v49 = vsub.f32 %v2008_v32, %v10755_v55  ;;  %v10836_v32 = vand.u32 4294901760, %v1968_v50 }
 0x89b   : > { %1526 = vst [vmem:[#allocation3 + $0xb0] sm:$0xf0] %v1518_v63  ;;  %2857 = vmatpush.msrb.mxu3 %v10755_v55  ;;  %v2750_v63 = vsub.f32 %v10793_v11, %v15913_v7  ;;  %v2762_v58 = vsub.f32 %v10808_v42, %v15911_v4  ;;  %v1989_v4 = vld [vmem:[#allocation3 + $0x120] sm:$0xff] }
 0x89c   : > { %2679 = vmatpush.msrb.mxu0 %v10745_v8  ;;  %2810 = vmatpush.msrb.mxu2 %v10762_v49  ;;  %v15920_v25 = vand.u32 4294901760, %v10762_v49  ;;  %16199 = vst [vmem:[#allocation17_spill] sm:$0xff] %v10836_v32 }
 0x89d   : > { %2859 = vmatpush.msrb.mxu3 %v10745_v8  ;;  %v2763_v46 = vand.u32 4294901760, %v2762_v58 }
 0x89e   : > { %2813 = vmatpush.msrb.mxu2 %v10753_v53  ;;  %v2726_v34 = vsub.f32 %v10762_v49, %v15920_v25 }
 0x8a0   : > { %v2727_v18 = vand.u32 4294901760, %v2726_v34  ;;  %v10855_v34 = vand.u32 4294901760, %v2009_v59 }
 0x8a1   : > { %v1889_v3 = vpop.permute.xlu1 %1888  ;;  %v2000_v10 = vld [vmem:[#allocation3 + $0x2d8] sm:$0xff] }
 0x8a2   : > { %v1893_v23 = vsel %vm784_vm2, %v10600_v45, %v1889_v3  ;;  %v10790_v26 = vand.u32 4294901760, %v2000_v10  ;;  %2728 = vmatpush.msrb.mxu1 %v2727_v18  ;;  %v10862_v3 = vsub.f32 %v1972_v52, %v10819_v15  ;;  %v15910_v18 = vand.u32 4294901760, %v10830_v47  ;;  %v2001_v51 = vld [vmem:[#allocation3 + $0xb0] sm:$0xff] }
 0x8a3   : > { %1901 = vst [vmem:[#allocation3 + $0x200] sm:$0xf0] %v1893_v23  ;;  %v15918_v52 = vand.u32 4294901760, %v10851_v6 }
 0x8a4   : > { %2681 = vmatpush.msrb.mxu0 %v10790_v26  ;;  %2861 = vmatpush.msrb.mxu3 %v10790_v26  ;;  %v10799_v45 = vsub.f32 %v2000_v10, %v10790_v26  ;;  %v2751_v10 = vand.u32 4294901760, %v2750_v63 }
 0x8a5   : > { %2734 = vmatpush.msrb.mxu1 %v2733_v22  ;;  %v10875_v22 = vsub.f32 %v1968_v50, %v10836_v32  ;;  %v2768_v50 = vsub.f32 %v10830_v47, %v15910_v18  ;;  %v2774_v13 = vsub.f32 %v10851_v6, %v15918_v52  ;;  %v1981_v52 = vld [vmem:[#allocation3 + $0x148] sm:$0xff] }
 0x8a6   : > { %2683 = vmatpush.msrb.mxu0 %v10769_v21  ;;  %2816 = vmatpush.msrb.mxu2 %v10799_v45  ;;  %v15916_v0 = vand.u32 4294901760, %v10799_v45  ;;  %v10964_v16 = vand.u32 4294901760, %v1981_v52 }
 0x8a7   : > { %2863 = vmatpush.msrb.mxu3 %v10769_v21  ;;  %v2769_v41 = vand.u32 4294901760, %v2768_v50  ;;  %v10933_v50 = vand.u32 4294901760, %v1989_v4 }
 0x8a8   : > { %2685 = vmatpush.msrb.mxu0 %v10776_v30  ;;  %2819 = vmatpush.msrb.mxu2 %v10782_v38  ;;  %v2738_v27 = vsub.f32 %v10799_v45, %v15916_v0 }
 0x8a9   : > { %v1574_v5 = vpop.permute.xlu1 %1573  ;;  %2865 = vmatpush.msrb.mxu3 %v10776_v30 }
 0x8aa   : > { %v1578_v40 = vsel %vm459_vm9, %v10709_v2, %v1574_v5  ;;  %v2013_v56 = vld [vmem:[#allocation3 + $0x200] sm:$0xff]  ;;  %2687 = vmatpush.msrb.mxu0 %v10784_v37  ;;  %2822 = vmatpush.msrb.mxu2 %v10793_v11  ;;  %v2739_v20 = vand.u32 4294901760, %v2738_v27  ;;  %v10882_v5 = vsub.f32 %v2009_v59, %v10855_v34  ;;  %v10884_v27 = vand.u32 4294901760, %v2001_v51 }
 0x8ab   : > { %1586 = vst [vmem:[#allocation3 + $0x290] sm:$0xf] %v1578_v40  ;;  %v10847_v2 = vand.u32 4294901760, %v2013_v56  ;;  %2867 = vmatpush.msrb.mxu3 %v10784_v37  ;;  %v10891_v40 = vsub.f32 %v1964_v61, %v10853_v28  ;;  %v3029_v61 = vsub.f32 %v10845_v24, %v15914_v19  ;;  %v1985_v19 = vld [vmem:[#allocation3 + $0x110] sm:$0xff] }
 0x8ac   : > { %2689 = vmatpush.msrb.mxu0 %v10788_v48  ;;  %2740 = vmatpush.msrb.mxu1 %v2739_v20  ;;  %v1993_v20 = vld [vmem:[#allocation3 + $0x260] sm:$0xff]  ;;  %v10913_v58 = vsub.f32 %v2001_v51, %v10884_v27  ;;  %v10940_v29 = vand.u32 4294901760, %v1985_v19 }
 0x8ad   : > { %2825 = vmatpush.msrb.mxu2 %v10802_v1  ;;  %2869 = vmatpush.msrb.mxu3 %v10788_v48  ;;  %v10868_v23 = vsub.f32 %v2013_v56, %v10847_v2  ;;  %v15919_v56 = vand.u32 4294901760, %v10862_v3  ;;  %v10915_v7 = vand.u32 4294901760, %v1993_v20 }
 0x8ae   : > { %2691 = vmatpush.msrb.mxu0 %v10804_v14  ;;  %2746 = vmatpush.msrb.mxu1 %v2745_v9  ;;  %v10897_v9 = vand.u32 4294901760, %v1997_v36 }
 0x8af   : > { %2828 = vmatpush.msrb.mxu2 %v10808_v42  ;;  %2871 = vmatpush.msrb.mxu3 %v10804_v14  ;;  %v15922_v59 = vand.u32 4294901760, %v10868_v23  ;;  %v2780_v0 = vsub.f32 %v10862_v3, %v15919_v56 }
 0x8b0   : > { %2693 = vmatpush.msrb.mxu0 %v10817_v43  ;;  %2752 = vmatpush.msrb.mxu1 %v2751_v10  ;;  %v15923_v10 = vand.u32 4294901760, %v10875_v22 }
 0x8b1   : > { %2831 = vmatpush.msrb.mxu2 %v10830_v47  ;;  %2873 = vmatpush.msrb.mxu3 %v10817_v43  ;;  %v3035_v51 = vsub.f32 %v10868_v23, %v15922_v59  ;;  %v2781_v25 = vand.u32 4294901760, %v2780_v0 }
 0x8b2   : > { %v2005_v63 = vld [vmem:[#allocation3 + $0x290] sm:$0xff]  ;;  %2695 = vmatpush.msrb.mxu0 %v10819_v15  ;;  %2758 = vmatpush.msrb.mxu1 %v2757_v39  ;;  %v15927_v39 = vand.u32 4294901760, %v10882_v5  ;;  %v2786_v56 = vsub.f32 %v10875_v22, %v15923_v10  ;;  %v1977_v10 = vld [vmem:[#allocation3 + $0x20] sm:$0xff] }
 0x8b3   : > { %v10904_v18 = vand.u32 4294901760, %v2005_v63  ;;  %2834 = vmatpush.msrb.mxu2 %v10851_v6  ;;  %2875 = vmatpush.msrb.mxu3 %v10819_v15 }
 0x8b4   : > { %2697 = vmatpush.msrb.mxu0 %v10836_v32  ;;  %2764 = vmatpush.msrb.mxu1 %v2763_v46  ;;  %v10931_v46 = vsub.f32 %v1997_v36, %v10897_v9  ;;  %v2775_v36 = vand.u32 4294901760, %v2774_v13  ;;  %v3041_v59 = vsub.f32 %v10882_v5, %v15927_v39  ;;  %v16202_v13 = vand.u32 4294901760, %v10891_v40 }
 0x8b5   : > { %v10922_v60 = vsub.f32 %v2005_v63, %v10904_v18  ;;  %2837 = vmatpush.msrb.mxu2 %v10862_v3  ;;  %2877 = vmatpush.msrb.mxu3 %v10836_v32  ;;  %v3030_v63 = vand.u32 4294901760, %v3029_v61  ;;  %v10949_v61 = vsub.f32 %v1993_v20, %v10915_v7  ;;  %v3036_v39 = vand.u32 4294901760, %v3035_v51 }
 0x8b6   : > { %2699 = vmatpush.msrb.mxu0 %v10853_v28  ;;  %2770 = vmatpush.msrb.mxu1 %v2769_v41  ;;  %v2792_v15 = vsub.f32 %v10891_v40, %v16202_v13  ;;  %v10962_v41 = vsub.f32 %v1989_v4, %v10933_v50  ;;  %v2787_v0 = vand.u32 4294901760, %v2786_v56  ;;  %v3042_v51 = vand.u32 4294901760, %v3041_v59 }
 0x8b7   : > { %2840 = vmatpush.msrb.mxu2 %v10875_v22  ;;  %2879 = vmatpush.msrb.mxu3 %v10853_v28  ;;  %v16201_v32 = vand.u32 4294901760, %v10922_v60  ;;  %v16204_v4 = vand.u32 4294901760, %v10913_v58  ;;  %v3064_v20 = vand.u32 4294901760, %v10949_v61  ;;  %v16206_v56 = vand.u32 4294901760, %v10931_v46 }
 0x8b8   : > { %2892 = vmatpush.msra.mxu0 %v2713_v35  ;;  %2776 = vmatpush.msrb.mxu1 %v2775_v36  ;;  %v16203_v35 = vand.u32 4294901760, %v10743_v12  ;;  %v1973_v12 = vld [vmem:[#allocation3 + $0xf0] sm:$0xff]  ;;  %v10986_v59 = vsub.f32 %v1981_v52, %v10964_v16 }
 0x8b9   : > { %3031 = vmatpush.msra.mxu3 %v3030_v63  ;;  %v3047_v28 = vsub.f32 %v10922_v60, %v16201_v32  ;;  %2843 = vmatpush.msrb.mxu2 %v10891_v40  ;;  %v10970_v32 = vsub.f32 %v1985_v19, %v10940_v29  ;;  %v10972_v63 = vand.u32 4294901760, %v1977_v10  ;;  %v3053_v13 = vsub.f32 %v10913_v58, %v16204_v4 }
 0x8ba   : > { %2896 = vmatpush.msra.mxu0 %v16203_v35  ;;  %2782 = vmatpush.msrb.mxu1 %v2781_v25  ;;  %v16205_v35 = vand.u32 4294901760, %v10762_v49  ;;  %v2793_v19 = vand.u32 4294901760, %v2792_v15  ;;  %v3059_v25 = vsub.f32 %v10931_v46, %v16206_v56  ;;  %v16207_v4 = vand.u32 4294901760, %v10753_v53  ;;  %v1965_v56 = vld [vmem:[#allocation3 + $0x48] sm:$0xff] }
 0x8bb   : > { %2988 = vmatpush.msra.mxu2 %v10814_v17  ;;  %3037 = vmatpush.msra.mxu3 %v3036_v39  ;;  %v3048_v36 = vand.u32 4294901760, %v3047_v28  ;;  %v3070_v28 = vand.u32 4294901760, %v10962_v41  ;;  %v1969_v39 = vld [vmem:[#allocation3 + $0x100] sm:$0xff]  ;;  %v10991_v49 = vand.u32 4294901760, %v1973_v12  ;;  %v3054_v15 = vand.u32 4294901760, %v3053_v13 }
 0x8bc   : > { %2900 = vmatpush.msra.mxu0 %v16205_v35  ;;  %2788 = vmatpush.msrb.mxu1 %v2787_v0  ;;  %v3065_v0 = vsub.f32 %v10949_v61, %v3064_v20  ;;  %v10998_v52 = vsub.f32 %v1977_v10, %v10972_v63  ;;  %v16208_v35 = vand.u32 4294901760, %v10799_v45  ;;  %v11003_v53 = vand.u32 4294901760, %v1969_v39 }
 0x8bd   : > { %2990 = vmatpush.msra.mxu2 %v10847_v2  ;;  %3043 = vmatpush.msra.mxu3 %v3042_v51  ;;  %v3076_v51 = vand.u32 4294901760, %v10970_v32  ;;  %v3071_v13 = vsub.f32 %v10962_v41, %v3070_v28  ;;  %v16209_v10 = vand.u32 4294901760, %v10782_v38  ;;  %v16210_v38 = vand.u32 4294901760, %v10793_v11 }
 0x8be   : > { %2904 = vmatpush.msra.mxu0 %v16207_v4  ;;  %2794 = vmatpush.msrb.mxu1 %v2793_v19  ;;  %v3082_v19 = vand.u32 4294901760, %v10986_v59  ;;  %v3066_v45 = vand.u32 4294901760, %v3065_v0  ;;  %v3088_v4 = vand.u32 4294901760, %v10998_v52 }
 0x8bf   : > { %2992 = vmatpush.msra.mxu2 %v10855_v34  ;;  %3049 = vmatpush.msra.mxu3 %v3048_v36  ;;  %v3060_v36 = vand.u32 4294901760, %v3059_v25  ;;  %v3077_v25 = vsub.f32 %v10970_v32, %v3076_v51 }
 0x8c0   : > { %2908 = vmatpush.msra.mxu0 %v16208_v35  ;;  %2953 = vmatpush.msra.mxu1 %v10715_v54  ;;  %v11014_v54 = vsub.f32 %v1973_v12, %v10991_v49  ;;  %v3072_v12 = vand.u32 4294901760, %v3071_v13  ;;  %v3083_v0 = vsub.f32 %v10986_v59, %v3082_v19  ;;  %v16211_v35 = vand.u32 4294901760, %v10802_v1 }
 0x8c1   : > { %2994 = vmatpush.msra.mxu2 %v10904_v18  ;;  %3055 = vmatpush.msra.mxu3 %v3054_v15  ;;  %v11021_v15 = vand.u32 4294901760, %v1965_v56  ;;  %v16212_v13 = vand.u32 4294901760, %v10808_v42 }
 0x8c2   : > { %2912 = vmatpush.msra.mxu0 %v16209_v10  ;;  %2955 = vmatpush.msra.mxu1 %v10737_v62  ;;  %v11027_v62 = vsub.f32 %v1969_v39, %v11003_v53  ;;  %v3094_v11 = vand.u32 4294901760, %v11014_v54  ;;  %v3089_v39 = vsub.f32 %v10998_v52, %v3088_v4  ;;  %v3084_v1 = vand.u32 4294901760, %v3083_v0 }
 0x8c3   : > { %2996 = vmatpush.msra.mxu2 %v10884_v27  ;;  %3061 = vmatpush.msra.mxu3 %v3060_v36  ;;  %v11042_v36 = vsub.f32 %v1965_v56, %v11021_v15  ;;  %v16213_v10 = vand.u32 4294901760, %v10830_v47 }
 0x8c4   : > { %2916 = vmatpush.msra.mxu0 %v16210_v38  ;;  %2957 = vmatpush.msra.mxu1 %v10755_v55  ;;  %v3078_v55 = vand.u32 4294901760, %v3077_v25  ;;  %v3095_v56 = vsub.f32 %v11014_v54, %v3094_v11  ;;  %v3090_v42 = vand.u32 4294901760, %v3089_v39  ;;  %v16224_v39 = vand.u32 4294901760, %v10922_v60 }
 0x8c5   : > { %2998 = vmatpush.msra.mxu2 %v10897_v9  ;;  %3067 = vmatpush.msra.mxu3 %v3066_v45  ;;  %v16214_v45 = vand.u32 4294901760, %v10851_v6  ;;  %v16216_v6 = vand.u32 4294901760, %v10875_v22  ;;  %v16218_v22 = vand.u32 4294901760, %v10845_v24 }
 0x8c6   : > { %2920 = vmatpush.msra.mxu0 %v16211_v35  ;;  %2959 = vmatpush.msra.mxu1 %v10745_v8  ;;  %v3100_v8 = vand.u32 4294901760, %v11027_v62  ;;  %v3096_v25 = vand.u32 4294901760, %v3095_v56  ;;  %v16222_v35 = vand.u32 4294901760, %v10882_v5 }
 0x8c7   : > { %3000 = vmatpush.msra.mxu2 %v10915_v7  ;;  %3073 = vmatpush.msra.mxu3 %v3072_v12  ;;  %v2217_v12 = vpop.f32.mrf.mxu2 }
 0x8c8   : > { %2924 = vmatpush.msra.mxu0 %v16212_v13  ;;  %2961 = vmatpush.msra.mxu1 %v10790_v26  ;;  %v3106_v26 = vand.u32 4294901760, %v11042_v36  ;;  %v3101_v47 = vsub.f32 %v11027_v62, %v3100_v8  ;;  %v2254_v13 = vpop.f32.mrf.mxu3 }
 0x8c9   : > { %3002 = vmatpush.msra.mxu2 %v10933_v50  ;;  %3079 = vmatpush.msra.mxu3 %v3078_v55 }
 0x8ca   : > { %2928 = vmatpush.msra.mxu0 %v16213_v10  ;;  %2963 = vmatpush.msra.mxu1 %v10769_v21  ;;  %v16215_v21 = vand.u32 4294901760, %v10862_v3  ;;  %v3102_v38 = vand.u32 4294901760, %v3101_v47  ;;  %v16217_v3 = vand.u32 4294901760, %v10891_v40  ;;  %v16219_v40 = vld [vmem:[#allocation16_spill] sm:$0xff] }
 0x8cb   : > { %3004 = vmatpush.msra.mxu2 %v10940_v29  ;;  %3085 = vmatpush.msra.mxu3 %v3084_v1 }
 0x8cc   : > { %2932 = vmatpush.msra.mxu0 %v16214_v45  ;;  %2965 = vmatpush.msra.mxu1 %v10776_v30  ;;  %v3107_v30 = vsub.f32 %v11042_v36, %v3106_v26 }
 0x8cd   : > { %3006 = vmatpush.msra.mxu2 %v10964_v16  ;;  %3091 = vmatpush.msra.mxu3 %v3090_v42 }
 0x8ce   : > { %2846 = vmatmul.f32.vlgmr.msrb.gmra.mxu2 %v10439_v44  ;;  %2936 = vmatpush.msra.mxu0 %v16215_v21 }
 0x8cf   : > { %2967 = vmatpush.msra.mxu1 %v10784_v37  ;;  %3008 = vmatpush.msra.mxu2 %v10972_v63  ;;  %v3108_v37 = vand.u32 4294901760, %v3107_v30 }
 0x8d0   : > { %3097 = vmatpush.msra.mxu3 %v3096_v25  ;;  %2940 = vmatpush.msra.mxu0 %v16216_v6 }
 0x8d1   : > { %2883 = vmatmul.f32.vlgmr.msrb.gmra.mxu3 %v10493_v31  ;;  %2969 = vmatpush.msra.mxu1 %v10788_v48  ;;  %v2076_v48 = vpop.f32.mrf.mxu0 }
 0x8d2   : > { %3010 = vmatpush.msra.mxu2 %v10991_v49  ;;  %3103 = vmatpush.msra.mxu3 %v3102_v38 }
 0x8d3   : > { %2705 = vmatmul.f32.vlgmr.msrb.gmra.mxu0 %v10548_v57  ;;  %2971 = vmatpush.msra.mxu1 %v10804_v14  ;;  %v2167_v14 = vpop.f32.mrf.mxu1 }
 0x8d4   : > { %2944 = vmatpush.msra.mxu0 %v16217_v3  ;;  %3012 = vmatpush.msra.mxu2 %v11003_v53 }
 0x8d5   : > { %3109 = vmatpush.msra.mxu3 %v3108_v37  ;;  %2796 = vmatmul.f32.vlgmr.msrb.gmra.mxu1 %v10414_v33 }
 0x8d6   : > { %3119 = vmatpush.msrb.mxu0 %v10845_v24  ;;  %2973 = vmatpush.msra.mxu1 %v10817_v43  ;;  %v16220_v43 = vand.u32 4294901760, %v10868_v23 }
 0x8d7   : > { %3268 = vmatpush.msrb.mxu3 %v10814_v17  ;;  %3014 = vmatpush.msra.mxu2 %v11021_v15 }
 0x8d8   : > { %3020 = vmatmul.f32.vlgmr.msra.gmra.mxu2 %v10548_v57  ;;  %3122 = vmatpush.msrb.mxu0 %v10868_v23  ;;  %v16221_v57 = vld [vmem:[#allocation17_spill] sm:$0xff]  ;;  %v16223_v23 = vld [vmem:[#allocation18_spill] sm:$0xff] }
 0x8d9   : > { %3207 = vmatpush.msrb.mxu2 %v16218_v22  ;;  %3270 = vmatpush.msrb.mxu3 %v10847_v2 }
 0x8da   : > { %2975 = vmatpush.msra.mxu1 %v16219_v40  ;;  %3111 = vmatmul.f32.vlgmr.msra.gmra.mxu3 %v10414_v33 }
 0x8db   : > { %3125 = vmatpush.msrb.mxu0 %v10882_v5  ;;  %3211 = vmatpush.msrb.mxu2 %v16220_v43  ;;  %v11097_v0 = vpop.permute.xlu1 %2020  ;;  %v16225_v5 = vand.u32 4294901760, %v10913_v58  ;;  %v9186_v43 = vld [vmem:[%s16162_s5 + $0x42] ss:$8 sm:$0xf] }
 0x8dc   : > { %3272 = vmatpush.msrb.mxu3 %v10855_v34  ;;  %2977 = vmatpush.msra.mxu1 %v16221_v57  ;;  %v2077_v24 = vadd.f32 %v2076_v48, %v11097_v0 }
 0x8dd   : > { %2946 = vmatmul.f32.vlgmr.msra.gmra.mxu0 %v10414_v33  ;;  %3215 = vmatpush.msrb.mxu2 %v16222_v35 }
 0x8de   : > { %3128 = vmatpush.msrb.mxu0 %v10922_v60  ;;  %3274 = vmatpush.msrb.mxu3 %v10904_v18  ;;  %v2168_v55 = vadd.f32 %v2167_v14, %v2077_v24  ;;  %v16226_v60 = vand.u32 4294901760, %v10931_v46  ;;  %v3337_v14 = vld [vmem:[%s16162_s5] ss:$8 sm:$0xf]  ;;  %v4364_v24 = vperm.slane %v9186_v43, 0 }
 0x8df   : > { %2979 = vmatpush.msra.mxu1 %v16223_v23  ;;  %3219 = vmatpush.msrb.mxu2 %v16224_v39  ;;  %v2317_v1 = vpop.f32.mrf.mxu0  ;;  %v3340_v35 = vperm.slane %v3337_v14, 1 }
 0x8e0   : > { %2981 = vmatmul.f32.vlgmr.msra.gmra.mxu1 %v10414_v33  ;;  %3131 = vmatpush.msrb.mxu0 %v10913_v58  ;;  %v2218_v56 = vadd.f32 %v2217_v12, %v2168_v55  ;;  %v3339_v12 = vperm.slane %v3337_v14, 0 }
 0x8e1   : > { %3168 = vmatpush.msrb.mxu1 %v10814_v17  ;;  %3276 = vmatpush.msrb.mxu3 %v10884_v27  ;;  %v2352_v10 = vpop.f32.mrf.mxu1 }
 0x8e2   : > { %3134 = vmatpush.msrb.mxu0 %v10931_v46  ;;  %3223 = vmatpush.msrb.mxu2 %v16225_v5  ;;  %v2255_v17 = vadd.f32 %v2254_v13, %v2218_v56 }
 0x8e3   : > { %3170 = vmatpush.msrb.mxu1 %v10847_v2  ;;  %3278 = vmatpush.msrb.mxu3 %v10897_v9  ;;  %v2391_v42 = vpop.f32.mrf.mxu2 }
 0x8e4   : > { %3137 = vmatpush.msrb.mxu0 %v10949_v61  ;;  %3227 = vmatpush.msrb.mxu2 %v16226_v60  ;;  %v2392_v2 = vadd.f32 %v2391_v42, %v11097_v0  ;;  %v2318_v58 = vadd.f32 %v2317_v1, %v2255_v17 }
 0x8e5   : > { %3172 = vmatpush.msrb.mxu1 %v10855_v34  ;;  %3280 = vmatpush.msrb.mxu3 %v10915_v7 }
 0x8e6   : > { %3140 = vmatpush.msrb.mxu0 %v10962_v41  ;;  %3231 = vmatpush.msrb.mxu2 %v3064_v20  ;;  %v2353_v61 = vadd.f32 %v2352_v10, %v2318_v58 }
 0x8e7   : > { %3174 = vmatpush.msrb.mxu1 %v10904_v18  ;;  %3282 = vmatpush.msrb.mxu3 %v10933_v50 }
 0x8e8   : > { %3143 = vmatpush.msrb.mxu0 %v10970_v32  ;;  %3235 = vmatpush.msrb.mxu2 %v3070_v28  ;;  %v2532_v18 = vpop.f32.mrf.mxu0 }
 0x8e9   : > { %3176 = vmatpush.msrb.mxu1 %v10884_v27  ;;  %3284 = vmatpush.msrb.mxu3 %v10940_v29  ;;  %v2569_v27 = vpop.f32.mrf.mxu1 }
 0x8ea   : > { %3146 = vmatpush.msrb.mxu0 %v10986_v59  ;;  %3239 = vmatpush.msrb.mxu2 %v3076_v51  ;;  %v2482_v34 = vpop.f32.mrf.mxu3 }
 0x8eb   : > { %3178 = vmatpush.msrb.mxu1 %v10897_v9  ;;  %3286 = vmatpush.msrb.mxu3 %v10964_v16  ;;  %v2483_v46 = vadd.f32 %v2482_v34, %v2392_v2  ;;  %v2632_v9 = vpop.f32.mrf.mxu2 }
 0x8ec   : > { %3149 = vmatpush.msrb.mxu0 %v10998_v52  ;;  %3243 = vmatpush.msrb.mxu2 %v3082_v19 }
 0x8ed   : > { %3180 = vmatpush.msrb.mxu1 %v10915_v7  ;;  %3288 = vmatpush.msrb.mxu3 %v10972_v63  ;;  %v2533_v41 = vadd.f32 %v2532_v18, %v2483_v46 }
 0x8ee   : > { %3152 = vmatpush.msrb.mxu0 %v11014_v54  ;;  %3247 = vmatpush.msrb.mxu2 %v3088_v4 }
 0x8ef   : > { %3182 = vmatpush.msrb.mxu1 %v10933_v50  ;;  %3290 = vmatpush.msrb.mxu3 %v10991_v49  ;;  %v2570_v20 = vadd.f32 %v2569_v27, %v2533_v41  ;;  %v3300_v50 = vmax.f32 %v2353_v61, 0.0  ;;  %v4365_v27 = vperm.slane %v9186_v43, 1  ;;  %v3341_v41 = vperm.slane %v3337_v14, 2 }
 0x8f0   : > { %3155 = vmatpush.msrb.mxu0 %v11027_v62  ;;  %3251 = vmatpush.msrb.mxu2 %v3094_v11 }
 0x8f1   : > { %3184 = vmatpush.msrb.mxu1 %v10940_v29  ;;  %3292 = vmatpush.msrb.mxu3 %v11003_v53  ;;  %v2633_v7 = vadd.f32 %v2632_v9, %v2570_v20 }
 0x8f2   : > { %3158 = vmatpush.msrb.mxu0 %v11042_v36  ;;  %3255 = vmatpush.msrb.mxu2 %v3100_v8  ;;  %v2667_v32 = vpop.f32.mrf.mxu3 }
 0x8f3   : > { %3186 = vmatpush.msrb.mxu1 %v10964_v16  ;;  %3294 = vmatpush.msrb.mxu3 %v11021_v15  ;;  %v2668_v28 = vadd.f32 %v2667_v32, %v2633_v7 }
 0x8f4   : > { %3161 = vmatmul.f32.vlgmr.msrb.gmra.mxu0 %v10439_v44  ;;  %3259 = vmatpush.msrb.mxu2 %v3106_v26  ;;  %v9169_v44 = vld [vmem:[%s16162_s5 + $0x1] ss:$8 sm:$0xf] }
 0x8f5   : > { %3188 = vmatpush.msrb.mxu1 %v10972_v63  ;;  %3261 = vmatmul.f32.vlgmr.msrb.gmra.mxu2 %v10414_v33  ;;  %v3301_v29 = vmax.f32 %v2668_v28, 0.0  ;;  %v3362_v16 = vperm.slane %v9169_v44, 0  ;;  %v3363_v8 = vperm.slane %v9169_v44, 1  ;;  %v3364_v60 = vperm.slane %v9169_v44, 2 }
 0x8f6   : > { %3296 = vmatmul.f32.vlgmr.msrb.gmra.mxu3 %v10414_v33  ;;  %3311 = vrot.lane.b32.xlu2 %v3300_v50, %s16227_s8 }
 0x8f7   : > { %3190 = vmatpush.msrb.mxu1 %v10991_v49  ;;  %3313 = vrot.lane.b32.xlu0 %v3301_v29, %s16227_s8  ;;  %v3365_v49 = vperm.slane %v9169_v44, 3 }
 0x8f9   : > { %3192 = vmatpush.msrb.mxu1 %v11003_v53 }
 0x8fb   : > { %3194 = vmatpush.msrb.mxu1 %v11021_v15 }
 0x8fc   : > { %3198 = vmatmul.f32.vlgmr.msrb.gmra.mxu1 %v10493_v31 }
 0x8ff   : > { %3366 = vrot.lane.b32.xlu0 %v3362_v16, %s16228_s19 }
 0x907   : > { %3372 = vrot.lane.b32.xlu0 %v3365_v49, %s16228_s19 }
 0x950   : > { %v2706_v33 = vpop.f32.mrf.mxu0  ;;  %v3312_v62 = vpop.permute.xlu2 %3311 }
 0x951   : > { %v2707_v63 = vadd.f32 %v2706_v33, %v11097_v0  ;;  %v2847_v52 = vpop.f32.mrf.mxu2  ;;  %3328 = vst.msk [vmem:[#allocation2] sm:$0xff] %vm15936_vm10, %v3312_v62  ;;  %v4366_v33 = vperm.slane %v9186_v43, 2  ;;  %vm16230_vm10 = vmmov %vm16197_vm12 }
 0x952   : > { %v2797_v59 = vpop.f32.mrf.mxu1  ;;  %vm16231_vm13 = vmmov %vm16230_vm10 }
 0x953   : > { %v2798_v51 = vadd.f32 %v2797_v59, %v2707_v63 }
 0x954   : > { %v2884_v54 = vpop.f32.mrf.mxu3 }
 0x955   : > { %v2848_v19 = vadd.f32 %v2847_v52, %v2798_v51  ;;  %v3342_v51 = vperm.slane %v3337_v14, 3  ;;  %v4367_v52 = vperm.slane %v9186_v43, 3 }
 0x957   : > { %v2885_v4 = vadd.f32 %v2884_v54, %v2848_v19  ;;  %v9170_v54 = vld [vmem:[%s16162_s5 + $0x2] ss:$8 sm:$0xf] }
 0x958   : > { %v11185_v21 = vld [vmem:[#allocation2] sm:$0xff] }
 0x959   : > { %v3333_v57 = vld [vmem:[#allocation2] sm:$0xff] }
 0x95a   : > { %v2947_v53 = vpop.f32.mrf.mxu0  ;;  %v3347_v23 = vmul.f32 %v3339_v12, %v3333_v57  ;;  %v9171_v57 = vld [vmem:[%s16162_s5 + $0x3] ss:$8 sm:$0xf] }
 0x95b   : > { %v2948_v15 = vadd.f32 %v2947_v53, %v2885_v4  ;;  %v3021_v47 = vpop.f32.mrf.mxu2 }
 0x95c   : > { %v3022_v30 = vadd.f32 %v3021_v47, %v11097_v0  ;;  %3351 = vst [vmem:[#allocation3 + $0x2b0] sm:$0xff] %v3347_v23 }
 0x95d   : > { %v2982_v11 = vpop.f32.mrf.mxu1  ;;  %v3112_v38 = vpop.f32.mrf.mxu3 }
 0x95e   : > { %v2983_v31 = vadd.f32 %v2982_v11, %v2948_v15  ;;  %v3113_v3 = vadd.f32 %v3112_v38, %v3022_v30  ;;  %v3422_v15 = vperm.slane %v9170_v54, 1  ;;  %v3423_v11 = vperm.slane %v9170_v54, 2 }
 0x960   : > { %v3302_v36 = vmax.f32 %v2983_v31, 0.0  ;;  %v3424_v31 = vperm.slane %v9170_v54, 3 }
 0x962   : > { %3315 = vrot.lane.b32.xlu1 %v3302_v36, %s16227_s8 }
 0x969   : > { %v3314_v26 = vpop.permute.xlu0 %3313 }
 0x96a   : > { %3368 = vrot.lane.b32.xlu1 %v3363_v8, %s16228_s19  ;;  %v11182_v45 = vsel %vm305_vm1, %v3312_v62, %v3314_v26  ;;  %v3421_v62 = vperm.slane %v9170_v54, 0 }
 0x96b   : > { %3329 = vst [vmem:[#allocation2 + $0x8] sm:$0xff] %v11182_v45 }
 0x971   : > { %v3367_v25 = vpop.permute.xlu0 %3366  ;;  %v3162_v37 = vpop.f32.mrf.mxu0 }
 0x972   : > { %v3382_v6 = vmul.f32 %v3367_v25, %v11185_v21  ;;  %v3163_v48 = vadd.f32 %v3162_v37, %v3113_v3  ;;  %v4358_v39 = vld [vmem:[#allocation2 + $0x8] sm:$0xff] }
 0x973   : > { %v4372_v1 = vmul.f32 %v4364_v24, %v4358_v39  ;;  %v3348_v5 = vmul.f32 %v4358_v39, %v3340_v35  ;;  %v3480_v35 = vperm.slane %v9171_v57, 0 }
 0x974   : > { %3392 = vrot.lane.b32.xlu1 %v3382_v6, %s16169_s29 }
 0x975   : > { %4376 = vst [vmem:[#allocation3 + $0x108] sm:$0xff] %v4372_v1  ;;  %v3482_v1 = vperm.slane %v9171_v57, 2 }
 0x976   : > { %3352 = vst [vmem:[#allocation3 + $0xd0] sm:$0xff] %v3348_v5  ;;  %v3481_v5 = vperm.slane %v9171_v57, 1 }
 0x978   : > { %v3262_v40 = vpop.f32.mrf.mxu2 }
 0x979   : > { %v3199_v22 = vpop.f32.mrf.mxu1  ;;  %v3297_v55 = vpop.f32.mrf.mxu3 }
 0x97a   : > { %v3200_v0 = vadd.f32 %v3199_v22, %v3163_v48  ;;  %v3373_v7 = vpop.permute.xlu0 %3372 }
 0x97c   : > { %v3263_v13 = vadd.f32 %v3262_v40, %v3200_v0 }
 0x97e   : > { %v3298_v10 = vadd.f32 %v3297_v55, %v3263_v13  ;;  %v3483_v13 = vperm.slane %v9171_v57, 3  ;;  %v11365_v57 = vld [vmem:[%s16162_s5 + $0x62] ss:$8 sm:$0xf] }
 0x980   : > { %v3303_v56 = vmax.f32 %v3298_v10, 0.0 }
 0x982   : > { %3317 = vrot.lane.b32.xlu2 %v3303_v56, %s16227_s8 }
 0x98a   : > { %3370 = vrot.lane.b32.xlu2 %v3364_v60, %s16228_s19 }
 0x9d4   : > { %v3316_v42 = vpop.permute.xlu1 %3315 }
 0x9d5   : > { %v11199_v17 = vsel %vm305_vm1, %v3314_v26, %v3316_v42 }
 0x9d6   : > { %3330 = vst [vmem:[#allocation2 + $0x10] sm:$0xff] %v11199_v17 }
 0x9dc   : > { %v3318_v2 = vpop.permute.xlu2 %3317  ;;  %v3369_v34 = vpop.permute.xlu1 %3368 }
 0x9dd   : > { %v11203_v18 = vsel %vm305_vm1, %v3316_v42, %v3318_v2  ;;  %3332 = vst.msk [vmem:[#allocation2 + $0x20] sm:$0xff] %vm305_vm1, %v3318_v2  ;;  %v3374_v58 = vsel %vm363_vm5, %v3367_v25, %v3369_v34  ;;  %v4359_v9 = vld [vmem:[#allocation2 + $0x10] sm:$0xff] }
 0x9de   : > { %3331 = vst [vmem:[#allocation2 + $0x18] sm:$0xff] %v11203_v18  ;;  %v3383_v46 = vmul.f32 %v3374_v58, %v11182_v45  ;;  %v4373_v61 = vmul.f32 %v4365_v27, %v4359_v9  ;;  %v3349_v20 = vmul.f32 %v4359_v9, %v3341_v41 }
 0x9e0   : > { %3394 = vrot.lane.b32.xlu2 %v3383_v46, %s16169_s29  ;;  %4377 = vst [vmem:[#allocation3 + $0x128] sm:$0xff] %v4373_v61 }
 0x9e1   : > { %3353 = vst [vmem:[#allocation3 + $0x10] sm:$0xff] %v3349_v20 }
 0x9e4   : > { %v3371_v32 = vpop.permute.xlu2 %3370  ;;  %v3359_v50 = vld [vmem:[#allocation2 + $0x20] sm:$0xff] }
 0x9e5   : > { %v3375_v28 = vsel %vm363_vm5, %v3369_v34, %v3371_v32  ;;  %v3376_v29 = vsel %vm363_vm5, %v3371_v32, %v3373_v7  ;;  %v4361_v63 = vld [vmem:[#allocation2 + $0x20] sm:$0xff]  ;;  %v3386_v59 = vmul.f32 %v3373_v7, %v3359_v50  ;;  %v4360_v49 = vld [vmem:[#allocation2 + $0x18] sm:$0xff] }
 0x9e6   : > { %v3384_v44 = vmul.f32 %v3375_v28, %v11199_v17  ;;  %v3385_v16 = vmul.f32 %v3376_v29, %v11203_v18  ;;  %v4374_v19 = vmul.f32 %v4366_v33, %v4360_v49  ;;  %v3350_v4 = vmul.f32 %v4360_v49, %v3342_v51  ;;  %v3393_v36 = vpop.permute.xlu1 %3392  ;;  %v11268_v33 = vld [vmem:[%s16162_s5 + $0x26] ss:$8 sm:$0xf]  ;;  %v11284_v51 = vld [vmem:[%s16162_s5 + $0x25] ss:$8 sm:$0xf] }
 0x9e7   : > { %v4375_v53 = vmul.f32 %v4367_v52, %v4361_v63  ;;  %v11273_v63 = vld [vmem:[%s16162_s5 + $0x27] ss:$8 sm:$0xf]  ;;  %v4071_v52 = vperm.slane %v11284_v51, 1  ;;  %v4130_v54 = vperm.slane %v11268_v33, 1 }
 0x9e8   : > { %3396 = vrot.lane.b32.xlu0 %v3384_v44, %s16169_s29  ;;  %3398 = vrot.lane.b32.xlu1 %v3385_v16, %s16169_s29  ;;  %4378 = vst [vmem:[#allocation3 + $0x118] sm:$0xff] %v4374_v19  ;;  %v4188_v49 = vperm.slane %v11273_v63, 0  ;;  %v4070_v19 = vperm.slane %v11284_v51, 0 }
 0x9e9   : > { %3400 = vrot.lane.b32.xlu2 %v3386_v59, %s16169_s29  ;;  %3354 = vst [vmem:[#allocation3 + $0x48] sm:$0xff] %v3350_v4  ;;  %v4189_v59 = vperm.slane %v11273_v63, 1  ;;  %v11295_v4 = vld [vmem:[%s16162_s5 + $0x23] ss:$8 sm:$0xf] }
 0x9ea   : > { %4379 = vst [vmem:[#allocation3 + $0x98] sm:$0xff] %v4375_v53  ;;  %v11300_v53 = vld [vmem:[%s16162_s5 + $0x24] ss:$8 sm:$0xf] }
 0x9f0   : > { %3425 = vrot.lane.b32.xlu0 %v3421_v62, %s16164_s21  ;;  %3427 = vrot.lane.b32.xlu1 %v3422_v15, %s16164_s21  ;;  %v3952_v62 = vperm.slane %v11295_v4, 0  ;;  %v4012_v15 = vperm.slane %v11300_v53, 1 }
 0x9f1   : > { %3429 = vrot.lane.b32.xlu2 %v3423_v11, %s16164_s21  ;;  %v4011_v11 = vperm.slane %v11300_v53, 0 }
 0x9f8   : > { %3431 = vrot.lane.b32.xlu0 %v3424_v31, %s16164_s21  ;;  %v11311_v31 = vld [vmem:[%s16162_s5 + $0x22] ss:$8 sm:$0xf] }
 0xa3a   : > { %v3395_v8 = vpop.permute.xlu2 %3394 }
 0xa3b   : > { %v3402_v26 = vsel %vm16229_vm14, %v3393_v36, %v3395_v8  ;;  %v3894_v36 = vperm.slane %v11311_v31, 1 }
 0xa3c   : > { %3410 = vst [vmem:[#allocation3 + $0x320] sm:$0xff] %v3402_v26  ;;  %v3953_v26 = vperm.slane %v11295_v4, 1 }
 0xa43   : > { %v3401_v47 = vpop.permute.xlu2 %3400 }
 0xa4b   : > { %v3430_v3 = vpop.permute.xlu2 %3429 }
 0xa5a   : > { %v3399_v25 = vpop.permute.xlu1 %3398  ;;  %v3397_v30 = vpop.permute.xlu0 %3396 }
 0xa5b   : > { %v3405_v6 = vsel %vm16197_vm12, %v3399_v25, %v3401_v47  ;;  %v3403_v38 = vsel %vm16230_vm10, %v3395_v8, %v3397_v30  ;;  %v3404_v37 = vsel %vm16231_vm13, %v3397_v30, %v3399_v25  ;;  %v3893_v8 = vperm.slane %v11311_v31, 0  ;;  %v11322_v47 = vld [vmem:[%s16162_s5 + $0x20] ss:$8 sm:$0xf] }
 0xa5c   : > { %3413 = vst [vmem:[#allocation3 + $0x100] sm:$0xff] %v3405_v6  ;;  %v11327_v25 = vld [vmem:[%s16162_s5 + $0x21] ss:$8 sm:$0xf]  ;;  %v3775_v30 = vperm.slane %v11322_v47, 0  ;;  %vm16244_vm13 = vcmask 982016  }
 0xa5d   : > { %3411 = vst [vmem:[#allocation3 + $0x38] sm:$0xff] %v3403_v38  ;;  %v3835_v6 = vperm.slane %v11327_v25, 1  ;;  %v3834_v38 = vperm.slane %v11327_v25, 0  ;;  %vm16247_vm10 = vmmov %vm16244_vm13  ;;  %vm16251_vm12 = vcmask 654336  }
 0xa5e   : > { %3412 = vst [vmem:[#allocation3 + $0xf8] sm:$0xff] %v3404_v37  ;;  %v11338_v37 = vld [vmem:[%s16162_s5 + $0x7] ss:$8 sm:$0xf]  ;;  %vm16248_vm14 = vmmov %vm16247_vm10 }
 0xa62   : > { %v3428_v48 = vpop.permute.xlu1 %3427  ;;  %v3426_v14 = vpop.permute.xlu0 %3425 }
 0xa63   : > { %v3434_v22 = vsel %vm430_vm3, %v3428_v48, %v3430_v3  ;;  %v3433_v40 = vsel %vm430_vm3, %v3426_v14, %v3428_v48  ;;  %v3441_v12 = vmul.f32 %v3426_v14, %v11185_v21  ;;  %v3716_v48 = vperm.slane %v11338_v37, 0 }
 0xa64   : > { %v3443_v43 = vmul.f32 %v3434_v22, %v11199_v17  ;;  %v3442_v0 = vmul.f32 %v3433_v40, %v11182_v45  ;;  %v3776_v14 = vperm.slane %v11322_v47, 1  ;;  %v11349_v22 = vld [vmem:[%s16162_s5 + $0x5] ss:$8 sm:$0xf] }
 0xa65   : > { %3451 = vrot.lane.b32.xlu1 %v3441_v12, %s16167_s17  ;;  %v11354_v40 = vld [vmem:[%s16162_s5 + $0x6] ss:$8 sm:$0xf]  ;;  %v3598_v12 = vperm.slane %v11349_v22, 0 }
 0xa66   : > { %3455 = vrot.lane.b32.xlu0 %v3443_v43, %s16167_s17  ;;  %3453 = vrot.lane.b32.xlu2 %v3442_v0, %s16167_s17  ;;  %v3658_v43 = vperm.slane %v11354_v40, 1  ;;  %v3657_v0 = vperm.slane %v11354_v40, 0 }
 0xa6a   : > { %v3432_v24 = vpop.permute.xlu0 %3431 }
 0xa6b   : > { %v3435_v55 = vsel %vm430_vm3, %v3430_v3, %v3432_v24  ;;  %v3445_v23 = vmul.f32 %v3432_v24, %v3359_v50  ;;  %v3717_v3 = vperm.slane %v11338_v37, 1  ;;  %v4801_v24 = vperm.slane %v11365_v57, 1 }
 0xa6c   : > { %v3444_v39 = vmul.f32 %v3435_v55, %v11203_v18  ;;  %v3599_v55 = vperm.slane %v11349_v22, 1 }
 0xa6e   : > { %3484 = vrot.lane.b32.xlu0 %v3480_v35, %s16163_s18  ;;  %3459 = vrot.lane.b32.xlu2 %v3445_v23, %s16167_s17  ;;  %v4800_v35 = vperm.slane %v11365_v57, 0  ;;  %v11376_v23 = vld [vmem:[%s16162_s5 + $0x61] ss:$8 sm:$0xf] }
 0xa6f   : > { %3457 = vrot.lane.b32.xlu1 %v3444_v39, %s16167_s17  ;;  %v11381_v39 = vld [vmem:[%s16162_s5 + $0x4] ss:$8 sm:$0xf] }
 0xa76   : > { %3490 = vrot.lane.b32.xlu0 %v3483_v13, %s16163_s18  ;;  %3488 = vrot.lane.b32.xlu2 %v3482_v1, %s16163_s18  ;;  %v4741_v13 = vperm.slane %v11376_v23, 0  ;;  %v3540_v1 = vperm.slane %v11381_v39, 1 }
 0xa77   : > { %3486 = vrot.lane.b32.xlu1 %v3481_v5, %s16163_s18  ;;  %v3539_v5 = vperm.slane %v11381_v39, 0 }
 0xac0   : > { %v3454_v10 = vpop.permute.xlu2 %3453 }
 0xac8   : > { %v3460_v34 = vpop.permute.xlu2 %3459 }
 0xad0   : > { %v3489_v61 = vpop.permute.xlu2 %3488 }
 0xad7   : > { %v3452_v56 = vpop.permute.xlu1 %3451 }
 0xad8   : > { %v3461_v60 = vsel %vm459_vm9, %v3452_v56, %v3454_v10  ;;  %v3456_v42 = vpop.permute.xlu0 %3455 }
 0xad9   : > { %3469 = vst [vmem:[#allocation3 + $0x80] sm:$0xff] %v3461_v60  ;;  %v3462_v2 = vsel %vm459_vm9, %v3454_v10, %v3456_v42  ;;  %v11392_v10 = vld [vmem:[%s16162_s5 + $0x60] ss:$8 sm:$0xf] }
 0xada   : > { %3470 = vst [vmem:[#allocation3 + $0x308] sm:$0xff] %v3462_v2  ;;  %v4683_v56 = vperm.slane %v11392_v10, 1  ;;  %v4682_v60 = vperm.slane %v11392_v10, 0  ;;  %v11403_v2 = vld [vmem:[%s16162_s5 + $0x46] ss:$8 sm:$0xf] }
 0xae0   : > { %v3485_v58 = vpop.permute.xlu0 %3484 }
 0xae1   : > { %v3458_v46 = vpop.permute.xlu1 %3457  ;;  %v3500_v27 = vmul.f32 %v3485_v58, %v11185_v21 }
 0xae2   : > { %v3463_v41 = vsel %vm459_vm9, %v3456_v42, %v3458_v46  ;;  %v3464_v9 = vsel %vm459_vm9, %v3458_v46, %v3460_v34  ;;  %v4742_v42 = vperm.slane %v11376_v23, 1  ;;  %v11408_v34 = vld [vmem:[%s16162_s5 + $0x47] ss:$8 sm:$0xf] }
 0xae3   : > { %3471 = vst [vmem:[#allocation3 + $0x138] sm:$0xff] %v3463_v41  ;;  %3510 = vrot.lane.b32.xlu1 %v3500_v27, %s16168_s20  ;;  %v4624_v46 = vperm.slane %v11408_v34, 1  ;;  %v4623_v27 = vperm.slane %v11408_v34, 0  ;;  %v11419_v41 = vld [vmem:[%s16162_s5 + $0x45] ss:$8 sm:$0xf] }
 0xae4   : > { %3472 = vst [vmem:[#allocation3 + $0xf0] sm:$0xff] %v3464_v9 }
 0xae8   : > { %v11253_v20 = vpop.permute.xlu0 %3490 }
 0xae9   : > { %16232 = vst [vmem:[#allocation16_spill] sm:$0xff] %v11253_v20  ;;  %v3487_v7 = vpop.permute.xlu1 %3486  ;;  %v3494_v32 = vsel %vm492_vm6, %v3489_v61, %v11253_v20 }
 0xaea   : > { %v3492_v50 = vsel %vm492_vm6, %v3485_v58, %v3487_v7  ;;  %v3493_v28 = vsel %vm492_vm6, %v3487_v7, %v3489_v61  ;;  %v3503_v29 = vmul.f32 %v3494_v32, %v11203_v18  ;;  %v4129_v18 = vperm.slane %v11268_v33, 0 }
 0xaeb   : > { %v3501_v44 = vmul.f32 %v3492_v50, %v11182_v45  ;;  %v3502_v16 = vmul.f32 %v3493_v28, %v11199_v17  ;;  %v4564_v58 = vperm.slane %v11403_v2, 0  ;;  %v4506_v61 = vperm.slane %v11419_v41, 1  ;;  %v11430_v50 = vld [vmem:[%s16162_s5 + $0x43] ss:$8 sm:$0xf] }
 0xaec   : > { %3516 = vrot.lane.b32.xlu1 %v3503_v29, %s16168_s20  ;;  %v4505_v7 = vperm.slane %v11419_v41, 0  ;;  %v4565_v32 = vperm.slane %v11403_v2, 1  ;;  %v11435_v28 = vld [vmem:[%s16162_s5 + $0x44] ss:$8 sm:$0xf] }
 0xaed   : > { %3514 = vrot.lane.b32.xlu0 %v3502_v16, %s16168_s20  ;;  %3512 = vrot.lane.b32.xlu2 %v3501_v44, %s16168_s20  ;;  %v4387_v44 = vperm.slane %v11430_v50, 0  ;;  %v4447_v16 = vperm.slane %v11435_v28, 1 }
 0xaf4   : > { %4133 = vrot.lane.b32.xlu1 %v4129_v18, %s16233_s0  ;;  %v4446_v18 = vperm.slane %v11435_v28, 0 }
 0xaf5   : > { %4194 = vrot.lane.b32.xlu0 %v4189_v59, %s16234_s1  ;;  %4192 = vrot.lane.b32.xlu2 %v4188_v49, %s16234_s1  ;;  %v11446_v49 = vld [vmem:[%s16162_s5 + $0x41] ss:$8 sm:$0xf] }
 0xafc   : > { %4076 = vrot.lane.b32.xlu1 %v4071_v52, %s16227_s8 }
 0xafd   : > { %4074 = vrot.lane.b32.xlu0 %v4070_v19, %s16227_s8  ;;  %4135 = vrot.lane.b32.xlu2 %v4130_v54, %s16233_s0  ;;  %v4307_v54 = vperm.slane %v11446_v49, 1 }
 0xb04   : > { %3956 = vrot.lane.b32.xlu1 %v3952_v62, %s16235_s2  ;;  %v4306_v62 = vperm.slane %v11446_v49, 0 }
 0xb05   : > { %4017 = vrot.lane.b32.xlu0 %v4012_v15, %s16236_s10  ;;  %4015 = vrot.lane.b32.xlu2 %v4011_v11, %s16236_s10  ;;  %v4388_v15 = vperm.slane %v11430_v50, 1 }
 0xb0c   : > { %3899 = vrot.lane.b32.xlu1 %v3894_v36, %s16237_s13  ;;  %v11465_v36 = vld [vmem:[%s16162_s5 + $0x40] ss:$8 sm:$0xf]  ;;  %s16263_s5 = smov 112  }
 0xb0d   : > { %3897 = vrot.lane.b32.xlu0 %v3893_v8, %s16237_s13  ;;  %3958 = vrot.lane.b32.xlu2 %v3953_v26, %s16235_s2 }
 0xb14   : > { %3779 = vrot.lane.b32.xlu1 %v3775_v30, %s16238_s30 }
 0xb15   : > { %3840 = vrot.lane.b32.xlu0 %v3835_v6, %s16239_s12  ;;  %3838 = vrot.lane.b32.xlu2 %v3834_v38, %s16239_s12  ;;  %v4248_v38 = vperm.slane %v11465_v36, 1 }
 0xb1c   : > { %3722 = vrot.lane.b32.xlu1 %v3717_v3, %s16240_s23  ;;  %v4247_v3 = vperm.slane %v11465_v36, 0 }
 0xb1d   : > { %3720 = vrot.lane.b32.xlu0 %v3716_v48, %s16240_s23  ;;  %3781 = vrot.lane.b32.xlu2 %v3776_v14, %s16238_s30 }
 0xb24   : > { %3602 = vrot.lane.b32.xlu1 %v3598_v12, %s16241_s27 }
 0xb25   : > { %3663 = vrot.lane.b32.xlu0 %v3658_v43, %s16242_s11  ;;  %3661 = vrot.lane.b32.xlu2 %v3657_v0, %s16242_s11 }
 0xb2c   : > { %4806 = vrot.lane.b32.xlu1 %v4801_v24, %s16238_s30  ;;  %v4190_v24 = vperm.slane %v11273_v63, 2 }
 0xb2d   : > { %4804 = vrot.lane.b32.xlu0 %v4800_v35, %s16238_s30  ;;  %3604 = vrot.lane.b32.xlu2 %v3599_v55, %s16241_s27 }
 0xb34   : > { %4745 = vrot.lane.b32.xlu1 %v4741_v13, %s16240_s23 }
 0xb35   : > { %3545 = vrot.lane.b32.xlu0 %v3540_v1, %s16243_s7  ;;  %3543 = vrot.lane.b32.xlu2 %v3539_v5, %s16243_s7 }
 0xb3c   : > { %4688 = vrot.lane.b32.xlu1 %v4683_v56, %s16242_s11 }
 0xb3d   : > { %4686 = vrot.lane.b32.xlu0 %v4682_v60, %s16242_s11  ;;  %4747 = vrot.lane.b32.xlu2 %v4742_v42, %s16240_s23  ;;  %v4131_v60 = vperm.slane %v11268_v33, 2 }
 0xb44   : > { %4568 = vrot.lane.b32.xlu1 %v4564_v58, %s16243_s7 }
 0xb45   : > { %4629 = vrot.lane.b32.xlu0 %v4624_v46, %s16241_s27  ;;  %4627 = vrot.lane.b32.xlu2 %v4623_v27, %s16241_s27 }
 0xb47   : > { %v3513_v9 = vpop.permute.xlu2 %3512 }
 0xb4c   : > { %4511 = vrot.lane.b32.xlu1 %v4506_v61, %s16163_s18 }
 0xb4d   : > { %4509 = vrot.lane.b32.xlu0 %v4505_v7, %s16163_s18  ;;  %4570 = vrot.lane.b32.xlu2 %v4565_v32, %s16243_s7  ;;  %v4072_v7 = vperm.slane %v11284_v51, 2 }
 0xb4f   : > { %v4193_v29 = vpop.permute.xlu2 %4192 }
 0xb50   : > { %v4208_v48 = vmul.f32 %v4193_v29, %v11185_v21 }
 0xb54   : > { %4391 = vrot.lane.b32.xlu1 %v4387_v44, %s16228_s19 }
 0xb55   : > { %4452 = vrot.lane.b32.xlu0 %v4447_v16, %s16164_s21  ;;  %4450 = vrot.lane.b32.xlu2 %v4446_v18, %s16164_s21  ;;  %v3511_v59 = vpop.permute.xlu1 %3510 }
 0xb56   : > { %v11449_v52 = vsel %vm16244_vm13, %v3511_v59, %v3513_v9  ;;  %vm16253_vm13 = vcmask 605184  }
 0xb57   : > { %3528 = vst [vmem:[#allocation3 + $0x18] sm:$0xff] %v11449_v52  ;;  %v11452_v19 = vpop.permute.xlu2 %4135 }
 0xb5c   : > { %4312 = vrot.lane.b32.xlu1 %v4307_v54, %s16245_s24  ;;  %v4013_v54 = vperm.slane %v11300_v53, 2 }
 0xb5d   : > { %4310 = vrot.lane.b32.xlu0 %v4306_v62, %s16245_s24  ;;  %4393 = vrot.lane.b32.xlu2 %v4388_v15, %s16228_s19 }
 0xb5e   : > { %v11460_v11 = vpop.permute.xlu1 %3516 }
 0xb5f   : > { %16246 = vst [vmem:[#allocation17_spill] sm:$0xff] %v11460_v11  ;;  %v4016_v8 = vpop.permute.xlu2 %4015  ;;  %v3515_v26 = vpop.permute.xlu0 %3514 }
 0xb60   : > { %v3521_v30 = vsel %vm16247_vm10, %v3513_v9, %v3515_v26  ;;  %v3522_v6 = vsel %vm16248_vm14, %v3515_v26, %v11460_v11  ;;  %v4031_v32 = vmul.f32 %v4016_v8, %v11185_v21  ;;  %vm16256_vm10 = vcmask 588800  }
 0xb61   : > { %3529 = vst [vmem:[#allocation3 + $0x2c8] sm:$0xff] %v3521_v30  ;;  %vm16258_vm14 = vcmask 539648  }
 0xb62   : > { %3530 = vst [vmem:[#allocation3 + $0x318] sm:$0xff] %v3522_v6 }
 0xb64   : > { %4218 = vrot.lane.b32.xlu1 %v4208_v48, %s16249_s9 }
 0xb65   : > { %4253 = vrot.lane.b32.xlu0 %v4248_v38, %s16250_s15  ;;  %4251 = vrot.lane.b32.xlu2 %v4247_v3, %s16250_s15  ;;  %v3954_v38 = vperm.slane %v11295_v4, 2 }
 0xb66   : > { %v4134_v14 = vpop.permute.xlu1 %4133 }
 0xb67   : > { %v11476_v12 = vpop.permute.xlu2 %3958  ;;  %v11478_v43 = vpop.permute.xlu0 %4194  ;;  %v4149_v35 = vmul.f32 %v4134_v14, %v11185_v21  ;;  %v4141_v56 = vsel %vm16253_vm13, %v4134_v14, %v11452_v19  ;;  %vm16261_vm13 = vcmask 523264  }
 0xb68   : > { %v4200_v0 = vsel %vm16251_vm12, %v4193_v29, %v11478_v43  ;;  %v4150_v58 = vmul.f32 %v4141_v56, %v11182_v45  ;;  %vm16260_vm12 = vcmask 531456  }
 0xb69   : > { %v4209_v55 = vmul.f32 %v4200_v0, %v11182_v45 }
 0xb6c   : > { %4159 = vrot.lane.b32.xlu1 %v4149_v35, %s16252_s26 }
 0xb6d   : > { %4196 = vrot.lane.b32.xlu0 %v4190_v24, %s16234_s1  ;;  %4220 = vrot.lane.b32.xlu2 %v4209_v55, %s16249_s9  ;;  %v3895_v55 = vperm.slane %v11311_v31, 2 }
 0xb6e   : > { %v11488_v13 = vpop.permute.xlu1 %4076 }
 0xb6f   : > { %v3839_v1 = vpop.permute.xlu2 %3838  ;;  %v4075_v5 = vpop.permute.xlu0 %4074 }
 0xb70   : > { %v4090_v42 = vmul.f32 %v4075_v5, %v11185_v21  ;;  %v4082_v61 = vsel %vm305_vm1, %v4075_v5, %v11488_v13  ;;  %v3854_v5 = vmul.f32 %v3839_v1, %v11185_v21 }
 0xb71   : > { %v4091_v29 = vmul.f32 %v4082_v61, %v11182_v45  ;;  %v3836_v61 = vperm.slane %v11327_v25, 2 }
 0xb74   : > { %4100 = vrot.lane.b32.xlu1 %v4090_v42, %s16254_s28 }
 0xb75   : > { %4137 = vrot.lane.b32.xlu0 %v4131_v60, %s16233_s0  ;;  %4161 = vrot.lane.b32.xlu2 %v4150_v58, %s16252_s26 }
 0xb76   : > { %v3957_v46 = vpop.permute.xlu1 %3956 }
 0xb77   : > { %v11498_v27 = vpop.permute.xlu2 %3781  ;;  %v11500_v9 = vpop.permute.xlu0 %4017  ;;  %v3972_v62 = vmul.f32 %v3957_v46, %v11185_v21 }
 0xb78   : > { %v4023_v59 = vsel %vm16256_vm10, %v4016_v8, %v11500_v9  ;;  %v3964_v8 = vsel %vm16258_vm14, %v3957_v46, %v11476_v12  ;;  %vm16269_vm10 = vcmask 392192   ;;  %vm16272_vm14 = vcmask 441344  }
 0xb79   : > { %v4032_v15 = vmul.f32 %v4023_v59, %v11182_v45  ;;  %v3973_v48 = vmul.f32 %v3964_v8, %v11182_v45 }
 0xb7c   : > { %4041 = vrot.lane.b32.xlu1 %v4031_v32, %s16255_s25 }
 0xb7d   : > { %4078 = vrot.lane.b32.xlu0 %v4072_v7, %s16227_s8  ;;  %4102 = vrot.lane.b32.xlu2 %v4091_v29, %s16254_s28 }
 0xb7e   : > { %v11510_v44 = vpop.permute.xlu1 %3899 }
 0xb7f   : > { %v11512_v16 = vpop.permute.xlu2 %3661  ;;  %v3898_v18 = vpop.permute.xlu0 %3897 }
 0xb80   : > { %v3913_v3 = vmul.f32 %v3898_v18, %v11185_v21  ;;  %v3905_v35 = vsel %vm16260_vm12, %v3898_v18, %v11510_v44  ;;  %vm16274_vm12 = vcmask 449536  }
 0xb81   : > { %v3914_v56 = vmul.f32 %v3905_v35, %v11182_v45  ;;  %v3677_v35 = vmul.f32 %v11512_v16, %v11185_v21 }
 0xb84   : > { %3982 = vrot.lane.b32.xlu1 %v3972_v62, %s16257_s6 }
 0xb85   : > { %4019 = vrot.lane.b32.xlu0 %v4013_v54, %s16236_s10  ;;  %4043 = vrot.lane.b32.xlu2 %v4032_v15, %s16255_s25  ;;  %v3777_v54 = vperm.slane %v11322_v47, 2 }
 0xb86   : > { %v3780_v26 = vpop.permute.xlu1 %3779 }
 0xb87   : > { %v11522_v30 = vpop.permute.xlu2 %3604  ;;  %v11524_v6 = vpop.permute.xlu0 %3840  ;;  %v3795_v7 = vmul.f32 %v3780_v26, %v11185_v21 }
 0xb88   : > { %v3846_v46 = vsel %vm16261_vm13, %v3839_v1, %v11524_v6  ;;  %v3787_v1 = vsel %vm282_vm0, %v3780_v26, %v11498_v27  ;;  %vm16277_vm13 = vcmask 457728  }
 0xb89   : > { %v3855_v32 = vmul.f32 %v3846_v46, %v11182_v45  ;;  %v3796_v15 = vmul.f32 %v3787_v1, %v11182_v45 }
 0xb8c   : > { %3923 = vrot.lane.b32.xlu1 %v3913_v3, %s16259_s4 }
 0xb8d   : > { %3960 = vrot.lane.b32.xlu0 %v3954_v38, %s16235_s2  ;;  %3984 = vrot.lane.b32.xlu2 %v3973_v48, %s16257_s6  ;;  %v3718_v48 = vperm.slane %v11338_v37, 2 }
 0xb8e   : > { %v11534_v14 = vpop.permute.xlu1 %3722 }
 0xb8f   : > { %v11536_v0 = vpop.permute.xlu2 %3543  ;;  %v3721_v24 = vpop.permute.xlu0 %3720 }
 0xb90   : > { %v3736_v62 = vmul.f32 %v3721_v24, %v11185_v21  ;;  %v3728_v26 = vsel %vm750_vm15, %v3721_v24, %v11534_v14  ;;  %v3659_v24 = vperm.slane %v11354_v40, 2  ;;  %v3600_v40 = vperm.slane %v11349_v22, 2 }
 0xb94   : > { %3864 = vrot.lane.b32.xlu1 %v3854_v5, %s16239_s12 }
 0xb95   : > { %3901 = vrot.lane.b32.xlu0 %v3895_v55, %s16237_s13  ;;  %3925 = vrot.lane.b32.xlu2 %v3914_v56, %s16259_s4  ;;  %v3737_v55 = vmul.f32 %v3728_v26, %v11182_v45 }
 0xb96   : > { %v3603_v60 = vpop.permute.xlu1 %3602 }
 0xb97   : > { %v11546_v42 = vpop.permute.xlu2 %4747  ;;  %v11548_v58 = vpop.permute.xlu0 %3663 }
 0xb98   : > { %v3669_v37 = vsel %vm688_vm8, %v11512_v16, %v11548_v58  ;;  %v3610_v16 = vsel %vm621_vm7, %v3603_v60, %v11522_v30 }
 0xb9c   : > { %3805 = vrot.lane.b32.xlu1 %v3795_v7, %s16262_s3  ;;  %v3678_v7 = vmul.f32 %v3669_v37, %v11182_v45  ;;  %v3559_v37 = vmul.f32 %v11536_v0, %v11185_v21 }
 0xb9d   : > { %3842 = vrot.lane.b32.xlu0 %v3836_v61, %s16239_s12  ;;  %3866 = vrot.lane.b32.xlu2 %v3855_v32, %s16239_s12  ;;  %v3618_v61 = vmul.f32 %v3603_v60, %v11185_v21 }
 0xb9e   : > { %v11558_v29 = vpop.permute.xlu1 %4806 }
 0xb9f   : > { %v11560_v18 = vpop.permute.xlu2 %4627  ;;  %v4805_v59 = vpop.permute.xlu0 %4804 }
 0xba0   : > { %v4812_v22 = vsel %vm282_vm0, %v4805_v59, %v11558_v29 }
 0xba4   : > { %3746 = vrot.lane.b32.xlu1 %v3736_v62, %s16170_s16  ;;  %v4820_v62 = vmul.f32 %v4805_v59, %v11182_v45 }
 0xba5   : > { %3783 = vrot.lane.b32.xlu0 %v3777_v54, %s16238_s30  ;;  %3807 = vrot.lane.b32.xlu2 %v3796_v15, %s16262_s3  ;;  %v3619_v15 = vmul.f32 %v3610_v16, %v11182_v45 }
 0xba6   : > { %v4746_v8 = vpop.permute.xlu1 %4745 }
 0xba7   : > { %v11570_v38 = vpop.permute.xlu2 %4570  ;;  %v11572_v3 = vpop.permute.xlu0 %3545 }
 0xbac   : > { %3687 = vrot.lane.b32.xlu1 %v3677_v35, %s16263_s5 }
 0xbad   : > { %3724 = vrot.lane.b32.xlu0 %v3718_v48, %s16240_s23  ;;  %3748 = vrot.lane.b32.xlu2 %v3737_v55, %s16170_s16  ;;  %v3551_v48 = vsel %vm559_vm4, %v11536_v0, %v11572_v3  ;;  %v4761_v0 = vmul.f32 %v4746_v8, %v11182_v45 }
 0xbae   : > { %v11583_v5 = vpop.permute.xlu1 %4688  ;;  %v3560_v55 = vmul.f32 %v3551_v48, %v11182_v45 }
 0xbaf   : > { %v11585_v56 = vpop.permute.xlu2 %4450  ;;  %v4687_v46 = vpop.permute.xlu0 %4686 }
 0xbb4   : > { %3628 = vrot.lane.b32.xlu1 %v3618_v61, %s16165_s22 }
 0xbb5   : > { %3665 = vrot.lane.b32.xlu0 %v3659_v24, %s16242_s11  ;;  %3689 = vrot.lane.b32.xlu2 %v3678_v7, %s16263_s5  ;;  %v4821_v24 = vmul.f32 %v4812_v22, %v11199_v17  ;;  %v4753_v7 = vsel %vm750_vm15, %v4746_v8, %v11546_v42  ;;  %v4694_v22 = vsel %vm688_vm8, %v4687_v46, %v11583_v5 }
 0xbb6   : > { %v11596_v32 = vpop.permute.xlu1 %4568  ;;  %v4762_v21 = vmul.f32 %v4753_v7, %v11199_v17  ;;  %v4703_v8 = vmul.f32 %v4694_v22, %v11199_v17  ;;  %v4643_v22 = vmul.f32 %v11560_v18, %v11182_v45 }
 0xbb7   : > { %v11598_v1 = vpop.permute.xlu2 %4393  ;;  %v11600_v54 = vpop.permute.xlu0 %4629 }
 0xbb8   : > { %16264 = vst [vmem:[#allocation18_spill] sm:$0xff] %v11598_v1 }
 0xbbc   : > { %4830 = vrot.lane.b32.xlu1 %v4820_v62, %s16262_s3 }
 0xbbd   : > { %3606 = vrot.lane.b32.xlu0 %v3600_v40, %s16241_s27  ;;  %3630 = vrot.lane.b32.xlu2 %v3619_v15, %s16165_s22  ;;  %v3541_v40 = vperm.slane %v11381_v39, 2  ;;  %v4802_v39 = vperm.slane %v11365_v57, 2  ;;  %v4635_v57 = vsel %vm621_vm7, %v11560_v18, %v11600_v54 }
 0xbbe   : > { %v11610_v26 = vpop.permute.xlu1 %4511 }
 0xbbf   : > { %16265 = vst [vmem:[#allocation19_spill] sm:$0xff] %v11610_v26  ;;  %v11615_v35 = vpop.permute.xlu2 %4251  ;;  %v11617_v60 = vpop.permute.xlu0 %4509 }
 0xbc4   : > { %3571 = vrot.lane.b32.xlu1 %v3560_v55, %s16166_s14  ;;  %v4702_v55 = vmul.f32 %v4687_v46, %v11182_v45  ;;  %v4743_v46 = vperm.slane %v11376_v23, 2 }
 0xbc5   : > { %3569 = vrot.lane.b32.xlu0 %v3559_v37, %s16166_s14  ;;  %4832 = vrot.lane.b32.xlu2 %v4821_v24, %s16262_s3 }
 0xbc6   : > { %v11628_v61 = vpop.permute.xlu1 %4391 }
 0xbc7   : > { %v11632_v16 = vpop.permute.xlu2 %4220  ;;  %v11634_v59 = vpop.permute.xlu0 %4452 }
 0xbc8   : > { %16266 = vst [vmem:[#allocation20_spill] sm:$0xff] %v11634_v59 }
 0xbcc   : > { %4773 = vrot.lane.b32.xlu1 %v4762_v21, %s16170_s16 }
 0xbcd   : > { %4771 = vrot.lane.b32.xlu0 %v4761_v0, %s16170_s16  ;;  %3547 = vrot.lane.b32.xlu2 %v3541_v40, %s16243_s7 }
 0xbce   : > { %v11642_v62 = vpop.permute.xlu1 %4312 }
 0xbcf   : > { %16267 = vst [vmem:[#allocation21_spill] sm:$0xff] %v11642_v62  ;;  %v11644_v15 = vpop.permute.xlu2 %4161  ;;  %v11646_v48 = vpop.permute.xlu0 %4310 }
 0xbd0   : > { %16268 = vst [vmem:[#allocation22_spill] sm:$0xff] %v11644_v15 }
 0xbd4   : > { %4808 = vrot.lane.b32.xlu1 %v4802_v39, %s16238_s30  ;;  %v4644_v39 = vmul.f32 %v4635_v57, %v11199_v17  ;;  %v4576_v57 = vsel %vm559_vm4, %v11596_v32, %v11570_v38 }
 0xbd5   : > { %4712 = vrot.lane.b32.xlu2 %v4702_v55, %s16263_s5  ;;  %4714 = vrot.lane.b32.xlu0 %v4703_v8, %s16263_s5  ;;  %v4585_v11 = vmul.f32 %v4576_v57, %v11199_v17 }
 0xbd6   : > { %v4219_v37 = vpop.permute.xlu1 %4218 }
 0xbd7   : > { %v4228_v24 = vsel %vm16269_vm10, %v4219_v37, %v11632_v16  ;;  %v11658_v7 = vpop.permute.xlu2 %4102  ;;  %v11660_v40 = vpop.permute.xlu0 %4253  ;;  %vm16280_vm10 = vcmask 506880  }
 0xbd8   : > { %16270 = vst [vmem:[#allocation23_spill] sm:$0xff] %v11658_v7  ;;  %v11666_v21 = vand.u32 4294901760, %v4228_v24 }
 0xbd9   : > { %16271 = vst [vmem:[#allocation24_spill] sm:$0xff] %v11660_v40 }
 0xbda   : > { %4970 = vmatpush.msra.mxu0 %v11666_v21  ;;  %5166 = vmatpush.msra.mxu3 %v11666_v21  ;;  %v11671_v0 = vsub.f32 %v4228_v24, %v11666_v21 }
 0xbdc   : > { %4749 = vrot.lane.b32.xlu1 %v4743_v46, %s16240_s23  ;;  %5113 = vmatpush.msra.mxu2 %v11671_v0  ;;  %v15952_v23 = vand.u32 4294901760, %v11671_v0  ;;  %v4684_v46 = vperm.slane %v11392_v10, 2 }
 0xbdd   : > { %4653 = vrot.lane.b32.xlu2 %v4643_v22, %s16165_s22  ;;  %4655 = vrot.lane.b32.xlu0 %v4644_v39, %s16165_s22 }
 0xbde   : > { %v4160_v55 = vpop.permute.xlu1 %4159  ;;  %v5013_v8 = vsub.f32 %v11671_v0, %v15952_v23 }
 0xbdf   : > { %v4169_v18 = vsel %vm16272_vm14, %v4160_v55, %v11644_v15  ;;  %v11686_v37 = vpop.permute.xlu2 %4043  ;;  %v11688_v24 = vpop.permute.xlu0 %4196  ;;  %v4584_v55 = vmul.f32 %v11596_v32, %v11182_v45  ;;  %vm16283_vm14 = vcmask 670720  }
 0xbe0   : > { %16273 = vst [vmem:[#allocation25_spill] sm:$0xff] %v11686_v37  ;;  %v11694_v22 = vand.u32 4294901760, %v4169_v18  ;;  %v5014_v39 = vand.u32 4294901760, %v5013_v8 }
 0xbe2   : > { %4972 = vmatpush.msra.mxu0 %v11694_v22  ;;  %5015 = vmatpush.msra.mxu1 %v5014_v39  ;;  %v11698_v23 = vsub.f32 %v4169_v18, %v11694_v22 }
 0xbe3   : > { %5168 = vmatpush.msra.mxu3 %v11694_v22 }
 0xbe4   : > { %4690 = vrot.lane.b32.xlu1 %v4684_v46, %s16242_s11  ;;  %5116 = vmatpush.msra.mxu2 %v11698_v23  ;;  %v15955_v10 = vand.u32 4294901760, %v11698_v23  ;;  %v4517_v46 = vsel %vm492_vm6, %v11617_v60, %v11610_v26 }
 0xbe5   : > { %4594 = vrot.lane.b32.xlu2 %v4584_v55, %s16166_s14  ;;  %4596 = vrot.lane.b32.xlu0 %v4585_v11, %s16166_s14  ;;  %v4625_v55 = vperm.slane %v11408_v34, 2 }
 0xbe6   : > { %v4101_v8 = vpop.permute.xlu1 %4100  ;;  %v5019_v18 = vsub.f32 %v11698_v23, %v15955_v10 }
 0xbe7   : > { %v4110_v32 = vsel %vm16274_vm12, %v4101_v8, %v11658_v7  ;;  %v11714_v57 = vpop.permute.xlu2 %3984  ;;  %v11716_v39 = vpop.permute.xlu0 %4137  ;;  %v4525_v8 = vmul.f32 %v11617_v60, %v11182_v45  ;;  %v4526_v7 = vmul.f32 %v4517_v46, %v11199_v17  ;;  %vm16284_vm12 = vcmask 515072  }
 0xbe8   : > { %16275 = vst [vmem:[#allocation26_spill] sm:$0xff] %v11714_v57  ;;  %v11722_v11 = vand.u32 4294901760, %v4110_v32  ;;  %v5020_v20 = vand.u32 4294901760, %v5019_v18 }
 0xbe9   : > { %16276 = vst [vmem:[#allocation27_spill] sm:$0xff] %v11716_v39 }
 0xbea   : > { %4118 = vst [vmem:[#allocation3 + $0x2e8] sm:$0xff] %v4110_v32  ;;  %4974 = vmatpush.msra.mxu0 %v11722_v11  ;;  %5021 = vmatpush.msra.mxu1 %v5020_v20  ;;  %v11726_v10 = vsub.f32 %v4110_v32, %v11722_v11 }
 0xbeb   : > { %5170 = vmatpush.msra.mxu3 %v11722_v11 }
 0xbec   : > { %4631 = vrot.lane.b32.xlu1 %v4625_v55, %s16241_s27  ;;  %5119 = vmatpush.msra.mxu2 %v11726_v10  ;;  %v15958_v34 = vand.u32 4294901760, %v11726_v10  ;;  %v4458_v55 = vsel %vm430_vm3, %v11585_v56, %v11634_v59 }
 0xbed   : > { %4535 = vrot.lane.b32.xlu2 %v4525_v8, %s16168_s20  ;;  %4537 = vrot.lane.b32.xlu0 %v4526_v7, %s16168_s20  ;;  %v4566_v8 = vperm.slane %v11403_v2, 2 }
 0xbee   : > { %v4042_v20 = vpop.permute.xlu1 %4041  ;;  %v5025_v18 = vsub.f32 %v11726_v10, %v15958_v34 }
 0xbef   : > { %v4051_v60 = vsel %vm16277_vm13, %v4042_v20, %v11686_v37  ;;  %v11742_v32 = vpop.permute.xlu2 %3925  ;;  %v11744_v46 = vpop.permute.xlu0 %4078  ;;  %v4466_v20 = vmul.f32 %v11585_v56, %v11182_v45  ;;  %v4467_v37 = vmul.f32 %v4458_v55, %v11199_v17  ;;  %vm16288_vm13 = vcmask 662528  }
 0xbf0   : > { %16278 = vst [vmem:[#allocation28_spill] sm:$0xff] %v11742_v32  ;;  %v11750_v7 = vand.u32 4294901760, %v4051_v60  ;;  %v5026_v15 = vand.u32 4294901760, %v5025_v18 }
 0xbf1   : > { %16279 = vst [vmem:[#allocation29_spill] sm:$0xff] %v11744_v46 }
 0xbf2   : > { %4059 = vst [vmem:[#allocation3 + $0x2b8] sm:$0xff] %v4051_v60  ;;  %4976 = vmatpush.msra.mxu0 %v11750_v7  ;;  %5027 = vmatpush.msra.mxu1 %v5026_v15  ;;  %v11754_v34 = vsub.f32 %v4051_v60, %v11750_v7 }
 0xbf3   : > { %5172 = vmatpush.msra.mxu3 %v11750_v7 }
 0xbf4   : > { %4572 = vrot.lane.b32.xlu1 %v4566_v8, %s16243_s7  ;;  %5122 = vmatpush.msra.mxu2 %v11754_v34  ;;  %v15961_v2 = vand.u32 4294901760, %v11754_v34  ;;  %v4399_v8 = vsel %vm363_vm5, %v11628_v61, %v11598_v1 }
 0xbf5   : > { %4476 = vrot.lane.b32.xlu2 %v4466_v20, %s16167_s17  ;;  %4478 = vrot.lane.b32.xlu0 %v4467_v37, %s16167_s17  ;;  %v4507_v20 = vperm.slane %v11419_v41, 2 }
 0xbf6   : > { %v3983_v15 = vpop.permute.xlu1 %3982  ;;  %v5031_v18 = vsub.f32 %v11754_v34, %v15961_v2 }
 0xbf7   : > { %v3992_v56 = vsel %vm16280_vm10, %v3983_v15, %v11714_v57  ;;  %v11770_v60 = vpop.permute.xlu2 %3866  ;;  %v11772_v55 = vpop.permute.xlu0 %4019  ;;  %v4407_v15 = vmul.f32 %v11628_v61, %v11182_v45  ;;  %v4408_v57 = vmul.f32 %v4399_v8, %v11199_v17  ;;  %v4318_v45 = vsel %vm16283_vm14, %v11646_v48, %v11642_v62  ;;  %v9277_v62 = vld [vmem:[#allocation2] sm:$0xff] }
 0xbf8   : > { %16281 = vst [vmem:[#allocation30_spill] sm:$0xff] %v11770_v60  ;;  %v11778_v37 = vand.u32 4294901760, %v3992_v56  ;;  %v5032_v26 = vand.u32 4294901760, %v5031_v18  ;;  %vm16289_vm10 = vcmask 523264   ;;  %vm16295_vm14 = vcmask 654336  }
 0xbf9   : > { %16282 = vst [vmem:[#allocation31_spill] sm:$0xff] %v11772_v55 }
 0xbfa   : > { %4000 = vst [vmem:[#allocation3 + $0x1c8] sm:$0xff] %v3992_v56  ;;  %4978 = vmatpush.msra.mxu0 %v11778_v37  ;;  %5033 = vmatpush.msra.mxu1 %v5032_v26  ;;  %v11782_v2 = vsub.f32 %v3992_v56, %v11778_v37 }
 0xbfb   : > { %5174 = vmatpush.msra.mxu3 %v11778_v37 }
 0xbfc   : > { %4513 = vrot.lane.b32.xlu1 %v4507_v20, %s16163_s18  ;;  %5125 = vmatpush.msra.mxu2 %v11782_v2  ;;  %v15964_v41 = vand.u32 4294901760, %v11782_v2  ;;  %v4448_v20 = vperm.slane %v11435_v28, 2 }
 0xbfd   : > { %4417 = vrot.lane.b32.xlu2 %v4407_v15, %s16169_s29  ;;  %4419 = vrot.lane.b32.xlu0 %v4408_v57, %s16169_s29  ;;  %v9276_v15 = vld [vmem:[#allocation2 + $0x8] sm:$0xff]  ;;  %s16287_s29 = smov 46  }
 0xbfe   : > { %v3924_v26 = vpop.permute.xlu1 %3923  ;;  %v5037_v18 = vsub.f32 %v11782_v2, %v15964_v41  ;;  %v4327_v1 = vmul.f32 %v9276_v15, %v4318_v45 }
 0xbff   : > { %v3933_v17 = vsel %vm16284_vm12, %v3924_v26, %v11742_v32  ;;  %v11801_v61 = vpop.permute.xlu2 %3807  ;;  %v11803_v56 = vpop.permute.xlu0 %3960  ;;  %v4326_v26 = vmul.f32 %v9277_v62, %v11646_v48  ;;  %v4259_v48 = vsel %vm16288_vm13, %v11615_v35, %v11660_v40  ;;  %v4389_v32 = vperm.slane %v11430_v50, 2 }
 0xc00   : > { %16285 = vst [vmem:[#allocation32_spill] sm:$0xff] %v11801_v61  ;;  %v11805_v8 = vand.u32 4294901760, %v3933_v17  ;;  %v5038_v57 = vand.u32 4294901760, %v5037_v18  ;;  %v4268_v59 = vmul.f32 %v9276_v15, %v4259_v48  ;;  %v4267_v40 = vmul.f32 %v9277_v62, %v11615_v35 }
 0xc01   : > { %16286 = vst [vmem:[#allocation33_spill] sm:$0xff] %v11803_v56  ;;  %vm16298_vm12 = vcmask 605184   ;;  %vm16299_vm13 = vcmask 588800  }
 0xc02   : > { %3941 = vst [vmem:[#allocation3 + $0x1a8] sm:$0xff] %v3933_v17  ;;  %4980 = vmatpush.msra.mxu0 %v11805_v8  ;;  %5039 = vmatpush.msra.mxu1 %v5038_v57  ;;  %v11810_v41 = vsub.f32 %v3933_v17, %v11805_v8 }
 0xc03   : > { %5176 = vmatpush.msra.mxu3 %v11805_v8 }
 0xc04   : > { %4338 = vrot.lane.b32.xlu1 %v4327_v1, %s16287_s29  ;;  %5128 = vmatpush.msra.mxu2 %v11810_v41  ;;  %v15969_v18 = vand.u32 4294901760, %v11810_v41 }
 0xc05   : > { %4454 = vrot.lane.b32.xlu2 %v4448_v20, %s16164_s21  ;;  %4336 = vrot.lane.b32.xlu0 %v4326_v26, %s16287_s29  ;;  %s16292_s29 = smov 47  }
 0xc06   : > { %v3865_v28 = vpop.permute.xlu1 %3864  ;;  %v5043_v45 = vsub.f32 %v11810_v41, %v15969_v18 }
 0xc07   : > { %v3874_v1 = vsel %vm16289_vm10, %v3865_v28, %v11770_v60  ;;  %v11827_v17 = vpop.permute.xlu2 %3748  ;;  %v11829_v57 = vpop.permute.xlu0 %3901  ;;  %vm16300_vm10 = vcmask 916480   ;;  %v4073_v60 = vperm.slane %v11284_v51, 3 }
 0xc08   : > { %16290 = vst [vmem:[#allocation34_spill] sm:$0xff] %v11827_v17  ;;  %v11831_v20 = vand.u32 4294901760, %v3874_v1  ;;  %v5044_v26 = vand.u32 4294901760, %v5043_v45 }
 0xc09   : > { %16291 = vst [vmem:[#allocation35_spill] sm:$0xff] %v11829_v57 }
 0xc0a   : > { %3882 = vst [vmem:[#allocation3 + $0x1d0] sm:$0xff] %v3874_v1  ;;  %4982 = vmatpush.msra.mxu0 %v11831_v20  ;;  %5045 = vmatpush.msra.mxu1 %v5044_v26  ;;  %v11836_v18 = vsub.f32 %v3874_v1, %v11831_v20  ;;  %v4308_v1 = vperm.slane %v11446_v49, 2 }
 0xc0b   : > { %5178 = vmatpush.msra.mxu3 %v11831_v20 }
 0xc0c   : > { %4279 = vrot.lane.b32.xlu1 %v4268_v59, %s16292_s29  ;;  %5131 = vmatpush.msra.mxu2 %v11836_v18  ;;  %v15972_v28 = vand.u32 4294901760, %v11836_v18  ;;  %v4201_v59 = vsel %vm16295_vm14, %v11478_v43, %v11688_v24  ;;  %vm16303_vm14 = vcmask 965632  }
 0xc0d   : > { %4395 = vrot.lane.b32.xlu2 %v4389_v32, %s16228_s19  ;;  %4277 = vrot.lane.b32.xlu0 %v4267_v40, %s16292_s29  ;;  %v4191_v32 = vperm.slane %v11273_v63, 3 }
 0xc0e   : > { %v3806_v50 = vpop.permute.xlu1 %3805  ;;  %v5049_v15 = vsub.f32 %v11836_v18, %v15972_v28 }
 0xc0f   : > { %v3815_v35 = vsel %vm845_vm11, %v3806_v50, %v11801_v61  ;;  %v11850_v62 = vpop.permute.xlu2 %3689  ;;  %v11852_v45 = vpop.permute.xlu0 %3842  ;;  %v9278_v50 = vld [vmem:[#allocation2 + $0x10] sm:$0xff]  ;;  %v4249_v61 = vperm.slane %v11465_v36, 2 }
 0xc10   : > { %16293 = vst [vmem:[#allocation36_spill] sm:$0xff] %v11850_v62  ;;  %v11858_v40 = vand.u32 4294901760, %v3815_v35  ;;  %v5050_v48 = vand.u32 4294901760, %v5049_v15  ;;  %v4210_v28 = vmul.f32 %v9278_v50, %v4201_v59 }
 0xc11   : > { %16294 = vst [vmem:[#allocation37_spill] sm:$0xff] %v11852_v45 }
 0xc12   : > { %3823 = vst [vmem:[#allocation3 + $0x158] sm:$0xff] %v3815_v35  ;;  %4984 = vmatpush.msra.mxu0 %v11858_v40  ;;  %5051 = vmatpush.msra.mxu1 %v5050_v48  ;;  %v11863_v26 = vsub.f32 %v3815_v35, %v11858_v40  ;;  %v4132_v48 = vperm.slane %v11268_v33, 3 }
 0xc13   : > { %5180 = vmatpush.msra.mxu3 %v11858_v40 }
 0xc14   : > { %4198 = vrot.lane.b32.xlu1 %v4191_v32, %s16234_s1  ;;  %5134 = vmatpush.msra.mxu2 %v11863_v26  ;;  %v15974_v63 = vand.u32 4294901760, %v11863_v26  ;;  %v4142_v32 = vsel %vm16298_vm12, %v11452_v19, %v11716_v39  ;;  %vm16305_vm12 = vcmask 539648  }
 0xc15   : > { %4314 = vrot.lane.b32.xlu0 %v4308_v1, %s16245_s24  ;;  %4222 = vrot.lane.b32.xlu2 %v4210_v28, %s16249_s9 }
 0xc16   : > { %v3747_v49 = vpop.permute.xlu1 %3746  ;;  %v5055_v43 = vsub.f32 %v11863_v26, %v15974_v63  ;;  %v4151_v63 = vmul.f32 %v9278_v50, %v4142_v32 }
 0xc17   : > { %v3756_v15 = vsel %vm784_vm2, %v3747_v49, %v11827_v17  ;;  %v11876_v35 = vpop.permute.xlu2 %3630  ;;  %v11878_v59 = vpop.permute.xlu0 %3783 }
 0xc18   : > { %16296 = vst [vmem:[#allocation38_spill] sm:$0xff] %v11876_v35  ;;  %v11884_v28 = vand.u32 4294901760, %v3756_v15  ;;  %v5056_v1 = vand.u32 4294901760, %v5055_v43  ;;  %v4024_v43 = vsel %vm16299_vm13, %v11500_v9, %v11772_v55  ;;  %vm16306_vm13 = vcmask 523264  }
 0xc19   : > { %16297 = vst [vmem:[#allocation39_spill] sm:$0xff] %v11878_v59 }
 0xc1a   : > { %3764 = vst [vmem:[#allocation3 + $0x1d8] sm:$0xff] %v3756_v15  ;;  %4986 = vmatpush.msra.mxu0 %v11884_v28  ;;  %5057 = vmatpush.msra.mxu1 %v5056_v1  ;;  %v11889_v49 = vsub.f32 %v3756_v15, %v11884_v28 }
 0xc1b   : > { %5182 = vmatpush.msra.mxu3 %v11884_v28 }
 0xc1c   : > { %4139 = vrot.lane.b32.xlu1 %v4132_v48, %s16233_s0  ;;  %5137 = vmatpush.msra.mxu2 %v11889_v49  ;;  %v15975_v33 = vand.u32 4294901760, %v11889_v49  ;;  %s16742_s0 = sld [smem:[#allocation8_spill]] }
 0xc1d   : > { %4255 = vrot.lane.b32.xlu0 %v4249_v61, %s16250_s15  ;;  %4163 = vrot.lane.b32.xlu2 %v4151_v63, %s16252_s26  ;;  %v4083_v61 = vsel %vm305_vm1, %v11488_v13, %v11744_v46 }
 0xc1e   : > { %v3688_v19 = vpop.permute.xlu1 %3687  ;;  %v5061_v36 = vsub.f32 %v11889_v49, %v15975_v33  ;;  %v11914_v33 = vld [vmem:[#allocation2 + $0x10] sm:$0xff] }
 0xc1f   : > { %v3697_v15 = vsel %vm16300_vm10, %v3688_v19, %v11850_v62  ;;  %v11905_v32 = vpop.permute.xlu2 %4832  ;;  %v11907_v48 = vpop.permute.xlu0 %3724  ;;  %v4033_v9 = vmul.f32 %v4024_v43, %v11914_v33  ;;  %v4092_v62 = vmul.f32 %v9278_v50, %v4083_v61  ;;  %v3965_v61 = vsel %vm16305_vm12, %v11476_v12, %v11803_v56 }
 0xc20   : > { %16301 = vst [vmem:[#allocation40_spill] sm:$0xff] %v11905_v32  ;;  %v11912_v63 = vand.u32 4294901760, %v3697_v15  ;;  %v5062_v1 = vand.u32 4294901760, %v5061_v36  ;;  %vm16308_vm10 = vcmask 531456   ;;  %vm16319_vm12 = vcmask 916480  }
 0xc21   : > { %16302 = vst [vmem:[#allocation41_spill] sm:$0xff] %v11907_v48 }
 0xc22   : > { %3705 = vst [vmem:[#allocation3 + $0x190] sm:$0xff] %v3697_v15  ;;  %4988 = vmatpush.msra.mxu0 %v11912_v63  ;;  %5063 = vmatpush.msra.mxu1 %v5062_v1  ;;  %v11920_v19 = vsub.f32 %v3697_v15, %v11912_v63  ;;  %s269_s1 = sand.u32 1, %s16742_s0  }
 0xc23   : > { %5184 = vmatpush.msra.mxu3 %v11912_v63 }
 0xc24   : > { %4045 = vrot.lane.b32.xlu1 %v4033_v9, %s16255_s25  ;;  %5140 = vmatpush.msra.mxu2 %v11920_v19  ;;  %v15978_v13 = vand.u32 4294901760, %v11920_v19  ;;  %v4014_v9 = vperm.slane %v11300_v53, 3 }
 0xc25   : > { %4080 = vrot.lane.b32.xlu0 %v4073_v60, %s16227_s8  ;;  %4104 = vrot.lane.b32.xlu2 %v4092_v62, %s16254_s28  ;;  %v3955_v60 = vperm.slane %v11295_v4, 3 }
 0xc26   : > { %v3629_v51 = vpop.permute.xlu1 %3628  ;;  %v5067_v36 = vsub.f32 %v11920_v19, %v15978_v13  ;;  %v3974_v13 = vmul.f32 %v11914_v33, %v3965_v61 }
 0xc27   : > { %v3638_v50 = vsel %vm16303_vm14, %v3629_v51, %v11876_v35  ;;  %v11933_v43 = vpop.permute.xlu2 %3547  ;;  %v11935_v15 = vpop.permute.xlu0 %3665  ;;  %vm16310_vm14 = vcmask 973824  }
 0xc28   : > { %16304 = vst [vmem:[#allocation42_spill] sm:$0xff] %v11935_v15  ;;  %v11941_v62 = vand.u32 4294901760, %v3638_v50  ;;  %v5068_v1 = vand.u32 4294901760, %v5067_v36  ;;  %v3847_v36 = vsel %vm16306_vm13, %v11524_v6, %v11852_v45  ;;  %v4860_v6 = vld [vmem:[#allocation3 + $0x80] sm:$0xff]  ;;  %vm16325_vm13 = vcmask 965632  }
 0xc29   : > { %3646 = vst [vmem:[#allocation3 + $0x2d0] sm:$0xff] %v3638_v50 }
 0xc2a   : > { %4990 = vmatpush.msra.mxu0 %v11941_v62  ;;  %5069 = vmatpush.msra.mxu1 %v5068_v1  ;;  %v11946_v51 = vsub.f32 %v3638_v50, %v11941_v62 }
 0xc2b   : > { %5186 = vmatpush.msra.mxu3 %v11941_v62 }
 0xc2c   : > { %3962 = vrot.lane.b32.xlu1 %v3955_v60, %s16235_s2  ;;  %5143 = vmatpush.msra.mxu2 %v11946_v51  ;;  %v15979_v4 = vand.u32 4294901760, %v11946_v51  ;;  %s16312_s2 = sld [smem:[#allocation65_spill]] }
 0xc2d   : > { %4021 = vrot.lane.b32.xlu2 %v4014_v9, %s16236_s10  ;;  %3986 = vrot.lane.b32.xlu0 %v3974_v13, %s16257_s6  ;;  %v3906_v13 = vsel %vm16308_vm10, %v11510_v44, %v11829_v57  ;;  %v3896_v9 = vperm.slane %v11311_v31, 3  ;;  %v11981_v44 = vand.u32 4294901760, %v11449_v52  ;;  %vm16331_vm10 = vmmov %vm16310_vm14 }
 0xc2e   : > { %v4831_v53 = vpop.permute.xlu1 %4830  ;;  %v5073_v12 = vsub.f32 %v11946_v51, %v15979_v4  ;;  %v3856_v4 = vmul.f32 %v11914_v33, %v3847_v36  ;;  %v3915_v35 = vmul.f32 %v11914_v33, %v3906_v13  ;;  %v4856_v36 = vld [vmem:[#allocation3 + $0x320] sm:$0xff] }
 0xc2f   : > { %v4840_v50 = vsel %vm845_vm11, %v4831_v53, %v11905_v32  ;;  %v11963_v61 = vpop.permute.xlu2 %4712  ;;  %v11965_v60 = vpop.permute.xlu0 %3606  ;;  %v12001_v56 = vsub.f32 %v11449_v52, %v11981_v44 }
 0xc30   : > { %16307 = vst [vmem:[#allocation43_spill] sm:$0xff] %v11965_v60  ;;  %v5074_v1 = vand.u32 4294901760, %v5073_v12  ;;  %v11976_v53 = vand.u32 4294901760, %v4840_v50 }
 0xc32   : > { %5075 = vmatpush.msra.mxu1 %v5074_v1  ;;  %v11991_v1 = vand.u32 4294901760, %v4860_v6  ;;  %v11997_v17 = vsub.f32 %v4840_v50, %v11976_v53  ;;  %v9279_v50 = vld [vmem:[#allocation3 + $0x2b0] sm:$0xff] }
 0xc34   : > { %3868 = vrot.lane.b32.xlu1 %v3856_v4, %s16239_s12  ;;  %v3788_v4 = vsel %vm282_vm0, %v11498_v27, %v11878_v59  ;;  %v12003_v27 = vand.u32 4294901760, %v4856_v36 }
 0xc35   : > { %3903 = vrot.lane.b32.xlu0 %v3896_v9, %s16237_s13  ;;  %3927 = vrot.lane.b32.xlu2 %v3915_v35, %s16259_s4  ;;  %v3778_v35 = vperm.slane %v11322_v47, 3  ;;  %v3837_v9 = vperm.slane %v11327_v25, 3  ;;  %v12013_v25 = vsub.f32 %v4860_v6, %v11991_v1  ;;  %s16322_s13 = sld [smem:[#allocation63_spill]] }
 0xc36   : > { %v11978_v32 = vpop.permute.xlu1 %3571  ;;  %v12026_v6 = vsub.f32 %v4856_v36, %v12003_v27  ;;  %v3729_v36 = vsel %vm750_vm15, %v11534_v14, %v11907_v48  ;;  %v16313_v48 = vand.u32 4294901760, %v11997_v17 }
 0xc37   : > { %16309 = vst [vmem:[#allocation44_spill] sm:$0xff] %v11978_v32  ;;  %v11983_v31 = vpop.permute.xlu2 %4653  ;;  %v3570_v12 = vpop.permute.xlu0 %3569 }
 0xc38   : > { %v3579_v13 = vsel %vm16310_vm14, %v3570_v12, %v11978_v32  ;;  %v3797_v12 = vmul.f32 %v11914_v33, %v3788_v4  ;;  %v12015_v32 = vand.u32 4294901760, %v9279_v50  ;;  %vm16335_vm14 = vcmask 982016  }
 0xc39   : > { %3587 = vst [vmem:[#allocation3 + $0x2c0] sm:$0xff] %v3579_v13  ;;  %v11994_v57 = vand.u32 4294901760, %v3579_v13 }
 0xc3b   : > { %4992 = vmatpush.msra.mxu0 %v11994_v57  ;;  %5188 = vmatpush.msra.mxu3 %v11994_v57  ;;  %v12009_v47 = vsub.f32 %v3579_v13, %v11994_v57 }
 0xc3c   : > { %3785 = vrot.lane.b32.xlu1 %v3778_v35, %s16238_s30  ;;  %v3670_v35 = vsel %vm688_vm8, %v11548_v58, %v11935_v15  ;;  %v12046_v58 = vsub.f32 %v9279_v50, %v12015_v32  ;;  %v16314_v50 = vand.u32 4294901760, %v12001_v56 }
 0xc3d   : > { %3844 = vrot.lane.b32.xlu2 %v3837_v9, %s16239_s12  ;;  %3809 = vrot.lane.b32.xlu0 %v3797_v12, %s16262_s3  ;;  %v15988_v52 = vand.u32 4294901760, %v12009_v47  ;;  %v3679_v46 = vmul.f32 %v11914_v33, %v3670_v35  ;;  %v16315_v35 = vand.u32 4294901760, %v12013_v25 }
 0xc3e   : > { %v12021_v59 = vpop.permute.xlu1 %4773  ;;  %4994 = vmatpush.msra.mxu0 %v11981_v44  ;;  %5146 = vmatpush.msra.mxu2 %v12009_v47  ;;  %v5085_v15 = vsub.f32 %v12001_v56, %v16314_v50 }
 0xc3f   : > { %16311 = vst [vmem:[#allocation45_spill] sm:$0xff] %v12021_v59  ;;  %v12032_v9 = vpop.permute.xlu2 %4594  ;;  %v4772_v12 = vpop.permute.xlu0 %4771  ;;  %5190 = vmatpush.msra.mxu3 %v11981_v44  ;;  %v5079_v4 = vsub.f32 %v12009_v47, %v15988_v52  ;;  %v9280_v52 = vld [vmem:[%s16312_s2 + $0x7] ss:$8 sm:$0xf]  ;;  %v5091_v55 = vsub.f32 %v12013_v25, %v16315_v35 }
 0xc40   : > { %v4781_v13 = vsel %vm784_vm2, %v4772_v12, %v12021_v59  ;;  %4996 = vmatpush.msra.mxu0 %v11991_v1  ;;  %5149 = vmatpush.msra.mxu2 %v12001_v56  ;;  %v3719_v45 = vperm.slane %v9280_v52, 3  ;;  %v5354_v12 = vsub.f32 %v11997_v17, %v16313_v48 }
 0xc41   : > { %5192 = vmatpush.msra.mxu3 %v11991_v1  ;;  %v5080_v14 = vand.u32 4294901760, %v5079_v4  ;;  %v12056_v59 = vand.u32 4294901760, %v4781_v13  ;;  %v3738_v4 = vmul.f32 %v11914_v33, %v3729_v36 }
 0xc42   : > { %4998 = vmatpush.msra.mxu0 %v12003_v27  ;;  %5152 = vmatpush.msra.mxu2 %v12013_v25  ;;  %v5355_v36 = vand.u32 4294901760, %v5354_v12 }
 0xc43   : > { %5194 = vmatpush.msra.mxu3 %v12003_v27  ;;  %5081 = vmatpush.msra.mxu1 %v5080_v14  ;;  %v12068_v48 = vsub.f32 %v4781_v13, %v12056_v59  ;;  %v16316_v13 = vand.u32 4294901760, %v12026_v6 }
 0xc44   : > { %3691 = vrot.lane.b32.xlu1 %v3679_v46, %s16263_s5  ;;  %5000 = vmatpush.msra.mxu0 %v12015_v32  ;;  %v5086_v46 = vand.u32 4294901760, %v5085_v15 }
 0xc45   : > { %3726 = vrot.lane.b32.xlu0 %v3719_v45, %s16240_s23  ;;  %3750 = vrot.lane.b32.xlu2 %v3738_v4, %s16170_s16  ;;  %v15996_v14 = vand.u32 4294901760, %v12068_v48  ;;  %v5097_v35 = vsub.f32 %v12026_v6, %v16316_v13  ;;  %v3611_v45 = vsel %vm621_vm7, %v11522_v30, %v11965_v60  ;;  %v16318_v4 = vand.u32 4294901760, %v11671_v0  ;;  %v9281_v0 = vld [vmem:[%s16312_s2 + $0x62] ss:$8 sm:$0xf] }
 0xc46   : > { %v12079_v52 = vpop.permute.xlu1 %4808  ;;  %5155 = vmatpush.msra.mxu2 %v12026_v6  ;;  %5196 = vmatpush.msra.mxu3 %v12015_v32  ;;  %v5092_v30 = vand.u32 4294901760, %v5091_v55  ;;  %v16320_v60 = vand.u32 4294901760, %v12046_v58 }
 0xc47   : > { %v12089_v50 = vpop.permute.xlu2 %4535  ;;  %v12091_v12 = vpop.permute.xlu0 %4714  ;;  %5207 = vmatpush.msrb.mxu0 %v16318_v4  ;;  %v5360_v15 = vsub.f32 %v12068_v48, %v15996_v14  ;;  %5087 = vmatpush.msra.mxu1 %v5086_v46  ;;  %v9282_v4 = vld [vmem:[%s16312_s2 + $0x6] ss:$8 sm:$0xf]  ;;  %v3620_v46 = vmul.f32 %v11914_v33, %v3611_v45 }
 0xc48   : > { %16317 = vst [vmem:[#allocation46_spill] sm:$0xff] %v12091_v12  ;;  %5356 = vmatpush.msrb.mxu3 %v5355_v36  ;;  %v4722_v13 = vsel %vm16319_vm12, %v11963_v61, %v12091_v12  ;;  %5158 = vmatpush.msra.mxu2 %v12046_v58  ;;  %v5103_v39 = vsub.f32 %v12046_v58, %v16320_v60  ;;  %v4803_v36 = vperm.slane %v9281_v0, 3  ;;  %v3660_v14 = vperm.slane %v9282_v4, 3  ;;  %v3304_v0 = vld [vmem:[%s16322_s13] sm:$0xff] }
 0xc49   : > { %v16321_v61 = vand.u32 4294901760, %v11698_v23  ;;  %v12114_v55 = vand.u32 4294901760, %v4722_v13  ;;  %5093 = vmatpush.msra.mxu1 %v5092_v30  ;;  %v5098_v60 = vand.u32 4294901760, %v5097_v35  ;;  %v16323_v12 = vand.u32 4294901760, %v11726_v10 }
 0xc4a   : > { %5316 = vmatpush.msrb.mxu2 %v11976_v53  ;;  %v5361_v4 = vand.u32 4294901760, %v5360_v15  ;;  %v5104_v45 = vand.u32 4294901760, %v5103_v39  ;;  %v16324_v15 = vand.u32 4294901760, %v11754_v34  ;;  %vm16343_vm12 = vcmask 392192  }
 0xc4b   : > { %5211 = vmatpush.msrb.mxu0 %v16321_v61  ;;  %v12124_v23 = vsub.f32 %v4722_v13, %v12114_v55  ;;  %v12126_v61 = vand.u32 4294901760, %v3304_v0  ;;  %5099 = vmatpush.msra.mxu1 %v5098_v60  ;;  %v3552_v13 = vsel %vm559_vm4, %v11572_v3, %v11933_v43  ;;  %v16326_v3 = vand.u32 4294901760, %v11782_v2 }
 0xc4c   : > { %5318 = vmatpush.msrb.mxu2 %v12056_v59  ;;  %3632 = vrot.lane.b32.xlu1 %v3620_v46, %s16165_s22  ;;  %v9283_v46 = vld [vmem:[%s16312_s2 + $0x61] ss:$8 sm:$0xf]  ;;  %v16327_v2 = vand.u32 4294901760, %v11810_v41 }
 0xc4d   : > { %5215 = vmatpush.msrb.mxu0 %v16323_v12  ;;  %4810 = vrot.lane.b32.xlu0 %v4803_v36, %s16238_s30  ;;  %v5365_v35 = vand.u32 4294901760, %v12124_v23  ;;  %v12133_v10 = vsub.f32 %v3304_v0, %v12126_v61  ;;  %v4744_v60 = vperm.slane %v9283_v46, 3  ;;  %v9284_v0 = vld [vmem:[%s16312_s2 + $0x5] ss:$8 sm:$0xf]  ;;  %v16329_v46 = vand.u32 4294901760, %v11836_v18 }
 0xc4e   : > { %3667 = vrot.lane.b32.xlu2 %v3660_v14, %s16242_s11  ;;  %v12135_v12 = vpop.permute.xlu1 %4749  ;;  %5105 = vmatpush.msra.mxu1 %v5104_v45 }
 0xc4f   : > { %5219 = vmatpush.msrb.mxu0 %v16324_v15  ;;  %v12142_v39 = vpop.permute.xlu2 %4476  ;;  %v12144_v30 = vpop.permute.xlu0 %4655  ;;  %5320 = vmatpush.msrb.mxu2 %v12114_v55  ;;  %v5366_v14 = vsub.f32 %v12124_v23, %v5365_v35  ;;  %v12151_v36 = vand.u32 4294901760, %v12133_v10 }
 0xc50   : > { %5362 = vmatpush.msrb.mxu3 %v5361_v4  ;;  %v4663_v34 = vsel %vm16325_vm13, %v11983_v31, %v12144_v30  ;;  %5274 = vmatpush.msrb.mxu1 %v11666_v21  ;;  %v3601_v4 = vperm.slane %v9284_v0, 3  ;;  %v3561_v21 = vmul.f32 %v11914_v33, %v3552_v13  ;;  %v16330_v33 = vand.u32 4294901760, %v11863_v26  ;;  %v12210_v26 = vld [vmem:[#allocation2 + $0x18] sm:$0xff] }
 0xc51   : > { %5223 = vmatpush.msrb.mxu0 %v16326_v3  ;;  %v12165_v45 = vand.u32 4294901760, %v4663_v34  ;;  %v5367_v15 = vand.u32 4294901760, %v5366_v14  ;;  %v5004_v31 = vsub.f32 %v12133_v10, %v12151_v36  ;;  %5107 = vmatmul.f32.vlgmr.msra.gmra.mxu1 %v12126_v61  ;;  %v4813_v13 = vsel %vm282_vm0, %v11558_v29, %v12079_v52  ;;  %v9285_v0 = vld [vmem:[%s16312_s2 + $0x60] ss:$8 sm:$0xf] }
 0xc52   : > { %5161 = vmatmul.f32.vlgmr.msra.gmra.mxu2 %v12133_v10  ;;  %5276 = vmatpush.msrb.mxu1 %v11694_v22  ;;  %v16332_v29 = vand.u32 4294901760, %v11889_v49  ;;  %v16333_v49 = vand.u32 4294901760, %v11920_v19  ;;  %v16334_v19 = vand.u32 4294901760, %v11946_v51  ;;  %v16336_v51 = vand.u32 4294901760, %v12009_v47 }
 0xc53   : > { %5227 = vmatpush.msrb.mxu0 %v16327_v2  ;;  %5322 = vmatpush.msrb.mxu2 %v12165_v45  ;;  %v12177_v3 = vsub.f32 %v4663_v34, %v12165_v45  ;;  %v12179_v14 = vand.u32 4294901760, %v5004_v31  ;;  %vm16344_vm13 = vcmask 1039360  }
 0xc54   : > { %5368 = vmatpush.msrb.mxu3 %v5367_v15  ;;  %3573 = vrot.lane.b32.xlu1 %v3561_v21, %s16166_s14  ;;  %v9286_v15 = vld [vmem:[%s16312_s2 + $0x4] ss:$8 sm:$0xf] }
 0xc55   : > { %16328 = vst [vmem:[#allocation47_spill] sm:$0xff] %v12179_v14  ;;  %5231 = vmatpush.msrb.mxu0 %v16329_v46  ;;  %4751 = vrot.lane.b32.xlu0 %v4744_v60, %s16240_s23  ;;  %v5371_v41 = vand.u32 4294901760, %v12177_v3  ;;  %v3542_v31 = vperm.slane %v9286_v15, 3 }
 0xc56   : > { %3608 = vrot.lane.b32.xlu2 %v3601_v4, %s16241_s27  ;;  %v12187_v22 = vpop.permute.xlu1 %4690  ;;  %5278 = vmatpush.msrb.mxu1 %v11722_v11  ;;  %v4685_v4 = vperm.slane %v9285_v0, 3  ;;  %v9288_v0 = vld [vmem:[%s16312_s2 + $0x47] ss:$8 sm:$0xf] }
 0xc57   : > { %5235 = vmatpush.msrb.mxu0 %v16330_v33  ;;  %v12195_v34 = vpop.permute.xlu2 %4417  ;;  %v12197_v18 = vpop.permute.xlu0 %4596  ;;  %v5372_v60 = vsub.f32 %v12177_v3, %v5371_v41  ;;  %5200 = vmatmul.f32.vlgmr.msra.gmra.mxu3 %v12151_v36 }
 0xc58   : > { %5006 = vmatmul.f32.vlgmr.msra.gmra.mxu0 %v12179_v14  ;;  %v4604_v11 = vsel %vm16331_vm10, %v12032_v9, %v12197_v18  ;;  %5280 = vmatpush.msrb.mxu1 %v11750_v7  ;;  %v4822_v7 = vmul.f32 %v4813_v13, %v12210_v26  ;;  %vm16350_vm10 = vcmask 441344  }
 0xc59   : > { %5239 = vmatpush.msrb.mxu0 %v16332_v29  ;;  %v12218_v21 = vand.u32 4294901760, %v4604_v11  ;;  %v5373_v9 = vand.u32 4294901760, %v5372_v60  ;;  %v4754_v60 = vsel %vm750_vm15, %v11546_v42, %v12135_v12 }
 0xc5a   : > { %5282 = vmatpush.msrb.mxu1 %v11778_v37 }
 0xc5b   : > { %5243 = vmatpush.msrb.mxu0 %v16333_v49  ;;  %5324 = vmatpush.msrb.mxu2 %v12218_v21  ;;  %v12226_v2 = vsub.f32 %v4604_v11, %v12218_v21 }
 0xc5c   : > { %5374 = vmatpush.msrb.mxu3 %v5373_v9  ;;  %4834 = vrot.lane.b32.xlu1 %v4822_v7, %s16262_s3  ;;  %v16339_v9 = vand.u32 4294901760, %v12026_v6  ;;  %v16340_v6 = vand.u32 4294901760, %v12046_v58  ;;  %v16342_v58 = vand.u32 4294901760, %v12068_v48 }
 0xc5d   : > { %5284 = vmatpush.msrb.mxu1 %v11805_v8  ;;  %4692 = vrot.lane.b32.xlu0 %v4685_v4, %s16242_s11  ;;  %v5377_v46 = vand.u32 4294901760, %v12226_v2  ;;  %v4626_v4 = vperm.slane %v9288_v0, 3 }
 0xc5e   : > { %3549 = vrot.lane.b32.xlu2 %v3542_v31, %s16243_s7  ;;  %v12233_v37 = vpop.permute.xlu1 %4631  ;;  %5247 = vmatpush.msrb.mxu0 %v16334_v19  ;;  %v16338_v31 = vand.u32 4294901760, %v12013_v25 }
 0xc5f   : > { %5286 = vmatpush.msrb.mxu1 %v11831_v20  ;;  %v12238_v33 = vpop.permute.xlu2 %4454  ;;  %v12240_v13 = vpop.permute.xlu0 %4537  ;;  %v5378_v8 = vsub.f32 %v12226_v2, %v5377_v46  ;;  %v9287_v20 = vld [vmem:[%s16312_s2 + $0x46] ss:$8 sm:$0xf]  ;;  %v4636_v7 = vsel %vm621_vm7, %v11600_v54, %v12233_v37  ;;  %v16341_v54 = vand.u32 4294901760, %v11997_v17 }
 0xc60   : > { %v4545_v11 = vsel %vm16335_vm14, %v12089_v50, %v12240_v13  ;;  %5251 = vmatpush.msrb.mxu0 %v16336_v51  ;;  %v4567_v29 = vperm.slane %v9287_v20, 3  ;;  %v16337_v50 = vand.u32 4294901760, %v12001_v56  ;;  %vm16351_vm14 = vcmask 375808  }
 0xc61   : > { %5288 = vmatpush.msrb.mxu1 %v11858_v40  ;;  %v12260_v42 = vand.u32 4294901760, %v4545_v11  ;;  %v5379_v15 = vand.u32 4294901760, %v5378_v8  ;;  %v4763_v40 = vmul.f32 %v12210_v26, %v4754_v60  ;;  %v4695_v8 = vsel %vm688_vm8, %v11583_v5, %v12187_v22  ;;  %v9289_v60 = vld [vmem:[%s16312_s2 + $0x45] ss:$8 sm:$0xf] }
 0xc62   : > { %5255 = vmatpush.msrb.mxu0 %v16337_v50  ;;  %v4645_v5 = vmul.f32 %v12210_v26, %v4636_v7 }
 0xc63   : > { %5290 = vmatpush.msrb.mxu1 %v11884_v28  ;;  %5326 = vmatpush.msrb.mxu2 %v12260_v42  ;;  %v12268_v47 = vsub.f32 %v4545_v11, %v12260_v42  ;;  %v4508_v11 = vperm.slane %v9289_v60, 3 }
 0xc64   : > { %5380 = vmatpush.msrb.mxu3 %v5379_v15  ;;  %4574 = vrot.lane.b32.xlu1 %v4567_v29, %s16243_s7  ;;  %v9290_v29 = vld [vmem:[#allocation3 + $0x108] sm:$0xff] }
 0xc65   : > { %5259 = vmatpush.msrb.mxu0 %v16338_v31  ;;  %4775 = vrot.lane.b32.xlu0 %v4763_v40, %s16170_s16  ;;  %v5383_v56 = vand.u32 4294901760, %v12268_v47  ;;  %v12315_v0 = vand.u32 4294901760, %v9290_v29 }
 0xc66   : > { %4633 = vrot.lane.b32.xlu2 %v4626_v4, %s16241_s27  ;;  %5292 = vmatpush.msrb.mxu1 %v11912_v63  ;;  %v12277_v28 = vpop.permute.xlu1 %4572 }
 0xc67   : > { %5263 = vmatpush.msrb.mxu0 %v16339_v9  ;;  %v12284_v49 = vpop.permute.xlu2 %4395  ;;  %v12286_v25 = vpop.permute.xlu0 %4478  ;;  %v5384_v19 = vsub.f32 %v12268_v47, %v5383_v56  ;;  %v12333_v40 = vsub.f32 %v9290_v29, %v12315_v0  ;;  %v4577_v31 = vsel %vm559_vm4, %v11570_v38, %v12277_v28  ;;  %v9291_v9 = vld [vmem:[%s16312_s2 + $0x43] ss:$8 sm:$0xf]  ;;  %v9292_v38 = vld [vmem:[%s16312_s2 + $0x44] ss:$8 sm:$0xf] }
 0xc68   : > { %v4486_v63 = vsel %vm459_vm9, %v12142_v39, %v12286_v25  ;;  %5294 = vmatpush.msrb.mxu1 %v11941_v62  ;;  %v4704_v62 = vmul.f32 %v12210_v26, %v4695_v8  ;;  %v4390_v7 = vperm.slane %v9291_v9, 3 }
 0xc69   : > { %5267 = vmatpush.msrb.mxu0 %v16340_v6  ;;  %v12303_v51 = vand.u32 4294901760, %v4486_v63  ;;  %v5385_v39 = vand.u32 4294901760, %v5384_v19  ;;  %v5401_v8 = vand.u32 4294901760, %v12333_v40 }
 0xc6a   : > { %5296 = vmatpush.msrb.mxu1 %v11994_v57  ;;  %5269 = vmatmul.f32.vlgmr.msrb.gmra.mxu0 %v12126_v61 }
 0xc6b   : > { %5508 = vmatpush.msra.mxu0 %v16341_v54  ;;  %5328 = vmatpush.msrb.mxu2 %v12303_v51  ;;  %v12313_v20 = vsub.f32 %v4486_v63, %v12303_v51  ;;  %v16346_v63 = vld [vmem:[#allocation20_spill] sm:$0xff] }
 0xc6c   : > { %5298 = vmatpush.msrb.mxu1 %v11981_v44  ;;  %4657 = vrot.lane.b32.xlu1 %v4645_v5, %s16165_s22  ;;  %v4459_v6 = vsel %vm430_vm3, %v16346_v63, %v12238_v33  ;;  %v16348_v5 = vld [vmem:[#allocation19_spill] sm:$0xff] }
 0xc6d   : > { %5512 = vmatpush.msra.mxu0 %v16342_v58  ;;  %4515 = vrot.lane.b32.xlu0 %v4508_v11, %s16163_s18  ;;  %v5389_v57 = vand.u32 4294901760, %v12313_v20  ;;  %v5402_v11 = vsub.f32 %v12333_v40, %v5401_v8  ;;  %v16349_v58 = vld [vmem:[#allocation22_spill] sm:$0xff]  ;;  %v4468_v9 = vmul.f32 %v12210_v26, %v4459_v6 }
 0xc6e   : > { %4716 = vrot.lane.b32.xlu2 %v4704_v62, %s16263_s5  ;;  %5300 = vmatpush.msrb.mxu1 %v11991_v1  ;;  %v12323_v4 = vpop.permute.xlu1 %4513  ;;  %v16354_v6 = vld [vmem:[#allocation18_spill] sm:$0xff] }
 0xc6f   : > { %5516 = vmatpush.msra.mxu0 %v5365_v35  ;;  %v12327_v15 = vpop.permute.xlu2 %4222  ;;  %v12329_v50 = vpop.permute.xlu0 %4419  ;;  %5386 = vmatpush.msrb.mxu3 %v5385_v39  ;;  %v5390_v44 = vsub.f32 %v12313_v20, %v5389_v57  ;;  %v4518_v62 = vsel %vm492_vm6, %v16348_v5, %v12323_v4 }
 0xc70   : > { %v12341_v1 = vsel %vm16343_vm12, %v11632_v16, %v12327_v15  ;;  %v4427_v35 = vsel %vm16344_vm13, %v12195_v34, %v12329_v50  ;;  %5302 = vmatpush.msrb.mxu1 %v12003_v27  ;;  %v4449_v16 = vperm.slane %v9292_v38, 3  ;;  %v4586_v27 = vmul.f32 %v12210_v26, %v4577_v31 }
 0xc71   : > { %5520 = vmatpush.msra.mxu0 %v5371_v41  ;;  %v12355_v19 = vand.u32 4294901760, %v4427_v35  ;;  %v5391_v41 = vand.u32 4294901760, %v5390_v44  ;;  %vm16356_vm12 = vcmask 449536   ;;  %vm16357_vm13 = vcmask 384000  }
 0xc72   : > { %5304 = vmatpush.msrb.mxu1 %v12015_v32 }
 0xc73   : > { %5524 = vmatpush.msra.mxu0 %v5377_v46  ;;  %5330 = vmatpush.msrb.mxu2 %v12355_v19  ;;  %v12364_v34 = vsub.f32 %v4427_v35, %v12355_v19 }
 0xc74   : > { %5560 = vmatpush.msra.mxu1 %v11976_v53  ;;  %4397 = vrot.lane.b32.xlu1 %v4390_v7, %s16228_s19  ;;  %v4527_v7 = vmul.f32 %v12210_v26, %v4518_v62  ;;  %v9294_v62 = vld [vmem:[%s16312_s2 + $0x40] ss:$8 sm:$0xf] }
 0xc75   : > { %5528 = vmatpush.msra.mxu0 %v5383_v56  ;;  %4598 = vrot.lane.b32.xlu0 %v4586_v27, %s16166_s14  ;;  %v5395_v32 = vand.u32 4294901760, %v12364_v34 }
 0xc76   : > { %4456 = vrot.lane.b32.xlu2 %v4449_v16, %s16164_s21  ;;  %5562 = vmatpush.msra.mxu1 %v12056_v59  ;;  %v12372_v46 = vpop.permute.xlu1 %4338  ;;  %v5403_v16 = vand.u32 4294901760, %v5402_v11 }
 0xc77   : > { %16345 = vst [vmem:[#allocation48_spill] sm:$0xff] %v12372_v46  ;;  %5532 = vmatpush.msra.mxu0 %v5389_v57  ;;  %v12377_v54 = vpop.permute.xlu2 %4163  ;;  %v4337_v60 = vpop.permute.xlu0 %4336  ;;  %5392 = vmatpush.msrb.mxu3 %v5391_v41  ;;  %v5396_v56 = vsub.f32 %v12364_v34, %v5395_v32  ;;  %v9293_v57 = vld [vmem:[%s16312_s2 + $0x41] ss:$8 sm:$0xf]  ;;  %s16359_s2 = smov 127  }
 0xc78   : > { %16347 = vst [vmem:[#allocation20_spill] sm:$0xff] %v12377_v54  ;;  %5332 = vmatpush.msrb.mxu2 %v12315_v0  ;;  %v12388_v39 = vsel %vm16350_vm10, %v16349_v58, %v12377_v54  ;;  %5564 = vmatpush.msra.mxu1 %v12114_v55  ;;  %v4346_v29 = vsel %vm16351_vm14, %v4337_v60, %v12372_v46  ;;  %v4309_v44 = vperm.slane %v9293_v57, 3  ;;  %v4250_v58 = vperm.slane %v9294_v62, 3  ;;  %v12756_v54 = vld [vmem:[#allocation2 + $0x20] sm:$0xff] }
 0xc79   : > { %5536 = vmatpush.msra.mxu0 %v5395_v32  ;;  %v12396_v31 = vand.u32 4294901760, %v4346_v29  ;;  %v5397_v35 = vand.u32 4294901760, %v5396_v56  ;;  %5306 = vmatmul.f32.vlgmr.msrb.gmra.mxu1 %v12126_v61  ;;  %v4400_v60 = vsel %vm363_vm5, %v16354_v6, %v12284_v49  ;;  %v16355_v56 = vld [vmem:[#allocation23_spill] sm:$0xff]  ;;  %vm4965_vm10 = vcmask 719872  }
 0xc7a   : > { %5566 = vmatpush.msra.mxu1 %v12165_v45  ;;  %v12455_v6 = vand.u32 4294901760, %v12388_v39  ;;  %vm16362_vm14 = vcmask 654336  }
 0xc7b   : > { %5540 = vmatpush.msra.mxu0 %v5401_v8  ;;  %5334 = vmatpush.msrb.mxu2 %v12396_v31  ;;  %v12404_v38 = vsub.f32 %v4346_v29, %v12396_v31 }
 0xc7c   : > { %5398 = vmatpush.msrb.mxu3 %v5397_v35  ;;  %5568 = vmatpush.msra.mxu1 %v12218_v21  ;;  %v4409_v35 = vmul.f32 %v12210_v26, %v4400_v60 }
 0xc7d   : > { %4316 = vrot.lane.b32.xlu1 %v4309_v44, %s16245_s24  ;;  %4480 = vrot.lane.b32.xlu0 %v4468_v9, %s16167_s17  ;;  %v5407_v27 = vand.u32 4294901760, %v12404_v38  ;;  %v3305_v44 = vld [vmem:[%s16322_s13 + $0x8] sm:$0xff] }
 0xc7e   : > { %4539 = vrot.lane.b32.xlu2 %v4527_v7, %s16168_s20  ;;  %5570 = vmatpush.msra.mxu1 %v12260_v42  ;;  %v12412_v41 = vpop.permute.xlu1 %4279  ;;  %v4967_v7 = vsel %vm4965_vm10, %v3305_v44, 0  ;;  %vm16374_vm10 = vcmask 515072  }
 0xc7f   : > { %16352 = vst [vmem:[#allocation19_spill] sm:$0xff] %v12412_v41  ;;  %5404 = vmatpush.msrb.mxu3 %v5403_v16  ;;  %v12414_v8 = vpop.permute.xlu2 %4104  ;;  %v4278_v32 = vpop.permute.xlu0 %4277  ;;  %5544 = vmatpush.msra.mxu0 %v5407_v27  ;;  %v5408_v63 = vsub.f32 %v12404_v38, %v5407_v27  ;;  %v12443_v16 = vand.u32 4294901760, %v12341_v1  ;;  %v12445_v27 = vand.u32 4294901760, %v4967_v7 }
 0xc80   : > { %16353 = vst [vmem:[#allocation22_spill] sm:$0xff] %v12414_v8  ;;  %v4111_v11 = vsel %vm16356_vm12, %v16355_v56, %v12414_v8  ;;  %5572 = vmatpush.msra.mxu1 %v12303_v51  ;;  %v4287_v5 = vsel %vm16357_vm13, %v4278_v32, %v12412_v41  ;;  %vm16364_vm12 = vcmask 670720   ;;  %vm16370_vm13 = vcmask 605184  }
 0xc81   : > { %4119 = vst [vmem:[#allocation3 + $0x208] sm:$0xff] %v4111_v11  ;;  %v12429_v29 = vand.u32 4294901760, %v4287_v5  ;;  %v5409_v57 = vand.u32 4294901760, %v5408_v63  ;;  %v12474_v44 = vsub.f32 %v12341_v1, %v12443_v16 }
 0xc82   : > { %5574 = vmatpush.msra.mxu1 %v12355_v19  ;;  %16358 = vst [vmem:[#allocation18_spill] sm:$0xff] %v12445_v27 }
 0xc83   : > { %5336 = vmatpush.msrb.mxu2 %v12429_v29  ;;  %5410 = vmatpush.msrb.mxu3 %v5409_v57  ;;  %v12438_v9 = vsub.f32 %v4287_v5, %v12429_v29 }
 0xc84   : > { %5576 = vmatpush.msra.mxu1 %v12315_v0 }
 0xc85   : > { %5429 = vmatpush.msra.mxu2 %v11997_v17  ;;  %4257 = vrot.lane.b32.xlu0 %v4250_v58, %s16250_s15  ;;  %v5413_v32 = vand.u32 4294901760, %v12438_v9  ;;  %v12458_v17 = vsub.f32 %v4967_v7, %v12445_v27  ;;  %v4301_v58 = vld [vmem:[#allocation2 + $0x10] sm:$0xff]  ;;  %v12478_v7 = vand.u32 4294901760, %v4111_v11  ;;  %s16366_s15 = smov 46  }
 0xc86   : > { %4421 = vrot.lane.b32.xlu2 %v4409_v35, %s16359_s2  ;;  %5578 = vmatpush.msra.mxu1 %v12396_v31  ;;  %v12451_v63 = vpop.permute.xlu1 %4198 }
 0xc87   : > { %5432 = vmatpush.msra.mxu2 %v12068_v48  ;;  %16360 = vst [vmem:[#allocation23_spill] sm:$0xff] %v12458_v17  ;;  %v12460_v60 = vpop.permute.xlu2 %4021  ;;  %v12462_v56 = vpop.permute.xlu0 %4314  ;;  %5548 = vmatpush.msra.mxu0 %v5413_v32  ;;  %v5414_v5 = vsub.f32 %v12438_v9, %v5413_v32  ;;  %v4202_v62 = vsel %vm16362_vm14, %v11688_v24, %v12451_v63  ;;  %v16363_v48 = vld [vmem:[#allocation21_spill] sm:$0xff]  ;;  %v12481_v24 = vand.u32 4294901760, %v12458_v17  ;;  %vm16376_vm14 = vcmask 662528  }
 0xc88   : > { %16361 = vst [vmem:[#allocation49_spill] sm:$0xff] %v12460_v60  ;;  %v4319_v57 = vsel %vm16364_vm12, %v16363_v48, %v12462_v56  ;;  %5580 = vmatpush.msra.mxu1 %v12429_v29  ;;  %v12486_v32 = vsub.f32 %v12388_v39, %v12455_v6  ;;  %v4211_v1 = vmul.f32 %v12210_v26, %v4202_v62  ;;  %vm16378_vm12 = vcmask 588800  }
 0xc89   : > { %v4328_v35 = vmul.f32 %v4319_v57, %v4301_v58  ;;  %5435 = vmatpush.msra.mxu2 %v12124_v23  ;;  %16365 = vst [vmem:[#allocation21_spill] sm:$0xff] %v12481_v24  ;;  %5730 = vmatpush.msrb.mxu0 %v12474_v44  ;;  %v5415_v48 = vand.u32 4294901760, %v5414_v5  ;;  %v5340_v23 = vsub.f32 %v12458_v17, %v12481_v24  ;;  %v16369_v57 = vld [vmem:[#allocation27_spill] sm:$0xff] }
 0xc8a   : > { %5783 = vmatpush.msrb.mxu1 %v12443_v16  ;;  %v12499_v39 = vsub.f32 %v4111_v11, %v12478_v7  ;;  %5550 = vmatmul.f32.vlgmr.msra.gmra.mxu0 %v12445_v27 }
 0xc8b   : > { %5582 = vmatmul.f32.vlgmr.msra.gmra.mxu1 %v12445_v27  ;;  %4340 = vrot.lane.b32.xlu1 %v4328_v35, %s16366_s15  ;;  %v12501_v5 = vand.u32 4294901760, %v5340_v23 }
 0xc8c   : > { %5785 = vmatpush.msrb.mxu1 %v12455_v6  ;;  %5438 = vmatpush.msra.mxu2 %v12177_v3 }
 0xc8d   : > { %5733 = vmatpush.msrb.mxu0 %v12486_v32  ;;  %16367 = vst [vmem:[#allocation50_spill] sm:$0xff] %v12501_v5  ;;  %5416 = vmatpush.msrb.mxu3 %v5415_v48 }
 0xc8e   : > { %4224 = vrot.lane.b32.xlu2 %v4211_v1, %s16249_s9  ;;  %5787 = vmatpush.msrb.mxu1 %v12478_v7  ;;  %v12503_v62 = vpop.permute.xlu1 %4139  ;;  %v16373_v1 = vld [vmem:[#allocation28_spill] sm:$0xff] }
 0xc8f   : > { %16368 = vst [vmem:[#allocation51_spill] sm:$0xff] %v12503_v62  ;;  %5441 = vmatpush.msra.mxu2 %v12226_v2  ;;  %v4143_v3 = vsel %vm16370_vm13, %v16369_v57, %v12503_v62  ;;  %v12509_v35 = vpop.permute.xlu2 %3927  ;;  %v12511_v41 = vpop.permute.xlu0 %4255  ;;  %5472 = vmatpush.msra.mxu3 %v11976_v53  ;;  %v16375_v2 = vld [vmem:[#allocation24_spill] sm:$0xff]  ;;  %vm16381_vm13 = vcmask 457728  }
 0xc90   : > { %16371 = vst [vmem:[#allocation27_spill] sm:$0xff] %v12509_v35  ;;  %5736 = vmatpush.msrb.mxu0 %v12499_v39  ;;  %v4152_v11 = vmul.f32 %v12210_v26, %v4143_v3  ;;  %v12519_v48 = vsel %vm16374_vm10, %v16373_v1, %v12509_v35  ;;  %v4260_v23 = vsel %vm16376_vm14, %v16375_v2, %v12511_v41  ;;  %vm16386_vm10 = vcmask 523264  }
 0xc91   : > { %16372 = vst [vmem:[#allocation52_spill] sm:$0xff] %v12511_v41  ;;  %5444 = vmatpush.msra.mxu2 %v12268_v47  ;;  %5418 = vmatmul.f32.vlgmr.msrb.gmra.mxu3 %v12445_v27  ;;  %v4269_v53 = vmul.f32 %v4301_v58, %v4260_v23  ;;  %v16377_v47 = vld [vmem:[#allocation31_spill] sm:$0xff]  ;;  %vm16389_vm14 = vcmask 539648  }
 0xc92   : > { %3942 = vst [vmem:[#allocation3 + $0x230] sm:$0xff] %v12519_v48  ;;  %5474 = vmatpush.msra.mxu3 %v12056_v59  ;;  %5342 = vmatmul.f32.vlgmr.msrb.gmra.mxu2 %v12501_v5  ;;  %v4025_v58 = vsel %vm16378_vm12, %v16377_v47, %v12460_v60  ;;  %v16380_v59 = vld [vmem:[#allocation25_spill] sm:$0xff]  ;;  %vm16394_vm12 = vcmask 506880  }
 0xc93   : > { %5447 = vmatpush.msra.mxu2 %v12313_v20  ;;  %4165 = vrot.lane.b32.xlu1 %v4152_v11, %s16252_s26  ;;  %v4034_v1 = vmul.f32 %v12210_v26, %v4025_v58 }
 0xc94   : > { %4281 = vrot.lane.b32.xlu0 %v4269_v53, %s16292_s29  ;;  %5476 = vmatpush.msra.mxu3 %v12114_v55  ;;  %v16384_v55 = vld [vmem:[#allocation29_spill] sm:$0xff] }
 0xc95   : > { %5450 = vmatpush.msra.mxu2 %v12364_v34 }
 0xc96   : > { %v12538_v57 = vpop.permute.xlu1 %4045  ;;  %5478 = vmatpush.msra.mxu3 %v12165_v45 }
 0xc97   : > { %16379 = vst [vmem:[#allocation28_spill] sm:$0xff] %v12538_v57  ;;  %5453 = vmatpush.msra.mxu2 %v12333_v40  ;;  %v4052_v20 = vsel %vm16381_vm13, %v16380_v59, %v12538_v57  ;;  %v12545_v3 = vpop.permute.xlu2 %3844  ;;  %v12547_v11 = vpop.permute.xlu0 %4080  ;;  %v16000_v59 = vand.u32 4294901760, %v12486_v32  ;;  %vm16397_vm13 = vmmov %vm16386_vm10 }
 0xc98   : > { %16382 = vst [vmem:[#allocation24_spill] sm:$0xff] %v12545_v3  ;;  %v4084_v34 = vsel %vm305_vm1, %v16384_v55, %v12547_v11  ;;  %5480 = vmatpush.msra.mxu3 %v12218_v21  ;;  %v12556_v45 = vand.u32 4294901760, %v4052_v20  ;;  %v16001_v21 = vand.u32 4294901760, %v12474_v44 }
 0xc99   : > { %16383 = vst [vmem:[#allocation31_spill] sm:$0xff] %v12547_v11  ;;  %v4093_v2 = vmul.f32 %v12210_v26, %v4084_v34  ;;  %5456 = vmatpush.msra.mxu2 %v12404_v38  ;;  %v16385_v38 = vld [vmem:[#allocation37_spill] sm:$0xff] }
 0xc9a   : > { %4060 = vst [vmem:[#allocation3 + $0x228] sm:$0xff] %v4052_v20  ;;  %v12561_v40 = vsub.f32 %v4052_v20, %v12556_v45  ;;  %5482 = vmatpush.msra.mxu3 %v12260_v42  ;;  %5789 = vmatpush.msrb.mxu1 %v12556_v45  ;;  %v3848_v23 = vsel %vm16386_vm10, %v16385_v38, %v12545_v3  ;;  %v16388_v42 = vld [vmem:[#allocation33_spill] sm:$0xff]  ;;  %v12585_v20 = vand.u32 4294901760, %v12519_v48  ;;  %vm16402_vm10 = vcmask 531456  }
 0xc9b   : > { %4106 = vrot.lane.b32.xlu2 %v4093_v2, %s16254_s28  ;;  %5459 = vmatpush.msra.mxu2 %v12438_v9  ;;  %v3857_v38 = vmul.f32 %v12210_v26, %v3848_v23  ;;  %v5636_v23 = vsub.f32 %v12486_v32, %v16000_v59 }
 0xc9c   : > { %4047 = vrot.lane.b32.xlu0 %v4034_v1, %s16255_s25  ;;  %5484 = vmatpush.msra.mxu3 %v12303_v51  ;;  %v16392_v51 = vld [vmem:[#allocation34_spill] sm:$0xff] }
 0xc9d   : > { %5587 = vmatpush.msrb.mxu2 %v12443_v16  ;;  %5739 = vmatpush.msrb.mxu0 %v12561_v40  ;;  %v16393_v1 = vld [vmem:[#allocation26_spill] sm:$0xff] }
 0xc9e   : > { %v12571_v53 = vpop.permute.xlu1 %3962  ;;  %5486 = vmatpush.msra.mxu3 %v12355_v19  ;;  %5462 = vmatmul.f32.vlgmr.msra.gmra.mxu2 %v12458_v17  ;;  %v16002_v19 = vand.u32 4294901760, %v12499_v39  ;;  %v16401_v17 = vld [vmem:[#allocation35_spill] sm:$0xff] }
 0xc9f   : > { %16387 = vst [vmem:[#allocation25_spill] sm:$0xff] %v12571_v53  ;;  %v3966_v9 = vsel %vm16389_vm14, %v16388_v42, %v12571_v53  ;;  %v12578_v47 = vpop.permute.xlu2 %3750  ;;  %v12580_v58 = vpop.permute.xlu0 %3986  ;;  %5589 = vmatpush.msrb.mxu2 %v12455_v6  ;;  %v5630_v42 = vsub.f32 %v12474_v44, %v16001_v21  ;;  %vm16414_vm14 = vcmask 916480  }
 0xca0   : > { %16390 = vst [vmem:[#allocation29_spill] sm:$0xff] %v12578_v47  ;;  %v3975_v55 = vmul.f32 %v12210_v26, %v3966_v9  ;;  %v12591_v34 = vsel %vm784_vm2, %v16392_v51, %v12578_v47  ;;  %v3993_v2 = vsel %vm16394_vm12, %v16393_v1, %v12580_v58  ;;  %5488 = vmatpush.msra.mxu3 %v12315_v0  ;;  %v16400_v0 = vld [vmem:[#allocation42_spill] sm:$0xff]  ;;  %vm16422_vm12 = vcmask 965632  }
 0xca1   : > { %16391 = vst [vmem:[#allocation37_spill] sm:$0xff] %v12580_v58  ;;  %5591 = vmatpush.msrb.mxu2 %v12478_v7  ;;  %v12604_v9 = vand.u32 4294901760, %v3993_v2  ;;  %v12619_v1 = vsub.f32 %v12519_v48, %v12585_v20  ;;  %v5642_v48 = vsub.f32 %v12499_v39, %v16002_v19 }
 0xca2   : > { %3765 = vst [vmem:[#allocation3 + $0x248] sm:$0xff] %v12591_v34  ;;  %3988 = vrot.lane.b32.xlu1 %v3975_v55, %s16257_s6  ;;  %5490 = vmatpush.msra.mxu3 %v12396_v31  ;;  %v5631_v55 = vand.u32 4294901760, %v5630_v42  ;;  %v16396_v31 = vld [vmem:[#allocation30_spill] sm:$0xff] }
 0xca3   : > { %4001 = vst [vmem:[#allocation3 + $0x1c0] sm:$0xff] %v3993_v2  ;;  %5593 = vmatpush.msrb.mxu2 %v12556_v45  ;;  %v12615_v51 = vsub.f32 %v3993_v2, %v12604_v9  ;;  %5791 = vmatpush.msrb.mxu1 %v12604_v9  ;;  %v5643_v58 = vand.u32 4294901760, %v5642_v48  ;;  %v12671_v48 = vand.u32 4294901760, %v12591_v34 }
 0xca4   : > { %3870 = vrot.lane.b32.xlu0 %v3857_v38, %s16239_s12  ;;  %5492 = vmatpush.msra.mxu3 %v12429_v29  ;;  %v5637_v38 = vand.u32 4294901760, %v5636_v23 }
 0xca5   : > { %5595 = vmatpush.msrb.mxu2 %v12604_v9  ;;  %5742 = vmatpush.msrb.mxu0 %v12615_v51  ;;  %v12694_v5 = vsub.f32 %v12591_v34, %v12671_v48 }
 0xca6   : > { %v12627_v59 = vpop.permute.xlu1 %3868  ;;  %5793 = vmatpush.msrb.mxu1 %v12585_v20  ;;  %5632 = vmatpush.msrb.mxu3 %v5631_v55  ;;  %v16404_v55 = vand.u32 4294901760, %v12615_v51 }
 0xca7   : > { %16395 = vst [vmem:[#allocation33_spill] sm:$0xff] %v12627_v59  ;;  %v3875_v2 = vsel %vm16397_vm13, %v16396_v31, %v12627_v59  ;;  %v12639_v21 = vpop.permute.xlu0 %3903  ;;  %5597 = vmatpush.msrb.mxu2 %v12585_v20  ;;  %v16403_v31 = vand.u32 4294901760, %v12561_v40  ;;  %5745 = vmatpush.msrb.mxu0 %v12619_v1  ;;  %vm16432_vm13 = vmmov %vm16414_vm14 }
 0xca8   : > { %v12637_v42 = vpop.permute.xlu2 %3667  ;;  %16399 = vst [vmem:[#allocation26_spill] sm:$0xff] %v12639_v21  ;;  %v3907_v27 = vsel %vm16402_vm10, %v16401_v17, %v12639_v21  ;;  %v5654_v23 = vsub.f32 %v12615_v51, %v16404_v55  ;;  %5638 = vmatpush.msrb.mxu3 %v5637_v38  ;;  %vm16474_vm10 = vcmask 662528  }
 0xca9   : > { %16398 = vst [vmem:[#allocation34_spill] sm:$0xff] %v12637_v42  ;;  %v3671_v19 = vsel %vm688_vm8, %v16400_v0, %v12637_v42  ;;  %v5648_v59 = vsub.f32 %v12561_v40, %v16403_v31  ;;  %v3916_v29 = vmul.f32 %v12210_v26, %v3907_v27  ;;  %v12658_v0 = vand.u32 4294901760, %v3875_v2  ;;  %5496 = vmatmul.f32.vlgmr.msra.gmra.mxu3 %v12481_v24  ;;  %v16410_v24 = vld [vmem:[#allocation32_spill] sm:$0xff] }
 0xcaa   : > { %3883 = vst [vmem:[#allocation3 + $0x1e0] sm:$0xff] %v3875_v2  ;;  %v3680_v47 = vmul.f32 %v12210_v26, %v3671_v19  ;;  %5644 = vmatpush.msrb.mxu3 %v5643_v58  ;;  %v5655_v27 = vand.u32 4294901760, %v5654_v23  ;;  %v16405_v19 = vand.u32 4294901760, %v12619_v1  ;;  %v16407_v58 = vld [vmem:[#allocation39_spill] sm:$0xff] }
 0xcab   : > { %3929 = vrot.lane.b32.xlu2 %v3916_v29, %s16259_s4  ;;  %v12664_v17 = vsub.f32 %v3875_v2, %v12658_v0  ;;  %v5649_v31 = vand.u32 4294901760, %v5648_v59  ;;  %5599 = vmatpush.msrb.mxu2 %v12658_v0 }
 0xcac   : > { %3693 = vrot.lane.b32.xlu0 %v3680_v47, %s16263_s5  ;;  %v5660_v38 = vsub.f32 %v12619_v1, %v16405_v19  ;;  %5795 = vmatpush.msrb.mxu1 %v12658_v0 }
 0xcad   : > { %5748 = vmatpush.msrb.mxu0 %v12664_v17  ;;  %v16016_v47 = vand.u32 4294901760, %v12664_v17  ;;  %5650 = vmatpush.msrb.mxu3 %v5649_v31 }
 0xcae   : > { %v12676_v2 = vpop.permute.xlu1 %3785  ;;  %v5661_v31 = vand.u32 4294901760, %v5660_v38 }
 0xcaf   : > { %16406 = vst [vmem:[#allocation30_spill] sm:$0xff] %v12676_v2  ;;  %v3789_v59 = vsel %vm282_vm0, %v16407_v58, %v12676_v2  ;;  %v12683_v55 = vpop.permute.xlu0 %3809  ;;  %v5666_v23 = vsub.f32 %v12664_v17, %v16016_v47  ;;  %5656 = vmatpush.msrb.mxu3 %v5655_v27  ;;  %v16416_v47 = vld [vmem:[#allocation41_spill] sm:$0xff] }
 0xcb0   : > { %v12681_v29 = vpop.permute.xlu2 %3608  ;;  %16409 = vst [vmem:[#allocation35_spill] sm:$0xff] %v12683_v55  ;;  %v3798_v19 = vmul.f32 %v12210_v26, %v3789_v59  ;;  %v3816_v57 = vsel %vm845_vm11, %v16410_v24, %v12683_v55  ;;  %v16417_v55 = vand.u32 4294901760, %v12694_v5 }
 0xcb1   : > { %16408 = vst [vmem:[#allocation42_spill] sm:$0xff] %v12681_v29  ;;  %v12696_v58 = vand.u32 4294901760, %v3816_v57  ;;  %v5667_v21 = vand.u32 4294901760, %v5666_v23  ;;  %5662 = vmatpush.msrb.mxu3 %v5661_v31  ;;  %v16413_v23 = vld [vmem:[#allocation36_spill] sm:$0xff]  ;;  %v12722_v31 = vld [vmem:[#allocation2 + $0x18] sm:$0xff] }
 0xcb2   : > { %3824 = vst [vmem:[#allocation3 + $0x180] sm:$0xff] %v3816_v57  ;;  %3811 = vrot.lane.b32.xlu1 %v3798_v19, %s16262_s3  ;;  %v5678_v2 = vsub.f32 %v12694_v5, %v16417_v55 }
 0xcb3   : > { %5601 = vmatpush.msrb.mxu2 %v12696_v58  ;;  %5797 = vmatpush.msrb.mxu1 %v12696_v58  ;;  %v12702_v59 = vsub.f32 %v3816_v57, %v12696_v58 }
 0xcb4   : > { %5668 = vmatpush.msrb.mxu3 %v5667_v21 }
 0xcb5   : > { %5603 = vmatpush.msrb.mxu2 %v12671_v48  ;;  %5751 = vmatpush.msrb.mxu0 %v12702_v59  ;;  %v16021_v34 = vand.u32 4294901760, %v12702_v59 }
 0xcb6   : > { %v12708_v27 = vpop.permute.xlu1 %3691  ;;  %5799 = vmatpush.msrb.mxu1 %v12671_v48 }
 0xcb7   : > { %16411 = vst [vmem:[#allocation39_spill] sm:$0xff] %v12708_v27  ;;  %v3698_v57 = vsel %vm16414_vm14, %v16413_v23, %v12708_v27  ;;  %v12716_v19 = vpop.permute.xlu0 %3726  ;;  %5754 = vmatpush.msrb.mxu0 %v12694_v5  ;;  %v5672_v21 = vsub.f32 %v12702_v59, %v16021_v34  ;;  %vm16477_vm14 = vcmask 375808  }
 0xcb8   : > { %v12711_v38 = vpop.permute.xlu2 %3549  ;;  %16415 = vst [vmem:[#allocation36_spill] sm:$0xff] %v12716_v19  ;;  %v3730_v24 = vsel %vm750_vm15, %v16416_v47, %v12716_v19  ;;  %v12731_v27 = vand.u32 4294901760, %v3698_v57  ;;  %v5679_v47 = vand.u32 4294901760, %v5678_v2 }
 0xcb9   : > { %16412 = vst [vmem:[#allocation32_spill] sm:$0xff] %v12711_v38  ;;  %v3739_v23 = vmul.f32 %v3730_v24, %v12722_v31  ;;  %v5673_v42 = vand.u32 4294901760, %v5672_v21  ;;  %v16418_v24 = vld [vmem:[#allocation43_spill] sm:$0xff] }
 0xcba   : > { %3706 = vst [vmem:[#allocation3 + $0x250] sm:$0xff] %v3698_v57  ;;  %5605 = vmatpush.msrb.mxu2 %v12731_v27  ;;  %v12736_v34 = vsub.f32 %v3698_v57, %v12731_v27  ;;  %5801 = vmatpush.msrb.mxu1 %v12731_v27  ;;  %v3612_v19 = vsel %vm621_vm7, %v16418_v24, %v12681_v29  ;;  %v16421_v57 = vld [vmem:[#allocation38_spill] sm:$0xff] }
 0xcbb   : > { %3752 = vrot.lane.b32.xlu2 %v3739_v23, %s16170_s16  ;;  %5674 = vmatpush.msrb.mxu3 %v5673_v42 }
 0xcbc   : > { %5757 = vmatpush.msrb.mxu0 %v12736_v34  ;;  %v16028_v55 = vand.u32 4294901760, %v12736_v34 }
 0xcbd   : > { %5680 = vmatpush.msrb.mxu3 %v5679_v47  ;;  %v3621_v47 = vmul.f32 %v12210_v26, %v3612_v19  ;;  %v4857_v19 = vld [vmem:[#allocation3 + $0x38] sm:$0xff] }
 0xcbe   : > { %v12744_v21 = vpop.permute.xlu1 %3632  ;;  %v5684_v2 = vsub.f32 %v12736_v34, %v16028_v55  ;;  %v12793_v41 = vand.u32 4294901760, %v4857_v19 }
 0xcbf   : > { %16419 = vst [vmem:[#allocation41_spill] sm:$0xff] %v12744_v21  ;;  %v3639_v42 = vsel %vm16422_vm12, %v16421_v57, %v12744_v21  ;;  %v12751_v35 = vpop.permute.xlu0 %4810  ;;  %v4865_v21 = vld [vmem:[#allocation3 + $0x2c8] sm:$0xff] }
 0xcc0   : > { %v12746_v23 = vpop.permute.xlu2 %4633  ;;  %16423 = vst [vmem:[#allocation38_spill] sm:$0xff] %v12751_v35  ;;  %v4814_v24 = vsel %vm282_vm0, %v12079_v52, %v12751_v35  ;;  %v12763_v11 = vand.u32 4294901760, %v3639_v42  ;;  %v5685_v57 = vand.u32 4294901760, %v5684_v2  ;;  %v12771_v53 = vand.u32 4294901760, %v4865_v21  ;;  %v4861_v52 = vld [vmem:[#allocation3 + $0x308] sm:$0xff] }
 0xcc1   : > { %16420 = vst [vmem:[#allocation43_spill] sm:$0xff] %v12746_v23  ;;  %v4823_v29 = vmul.f32 %v4814_v24, %v12756_v54  ;;  %vm16428_vm0 = vcmask 973824   ;;  %v12791_v46 = vand.u32 4294901760, %v4861_v52 }
 0xcc2   : > { %3647 = vst [vmem:[#allocation3 + $0x268] sm:$0xff] %v3639_v42  ;;  %v12768_v55 = vsub.f32 %v3639_v42, %v12763_v11  ;;  %5607 = vmatpush.msrb.mxu2 %v12763_v11  ;;  %5686 = vmatpush.msrb.mxu3 %v5685_v57  ;;  %v12806_v62 = vsub.f32 %v4865_v21, %v12771_v53  ;;  %v9295_v21 = vld [vmem:[#allocation3 + $0xd0] sm:$0xff] }
 0xcc3   : > { %3634 = vrot.lane.b32.xlu2 %v3621_v47, %s16165_s22  ;;  %4836 = vrot.lane.b32.xlu1 %v4823_v29, %s16262_s3  ;;  %16424 = vst [vmem:[#allocation53_spill] sm:$0xff] %v12771_v53  ;;  %v3553_v29 = vsel %vm559_vm4, %v11933_v43, %v12711_v38  ;;  %v16427_v47 = vld [vmem:[#allocation44_spill] sm:$0xff]  ;;  %v16431_v43 = vld [vmem:[#allocation46_spill] sm:$0xff] }
 0xcc4   : > { %5803 = vmatpush.msrb.mxu1 %v12763_v11  ;;  %5760 = vmatpush.msrb.mxu0 %v12768_v55  ;;  %v16037_v2 = vand.u32 4294901760, %v12768_v55  ;;  %16430 = vst [vmem:[#allocation56_spill] sm:$0xff] %v12793_v41 }
 0xcc6   : > { %v12779_v24 = vpop.permute.xlu1 %3573  ;;  %v5690_v3 = vsub.f32 %v12768_v55, %v16037_v2  ;;  %v3562_v2 = vmul.f32 %v12210_v26, %v3553_v29 }
 0xcc7   : > { %16425 = vst [vmem:[#allocation54_spill] sm:$0xff] %v12779_v24  ;;  %v3580_v57 = vsel %vm16428_vm0, %v16427_v47, %v12779_v24  ;;  %v12786_v35 = vpop.permute.xlu0 %4751 }
 0xcc8   : > { %v12781_v42 = vpop.permute.xlu2 %4716  ;;  %16429 = vst [vmem:[#allocation44_spill] sm:$0xff] %v12786_v35  ;;  %v4755_v47 = vsel %vm750_vm15, %v12135_v12, %v12786_v35  ;;  %v12803_v24 = vand.u32 4294901760, %v3580_v57  ;;  %v5691_v8 = vand.u32 4294901760, %v5690_v3  ;;  %v12818_v12 = vsub.f32 %v4861_v52, %v12791_v46 }
 0xcc9   : > { %16426 = vst [vmem:[#allocation55_spill] sm:$0xff] %v12781_v42  ;;  %v12798_v38 = vsel %vm16432_vm13, %v16431_v43, %v12781_v42  ;;  %v4764_v60 = vmul.f32 %v4755_v47, %v12756_v54  ;;  %v12820_v42 = vand.u32 4294901760, %v9295_v21  ;;  %v12825_v3 = vsub.f32 %v4857_v19, %v12793_v41 }
 0xcca   : > { %3588 = vst [vmem:[#allocation3 + $0x188] sm:$0xff] %v3580_v57  ;;  %5609 = vmatpush.msrb.mxu2 %v12803_v24  ;;  %5805 = vmatpush.msrb.mxu1 %v12803_v24  ;;  %v12813_v43 = vsub.f32 %v3580_v57, %v12803_v24  ;;  %v16438_v35 = vand.u32 4294901760, %v12806_v62  ;;  %vm16468_vm15 = vcmask 449536   ;;  %vm16489_vm13 = vcmask 384000  }
 0xccb   : > { %3575 = vrot.lane.b32.xlu1 %v3562_v2, %s16166_s14  ;;  %4777 = vrot.lane.b32.xlu0 %v4764_v60, %s16170_s16  ;;  %16433 = vst [vmem:[#allocation46_spill] sm:$0xff] %v12820_v42  ;;  %v4637_v60 = vsel %vm621_vm7, %v12233_v37, %v12746_v23  ;;  %v16436_v2 = vld [vmem:[#allocation40_spill] sm:$0xff]  ;;  %v12849_v37 = vsub.f32 %v9295_v21, %v12820_v42  ;;  %vm16451_vm7 = vcmask 1039360  }
 0xccc   : > { %5692 = vmatpush.msrb.mxu3 %v5691_v8  ;;  %5611 = vmatpush.msrb.mxu2 %v12771_v53  ;;  %v16041_v26 = vand.u32 4294901760, %v12813_v43  ;;  %v5702_v23 = vsub.f32 %v12806_v62, %v16438_v35  ;;  %v16439_v35 = vand.u32 4294901760, %v12818_v12 }
 0xccd   : > { %5763 = vmatpush.msrb.mxu0 %v12813_v43  ;;  %5807 = vmatpush.msrb.mxu1 %v12771_v53 }
 0xcce   : > { %v12833_v52 = vpop.permute.xlu1 %4834  ;;  %5613 = vmatpush.msrb.mxu2 %v12791_v46  ;;  %v5696_v8 = vsub.f32 %v12813_v43, %v16041_v26 }
 0xccf   : > { %16434 = vst [vmem:[#allocation57_spill] sm:$0xff] %v12833_v52  ;;  %v4841_v57 = vsel %vm845_vm11, %v16436_v2, %v12833_v52  ;;  %v12844_v47 = vpop.permute.xlu0 %4692  ;;  %5766 = vmatpush.msrb.mxu0 %v12806_v62  ;;  %5809 = vmatpush.msrb.mxu1 %v12791_v46  ;;  %v16047_v2 = vand.u32 4294901760, %v12825_v3  ;;  %v4646_v52 = vmul.f32 %v4637_v60, %v12756_v54 }
 0xcd0   : > { %v12839_v19 = vpop.permute.xlu2 %4456  ;;  %16437 = vst [vmem:[#allocation40_spill] sm:$0xff] %v12844_v47  ;;  %v4696_v26 = vsel %vm688_vm8, %v12187_v22, %v12844_v47  ;;  %5615 = vmatpush.msrb.mxu2 %v12793_v41  ;;  %v5697_v21 = vand.u32 4294901760, %v5696_v8  ;;  %v12863_v29 = vand.u32 4294901760, %v4841_v57  ;;  %v5703_v8 = vand.u32 4294901760, %v5702_v23  ;;  %vm16457_vm8 = vmmov %vm16428_vm0 }
 0xcd1   : > { %16435 = vst [vmem:[#allocation58_spill] sm:$0xff] %v12839_v19  ;;  %v4705_v53 = vmul.f32 %v4696_v26, %v12756_v54  ;;  %5769 = vmatpush.msrb.mxu0 %v12818_v12  ;;  %5811 = vmatpush.msrb.mxu1 %v12793_v41  ;;  %v5708_v26 = vsub.f32 %v12818_v12, %v16439_v35  ;;  %v16441_v23 = vand.u32 4294901760, %v12474_v44  ;;  %vm16486_vm0 = vcmask 515072  }
 0xcd2   : > { %v12869_v22 = vsub.f32 %v4841_v57, %v12863_v29  ;;  %5617 = vmatpush.msrb.mxu2 %v12820_v42  ;;  %5698 = vmatpush.msrb.mxu3 %v5697_v21  ;;  %v5714_v47 = vsub.f32 %v12825_v3, %v16047_v2  ;;  %v4460_v57 = vsel %vm430_vm3, %v12238_v33, %v12839_v19  ;;  %vm16444_vm3 = vcmask 982016  }
 0xcd3   : > { %4659 = vrot.lane.b32.xlu0 %v4646_v52, %s16165_s22  ;;  %4718 = vrot.lane.b32.xlu2 %v4705_v53, %s16263_s5  ;;  %v12883_v52 = vand.u32 4294901760, %v12798_v38  ;;  %v5709_v60 = vand.u32 4294901760, %v5708_v26 }
 0xcd4   : > { %5772 = vmatpush.msrb.mxu0 %v12825_v3  ;;  %5813 = vmatpush.msrb.mxu1 %v12820_v42  ;;  %v16442_v42 = vand.u32 4294901760, %v12849_v37  ;;  %v16443_v19 = vand.u32 4294901760, %v12869_v22 }
 0xcd5   : > { %5824 = vmatpush.msra.mxu2 %v16441_v23  ;;  %5704 = vmatpush.msrb.mxu3 %v5703_v8  ;;  %v16445_v23 = vld [vmem:[#allocation45_spill] sm:$0xff] }
 0xcd6   : > { %v12888_v35 = vpop.permute.xlu1 %4574  ;;  %5775 = vmatpush.msrb.mxu0 %v12849_v37  ;;  %v5720_v33 = vsub.f32 %v12849_v37, %v16442_v42  ;;  %v5971_v44 = vsub.f32 %v12869_v22, %v16443_v19  ;;  %5623 = vmatmul.f32.vlgmr.msrb.gmra.mxu2 %v12179_v14  ;;  %v5715_v42 = vand.u32 4294901760, %v5714_v47  ;;  %v4469_v19 = vmul.f32 %v4460_v57, %v12756_v54 }
 0xcd7   : > { %16440 = vst [vmem:[#allocation59_spill] sm:$0xff] %v12888_v35  ;;  %v4578_v2 = vsel %vm559_vm4, %v12277_v28, %v12888_v35  ;;  %v12897_v53 = vpop.permute.xlu0 %4775  ;;  %v16446_v35 = vand.u32 4294901760, %v12486_v32  ;;  %5710 = vmatpush.msrb.mxu3 %v5709_v60  ;;  %5778 = vmatmul.f32.vlgmr.msrb.gmra.mxu0 %v12133_v10  ;;  %v16447_v32 = vand.u32 4294901760, %v12499_v39  ;;  %v16448_v60 = vand.u32 4294901760, %v12561_v40  ;;  %vm16450_vm4 = vmmov %vm16422_vm12 }
 0xcd8   : > { %v12892_v21 = vpop.permute.xlu2 %4539  ;;  %v4587_v28 = vmul.f32 %v4578_v2, %v12756_v54  ;;  %v4782_v26 = vsel %vm784_vm2, %v16445_v23, %v12897_v53  ;;  %5933 = vmatpush.msra.mxu0 %v12863_v29  ;;  %v5972_v41 = vand.u32 4294901760, %v5971_v44  ;;  %v5721_v47 = vand.u32 4294901760, %v5720_v33  ;;  %5817 = vmatmul.f32.vlgmr.msrb.gmra.mxu1 %v12151_v36 }
 0xcd9   : > { %v12910_v8 = vsel %vm16444_vm3, %v12240_v13, %v12892_v21  ;;  %5828 = vmatpush.msra.mxu2 %v16446_v35  ;;  %v12920_v14 = vand.u32 4294901760, %v4782_v26  ;;  %v12924_v13 = vsub.f32 %v12798_v38, %v12883_v52  ;;  %5716 = vmatpush.msrb.mxu3 %v5715_v42  ;;  %v16449_v35 = vand.u32 4294901760, %v12615_v51 }
 0xcda   : > { %4600 = vrot.lane.b32.xlu1 %v4587_v28, %s16166_s14  ;;  %5973 = vmatpush.msra.mxu1 %v5972_v41  ;;  %vm16484_vm12 = vcmask 441344   ;;  %vm16496_vm3 = vcmask 457728  }
 0xcdb   : > { %5832 = vmatpush.msra.mxu2 %v16447_v32  ;;  %4482 = vrot.lane.b32.xlu0 %v4469_v19, %s16167_s17  ;;  %v12932_v2 = vsub.f32 %v4782_v26, %v12920_v14  ;;  %v5982_v57 = vand.u32 4294901760, %v12924_v13  ;;  %v16455_v32 = vand.u32 4294901760, %v12694_v5 }
 0xcdc   : > { %5935 = vmatpush.msra.mxu0 %v12920_v14  ;;  %5722 = vmatpush.msrb.mxu3 %v5721_v47 }
 0xcdd   : > { %5836 = vmatpush.msra.mxu2 %v16448_v60  ;;  %v5976_v38 = vand.u32 4294901760, %v12932_v2  ;;  %5724 = vmatmul.f32.vlgmr.msrb.gmra.mxu3 %v12126_v61  ;;  %v5983_v42 = vsub.f32 %v12924_v13, %v5982_v57 }
 0xcde   : > { %v12939_v39 = vpop.permute.xlu1 %4657  ;;  %5891 = vmatpush.msra.mxu3 %v12443_v16  ;;  %5937 = vmatpush.msra.mxu0 %v12883_v52 }
 0xcdf   : > { %5840 = vmatpush.msra.mxu2 %v16449_v35  ;;  %v4664_v40 = vsel %vm16450_vm4, %v12144_v30, %v12939_v39  ;;  %v12949_v44 = vpop.permute.xlu0 %4515  ;;  %v5977_v41 = vsub.f32 %v12932_v2, %v5976_v38  ;;  %v16452_v30 = vand.u32 4294901760, %v12619_v1  ;;  %v5984_v1 = vand.u32 4294901760, %v5983_v42 }
 0xce0   : > { %v12944_v33 = vpop.permute.xlu2 %4421  ;;  %v4519_v51 = vsel %vm492_vm6, %v12323_v4, %v12949_v44  ;;  %5893 = vmatpush.msra.mxu3 %v12455_v6  ;;  %v12966_v23 = vand.u32 4294901760, %v4664_v40  ;;  %v16454_v6 = vand.u32 4294901760, %v12702_v59  ;;  %vm16456_vm6 = vcmask 392192  }
 0xce1   : > { %v4428_v16 = vsel %vm16451_vm7, %v12329_v50, %v12944_v33  ;;  %5844 = vmatpush.msra.mxu2 %v16452_v30  ;;  %v4528_v28 = vmul.f32 %v4519_v51, %v12756_v54  ;;  %v5978_v26 = vand.u32 4294901760, %v5977_v41  ;;  %v16453_v50 = vand.u32 4294901760, %v12664_v17 }
 0xce2   : > { %5895 = vmatpush.msra.mxu3 %v12478_v7  ;;  %5939 = vmatpush.msra.mxu0 %v12966_v23  ;;  %v12978_v4 = vsub.f32 %v4664_v40, %v12966_v23  ;;  %v12985_v17 = vand.u32 4294901760, %v12910_v8  ;;  %vm16501_vm4 = vcmask 506880   ;;  %vm16506_vm7 = vcmask 523264  }
 0xce3   : > { %5848 = vmatpush.msra.mxu2 %v16453_v50  ;;  %4541 = vrot.lane.b32.xlu2 %v4528_v28, %s16168_s20  ;;  %v9296_v28 = vld [vmem:[#allocation3 + $0x128] sm:$0xff] }
 0xce4   : > { %5897 = vmatpush.msra.mxu3 %v12556_v45  ;;  %5979 = vmatpush.msra.mxu1 %v5978_v26  ;;  %v5988_v19 = vand.u32 4294901760, %v12978_v4  ;;  %v13018_v51 = vsub.f32 %v12910_v8, %v12985_v17 }
 0xce5   : > { %5852 = vmatpush.msra.mxu2 %v16454_v6 }
 0xce6   : > { %v12987_v7 = vpop.permute.xlu1 %4397  ;;  %5899 = vmatpush.msra.mxu3 %v12604_v9  ;;  %5985 = vmatpush.msra.mxu1 %v5984_v1  ;;  %v5989_v60 = vsub.f32 %v12978_v4, %v5988_v19  ;;  %v16463_v1 = vand.u32 4294901760, %v12818_v12  ;;  %v16464_v12 = vand.u32 4294901760, %v12825_v3 }
 0xce7   : > { %5856 = vmatpush.msra.mxu2 %v16455_v32  ;;  %v4401_v45 = vsel %vm363_vm5, %v12284_v49, %v12987_v7  ;;  %v12997_v59 = vpop.permute.xlu0 %4598  ;;  %v16458_v49 = vand.u32 4294901760, %v12736_v34  ;;  %v13030_v34 = vand.u32 4294901760, %v4428_v16  ;;  %vm16462_vm5 = vcmask 670720  }
 0xce8   : > { %v12992_v47 = vpop.permute.xlu2 %4224  ;;  %v4410_v9 = vmul.f32 %v4401_v45, %v12756_v54  ;;  %v4605_v35 = vsel %vm16457_vm8, %v12197_v18, %v12997_v59  ;;  %5901 = vmatpush.msra.mxu3 %v12585_v20  ;;  %v5990_v40 = vand.u32 4294901760, %v5989_v60  ;;  %v16460_v20 = vand.u32 4294901760, %v12813_v43 }
 0xce9   : > { %v13005_v5 = vsel %vm16456_vm6, %v12327_v15, %v12992_v47  ;;  %5860 = vmatpush.msra.mxu2 %v16458_v49  ;;  %v13014_v41 = vand.u32 4294901760, %v4605_v35  ;;  %v16459_v15 = vand.u32 4294901760, %v12768_v55  ;;  %v6000_v55 = vand.u32 4294901760, %v13018_v51 }
 0xcea   : > { %4423 = vrot.lane.b32.xlu1 %v4410_v9, %s16359_s2  ;;  %5903 = vmatpush.msra.mxu3 %v12658_v0  ;;  %v16461_v0 = vand.u32 4294901760, %v12806_v62  ;;  %v13040_v43 = vand.u32 4294901760, %v9296_v28  ;;  %v4212_v62 = vmul.f32 %v12451_v63, %v12756_v54  ;;  %v16466_v60 = vand.u32 4294901760, %v12849_v37 }
 0xceb   : > { %5864 = vmatpush.msra.mxu2 %v16459_v15  ;;  %5991 = vmatpush.msra.mxu1 %v5990_v40  ;;  %v13025_v18 = vsub.f32 %v4605_v35, %v13014_v41  ;;  %v6001_v63 = vsub.f32 %v13018_v51, %v6000_v55  ;;  %v16469_v49 = vand.u32 4294901760, %v12869_v22  ;;  %v16470_v15 = vld [vmem:[#allocation49_spill] sm:$0xff]  ;;  %vm16512_vm6 = vcmask 965632  }
 0xcec   : > { %5941 = vmatpush.msra.mxu0 %v13014_v41  ;;  %5905 = vmatpush.msra.mxu3 %v12696_v58  ;;  %v4035_v37 = vmul.f32 %v12756_v54, %v16470_v15  ;;  %v16480_v15 = vld [vmem:[#allocation25_spill] sm:$0xff]  ;;  %vm16515_vm8 = vcmask 916480  }
 0xced   : > { %5868 = vmatpush.msra.mxu2 %v16460_v20  ;;  %v5994_v8 = vand.u32 4294901760, %v13025_v18  ;;  %v6002_v9 = vand.u32 4294901760, %v6001_v63  ;;  %v16471_v20 = vld [vmem:[#allocation53_spill] sm:$0xff] }
 0xcee   : > { %5943 = vmatpush.msra.mxu0 %v12985_v17  ;;  %5907 = vmatpush.msra.mxu3 %v12671_v48 }
 0xcef   : > { %v13035_v30 = vpop.permute.xlu1 %4316  ;;  %5872 = vmatpush.msra.mxu2 %v16461_v0  ;;  %v13045_v42 = vpop.permute.xlu0 %4480  ;;  %v5995_v58 = vsub.f32 %v13025_v18, %v5994_v8 }
 0xcf0   : > { %v4320_v26 = vsel %vm16462_vm5, %v12462_v56, %v13035_v30  ;;  %v4487_v6 = vsel %vm459_vm9, %v12286_v25, %v13045_v42  ;;  %v13060_v56 = vsub.f32 %v4428_v16, %v13030_v34  ;;  %5909 = vmatpush.msra.mxu3 %v12731_v27  ;;  %v13071_v25 = vsub.f32 %v9296_v28, %v13040_v43  ;;  %v16472_v28 = vld [vmem:[#allocation51_spill] sm:$0xff]  ;;  %vm16525_vm5 = vmmov %vm16515_vm8 }
 0xcf1   : > { %v4329_v50 = vmul.f32 %v4320_v26, %v12722_v31  ;;  %5876 = vmatpush.msra.mxu2 %v16463_v1  ;;  %v13063_v48 = vand.u32 4294901760, %v4487_v6  ;;  %v5996_v32 = vand.u32 4294901760, %v5995_v58  ;;  %v4153_v26 = vmul.f32 %v12756_v54, %v16472_v28  ;;  %v16473_v58 = vld [vmem:[#allocation52_spill] sm:$0xff] }
 0xcf2   : > { %4226 = vrot.lane.b32.xlu1 %v4212_v62, %s16249_s9  ;;  %5911 = vmatpush.msra.mxu3 %v12763_v11  ;;  %v6012_v16 = vand.u32 4294901760, %v13060_v56  ;;  %v16467_v11 = vld [vmem:[#allocation22_spill] sm:$0xff]  ;;  %v6018_v40 = vand.u32 4294901760, %v13071_v25  ;;  %s9062_s9 = scalar_lea.sflag [#allocation5], %s269_s1 }
 0xcf3   : > { %4342 = vrot.lane.b32.xlu2 %v4329_v50, %s16366_s15  ;;  %5880 = vmatpush.msra.mxu2 %v16464_v12  ;;  %v13077_v27 = vsub.f32 %v4487_v6, %v13063_v48 }
 0xcf4   : > { %5945 = vmatpush.msra.mxu0 %v13063_v48  ;;  %5997 = vmatpush.msra.mxu1 %v5996_v32  ;;  %v6013_v50 = vsub.f32 %v13060_v56, %v6012_v16  ;;  %v6019_v32 = vsub.f32 %v13071_v25, %v6018_v40 }
 0xcf5   : > { %v13081_v45 = vpop.permute.xlu2 %4106  ;;  %5884 = vmatpush.msra.mxu2 %v16466_v60  ;;  %5913 = vmatpush.msra.mxu3 %v12803_v24  ;;  %v6006_v3 = vand.u32 4294901760, %v13077_v27  ;;  %v16478_v60 = vld [vmem:[#allocation46_spill] sm:$0xff] }
 0xcf6   : > { %16465 = vst [vmem:[#allocation45_spill] sm:$0xff] %v13081_v45  ;;  %v13090_v35 = vsel %vm16468_vm15, %v16467_v11, %v13081_v45  ;;  %5947 = vmatpush.msra.mxu0 %v13030_v34  ;;  %6003 = vmatpush.msra.mxu1 %v6002_v9  ;;  %v6020_v9 = vand.u32 4294901760, %v6019_v32  ;;  %v16479_v11 = vld [vmem:[#allocation24_spill] sm:$0xff]  ;;  %vm16535_vm15 = vcmask 973824  }
 0xcf7   : > { %6125 = vmatpush.msrb.mxu2 %v16469_v49  ;;  %4120 = vst [vmem:[#allocation3 + $0x2f8] sm:$0xff] %v13090_v35  ;;  %v13099_v24 = vpop.permute.xlu0 %4257  ;;  %5915 = vmatpush.msra.mxu3 %v16471_v20  ;;  %v6007_v0 = vsub.f32 %v13077_v27, %v6006_v3  ;;  %v3858_v49 = vmul.f32 %v12756_v54, %v16479_v11 }
 0xcf8   : > { %v4261_v62 = vsel %vm16474_vm10, %v16473_v58, %v13099_v24  ;;  %5949 = vmatpush.msra.mxu0 %v13040_v43  ;;  %5886 = vmatmul.f32.vlgmr.msra.gmra.mxu2 %v12126_v61  ;;  %v16483_v58 = vld [vmem:[#allocation20_spill] sm:$0xff]  ;;  %vm16536_vm10 = vcmask 982016  }
 0xcf9   : > { %6129 = vmatpush.msrb.mxu2 %v5976_v38  ;;  %v4270_v6 = vmul.f32 %v4261_v62, %v12722_v31  ;;  %5917 = vmatpush.msra.mxu3 %v12791_v46  ;;  %v6008_v1 = vand.u32 4294901760, %v6007_v0  ;;  %v16475_v38 = vld [vmem:[#allocation56_spill] sm:$0xff]  ;;  %v6014_v31 = vand.u32 4294901760, %v6013_v50  ;;  %v16485_v50 = vld [vmem:[#allocation27_spill] sm:$0xff] }
 0xcfa   : > { %4049 = vrot.lane.b32.xlu1 %v4035_v37, %s16255_s25  ;;  %v16476_v46 = vld [vmem:[#allocation48_spill] sm:$0xff]  ;;  %v16481_v37 = vld [vmem:[#allocation31_spill] sm:$0xff]  ;;  %s16677_s25 = smov 73  }
 0xcfb   : > { %4167 = vrot.lane.b32.xlu2 %v4153_v26, %s16252_s26  ;;  %4283 = vrot.lane.b32.xlu0 %v4270_v6, %s16292_s29  ;;  %v4094_v20 = vmul.f32 %v12756_v54, %v16481_v37 }
 0xcfc   : > { %6133 = vmatpush.msrb.mxu2 %v5982_v57  ;;  %5919 = vmatpush.msra.mxu3 %v16475_v38  ;;  %v16490_v38 = vld [vmem:[#allocation34_spill] sm:$0xff] }
 0xcfd   : > { %6009 = vmatpush.msra.mxu1 %v6008_v1  ;;  %v13122_v63 = vpop.permute.xlu1 %4340  ;;  %v16488_v1 = vld [vmem:[#allocation19_spill] sm:$0xff] }
 0xcfe   : > { %6137 = vmatpush.msrb.mxu2 %v5988_v19  ;;  %v4347_v12 = vsel %vm16477_vm14, %v16476_v46, %v13122_v63  ;;  %5921 = vmatpush.msra.mxu3 %v16478_v60  ;;  %v3976_v19 = vmul.f32 %v12756_v54, %v16480_v15  ;;  %v16491_v46 = vld [vmem:[#allocation30_spill] sm:$0xff]  ;;  %vm16541_vm14 = vmmov %vm16512_vm6 }
 0xcff   : > { %6015 = vmatpush.msra.mxu1 %v6014_v31  ;;  %v13133_v57 = vand.u32 4294901760, %v4347_v12  ;;  %5923 = vmatmul.f32.vlgmr.msra.gmra.mxu3 %v12126_v61  ;;  %v3681_v31 = vmul.f32 %v12756_v54, %v16490_v38  ;;  %v16499_v38 = vld [vmem:[#allocation36_spill] sm:$0xff] }
 0xd00   : > { %6177 = vmatpush.msrb.mxu3 %v12863_v29  ;;  %6141 = vmatpush.msrb.mxu2 %v5994_v8 }
 0xd01   : > { %6021 = vmatpush.msra.mxu1 %v6020_v9  ;;  %v13146_v8 = vsub.f32 %v4347_v12, %v13133_v57  ;;  %5951 = vmatpush.msra.mxu0 %v13133_v57  ;;  %v3799_v12 = vmul.f32 %v12756_v54, %v16491_v46  ;;  %v16492_v9 = vld [vmem:[#allocation26_spill] sm:$0xff] }
 0xd02   : > { %6145 = vmatpush.msrb.mxu2 %v6000_v55  ;;  %6179 = vmatpush.msrb.mxu3 %v12920_v14  ;;  %v3917_v11 = vmul.f32 %v12756_v54, %v16492_v9 }
 0xd03   : > { %3872 = vrot.lane.b32.xlu1 %v3858_v49, %s16239_s12  ;;  %3990 = vrot.lane.b32.xlu2 %v3976_v19, %s16257_s6  ;;  %v6024_v0 = vand.u32 4294901760, %v13146_v8  ;;  %v13189_v49 = vand.u32 4294901760, %v13005_v5  ;;  %s16529_s6 = sld [smem:[#allocation64_spill]] }
 0xd04   : > { %4108 = vrot.lane.b32.xlu0 %v4094_v20, %s16254_s28  ;;  %6149 = vmatpush.msrb.mxu2 %v6006_v3 }
 0xd05   : > { %6181 = vmatpush.msrb.mxu3 %v12883_v52  ;;  %v13154_v28 = vpop.permute.xlu1 %4165  ;;  %v13156_v55 = vpop.permute.xlu2 %3929  ;;  %v6025_v26 = vsub.f32 %v13146_v8, %v6024_v0  ;;  %v13201_v37 = vsub.f32 %v13005_v5, %v13189_v49 }
 0xd06   : > { %16482 = vst [vmem:[#allocation22_spill] sm:$0xff] %v13156_v55  ;;  %6153 = vmatpush.msrb.mxu2 %v6012_v16  ;;  %v4171_v62 = vsel %vm16484_vm12, %v16483_v58, %v13154_v28  ;;  %v13165_v3 = vsel %vm16486_vm0, %v16485_v50, %v13156_v55  ;;  %v13167_v6 = vpop.permute.xlu0 %4281  ;;  %v16495_v58 = vld [vmem:[#allocation28_spill] sm:$0xff]  ;;  %vm16548_vm12 = vmmov %vm16535_vm15  ;;  %vm16549_vm0 = vcmask 375808  }
 0xd07   : > { %16487 = vst [vmem:[#allocation49_spill] sm:$0xff] %v13167_v6  ;;  %6183 = vmatpush.msrb.mxu3 %v12966_v23  ;;  %v4288_v32 = vsel %vm16489_vm13, %v16488_v1, %v13167_v6  ;;  %v6026_v16 = vand.u32 4294901760, %v6025_v26  ;;  %v13203_v20 = vand.u32 4294901760, %v4171_v62  ;;  %v16494_v26 = vld [vmem:[#allocation50_spill] sm:$0xff]  ;;  %v16497_v1 = vld [vmem:[#allocation16_spill] sm:$0xff]  ;;  %vm16555_vm13 = vcmask 441344  }
 0xd08   : > { %6157 = vmatpush.msrb.mxu2 %v6018_v40  ;;  %3943 = vst [vmem:[#allocation3 + $0x328] sm:$0xff] %v13165_v3  ;;  %v13179_v60 = vand.u32 4294901760, %v4288_v32 }
 0xd09   : > { %6185 = vmatpush.msrb.mxu3 %v13014_v41  ;;  %6027 = vmatpush.msra.mxu1 %v6026_v16  ;;  %v16498_v16 = vld [vmem:[#allocation42_spill] sm:$0xff]  ;;  %v13228_v9 = vsub.f32 %v4171_v62, %v13203_v20 }
 0xd0a   : > { %6161 = vmatpush.msrb.mxu2 %v6024_v0  ;;  %v13186_v40 = vsub.f32 %v4288_v32, %v13179_v60  ;;  %5953 = vmatpush.msra.mxu0 %v13179_v60  ;;  %v3622_v5 = vmul.f32 %v12756_v54, %v16498_v16 }
 0xd0b   : > { %3695 = vrot.lane.b32.xlu1 %v3681_v31, %s16263_s5  ;;  %3813 = vrot.lane.b32.xlu2 %v3799_v12, %s16262_s3  ;;  %v3740_v31 = vmul.f32 %v12756_v54, %v16499_v38  ;;  %v13221_v12 = vand.u32 4294901760, %v13090_v35 }
 0xd0c   : > { %3931 = vrot.lane.b32.xlu0 %v3917_v11, %s16259_s4  ;;  %6187 = vmatpush.msrb.mxu3 %v12985_v17  ;;  %v6030_v15 = vand.u32 4294901760, %v13186_v40 }
 0xd0d   : > { %6046 = vmatpush.msrb.mxu0 %v12869_v22  ;;  %v9297_v22 = vld [vmem:[#allocation2 + $0x20] sm:$0xff]  ;;  %v13246_v62 = vsub.f32 %v13090_v35, %v13221_v12  ;;  %v16505_v35 = vld [vmem:[#allocation33_spill] sm:$0xff] }
 0xd0e   : > { %6189 = vmatpush.msrb.mxu3 %v13063_v48  ;;  %v13197_v19 = vpop.permute.xlu0 %4047  ;;  %6165 = vmatpush.msrb.mxu2 %v6030_v15  ;;  %v6031_v0 = vsub.f32 %v13186_v40, %v6030_v15  ;;  %v3504_v32 = vmul.f32 %v9297_v22, %v16497_v1  ;;  %v16500_v15 = vld [vmem:[#allocation37_spill] sm:$0xff] }
 0xd0f   : > { %16493 = vst [vmem:[#allocation53_spill] sm:$0xff] %v13197_v19  ;;  %5959 = vmatmul.f32.vlgmr.msra.gmra.mxu0 %v16494_v26  ;;  %v4053_v50 = vsel %vm16496_vm3, %v16495_v58, %v13197_v19  ;;  %v16546_v19 = vand.u32 4294901760, %v13201_v37  ;;  %vm16560_vm3 = vcmask 1039360  }
 0xd10   : > { %6191 = vmatpush.msrb.mxu3 %v13030_v34  ;;  %6049 = vmatpush.msrb.mxu0 %v12932_v2  ;;  %4061 = vst [vmem:[#allocation3 + $0x178] sm:$0xff] %v4053_v50  ;;  %v6032_v46 = vand.u32 4294901760, %v6031_v0  ;;  %v13223_v2 = vand.u32 4294901760, %v4053_v50 }
 0xd11   : > { %6347 = vmatpush.msra.mxu2 %v13201_v37 }
 0xd12   : > { %6193 = vmatpush.msrb.mxu3 %v13040_v43  ;;  %6052 = vmatpush.msrb.mxu0 %v12924_v13  ;;  %v13236_v13 = vld [vmem:[#allocation2 + $0x28] sm:$0xff]  ;;  %v13249_v22 = vsub.f32 %v4053_v50, %v13223_v2 }
 0xd13   : > { %3518 = vrot.lane.b32.xlu1 %v3504_v32, %s16168_s20  ;;  %3636 = vrot.lane.b32.xlu2 %v3622_v5, %s16165_s22  ;;  %v16507_v5 = vld [vmem:[#allocation38_spill] sm:$0xff] }
 0xd14   : > { %3754 = vrot.lane.b32.xlu0 %v3740_v31, %s16170_s16  ;;  %6195 = vmatpush.msrb.mxu3 %v13133_v57  ;;  %v13232_v11 = vpop.permute.xlu1 %3988  ;;  %v4824_v38 = vmul.f32 %v16507_v5, %v13236_v13  ;;  %v16508_v31 = vld [vmem:[#allocation40_spill] sm:$0xff] }
 0xd15   : > { %6055 = vmatpush.msrb.mxu0 %v12978_v4  ;;  %6350 = vmatpush.msra.mxu2 %v13228_v9  ;;  %v3994_v0 = vsel %vm16501_vm4, %v16500_v15, %v13232_v11  ;;  %v13241_v58 = vpop.permute.xlu2 %3752  ;;  %v16503_v4 = vld [vmem:[#allocation29_spill] sm:$0xff] }
 0xd16   : > { %16502 = vst [vmem:[#allocation51_spill] sm:$0xff] %v13241_v58  ;;  %6197 = vmatpush.msrb.mxu3 %v13179_v60  ;;  %6033 = vmatpush.msra.mxu1 %v6032_v46  ;;  %v13254_v1 = vsel %vm784_vm2, %v16503_v4, %v13241_v58  ;;  %v13256_v32 = vpop.permute.xlu0 %3870  ;;  %v13260_v16 = vand.u32 4294901760, %v3994_v0  ;;  %v4706_v46 = vmul.f32 %v16508_v31, %v13236_v13  ;;  %v13282_v4 = vand.u32 4294901760, %v13165_v3  ;;  %v16516_v31 = vld [vmem:[#allocation43_spill] sm:$0xff] }
 0xd17   : > { %4002 = vst [vmem:[#allocation3 + $0x298] sm:$0xff] %v3994_v0  ;;  %6058 = vmatpush.msrb.mxu0 %v13025_v18  ;;  %v3876_v50 = vsel %vm16506_vm7, %v16505_v35, %v13256_v32  ;;  %6353 = vmatpush.msra.mxu2 %v13246_v62  ;;  %v16509_v18 = vld [vmem:[#allocation32_spill] sm:$0xff]  ;;  %v16511_v35 = vld [vmem:[#allocation41_spill] sm:$0xff]  ;;  %vm16565_vm7 = vcmask 392192  }
 0xd18   : > { %16504 = vst [vmem:[#allocation52_spill] sm:$0xff] %v13256_v32  ;;  %6400 = vmatpush.msra.mxu3 %v13189_v49  ;;  %6089 = vmatpush.msrb.mxu1 %v12863_v29  ;;  %v3563_v15 = vmul.f32 %v12756_v54, %v16509_v18  ;;  %v13279_v29 = vsub.f32 %v3994_v0, %v13260_v16 }
 0xd19   : > { %3766 = vst [vmem:[#allocation3 + $0x280] sm:$0xff] %v13254_v1  ;;  %6061 = vmatpush.msrb.mxu0 %v13018_v51  ;;  %6356 = vmatpush.msra.mxu2 %v13249_v22  ;;  %v13288_v51 = vand.u32 4294901760, %v3876_v50  ;;  %v13298_v0 = vsub.f32 %v13165_v3, %v13282_v4 }
 0xd1a   : > { %3884 = vst [vmem:[#allocation3 + $0x2d8] sm:$0xff] %v3876_v50  ;;  %6402 = vmatpush.msra.mxu3 %v13203_v20  ;;  %6091 = vmatpush.msrb.mxu1 %v12920_v14 }
 0xd1b   : > { %4720 = vrot.lane.b32.xlu1 %v4706_v46, %s16263_s5  ;;  %4838 = vrot.lane.b32.xlu2 %v4824_v38, %s16262_s3  ;;  %v13316_v3 = vsub.f32 %v3876_v50, %v13288_v51  ;;  %v4647_v46 = vmul.f32 %v16516_v31, %v13236_v13  ;;  %v16519_v50 = vld [vmem:[#allocation18_spill] sm:$0xff]  ;;  %v4330_v31 = vmul.f32 %v13035_v30, %v12756_v54 }
 0xd1c   : > { %3577 = vrot.lane.b32.xlu0 %v3563_v15, %s16166_s14  ;;  %6404 = vmatpush.msra.mxu3 %v13221_v12  ;;  %v16059_v15 = vand.u32 4294901760, %v13201_v37 }
 0xd1d   : > { %6064 = vmatpush.msrb.mxu0 %v13077_v27  ;;  %6093 = vmatpush.msrb.mxu1 %v12883_v52  ;;  %v13292_v14 = vpop.permute.xlu2 %3634  ;;  %v16514_v52 = vld [vmem:[#allocation39_spill] sm:$0xff] }
 0xd1e   : > { %16510 = vst [vmem:[#allocation56_spill] sm:$0xff] %v13292_v14  ;;  %6406 = vmatpush.msra.mxu3 %v13223_v2  ;;  %6359 = vmatpush.msra.mxu2 %v13279_v29  ;;  %v13303_v5 = vsel %vm16512_vm6, %v16511_v35, %v13292_v14  ;;  %v13305_v38 = vpop.permute.xlu0 %3693  ;;  %v16520_v35 = vld [vmem:[#allocation23_spill] sm:$0xff]  ;;  %vm16572_vm6 = vcmask 457728  }
 0xd1f   : > { %16513 = vst [vmem:[#allocation48_spill] sm:$0xff] %v13305_v38  ;;  %6067 = vmatpush.msrb.mxu0 %v13060_v56  ;;  %6095 = vmatpush.msrb.mxu1 %v12966_v23  ;;  %v3699_v27 = vsel %vm16515_vm8, %v16514_v52, %v13305_v38  ;;  %v4529_v56 = vmul.f32 %v13236_v13, %v12949_v44  ;;  %v16517_v23 = vld [vmem:[#allocation44_spill] sm:$0xff]  ;;  %v16521_v52 = vld [vmem:[#allocation58_spill] sm:$0xff]  ;;  %vm16574_vm8 = vmmov %vm16541_vm14 }
 0xd20   : > { %3648 = vst [vmem:[#allocation3 + $0x340] sm:$0xff] %v13303_v5  ;;  %6408 = vmatpush.msra.mxu3 %v13260_v16  ;;  %6362 = vmatpush.msra.mxu2 %v13298_v0  ;;  %v4765_v18 = vmul.f32 %v16517_v23, %v13236_v13 }
 0xd21   : > { %3707 = vst [vmem:[#allocation3 + $0x8] sm:$0xff] %v3699_v27  ;;  %6070 = vmatpush.msrb.mxu0 %v13071_v25  ;;  %6097 = vmatpush.msrb.mxu1 %v13014_v41  ;;  %v16518_v41 = vld [vmem:[#allocation35_spill] sm:$0xff] }
 0xd22   : > { %6410 = vmatpush.msra.mxu3 %v13282_v4  ;;  %6365 = vmatpush.msra.mxu2 %v13316_v3 }
 0xd23   : > { %4543 = vrot.lane.b32.xlu1 %v4529_v56, %s16168_s20  ;;  %4661 = vrot.lane.b32.xlu2 %v4647_v46, %s16165_s22  ;;  %v6247_v56 = vsub.f32 %v13201_v37, %v16059_v15  ;;  %v3306_v15 = vld [vmem:[%s16529_s6] sm:$0xff]  ;;  %s16700_s20 = sld [smem:[#allocation66_spill]] }
 0xd24   : > { %4779 = vrot.lane.b32.xlu0 %v4765_v18, %s16170_s16  ;;  %6073 = vmatpush.msrb.mxu0 %v13146_v8  ;;  %v13333_v44 = vpop.permute.xlu1 %3811  ;;  %v16056_v8 = vand.u32 4294901760, %v13228_v9  ;;  %v13365_v18 = vand.u32 4294901760, %v13254_v1  ;;  %s16744_s6 = sld [smem:[#allocation67_spill]] }
 0xd25   : > { %6099 = vmatpush.msrb.mxu1 %v12985_v17  ;;  %6412 = vmatpush.msra.mxu3 %v13288_v51  ;;  %v3817_v25 = vsel %vm845_vm11, %v16518_v41, %v13333_v44  ;;  %v13375_v41 = vand.u32 4294901760, %v3699_v27 }
 0xd26   : > { %6076 = vmatpush.msrb.mxu0 %v13186_v40  ;;  %6035 = vmatmul.f32.vlgmr.msra.gmra.mxu1 %v16519_v50  ;;  %3825 = vst [vmem:[#allocation3 + $0xc0] sm:$0xff] %v3817_v25  ;;  %v13344_v17 = vand.u32 4294901760, %v3817_v25  ;;  %v4470_v40 = vmul.f32 %v13236_v13, %v16521_v52  ;;  %v6253_v30 = vsub.f32 %v13228_v9, %v16056_v8  ;;  %v6248_v52 = vand.u32 4294901760, %v6247_v56 }
 0xd27   : > { %6101 = vmatpush.msrb.mxu1 %v13063_v48  ;;  %6167 = vmatmul.f32.vlgmr.msrb.gmra.mxu2 %v16519_v50  ;;  %v16522_v48 = vld [vmem:[#allocation59_spill] sm:$0xff]  ;;  %v16060_v8 = vand.u32 4294901760, %v13316_v3 }
 0xd28   : > { %6204 = vmatpush.msra.mxu0 %v13189_v49  ;;  %v4588_v46 = vmul.f32 %v13236_v13, %v16522_v48  ;;  %6414 = vmatpush.msra.mxu3 %v13344_v17  ;;  %v13362_v23 = vsub.f32 %v3817_v25, %v13344_v17  ;;  %v6254_v56 = vand.u32 4294901760, %v6253_v30  ;;  %v4411_v30 = vmul.f32 %v13236_v13, %v12987_v7 }
 0xd29   : > { %6079 = vmatmul.f32.vlgmr.msrb.gmra.mxu0 %v16520_v35  ;;  %6103 = vmatpush.msrb.mxu1 %v13030_v34  ;;  %v16054_v34 = vand.u32 4294901760, %v13246_v62  ;;  %v4858_v35 = vld [vmem:[#allocation3 + $0xf8] sm:$0xff] }
 0xd2a   : > { %6206 = vmatpush.msra.mxu0 %v13203_v20  ;;  %6368 = vmatpush.msra.mxu2 %v13362_v23  ;;  %v16062_v13 = vand.u32 4294901760, %v13362_v23  ;;  %s9322_s10 = scalar_lea.hbm %s16744_s6, 16 }
 0xd2b   : > { %6105 = vmatpush.msrb.mxu1 %v13040_v43  ;;  %4344 = vrot.lane.b32.xlu1 %v4330_v31, %s16366_s15  ;;  %v16055_v43 = vand.u32 4294901760, %v13249_v22  ;;  %v16524_v31 = vld [vmem:[#allocation55_spill] sm:$0xff] }
 0xd2c   : > { %4484 = vrot.lane.b32.xlu2 %v4470_v40, %s16167_s17  ;;  %4602 = vrot.lane.b32.xlu0 %v4588_v46, %s16166_s14  ;;  %v13386_v40 = vsub.f32 %v13254_v1, %v13365_v18  ;;  %v16058_v46 = vand.u32 4294901760, %v13279_v29  ;;  %v13401_v1 = vsub.f32 %v3699_v27, %v13375_v41  ;;  %v4271_v27 = vmul.f32 %v13099_v24, %v12756_v54 }
 0xd2d   : > { %6208 = vmatpush.msra.mxu0 %v13221_v12  ;;  %6107 = vmatpush.msrb.mxu1 %v13133_v57  ;;  %v13380_v25 = vpop.permute.xlu2 %4718  ;;  %v6259_v57 = vsub.f32 %v13246_v62, %v16054_v34  ;;  %v16057_v34 = vand.u32 4294901760, %v13298_v0 }
 0xd2e   : > { %16523 = vst [vmem:[#allocation46_spill] sm:$0xff] %v13380_v25  ;;  %6416 = vmatpush.msra.mxu3 %v13365_v18  ;;  %v13391_v48 = vsel %vm16525_vm5, %v16524_v31, %v13380_v25  ;;  %6371 = vmatpush.msra.mxu2 %v13386_v40  ;;  %v13404_v31 = vand.u32 4294901760, %v13303_v5  ;;  %vm16577_vm5 = vcmask 384000  }
 0xd2f   : > { %6210 = vmatpush.msra.mxu0 %v13223_v2  ;;  %6109 = vmatpush.msrb.mxu1 %v13179_v60  ;;  %v6265_v60 = vsub.f32 %v13249_v22, %v16055_v43  ;;  %v6271_v43 = vsub.f32 %v13279_v29, %v16058_v46  ;;  %v6277_v24 = vsub.f32 %v13298_v0, %v16057_v34  ;;  %v16528_v34 = vld [vmem:[#allocation21_spill] sm:$0xff]  ;;  %v13496_v38 = vand.u32 4294901760, %v13391_v48 }
 0xd30   : > { %6418 = vmatpush.msra.mxu3 %v13375_v41  ;;  %6374 = vmatpush.msra.mxu2 %v13401_v1  ;;  %v13427_v54 = vsub.f32 %v13303_v5, %v13404_v31  ;;  %v16527_v5 = vld [vmem:[#allocation57_spill] sm:$0xff] }
 0xd31   : > { %6249 = vmatpush.msra.mxu1 %v6248_v52  ;;  %6212 = vmatpush.msra.mxu0 %v13260_v16  ;;  %v6260_v52 = vand.u32 4294901760, %v6259_v57  ;;  %v6266_v7 = vand.u32 4294901760, %v6265_v60  ;;  %v6272_v60 = vand.u32 4294901760, %v6271_v43  ;;  %v6278_v46 = vand.u32 4294901760, %v6277_v24 }
 0xd32   : > { %6420 = vmatpush.msra.mxu3 %v13404_v31  ;;  %6377 = vmatpush.msra.mxu2 %v13427_v54  ;;  %v16066_v43 = vand.u32 4294901760, %v13401_v1 }
 0xd33   : > { %6255 = vmatpush.msra.mxu1 %v6254_v56  ;;  %6214 = vmatpush.msra.mxu0 %v13282_v4  ;;  %v16063_v56 = vand.u32 4294901760, %v13386_v40 }
 0xd34   : > { %4285 = vrot.lane.b32.xlu2 %v4271_v27, %s16292_s29  ;;  %4425 = vrot.lane.b32.xlu0 %v4411_v30, %s16359_s2  ;;  %v6283_v27 = vsub.f32 %v13316_v3, %v16060_v8 }
 0xd35   : > { %6216 = vmatpush.msra.mxu0 %v13288_v51  ;;  %6261 = vmatpush.msra.mxu1 %v6260_v52  ;;  %v13434_v57 = vpop.permute.xlu1 %4836  ;;  %v4866_v52 = vld [vmem:[#allocation3 + $0x318] sm:$0xff] }
 0xd36   : > { %16526 = vst [vmem:[#allocation24_spill] sm:$0xff] %v13434_v57  ;;  %6199 = vmatmul.f32.vlgmr.msrb.gmra.mxu3 %v16519_v50  ;;  %v4842_v30 = vsel %vm845_vm11, %v16527_v5, %v13434_v57  ;;  %6113 = vmatmul.f32.vlgmr.msrb.gmra.mxu1 %v16528_v34  ;;  %v6295_v5 = vsub.f32 %v13386_v40, %v16063_v56  ;;  %v13458_v8 = vand.u32 4294901760, %v4866_v52  ;;  %v4862_v34 = vld [vmem:[#allocation3 + $0x138] sm:$0xff]  ;;  %v6284_v24 = vand.u32 4294901760, %v6283_v27 }
 0xd37   : > { %6218 = vmatpush.msra.mxu0 %v13344_v17  ;;  %6267 = vmatpush.msra.mxu1 %v6266_v7  ;;  %v6289_v7 = vsub.f32 %v13362_v23, %v16062_v13  ;;  %v13460_v25 = vand.u32 4294901760, %v4842_v30  ;;  %v6301_v56 = vsub.f32 %v13401_v1, %v16066_v43  ;;  %v13468_v58 = vand.u32 4294901760, %v4862_v34 }
 0xd38   : > { %v13475_v27 = vsub.f32 %v4866_v52, %v13458_v8  ;;  %v16538_v52 = vand.u32 4294901760, %v13427_v54  ;;  %v13525_v57 = vsub.f32 %v13391_v48, %v13496_v38 }
 0xd39   : > { %6220 = vmatpush.msra.mxu0 %v13365_v18  ;;  %6273 = vmatpush.msra.mxu1 %v6272_v60  ;;  %v6290_v13 = vand.u32 4294901760, %v6289_v7  ;;  %16530 = vst [vmem:[#allocation25_spill] sm:$0xff] %v13468_v58  ;;  %v13477_v60 = vand.u32 4294901760, %v4858_v35  ;;  %v16534_v7 = vld [vmem:[#allocation54_spill] sm:$0xff] }
 0xd3b   : > { %6222 = vmatpush.msra.mxu0 %v13375_v41  ;;  %6279 = vmatpush.msra.mxu1 %v6278_v46  ;;  %v6296_v46 = vand.u32 4294901760, %v6295_v5  ;;  %16533 = vst [vmem:[#allocation27_spill] sm:$0xff] %v13477_v60  ;;  %v6307_v5 = vsub.f32 %v13427_v54, %v16538_v52 }
 0xd3c   : > { %4962 = vperm.xlu0 %9275, %v3306_v15   ;;  %v13480_v15 = vsub.f32 %v4842_v30, %v13460_v25 }
 0xd3d   : > { %6224 = vmatpush.msra.mxu0 %v13404_v31  ;;  %6285 = vmatpush.msra.mxu1 %v6284_v24  ;;  %v13470_v50 = vpop.permute.xlu1 %3575  ;;  %v13472_v26 = vpop.permute.xlu2 %4541 }
 0xd3e   : > { %16531 = vst [vmem:[#allocation31_spill] sm:$0xff] %v13470_v50  ;;  %v3581_v24 = vsel %vm16535_vm15, %v16534_v7, %v13470_v50  ;;  %v13488_v43 = vsel %vm16536_vm10, %v12892_v21, %v13472_v26  ;;  %v13490_v55 = vpop.permute.xlu0 %4777  ;;  %v9298_v50 = vld [vmem:[#allocation3 + $0x10] sm:$0xff]  ;;  %vm16583_vm15 = vcmask 523264   ;;  %vm16586_vm10 = vcmask 449536  }
 0xd3f   : > { %16532 = vst [vmem:[#allocation20_spill] sm:$0xff] %v13472_v26  ;;  %6291 = vmatpush.msra.mxu1 %v6290_v13  ;;  %v4783_v30 = vsel %vm784_vm2, %v12897_v53, %v13490_v55  ;;  %v13501_v7 = vand.u32 4294901760, %v3581_v24  ;;  %v13503_v21 = vand.u32 4294901760, %v9298_v50  ;;  %v6302_v13 = vand.u32 4294901760, %v6301_v56 }
 0xd40   : > { %16537 = vst [vmem:[#allocation19_spill] sm:$0xff] %v13490_v55  ;;  %v13506_v26 = vsub.f32 %v4862_v34, %v13468_v58  ;;  %v13508_v45 = vand.u32 4294901760, %v4783_v30  ;;  %v13516_v53 = vsub.f32 %v4858_v35, %v13477_v60  ;;  %v16075_v55 = vand.u32 4294901760, %v13480_v15 }
 0xd41   : > { %3589 = vst [vmem:[#allocation3 + $0x198] sm:$0xff] %v3581_v24  ;;  %6297 = vmatpush.msra.mxu1 %v6296_v46  ;;  %6226 = vmatpush.msra.mxu0 %v13501_v7  ;;  %v13513_v52 = vsub.f32 %v3581_v24, %v13501_v7  ;;  %v6308_v46 = vand.u32 4294901760, %v6307_v5  ;;  %v16078_v56 = vand.u32 4294901760, %v13475_v27  ;;  %v13531_v24 = vsub.f32 %v9298_v50, %v13503_v21 }
 0xd42   : > { %16539 = vst [vmem:[#allocation34_spill] sm:$0xff] %v13503_v21  ;;  %6422 = vmatpush.msra.mxu3 %v13501_v7  ;;  %v13521_v34 = vsub.f32 %v4783_v30, %v13508_v45  ;;  %v6588_v50 = vsub.f32 %v13480_v15, %v16075_v55  ;;  %v16543_v30 = vand.u32 4294901760, %v13506_v26 }
 0xd43   : > { %6303 = vmatpush.msra.mxu1 %v6302_v13  ;;  %6228 = vmatpush.msra.mxu0 %v13458_v8  ;;  %v16074_v35 = vand.u32 4294901760, %v13513_v52 }
 0xd44   : > { %6380 = vmatpush.msra.mxu2 %v13513_v52  ;;  %6424 = vmatpush.msra.mxu3 %v13458_v8  ;;  %v16542_v6 = vand.u32 4294901760, %v13521_v34  ;;  %v6325_v5 = vsub.f32 %v13506_v26, %v16543_v30  ;;  %v16545_v30 = vand.u32 4294901760, %v13516_v53 }
 0xd45   : > { %6309 = vmatpush.msra.mxu1 %v6308_v46  ;;  %6230 = vmatpush.msra.mxu0 %v13468_v58  ;;  %v6313_v48 = vsub.f32 %v13513_v52, %v16074_v35  ;;  %v6319_v46 = vsub.f32 %v13475_v27, %v16078_v56 }
 0xd46   : > { %6383 = vmatpush.msra.mxu2 %v13475_v27  ;;  %v13544_v13 = vpop.permute.xlu0 %4659  ;;  %6426 = vmatpush.msra.mxu3 %v13468_v58  ;;  %v6594_v56 = vsub.f32 %v13521_v34, %v16542_v6  ;;  %v16544_v6 = vand.u32 4294901760, %v13525_v57 }
 0xd47   : > { %16540 = vst [vmem:[#allocation30_spill] sm:$0xff] %v13544_v13  ;;  %v4665_v35 = vsel %vm16541_vm14, %v12939_v39, %v13544_v13  ;;  %6232 = vmatpush.msra.mxu0 %v13477_v60  ;;  %v6314_v55 = vand.u32 4294901760, %v6313_v48  ;;  %v13568_v39 = vand.u32 4294901760, %v13488_v43  ;;  %v6589_v48 = vand.u32 4294901760, %v6588_v50 }
 0xd48   : > { %6386 = vmatpush.msra.mxu2 %v13506_v26  ;;  %6428 = vmatpush.msra.mxu3 %v13477_v60  ;;  %v13565_v58 = vand.u32 4294901760, %v4665_v35  ;;  %v6320_v32 = vand.u32 4294901760, %v6319_v46  ;;  %v6600_v13 = vsub.f32 %v13525_v57, %v16544_v6  ;;  %v6331_v60 = vsub.f32 %v13516_v53, %v16545_v30 }
 0xd49   : > { %6234 = vmatpush.msra.mxu0 %v13503_v21  ;;  %6315 = vmatpush.msra.mxu1 %v6314_v55  ;;  %v16547_v55 = vand.u32 4294901760, %v13531_v24  ;;  %v6595_v6 = vand.u32 4294901760, %v6594_v56  ;;  %v6326_v30 = vand.u32 4294901760, %v6325_v5  ;;  %v13595_v37 = vsub.f32 %v13488_v43, %v13568_v39 }
 0xd4a   : > { %6389 = vmatpush.msra.mxu2 %v13516_v53  ;;  %6430 = vmatpush.msra.mxu3 %v13503_v21  ;;  %v13580_v14 = vsub.f32 %v4665_v35, %v13565_v58  ;;  %v6601_v43 = vand.u32 4294901760, %v6600_v13  ;;  %v6332_v5 = vand.u32 4294901760, %v6331_v60  ;;  %vm16588_vm14 = vcmask 916480  }
 0xd4b   : > { %6441 = vmatpush.msrb.mxu0 %v16546_v19  ;;  %v6337_v50 = vsub.f32 %v13531_v24, %v16547_v55  ;;  %6321 = vmatpush.msra.mxu1 %v6320_v32  ;;  %v16550_v32 = vand.u32 4294901760, %v13228_v9  ;;  %v16551_v9 = vand.u32 4294901760, %v13246_v62 }
 0xd4c   : > { %6590 = vmatpush.msrb.mxu3 %v6589_v48  ;;  %v13587_v46 = vpop.permute.xlu1 %4600  ;;  %6392 = vmatpush.msra.mxu2 %v13531_v24  ;;  %v16085_v35 = vand.u32 4294901760, %v13580_v14 }
 0xd4d   : > { %v13589_v21 = vpop.permute.xlu2 %4342  ;;  %v4606_v19 = vsel %vm16548_vm12, %v12997_v59, %v13587_v46  ;;  %6445 = vmatpush.msrb.mxu0 %v16550_v32  ;;  %6327 = vmatpush.msra.mxu1 %v6326_v30  ;;  %v6338_v32 = vand.u32 4294901760, %v6337_v50  ;;  %v6617_v30 = vand.u32 4294901760, %v13595_v37  ;;  %v16553_v50 = vand.u32 4294901760, %v13279_v29  ;;  %vm16590_vm12 = vmmov %vm16574_vm8 }
 0xd4e   : > { %v13603_v48 = vsel %vm16549_vm0, %v13122_v63, %v13589_v21  ;;  %6550 = vmatpush.msrb.mxu2 %v13460_v25  ;;  %v13608_v56 = vpop.permute.xlu0 %4482  ;;  %6596 = vmatpush.msrb.mxu3 %v6595_v6  ;;  %v6606_v59 = vsub.f32 %v13580_v14, %v16085_v35  ;;  %v13613_v55 = vand.u32 4294901760, %v4606_v19  ;;  %v16552_v35 = vand.u32 4294901760, %v13249_v22 }
 0xd4f   : > { %v4488_v63 = vsel %vm459_vm9, %v13045_v42, %v13608_v56  ;;  %6449 = vmatpush.msrb.mxu0 %v16551_v9  ;;  %6333 = vmatpush.msra.mxu1 %v6332_v5  ;;  %v16554_v5 = vld [vmem:[#allocation47_spill] sm:$0xff]  ;;  %v16557_v9 = vand.u32 4294901760, %v13316_v3  ;;  %v13669_v3 = vand.u32 4294901760, %v13603_v48  ;;  %vm16592_vm0 = vcmask 515072  }
 0xd50   : > { %6552 = vmatpush.msrb.mxu2 %v13508_v45  ;;  %6602 = vmatpush.msrb.mxu3 %v6601_v43  ;;  %v6607_v13 = vand.u32 4294901760, %v6606_v59  ;;  %v13621_v60 = vand.u32 4294901760, %v4488_v63  ;;  %v13624_v6 = vsub.f32 %v4606_v19, %v13613_v55 }
 0xd51   : > { %6453 = vmatpush.msrb.mxu0 %v16552_v35  ;;  %6339 = vmatpush.msra.mxu1 %v6338_v32  ;;  %v6618_v35 = vsub.f32 %v13595_v37, %v6617_v30  ;;  %v16558_v32 = vand.u32 4294901760, %v13362_v23 }
 0xd52   : > { %6554 = vmatpush.msrb.mxu2 %v13496_v38  ;;  %6608 = vmatpush.msrb.mxu3 %v6607_v13  ;;  %v6611_v42 = vand.u32 4294901760, %v13624_v6  ;;  %v13632_v62 = vsub.f32 %v4488_v63, %v13621_v60 }
 0xd53   : > { %6457 = vmatpush.msrb.mxu0 %v16553_v50  ;;  %6508 = vmatpush.msrb.mxu1 %v13189_v49  ;;  %v16556_v49 = vand.u32 4294901760, %v13298_v0  ;;  %v9299_v0 = vld [vmem:[#allocation3 + $0x118] sm:$0xff] }
 0xd54   : > { %6556 = vmatpush.msrb.mxu2 %v13565_v58  ;;  %v6612_v22 = vsub.f32 %v13624_v6, %v6611_v42  ;;  %v6623_v43 = vand.u32 4294901760, %v13632_v62  ;;  %6240 = vmatmul.f32.vlgmr.msra.gmra.mxu0 %v16554_v5 }
 0xd55   : > { %v4168_v19 = vpop.permute.xlu2 %4167  ;;  %6461 = vmatpush.msrb.mxu0 %v16556_v49  ;;  %6510 = vmatpush.msrb.mxu1 %v13203_v20  ;;  %v13662_v20 = vand.u32 4294901760, %v9299_v0 }
 0xd56   : > { %v13648_v29 = vsel %vm16555_vm13, %v13154_v28, %v4168_v19  ;;  %6558 = vmatpush.msrb.mxu2 %v13613_v55  ;;  %v6613_v59 = vand.u32 4294901760, %v6612_v22  ;;  %v6624_v63 = vsub.f32 %v13632_v62, %v6623_v43  ;;  %6341 = vmatmul.f32.vlgmr.msra.gmra.mxu1 %v12126_v61  ;;  %v6619_v28 = vand.u32 4294901760, %v6618_v35 }
 0xd57   : > { %6465 = vmatpush.msrb.mxu0 %v16557_v9  ;;  %6512 = vmatpush.msrb.mxu1 %v13221_v12  ;;  %v16559_v12 = vand.u32 4294901760, %v13386_v40  ;;  %v13677_v23 = vsub.f32 %v9299_v0, %v13662_v20  ;;  %v16561_v40 = vand.u32 4294901760, %v13401_v1  ;;  %v13694_v35 = vsub.f32 %v13603_v48, %v13669_v3 }
 0xd58   : > { %6560 = vmatpush.msrb.mxu2 %v13568_v39  ;;  %6614 = vmatpush.msrb.mxu3 %v6613_v59  ;;  %v6625_v13 = vand.u32 4294901760, %v6624_v63  ;;  %v16563_v1 = vand.u32 4294901760, %v13513_v52  ;;  %v16567_v0 = vand.u32 4294901760, %v13516_v53  ;;  %vm16596_vm13 = vcmask 982016  }
 0xd59   : > { %6469 = vmatpush.msrb.mxu0 %v16558_v32  ;;  %6514 = vmatpush.msrb.mxu1 %v13223_v2 }
 0xd5a   : > { %6562 = vmatpush.msrb.mxu2 %v13621_v60  ;;  %6620 = vmatpush.msrb.mxu3 %v6619_v28 }
 0xd5b   : > { %6473 = vmatpush.msrb.mxu0 %v16559_v12  ;;  %6516 = vmatpush.msrb.mxu1 %v13260_v16 }
 0xd5c   : > { %v13674_v50 = vpop.permute.xlu1 %4423  ;;  %6626 = vmatpush.msrb.mxu3 %v6625_v13  ;;  %6395 = vmatmul.f32.vlgmr.msra.gmra.mxu2 %v12133_v10  ;;  %v16571_v13 = vld [vmem:[#allocation53_spill] sm:$0xff] }
 0xd5d   : > { %v3991_v19 = vpop.permute.xlu2 %3990  ;;  %v4429_v2 = vsel %vm16560_vm3, %v12944_v33, %v13674_v50  ;;  %6477 = vmatpush.msrb.mxu0 %v16561_v40  ;;  %6518 = vmatpush.msrb.mxu1 %v13282_v4  ;;  %v16562_v33 = vand.u32 4294901760, %v13427_v54  ;;  %v6635_v4 = vand.u32 4294901760, %v13677_v23  ;;  %v6641_v54 = vand.u32 4294901760, %v13694_v35  ;;  %vm16605_vm3 = vmmov %vm16577_vm5 }
 0xd5e   : > { %v13685_v22 = vsel %vm16501_vm4, %v13232_v11, %v3991_v19  ;;  %v13690_v16 = vand.u32 4294901760, %v4429_v2  ;;  %6434 = vmatmul.f32.vlgmr.msra.gmra.mxu3 %v12151_v36  ;;  %vm16607_vm4 = vcmask 973824  }
 0xd5f   : > { %4003 = vst [vmem:[#allocation3 + $0x310] sm:$0xff] %v13685_v22  ;;  %6481 = vmatpush.msrb.mxu0 %v16562_v33  ;;  %6520 = vmatpush.msrb.mxu1 %v13288_v51  ;;  %v16564_v51 = vand.u32 4294901760, %v13475_v27  ;;  %v6642_v28 = vsub.f32 %v13694_v35, %v6641_v54  ;;  %v16578_v33 = vand.u32 4294901760, %v13525_v57 }
 0xd60   : > { %6564 = vmatpush.msrb.mxu2 %v13690_v16  ;;  %v13703_v11 = vsub.f32 %v4429_v2, %v13690_v16  ;;  %v16575_v2 = vld [vmem:[#allocation25_spill] sm:$0xff] }
 0xd61   : > { %6485 = vmatpush.msrb.mxu0 %v16563_v1  ;;  %6522 = vmatpush.msrb.mxu1 %v13344_v17  ;;  %v6636_v17 = vsub.f32 %v13677_v23, %v6635_v4  ;;  %v16579_v1 = vld [vmem:[#allocation27_spill] sm:$0xff] }
 0xd62   : > { %6566 = vmatpush.msrb.mxu2 %v13662_v20  ;;  %v6629_v48 = vand.u32 4294901760, %v13703_v11 }
 0xd63   : > { %6489 = vmatpush.msrb.mxu0 %v16564_v51  ;;  %6524 = vmatpush.msrb.mxu1 %v13365_v18  ;;  %v16566_v18 = vand.u32 4294901760, %v13506_v26  ;;  %v16569_v26 = vand.u32 4294901760, %v13480_v15 }
 0xd64   : > { %v4227_v49 = vpop.permute.xlu1 %4226  ;;  %6568 = vmatpush.msrb.mxu2 %v13669_v3  ;;  %v6630_v52 = vsub.f32 %v13703_v11, %v6629_v48 }
 0xd65   : > { %v3814_v59 = vpop.permute.xlu2 %3813  ;;  %v13724_v63 = vsel %vm16565_vm7, %v12992_v47, %v4227_v49  ;;  %6493 = vmatpush.msrb.mxu0 %v16566_v18  ;;  %6526 = vmatpush.msrb.mxu1 %v13375_v41  ;;  %v6637_v47 = vand.u32 4294901760, %v6636_v17  ;;  %v6643_v41 = vand.u32 4294901760, %v6642_v28  ;;  %v16580_v49 = vand.u32 4294901760, %v13580_v14  ;;  %v16582_v28 = vld [vmem:[#allocation52_spill] sm:$0xff]  ;;  %vm16615_vm7 = vmmov %vm16596_vm13 }
 0xd66   : > { %v13728_v27 = vsel %vm845_vm11, %v13333_v44, %v3814_v59  ;;  %v6631_v9 = vand.u32 4294901760, %v6630_v52  ;;  %v16568_v44 = vand.u32 4294901760, %v13531_v24  ;;  %v16581_v59 = vld [vmem:[#allocation34_spill] sm:$0xff] }
 0xd67   : > { %3826 = vst [vmem:[#allocation3 + $0x60] sm:$0xff] %v13728_v27  ;;  %6497 = vmatpush.msrb.mxu0 %v16567_v0  ;;  %6528 = vmatpush.msrb.mxu1 %v13404_v31  ;;  %v16570_v31 = vand.u32 4294901760, %v13521_v34 }
 0xd68   : > { %6632 = vmatpush.msrb.mxu3 %v6631_v9 }
 0xd69   : > { %6501 = vmatpush.msrb.mxu0 %v16568_v44  ;;  %6530 = vmatpush.msrb.mxu1 %v13501_v7  ;;  %v16573_v7 = vld [vmem:[#allocation56_spill] sm:$0xff] }
 0xd6a   : > { %6638 = vmatpush.msrb.mxu3 %v6637_v47  ;;  %6503 = vmatmul.f32.vlgmr.msrb.gmra.mxu0 %v12126_v61 }
 0xd6b   : > { %6742 = vmatpush.msra.mxu0 %v16569_v26  ;;  %6532 = vmatpush.msrb.mxu1 %v13458_v8  ;;  %v16576_v8 = vld [vmem:[#allocation49_spill] sm:$0xff] }
 0xd6c   : > { %v4050_v53 = vpop.permute.xlu1 %4049  ;;  %6644 = vmatpush.msrb.mxu3 %v6643_v41  ;;  %v16585_v26 = vld [vmem:[#allocation45_spill] sm:$0xff] }
 0xd6d   : > { %v3637_v32 = vpop.permute.xlu2 %3636  ;;  %6746 = vmatpush.msra.mxu0 %v16570_v31  ;;  %v13751_v24 = vsel %vm16572_vm6, %v16571_v13, %v4050_v53  ;;  %v13757_v19 = vpop.permute.xlu0 %4283  ;;  %6534 = vmatpush.msrb.mxu1 %v16575_v2  ;;  %v16589_v53 = vld [vmem:[#allocation30_spill] sm:$0xff]  ;;  %vm16625_vm6 = vcmask 375808  }
 0xd6e   : > { %v13755_v12 = vsel %vm16574_vm8, %v16573_v7, %v3637_v32  ;;  %4062 = vst [vmem:[#allocation3 + $0x200] sm:$0xff] %v13751_v24  ;;  %v4289_v40 = vsel %vm16577_vm5, %v16576_v8, %v13757_v19  ;;  %vm16627_vm8 = vmmov %vm16607_vm4  ;;  %vm16639_vm5 = vcmask 1039360  }
 0xd6f   : > { %6750 = vmatpush.msra.mxu0 %v16578_v33  ;;  %3649 = vst [vmem:[#allocation3 + $0x110] sm:$0xff] %v13755_v12  ;;  %6536 = vmatpush.msrb.mxu1 %v16579_v1  ;;  %v13768_v51 = vand.u32 4294901760, %v4289_v40 }
 0xd71   : > { %6754 = vmatpush.msra.mxu0 %v16580_v49  ;;  %6538 = vmatpush.msrb.mxu1 %v16581_v59  ;;  %v13775_v52 = vsub.f32 %v4289_v40, %v13768_v51 }
 0xd72   : > { %6570 = vmatpush.msrb.mxu2 %v13768_v51  ;;  %6540 = vmatmul.f32.vlgmr.msrb.gmra.mxu1 %v12126_v61 }
 0xd73   : > { %6758 = vmatpush.msra.mxu0 %v6611_v42  ;;  %6794 = vmatpush.msra.mxu1 %v13460_v25  ;;  %v6647_v17 = vand.u32 4294901760, %v13775_v52  ;;  %v16584_v42 = vld [vmem:[#allocation24_spill] sm:$0xff] }
 0xd74   : > { %6663 = vmatpush.msra.mxu2 %v13480_v15 }
 0xd75   : > { %v3873_v18 = vpop.permute.xlu1 %3872  ;;  %v4839_v9 = vpop.permute.xlu2 %4838  ;;  %6762 = vmatpush.msra.mxu0 %v6617_v30  ;;  %6796 = vmatpush.msra.mxu1 %v13508_v45  ;;  %v6648_v44 = vsub.f32 %v13775_v52, %v6647_v17 }
 0xd76   : > { %v13788_v0 = vsel %vm16583_vm15, %v16582_v28, %v3873_v18  ;;  %v13792_v47 = vsel %vm845_vm11, %v16584_v42, %v4839_v9  ;;  %v4109_v15 = vpop.permute.xlu0 %4108  ;;  %6666 = vmatpush.msra.mxu2 %v13521_v34  ;;  %v13811_v34 = vand.u32 4294901760, %v13724_v63  ;;  %v16603_v18 = vld [vmem:[#allocation46_spill] sm:$0xff]  ;;  %vm16699_vm15 = vcmask 1048136  }
 0xd77   : > { %3885 = vst [vmem:[#allocation3 + $0xb0] sm:$0xff] %v13788_v0  ;;  %v4113_v30 = vsel %vm16586_vm10, %v16585_v26, %v4109_v15  ;;  %6766 = vmatpush.msra.mxu0 %v6623_v43  ;;  %6798 = vmatpush.msra.mxu1 %v13496_v38  ;;  %v6649_v41 = vand.u32 4294901760, %v6648_v44  ;;  %v13894_v49 = vand.u32 4294901760, %v13788_v0  ;;  %v16606_v44 = vld [vmem:[#allocation31_spill] sm:$0xff]  ;;  %vm16702_vm10 = vmmov %vm16605_vm3 }
 0xd78   : > { %6669 = vmatpush.msra.mxu2 %v13525_v57  ;;  %4121 = vst [vmem:[#allocation3 + $0xa8] sm:$0xff] %v4113_v30  ;;  %v13837_v31 = vsub.f32 %v13724_v63, %v13811_v34  ;;  %v13841_v13 = vand.u32 4294901760, %v4113_v30  ;;  %v13852_v63 = vand.u32 4294901760, %v13751_v24 }
 0xd79   : > { %6770 = vmatpush.msra.mxu0 %v6629_v48  ;;  %6800 = vmatpush.msra.mxu1 %v13565_v58  ;;  %16599 = vst [vmem:[#allocation28_spill] sm:$0xff] %v13894_v49 }
 0xd7a   : > { %6672 = vmatpush.msra.mxu2 %v13580_v14  ;;  %6650 = vmatpush.msrb.mxu3 %v6649_v41  ;;  %v13819_v14 = vand.u32 4294901760, %v13648_v29  ;;  %v13874_v40 = vsub.f32 %v13751_v24, %v13852_v63 }
 0xd7b   : > { %6774 = vmatpush.msra.mxu0 %v6635_v4  ;;  %6802 = vmatpush.msra.mxu1 %v13613_v55  ;;  %v16587_v4 = vld [vmem:[#allocation48_spill] sm:$0xff] }
 0xd7c   : > { %6675 = vmatpush.msra.mxu2 %v13624_v6  ;;  %6706 = vmatpush.msra.mxu3 %v13460_v25  ;;  %v16591_v25 = vld [vmem:[#allocation22_spill] sm:$0xff] }
 0xd7d   : > { %v3696_v57 = vpop.permute.xlu1 %3695  ;;  %v4662_v43 = vpop.permute.xlu2 %4661  ;;  %6778 = vmatpush.msra.mxu0 %v6641_v54  ;;  %6804 = vmatpush.msra.mxu1 %v13568_v39 }
 0xd7e   : > { %v13823_v48 = vsel %vm16588_vm14, %v16587_v4, %v3696_v57  ;;  %v13827_v32 = vsel %vm16590_vm12, %v16589_v53, %v4662_v43  ;;  %v3932_v6 = vpop.permute.xlu0 %3931  ;;  %6678 = vmatpush.msra.mxu2 %v13595_v37  ;;  %6708 = vmatpush.msra.mxu3 %v13508_v45  ;;  %v16593_v45 = vld [vmem:[#allocation50_spill] sm:$0xff]  ;;  %v13847_v37 = vsub.f32 %v13648_v29, %v13819_v14  ;;  %v13862_v29 = vand.u32 4294901760, %v13685_v22  ;;  %v13963_v4 = vpop.f32.mrf.mxu2  ;;  %vm16704_vm12 = vmmov %vm16607_vm4 }
 0xd7f   : > { %3708 = vst [vmem:[#allocation3 + $0x120] sm:$0xff] %v13823_v48  ;;  %v3936_v54 = vsel %vm16592_vm0, %v16591_v25, %v3932_v6  ;;  %6782 = vmatpush.msra.mxu0 %v6647_v17  ;;  %6806 = vmatpush.msra.mxu1 %v13621_v60  ;;  %v16086_v57 = vand.u32 4294901760, %v13874_v40  ;;  %v13965_v53 = vpop.f32.mrf.mxu1  ;;  %vm16705_vm0 = vcmask 965632  }
 0xd80   : > { %6681 = vmatpush.msra.mxu2 %v13632_v62  ;;  %6710 = vmatpush.msra.mxu3 %v13496_v38  ;;  %3944 = vst [vmem:[#allocation3 + $0x290] sm:$0xff] %v3936_v54  ;;  %v16594_v38 = vld [vmem:[#allocation18_spill] sm:$0xff]  ;;  %v13859_v62 = vsub.f32 %v4113_v30, %v13841_v13  ;;  %v13876_v33 = vand.u32 4294901760, %v3936_v54  ;;  %v13891_v24 = vsub.f32 %v13685_v22, %v13862_v29  ;;  %v16091_v22 = vand.u32 4294901760, %v13837_v31  ;;  %v13945_v30 = vpop.f32.mrf.mxu0 }
 0xd81   : > { %6964 = vmatpush.msrb.mxu0 %v13837_v31  ;;  %6576 = vmatmul.f32.vlgmr.msrb.gmra.mxu2 %v16593_v45 }
 0xd82   : > { %6808 = vmatpush.msra.mxu1 %v13690_v16  ;;  %6684 = vmatpush.msra.mxu2 %v13703_v11  ;;  %v16595_v11 = vld [vmem:[#allocation17_spill] sm:$0xff]  ;;  %16597 = vst [vmem:[#allocation26_spill] sm:$0xff] %v13876_v33  ;;  %v6864_v42 = vsub.f32 %v13837_v31, %v16091_v22 }
 0xd83   : > { %6712 = vmatpush.msra.mxu3 %v13565_v58  ;;  %6967 = vmatpush.msrb.mxu0 %v13847_v37 }
 0xd84   : > { %6810 = vmatpush.msra.mxu1 %v13662_v20  ;;  %6652 = vmatmul.f32.vlgmr.msrb.gmra.mxu3 %v16594_v38  ;;  %v6865_v6 = vand.u32 4294901760, %v6864_v42 }
 0xd85   : > { %v3519_v7 = vpop.permute.xlu1 %3518  ;;  %6687 = vmatpush.msra.mxu2 %v13677_v23  ;;  %6714 = vmatpush.msra.mxu3 %v13613_v55  ;;  %v16598_v23 = vld [vmem:[#allocation51_spill] sm:$0xff] }
 0xd86   : > { %v13868_v58 = vsel %vm16596_vm13, %v16595_v11, %v3519_v7  ;;  %v4485_v2 = vpop.permute.xlu2 %4484  ;;  %v3755_v8 = vpop.permute.xlu0 %3754  ;;  %6970 = vmatpush.msrb.mxu0 %v13859_v62  ;;  %6812 = vmatpush.msra.mxu1 %v13669_v3  ;;  %v16088_v7 = vand.u32 4294901760, %v13891_v24 }
 0xd87   : > { %3531 = vst [vmem:[#allocation3 + $0x20] sm:$0xff] %v13868_v58  ;;  %v13881_v55 = vsel %vm459_vm9, %v13608_v56, %v4485_v2  ;;  %v3759_v1 = vsel %vm784_vm2, %v16598_v23, %v3755_v8  ;;  %6690 = vmatpush.msra.mxu2 %v13694_v35  ;;  %6716 = vmatpush.msra.mxu3 %v13568_v39  ;;  %v13904_v56 = vand.u32 4294901760, %v13728_v27  ;;  %v16601_v35 = vld [vmem:[#allocation23_spill] sm:$0xff]  ;;  %vm16604_vm9 = vmmov %vm16588_vm14  ;;  %v13979_v11 = vpop.f32.mrf.mxu3  ;;  %v4863_v23 = vld [vmem:[#allocation3 + $0xf0] sm:$0xff] }
 0xd88   : > { %6973 = vmatpush.msrb.mxu0 %v13874_v40  ;;  %6814 = vmatpush.msra.mxu1 %v13768_v51  ;;  %3767 = vst [vmem:[#allocation3 + $0x260] sm:$0xff] %v3759_v1  ;;  %v13901_v39 = vsub.f32 %v3936_v54, %v13876_v33  ;;  %v13915_v59 = vand.u32 4294901760, %v3759_v1  ;;  %v6882_v8 = vsub.f32 %v13874_v40, %v16086_v57  ;;  %v14012_v57 = vand.u32 4294901760, %v4863_v23  ;;  %vm16703_vm14 = vmmov %vm16625_vm6 }
 0xd89   : > { %6693 = vmatpush.msra.mxu2 %v13775_v52  ;;  %6718 = vmatpush.msra.mxu3 %v13621_v60  ;;  %16600 = vst [vmem:[#allocation16_spill] sm:$0xff] %v13904_v56  ;;  %v13913_v60 = vsub.f32 %v13788_v0, %v13894_v49  ;;  %v16089_v52 = vand.u32 4294901760, %v13847_v37  ;;  %v13928_v0 = vsub.f32 %v13728_v27, %v13904_v56  ;;  %v13943_v27 = vand.u32 4294901760, %v13823_v48 }
 0xd8a   : > { %6976 = vmatpush.msrb.mxu0 %v13891_v24  ;;  %7017 = vmatpush.msrb.mxu1 %v13811_v34  ;;  %16602 = vst [vmem:[#allocation42_spill] sm:$0xff] %v13915_v59  ;;  %v13950_v41 = vsub.f32 %v3759_v1, %v13915_v59 }
 0xd8b   : > { %6696 = vmatmul.f32.vlgmr.msra.gmra.mxu2 %v16601_v35  ;;  %6720 = vmatpush.msra.mxu3 %v13690_v16  ;;  %16608 = vst [vmem:[#allocation36_spill] sm:$0xff] %v13943_v27  ;;  %v13976_v54 = vsub.f32 %v13823_v48, %v13943_v27 }
 0xd8c   : > { %6821 = vmatpush.msrb.mxu2 %v13811_v34  ;;  %6979 = vmatpush.msrb.mxu0 %v13901_v39  ;;  %16617 = vst [vmem:[#allocation40_spill] sm:$0xff] %v14012_v57 }
 0xd8d   : > { %v4721_v17 = vpop.permute.xlu1 %4720  ;;  %7019 = vmatpush.msrb.mxu1 %v13819_v14  ;;  %6722 = vmatpush.msra.mxu3 %v13662_v20  ;;  %v16087_v20 = vand.u32 4294901760, %v13859_v62 }
 0xd8e   : > { %v13922_v16 = vsel %vm16604_vm9, %v16603_v18, %v4721_v17  ;;  %v4286_v9 = vpop.permute.xlu2 %4285  ;;  %v3578_v28 = vpop.permute.xlu0 %3577  ;;  %6823 = vmatpush.msrb.mxu2 %v13819_v14  ;;  %6982 = vmatpush.msrb.mxu0 %v13913_v60  ;;  %v13995_v18 = vand.u32 4294901760, %v13868_v58  ;;  %vm16709_vm9 = vmmov %vm16605_vm3 }
 0xd8f   : > { %v13936_v15 = vsel %vm16605_vm3, %v13757_v19, %v4286_v9  ;;  %v3582_v26 = vsel %vm16607_vm4, %v16606_v44, %v3578_v28  ;;  %7021 = vmatpush.msrb.mxu1 %v13841_v13  ;;  %6724 = vmatpush.msra.mxu3 %v13669_v3  ;;  %v6870_v19 = vsub.f32 %v13847_v37, %v16089_v52  ;;  %v13959_v3 = vand.u32 4294901760, %v13755_v12  ;;  %v16614_v28 = vld [vmem:[#allocation20_spill] sm:$0xff]  ;;  %v14030_v52 = vpop.f32.mrf.mxu1  ;;  %vm16711_vm3 = vmmov %vm16625_vm6 }
 0xd90   : > { %6825 = vmatpush.msrb.mxu2 %v13841_v13  ;;  %6985 = vmatpush.msrb.mxu0 %v13928_v0  ;;  %3590 = vst [vmem:[#allocation3 + $0x148] sm:$0xff] %v3582_v26  ;;  %v13961_v43 = vand.u32 4294901760, %v3582_v26  ;;  %v6876_v25 = vsub.f32 %v13859_v62, %v16087_v20  ;;  %v16090_v9 = vand.u32 4294901760, %v13901_v39  ;;  %v14015_v20 = vpop.f32.mrf.mxu0 }
 0xd91   : > { %7023 = vmatpush.msrb.mxu1 %v13852_v63  ;;  %6726 = vmatpush.msra.mxu3 %v13768_v51  ;;  %16609 = vst [vmem:[#allocation37_spill] sm:$0xff] %v13959_v3  ;;  %v16611_v51 = vld [vmem:[#allocation21_spill] sm:$0xff]  ;;  %v6871_v2 = vand.u32 4294901760, %v6870_v19  ;;  %v13989_v48 = vsub.f32 %v13755_v12, %v13959_v3 }
 0xd92   : > { %16610 = vst [vmem:[#allocation29_spill] sm:$0xff] %v13961_v43  ;;  %6827 = vmatpush.msrb.mxu2 %v13852_v63  ;;  %6988 = vmatpush.msrb.mxu0 %v13950_v41  ;;  %v13992_v17 = vsub.f32 %v3582_v26, %v13961_v43  ;;  %v6877_v19 = vand.u32 4294901760, %v6876_v25  ;;  %v6888_v26 = vsub.f32 %v13891_v24, %v16088_v7  ;;  %v6883_v25 = vand.u32 4294901760, %v6882_v8  ;;  %v14028_v7 = vpop.f32.mrf.mxu2 }
 0xd93   : > { %7025 = vmatpush.msrb.mxu1 %v13862_v29  ;;  %6730 = vmatmul.f32.vlgmr.msra.gmra.mxu3 %v16611_v51  ;;  %16613 = vst [vmem:[#allocation38_spill] sm:$0xff] %v13995_v18  ;;  %v9300_v51 = vld [vmem:[#allocation3 + $0x48] sm:$0xff] }
 0xd94   : > { %6829 = vmatpush.msrb.mxu2 %v13862_v29  ;;  %6866 = vmatpush.msrb.mxu3 %v6865_v6  ;;  %16612 = vst [vmem:[#allocation33_spill] sm:$0xff] %v13992_v17  ;;  %v16616_v6 = vld [vmem:[#allocation19_spill] sm:$0xff]  ;;  %v14051_v35 = vand.u32 4294901760, %v9300_v51 }
 0xd95   : > { %v4544_v1 = vpop.permute.xlu1 %4543  ;;  %6991 = vmatpush.msrb.mxu0 %v13976_v54  ;;  %7027 = vmatpush.msrb.mxu1 %v13876_v33 }
 0xd96   : > { %v14000_v42 = vsel %vm16615_vm7, %v16614_v28, %v4544_v1  ;;  %v4780_v44 = vpop.permute.xlu0 %4779  ;;  %6831 = vmatpush.msrb.mxu2 %v13876_v33  ;;  %6872 = vmatpush.msrb.mxu3 %v6871_v2  ;;  %v4859_v1 = vld [vmem:[#allocation3 + $0x100] sm:$0xff]  ;;  %v16092_v28 = vand.u32 4294901760, %v13913_v60  ;;  %v14022_v2 = vsub.f32 %v13868_v58, %v13995_v18  ;;  %v6889_v58 = vand.u32 4294901760, %v6888_v26  ;;  %16622 = vst [vmem:[#allocation44_spill] sm:$0xff] %v14051_v35  ;;  %vm16721_vm7 = vmmov %vm16705_vm0 }
 0xd97   : > { %v14005_v12 = vsel %vm784_vm2, %v16616_v6, %v4780_v44  ;;  %6994 = vmatpush.msrb.mxu0 %v13989_v48  ;;  %7029 = vmatpush.msrb.mxu1 %v13894_v49  ;;  %v6894_v44 = vsub.f32 %v13901_v39, %v16090_v9  ;;  %v14033_v8 = vand.u32 4294901760, %v4859_v1  ;;  %v14041_v9 = vsub.f32 %v4863_v23, %v14012_v57 }
 0xd98   : > { %6833 = vmatpush.msrb.mxu2 %v13894_v49  ;;  %6878 = vmatpush.msrb.mxu3 %v6877_v19  ;;  %16618 = vst [vmem:[#allocation32_spill] sm:$0xff] %v14022_v2  ;;  %v14036_v19 = vand.u32 4294901760, %v13792_v47  ;;  %v6900_v22 = vsub.f32 %v13913_v60, %v16092_v28  ;;  %v16623_v26 = vand.u32 4294901760, %v13928_v0  ;;  %v14058_v6 = vand.u32 4294901760, %v14005_v12  ;;  %v14084_v33 = vpop.f32.mrf.mxu0 }
 0xd99   : > { %6997 = vmatpush.msrb.mxu0 %v13992_v17  ;;  %7031 = vmatpush.msrb.mxu1 %v13904_v56  ;;  %16619 = vst [vmem:[#allocation41_spill] sm:$0xff] %v14033_v8  ;;  %v6895_v23 = vand.u32 4294901760, %v6894_v44  ;;  %v14068_v44 = vsub.f32 %v4859_v1, %v14033_v8  ;;  %v14082_v1 = vand.u32 4294901760, %v13922_v16 }
 0xd9a   : > { %6835 = vmatpush.msrb.mxu2 %v13904_v56  ;;  %6884 = vmatpush.msrb.mxu3 %v6883_v25  ;;  %16620 = vst [vmem:[#allocation39_spill] sm:$0xff] %v14036_v19  ;;  %v14047_v25 = vpop.f32.mrf.mxu3  ;;  %v6906_v28 = vsub.f32 %v13928_v0, %v16623_v26  ;;  %v14101_v26 = vsub.f32 %v14005_v12, %v14058_v6 }
 0xd9b   : > { %7000 = vmatpush.msrb.mxu0 %v14022_v2  ;;  %7033 = vmatpush.msrb.mxu1 %v13915_v59  ;;  %16621 = vst [vmem:[#allocation43_spill] sm:$0xff] %v14041_v9 }
 0xd9c   : > { %6784 = vmatmul.f32.vlgmr.msra.gmra.mxu0 %v16594_v38  ;;  %6837 = vmatpush.msrb.mxu2 %v13915_v59  ;;  %16624 = vst [vmem:[#allocation35_spill] sm:$0xff] %v14058_v6 }
 0xd9d   : > { %v4345_v45 = vpop.permute.xlu1 %4344  ;;  %6890 = vmatpush.msrb.mxu3 %v6889_v58  ;;  %7003 = vmatpush.msrb.mxu0 %v14041_v9  ;;  %16626 = vst [vmem:[#allocation58_spill] sm:$0xff] %v14068_v44  ;;  %v14072_v58 = vsub.f32 %v13792_v47, %v14036_v19  ;;  %v14089_v47 = vsub.f32 %v9300_v51, %v14051_v35  ;;  %v14105_v51 = vpop.f32.mrf.mxu1 }
 0xd9e   : > { %v14063_v59 = vsel %vm16625_vm6, %v13589_v21, %v4345_v45  ;;  %v4603_v49 = vpop.permute.xlu0 %4602  ;;  %7035 = vmatpush.msrb.mxu1 %v13943_v27  ;;  %6839 = vmatpush.msrb.mxu2 %v13943_v27  ;;  %v6901_v21 = vand.u32 4294901760, %v6900_v22  ;;  %v16628_v45 = vand.u32 4294901760, %v13950_v41  ;;  %16629 = vst [vmem:[#allocation59_spill] sm:$0xff] %v14082_v1  ;;  %v16633_v22 = vand.u32 4294901760, %v13976_v54 }
 0xd9f   : > { %v4607_v56 = vsel %vm16627_vm8, %v13587_v46, %v4603_v49  ;;  %6816 = vmatmul.f32.vlgmr.msra.gmra.mxu1 %v16594_v38  ;;  %6896 = vmatpush.msrb.mxu3 %v6895_v23  ;;  %16630 = vst [vmem:[#allocation55_spill] sm:$0xff] %v14084_v33  ;;  %v14092_v46 = vand.u32 4294901760, %v13827_v32  ;;  %v6907_v49 = vand.u32 4294901760, %v6906_v28  ;;  %v14103_v38 = vpop.f32.mrf.mxu2  ;;  %v16635_v28 = vand.u32 4294901760, %v13989_v48  ;;  %vm16724_vm8 = vmmov %vm16709_vm9 }
 0xda0   : > { %v6912_v27 = vsub.f32 %v13950_v41, %v16628_v45  ;;  %7006 = vmatpush.msrb.mxu0 %v14068_v44  ;;  %7037 = vmatpush.msrb.mxu1 %v13959_v3  ;;  %16631 = vst [vmem:[#allocation57_spill] sm:$0xff] %v14089_v47  ;;  %v6918_v23 = vsub.f32 %v13976_v54, %v16633_v22  ;;  %v14114_v12 = vand.u32 4294901760, %v4607_v56  ;;  %v14135_v22 = vand.u32 4294901760, %v14000_v42 }
 0xda1   : > { %16632 = vst [vmem:[#allocation54_spill] sm:$0xff] %v14092_v46  ;;  %6841 = vmatpush.msrb.mxu2 %v13959_v3  ;;  %6902 = vmatpush.msrb.mxu3 %v6901_v21  ;;  %v6924_v21 = vsub.f32 %v13989_v48, %v16635_v28  ;;  %v16637_v3 = vand.u32 4294901760, %v13992_v17  ;;  %v16638_v28 = vand.u32 4294901760, %v14072_v58 }
 0xda2   : > { %16634 = vst [vmem:[#allocation47_spill] sm:$0xff] %v14105_v51  ;;  %7009 = vmatpush.msrb.mxu0 %v14089_v47  ;;  %7039 = vmatpush.msrb.mxu1 %v13961_v43  ;;  %v6913_v45 = vand.u32 4294901760, %v6912_v27  ;;  %v14119_v51 = vsub.f32 %v13922_v16, %v14082_v1  ;;  %v14121_v33 = vpop.f32.mrf.mxu3  ;;  %v6919_v27 = vand.u32 4294901760, %v6918_v23  ;;  %v14144_v23 = vand.u32 4294901760, %v13881_v55 }
 0xda3   : > { %6843 = vmatpush.msrb.mxu2 %v13961_v43  ;;  %6908 = vmatpush.msrb.mxu3 %v6907_v49  ;;  %16636 = vst [vmem:[#allocation53_spill] sm:$0xff] %v14114_v12  ;;  %v14128_v49 = vsub.f32 %v13827_v32, %v14092_v46  ;;  %v6930_v16 = vsub.f32 %v13992_v17, %v16637_v3  ;;  %v6925_v32 = vand.u32 4294901760, %v6924_v21  ;;  %v16640_v43 = vand.u32 4294901760, %v14022_v2 }
 0xda4   : > { %7167 = vmatpush.msra.mxu0 %v14036_v19  ;;  %7041 = vmatpush.msrb.mxu1 %v13995_v18  ;;  %v14155_v17 = vsub.f32 %v4607_v56, %v14114_v12  ;;  %v16642_v21 = vand.u32 4294901760, %v14101_v26  ;;  %v16644_v3 = vand.u32 4294901760, %v14119_v51 }
 0xda5   : > { %6845 = vmatpush.msrb.mxu2 %v13995_v18  ;;  %6914 = vmatpush.msrb.mxu3 %v6913_v45  ;;  %v7205_v45 = vsub.f32 %v14072_v58, %v16638_v28  ;;  %v16641_v28 = vand.u32 4294901760, %v14041_v9 }
 0xda6   : > { %v4426_v19 = vpop.permute.xlu0 %4425  ;;  %7169 = vmatpush.msra.mxu0 %v14058_v6  ;;  %7043 = vmatpush.msrb.mxu1 %v14012_v57  ;;  %v6936_v6 = vsub.f32 %v14022_v2, %v16640_v43  ;;  %v6931_v43 = vand.u32 4294901760, %v6930_v16  ;;  %v7211_v56 = vsub.f32 %v14101_v26, %v16642_v21  ;;  %v14183_v21 = vsub.f32 %v13881_v55, %v14144_v23  ;;  %v9301_v55 = vld [vmem:[#allocation3 + $0x98] sm:$0xff] }
 0xda7   : > { %v4430_v18 = vsel %vm16639_vm5, %v13674_v50, %v4426_v19  ;;  %6847 = vmatpush.msrb.mxu2 %v14012_v57  ;;  %6920 = vmatpush.msrb.mxu3 %v6919_v27  ;;  %v6942_v50 = vsub.f32 %v14041_v9, %v16641_v28  ;;  %v14162_v19 = vpop.f32.mrf.mxu0  ;;  %v14172_v57 = vsub.f32 %v14000_v42, %v14135_v22  ;;  %v7206_v28 = vand.u32 4294901760, %v7205_v45  ;;  %v5624_v27 = vpop.f32.mrf.mxu2  ;;  %vm16726_vm5 = vmmov %vm16711_vm3 }
 0xda8   : > { %7171 = vmatpush.msra.mxu0 %v14082_v1  ;;  %7045 = vmatpush.msrb.mxu1 %v14033_v8  ;;  %v5818_v9 = vpop.f32.mrf.mxu1  ;;  %v6937_v42 = vand.u32 4294901760, %v6936_v6  ;;  %v7217_v45 = vsub.f32 %v14119_v51, %v16644_v3  ;;  %v14194_v2 = vand.u32 4294901760, %v9301_v55  ;;  %v7212_v6 = vand.u32 4294901760, %v7211_v56 }
 0xda9   : > { %6849 = vmatpush.msrb.mxu2 %v14033_v8  ;;  %6926 = vmatpush.msrb.mxu3 %v6925_v32  ;;  %v16643_v8 = vand.u32 4294901760, %v14068_v44  ;;  %v14179_v32 = vand.u32 4294901760, %v4430_v18  ;;  %v16646_v3 = vand.u32 4294901760, %v14128_v49 }
 0xdaa   : > { %7173 = vmatpush.msra.mxu0 %v14092_v46  ;;  %7047 = vmatpush.msrb.mxu1 %v14051_v35 }
 0xdab   : > { %v6948_v16 = vsub.f32 %v14068_v44, %v16643_v8  ;;  %6851 = vmatpush.msrb.mxu2 %v14051_v35  ;;  %6932 = vmatpush.msrb.mxu3 %v6931_v43  ;;  %v5725_v8 = vpop.f32.mrf.mxu3  ;;  %v16645_v44 = vand.u32 4294901760, %v14089_v47  ;;  %v6943_v43 = vand.u32 4294901760, %v6942_v50  ;;  %v7223_v46 = vsub.f32 %v14128_v49, %v16646_v3 }
 0xdac   : > { %7175 = vmatpush.msra.mxu0 %v14114_v12  ;;  %7207 = vmatpush.msra.mxu1 %v7206_v28  ;;  %v7234_v35 = vand.u32 4294901760, %v14172_v57  ;;  %v16647_v12 = vand.u32 4294901760, %v13837_v31  ;;  %v14211_v50 = vsub.f32 %v4430_v18, %v14179_v32  ;;  %v16649_v3 = vand.u32 4294901760, %v13847_v37 }
 0xdad   : > { %v6954_v1 = vsub.f32 %v14089_v47, %v16645_v44  ;;  %6857 = vmatmul.f32.vlgmr.msrb.gmra.mxu2 %v16554_v5  ;;  %6938 = vmatpush.msrb.mxu3 %v6937_v42  ;;  %v6949_v44 = vand.u32 4294901760, %v6948_v16  ;;  %v14207_v47 = vand.u32 4294901760, %v14063_v59  ;;  %v7218_v42 = vand.u32 4294901760, %v7217_v45 }
 0xdae   : > { %v14201_v28 = vpop.permute.xlu0 %4962  ;;  %7058 = vmatpush.msra.mxu2 %v16647_v12  ;;  %7177 = vmatpush.msra.mxu0 %v14135_v22  ;;  %v16648_v12 = vand.u32 4294901760, %v14155_v17  ;;  %v14223_v18 = vand.u32 4294901760, %v13936_v15  ;;  %v7235_v37 = vsub.f32 %v14172_v57, %v7234_v35 }
 0xdaf   : > { %v5008_v56 = vadd.f32 %v13945_v30, %v14201_v28  ;;  %7213 = vmatpush.msra.mxu1 %v7212_v6  ;;  %6944 = vmatpush.msrb.mxu3 %v6943_v43  ;;  %v5625_v31 = vadd.f32 %v5624_v27, %v14201_v28  ;;  %v6955_v5 = vand.u32 4294901760, %v6954_v1  ;;  %v14226_v30 = vsub.f32 %v9301_v55, %v14194_v2  ;;  %v5960_v1 = vpop.f32.mrf.mxu0 }
 0xdb0   : > { %v7229_v16 = vsub.f32 %v14155_v17, %v16648_v12  ;;  %7062 = vmatpush.msra.mxu2 %v16649_v3  ;;  %7179 = vmatpush.msra.mxu0 %v14144_v23  ;;  %v7224_v27 = vand.u32 4294901760, %v7223_v46  ;;  %v16650_v43 = vand.u32 4294901760, %v13859_v62  ;;  %v7246_v12 = vand.u32 4294901760, %v14211_v50 }
 0xdb1   : > { %v5109_v45 = vadd.f32 %v13965_v53, %v5008_v56  ;;  %7219 = vmatpush.msra.mxu1 %v7218_v42  ;;  %6950 = vmatpush.msrb.mxu3 %v6949_v44  ;;  %v5726_v6 = vadd.f32 %v5725_v8, %v5625_v31  ;;  %v14238_v55 = vsub.f32 %v14063_v59, %v14207_v47  ;;  %v16651_v44 = vand.u32 4294901760, %v14183_v21  ;;  %v5887_v42 = vpop.f32.mrf.mxu2  ;;  %v6036_v31 = vpop.f32.mrf.mxu1 }
 0xdb2   : > { %7066 = vmatpush.msra.mxu2 %v16650_v43  ;;  %7181 = vmatpush.msra.mxu0 %v14179_v32  ;;  %v7230_v8 = vand.u32 4294901760, %v7229_v16  ;;  %v16652_v56 = vand.u32 4294901760, %v13874_v40  ;;  %v7252_v59 = vand.u32 4294901760, %v14226_v30  ;;  %v7236_v16 = vand.u32 4294901760, %v7235_v37 }
 0xdb3   : > { %v5163_v53 = vadd.f32 %v13963_v4, %v5109_v45  ;;  %7225 = vmatpush.msra.mxu1 %v7224_v27  ;;  %v5780_v46 = vadd.f32 %v14162_v19, %v5726_v6  ;;  %6956 = vmatpush.msrb.mxu3 %v6955_v5  ;;  %v7241_v62 = vsub.f32 %v14183_v21, %v16651_v44  ;;  %v16653_v40 = vand.u32 4294901760, %v13891_v24  ;;  %v5924_v45 = vpop.f32.mrf.mxu3 }
 0xdb4   : > { %7070 = vmatpush.msra.mxu2 %v16652_v56  ;;  %7183 = vmatpush.msra.mxu0 %v14194_v2  ;;  %v14251_v4 = vsub.f32 %v13936_v15, %v14223_v18  ;;  %v7247_v3 = vsub.f32 %v14211_v50, %v7246_v12  ;;  %v7258_v15 = vand.u32 4294901760, %v14238_v55  ;;  %v16654_v6 = vand.u32 4294901760, %v13901_v39 }
 0xdb5   : > { %v5202_v19 = vadd.f32 %v13979_v11, %v5163_v53  ;;  %v5819_v5 = vadd.f32 %v5818_v9, %v5780_v46  ;;  %7231 = vmatpush.msra.mxu1 %v7230_v8  ;;  %6958 = vmatmul.f32.vlgmr.msrb.gmra.mxu3 %v12126_v61  ;;  %v7242_v11 = vand.u32 4294901760, %v7241_v62  ;;  %v16655_v43 = vand.u32 4294901760, %v13913_v60 }
 0xdb6   : > { %7074 = vmatpush.msra.mxu2 %v16653_v40  ;;  %7125 = vmatpush.msra.mxu3 %v13811_v34  ;;  %v7253_v34 = vsub.f32 %v14226_v30, %v7252_v59  ;;  %v7264_v24 = vand.u32 4294901760, %v14251_v4  ;;  %v7248_v39 = vand.u32 4294901760, %v7247_v3  ;;  %v16656_v46 = vand.u32 4294901760, %v13928_v0  ;;  %v16664_v40 = vld [vmem:[#allocation33_spill] sm:$0xff] }
 0xdb7   : > { %v5271_v27 = vadd.f32 %v14015_v20, %v5202_v19  ;;  %7185 = vmatpush.msra.mxu0 %v14207_v47  ;;  %7237 = vmatpush.msra.mxu1 %v7236_v16  ;;  %v5888_v9 = vadd.f32 %v5887_v42, %v5819_v5  ;;  %v6080_v8 = vpop.f32.mrf.mxu0  ;;  %v16662_v5 = vld [vmem:[#allocation55_spill] sm:$0xff]  ;;  %v16665_v3 = vand.u32 4294901760, %v16664_v40 }
 0xdb8   : > { %7078 = vmatpush.msra.mxu2 %v16654_v6  ;;  %7127 = vmatpush.msra.mxu3 %v13819_v14  ;;  %v7259_v14 = vsub.f32 %v14238_v55, %v7258_v15  ;;  %v7265_v60 = vsub.f32 %v14251_v4, %v7264_v24  ;;  %v16663_v16 = vld [vmem:[#allocation39_spill] sm:$0xff] }
 0xdb9   : > { %v5308_v37 = vadd.f32 %v14030_v52, %v5271_v27  ;;  %7187 = vmatpush.msra.mxu0 %v14223_v18  ;;  %7243 = vmatpush.msra.mxu1 %v7242_v11  ;;  %v5925_v20 = vadd.f32 %v5924_v45, %v5888_v9  ;;  %v6114_v0 = vpop.f32.mrf.mxu1  ;;  %v16666_v45 = vld [vmem:[#allocation16_spill] sm:$0xff]  ;;  %v16667_v27 = vld [vmem:[#allocation47_spill] sm:$0xff] }
 0xdba   : > { %7012 = vmatmul.f32.vlgmr.msrb.gmra.mxu0 %v12133_v10  ;;  %7082 = vmatpush.msra.mxu2 %v16655_v43  ;;  %v7254_v10 = vand.u32 4294901760, %v7253_v34  ;;  %v7266_v42 = vand.u32 4294901760, %v7265_v60  ;;  %v16669_v9 = vld [vmem:[#allocation32_spill] sm:$0xff]  ;;  %v16671_v34 = vld [vmem:[#allocation42_spill] sm:$0xff] }
 0xdbb   : > { %v5344_v53 = vadd.f32 %v14028_v7, %v5308_v37  ;;  %7129 = vmatpush.msra.mxu3 %v13841_v13  ;;  %7280 = vmatpush.msrb.mxu0 %v14072_v58  ;;  %v5961_v52 = vadd.f32 %v5960_v1, %v5925_v20  ;;  %v16657_v7 = vand.u32 4294901760, %v13950_v41  ;;  %v7260_v1 = vand.u32 4294901760, %v7259_v14  ;;  %v16672_v20 = vld [vmem:[#allocation59_spill] sm:$0xff] }
 0xdbc   : > { %7249 = vmatpush.msra.mxu1 %v7248_v39  ;;  %7086 = vmatpush.msra.mxu2 %v16656_v46  ;;  %v16670_v6 = vand.u32 4294901760, %v16669_v9  ;;  %v16673_v39 = vld [vmem:[#allocation43_spill] sm:$0xff]  ;;  %v16678_v46 = vld [vmem:[#allocation58_spill] sm:$0xff] }
 0xdbd   : > { %v6037_v44 = vadd.f32 %v6036_v31, %v5961_v52  ;;  %7131 = vmatpush.msra.mxu3 %v13852_v63  ;;  %7283 = vmatpush.msrb.mxu0 %v14101_v26  ;;  %v5420_v13 = vadd.f32 %v14047_v25, %v5344_v53  ;;  %v16658_v63 = vand.u32 4294901760, %v13976_v54  ;;  %v16659_v25 = vld [vmem:[#allocation26_spill] sm:$0xff]  ;;  %v6168_v31 = vpop.f32.mrf.mxu2  ;;  %v16674_v14 = vand.u32 4294901760, %v16673_v39  ;;  %v16675_v53 = vld [vmem:[#allocation36_spill] sm:$0xff] }
 0xdbe   : > { %7255 = vmatpush.msra.mxu1 %v7254_v10  ;;  %7090 = vmatpush.msra.mxu2 %v16657_v7  ;;  %v16676_v52 = vld [vmem:[#allocation54_spill] sm:$0xff]  ;;  %v16679_v10 = vand.u32 4294901760, %v16678_v46 }
 0xdbf   : > { %7133 = vmatpush.msra.mxu3 %v13862_v29  ;;  %7286 = vmatpush.msrb.mxu0 %v14119_v51  ;;  %v6081_v62 = vadd.f32 %v6080_v8, %v6037_v44  ;;  %v5464_v56 = vadd.f32 %v14103_v38, %v5420_v13  ;;  %v16660_v29 = vand.u32 4294901760, %v13989_v48  ;;  %v16661_v38 = vld [vmem:[#allocation28_spill] sm:$0xff]  ;;  %v16668_v48 = vld [vmem:[#allocation35_spill] sm:$0xff]  ;;  %v16680_v8 = vld [vmem:[#allocation37_spill] sm:$0xff] }
 0xdc0   : > { %7261 = vmatpush.msra.mxu1 %v7260_v1  ;;  %7094 = vmatpush.msra.mxu2 %v16658_v63  ;;  %v16681_v44 = vld [vmem:[#allocation53_spill] sm:$0xff]  ;;  %v16688_v63 = vld [vmem:[#allocation40_spill] sm:$0xff] }
 0xdc1   : > { %7051 = vmatmul.f32.vlgmr.msrb.gmra.mxu1 %v12151_v36  ;;  %7135 = vmatpush.msra.mxu3 %v16659_v25  ;;  %v6115_v41 = vadd.f32 %v6114_v0, %v6081_v62  ;;  %v5498_v19 = vadd.f32 %v14121_v33, %v5464_v56  ;;  %v6200_v33 = vpop.f32.mrf.mxu3  ;;  %v16682_v13 = vld [vmem:[#allocation57_spill] sm:$0xff]  ;;  %v16685_v0 = vand.u32 4294901760, %v14072_v58  ;;  %v16686_v62 = vld [vmem:[#allocation38_spill] sm:$0xff]  ;;  %v16687_v56 = vand.u32 4294901760, %v14101_v26  ;;  %v16694_v26 = vld [vmem:[#allocation44_spill] sm:$0xff] }
 0xdc2   : > { %7289 = vmatpush.msrb.mxu0 %v14128_v49  ;;  %7267 = vmatpush.msra.mxu1 %v7266_v42  ;;  %v16683_v7 = vand.u32 4294901760, %v16682_v13  ;;  %v16684_v1 = vld [vmem:[#allocation29_spill] sm:$0xff]  ;;  %v16689_v42 = vld [vmem:[#allocation50_spill] sm:$0xff]  ;;  %v16690_v58 = vand.u32 4294901760, %v14119_v51  ;;  %v16696_v51 = vld [vmem:[#allocation23_spill] sm:$0xff] }
 0xdc3   : > { %7098 = vmatpush.msra.mxu2 %v16660_v29  ;;  %7137 = vmatpush.msra.mxu3 %v16661_v38  ;;  %v5552_v54 = vadd.f32 %v16662_v5, %v5498_v19  ;;  %v6169_v36 = vadd.f32 %v6168_v31, %v6115_v41  ;;  %v16691_v25 = vld [vmem:[#allocation41_spill] sm:$0xff]  ;;  %v16692_v41 = vld [vmem:[#allocation18_spill] sm:$0xff]  ;;  %v16693_v31 = vand.u32 4294901760, %v14128_v49  ;;  %v16695_v19 = vand.u32 4294901760, %v14155_v17 }
 0xdc4   : > { %7292 = vmatpush.msrb.mxu0 %v14155_v17  ;;  %7323 = vmatpush.msrb.mxu1 %v16663_v16  ;;  %v16697_v49 = vand.u32 4294901760, %v14183_v21 }
 0xdc5   : > { %7102 = vmatpush.msra.mxu2 %v16665_v3  ;;  %7139 = vmatpush.msra.mxu3 %v16666_v45  ;;  %v14311_v11 = vadd.f32 %v16667_v27, %v5552_v54  ;;  %v14321_v43 = vadd.f32 %v6200_v33, %v6169_v36 }
 0xdc6   : > { %7295 = vmatpush.msrb.mxu0 %v14172_v57  ;;  %7325 = vmatpush.msrb.mxu1 %v16668_v48 }
 0xdc7   : > { %7106 = vmatpush.msra.mxu2 %v16670_v6  ;;  %7141 = vmatpush.msra.mxu3 %v16671_v34  ;;  %v7437_v37 = vmax.f32 %v14311_v11, 0.0  ;;  %v16122_v60 = vmax.f32 %v14321_v43, 0.0 }
 0xdc8   : > { %7298 = vmatpush.msrb.mxu0 %v14183_v21  ;;  %7327 = vmatpush.msrb.mxu1 %v16672_v20 }
 0xdc9   : > { %7110 = vmatpush.msra.mxu2 %v16674_v14  ;;  %7143 = vmatpush.msra.mxu3 %v16675_v53 }
 0xdca   : > { %7301 = vmatpush.msrb.mxu0 %v14211_v50  ;;  %7329 = vmatpush.msrb.mxu1 %v16676_v52 }
 0xdcb   : > { %7445 = vrot.lane.b32.xlu1 %v7437_v37, %s16677_s25  ;;  %7114 = vmatpush.msra.mxu2 %v16679_v10 }
 0xdcc   : > { %7145 = vmatpush.msra.mxu3 %v16680_v8  ;;  %7304 = vmatpush.msrb.mxu0 %v14226_v30 }
 0xdcd   : > { %7331 = vmatpush.msrb.mxu1 %v16681_v44  ;;  %7118 = vmatpush.msra.mxu2 %v16683_v7 }
 0xdce   : > { %7147 = vmatpush.msra.mxu3 %v16684_v1  ;;  %7307 = vmatpush.msrb.mxu0 %v14238_v55 }
 0xdcf   : > { %7333 = vmatpush.msrb.mxu1 %v14135_v22  ;;  %7120 = vmatmul.f32.vlgmr.msra.gmra.mxu2 %v12126_v61 }
 0xdd0   : > { %7359 = vmatpush.msrb.mxu2 %v16685_v0  ;;  %7447 = vrot.lane.b32.xlu2 %v16122_v60, %s16677_s25 }
 0xdd1   : > { %7149 = vmatpush.msra.mxu3 %v16686_v62  ;;  %7310 = vmatpush.msrb.mxu0 %v14251_v4 }
 0xdd2   : > { %7335 = vmatpush.msrb.mxu1 %v14144_v23  ;;  %7363 = vmatpush.msrb.mxu2 %v16687_v56 }
 0xdd3   : > { %7151 = vmatpush.msra.mxu3 %v16688_v63  ;;  %7193 = vmatmul.f32.vlgmr.msra.gmra.mxu0 %v16689_v42  ;;  %v6342_v17 = vpop.f32.mrf.mxu1 }
 0xdd4   : > { %7337 = vmatpush.msrb.mxu1 %v14179_v32  ;;  %7367 = vmatpush.msrb.mxu2 %v16690_v58 }
 0xdd5   : > { %7153 = vmatpush.msra.mxu3 %v16691_v25  ;;  %7269 = vmatmul.f32.vlgmr.msra.gmra.mxu1 %v16692_v41 }
 0xdd6   : > { %7339 = vmatpush.msrb.mxu1 %v14194_v2  ;;  %7371 = vmatpush.msrb.mxu2 %v16693_v31 }
 0xdd7   : > { %7155 = vmatpush.msra.mxu3 %v16694_v26 }
 0xdd8   : > { %7341 = vmatpush.msrb.mxu1 %v14207_v47  ;;  %7157 = vmatmul.f32.vlgmr.msra.gmra.mxu3 %v12126_v61  ;;  %v16698_v61 = vld [vmem:[#allocation21_spill] sm:$0xff] }
 0xdd9   : > { %7375 = vmatpush.msrb.mxu2 %v16695_v19  ;;  %7411 = vmatpush.msrb.mxu3 %v16663_v16  ;;  %v7647_v19 = vld [vmem:[%s16700_s20 + $0x78] sm:$0xff] }
 0xdda   : > { %7343 = vmatpush.msrb.mxu1 %v14223_v18 }
 0xddb   : > { %7379 = vmatpush.msrb.mxu2 %v7234_v35  ;;  %7413 = vmatpush.msrb.mxu3 %v16668_v48  ;;  %v6241_v35 = vpop.f32.mrf.mxu0 }
 0xddc   : > { %7313 = vmatmul.f32.vlgmr.msrb.gmra.mxu0 %v16696_v51  ;;  %v6242_v57 = vadd.f32 %v6241_v35, %v14201_v28  ;;  %v7646_v51 = vld [vmem:[%s16700_s20 + $0x70] sm:$0xff] }
 0xddd   : > { %7383 = vmatpush.msrb.mxu2 %v16697_v49  ;;  %7415 = vmatpush.msrb.mxu3 %v16672_v20  ;;  %v7645_v49 = vld [vmem:[%s16700_s20 + $0x68] sm:$0xff]  ;;  %v14444_v35 = vand.u32 4294901760, %v7646_v51 }
 0xdde   : > { %7347 = vmatmul.f32.vlgmr.msrb.gmra.mxu1 %v16698_v61  ;;  %v14442_v61 = vand.u32 4294901760, %v7647_v19 }
 0xddf   : > { %7387 = vmatpush.msrb.mxu2 %v7246_v12  ;;  %7417 = vmatpush.msrb.mxu3 %v16676_v52  ;;  %v6396_v21 = vpop.f32.mrf.mxu2 }
 0xde0   : > { %7697 = vmatpush.msra.mxu0 %v14442_v61 }
 0xde1   : > { %7391 = vmatpush.msrb.mxu2 %v7252_v59  ;;  %7419 = vmatpush.msrb.mxu3 %v16681_v44 }
 0xde2   : > { %7699 = vmatpush.msra.mxu0 %v14444_v35 }
 0xde3   : > { %7395 = vmatpush.msrb.mxu2 %v7258_v15  ;;  %7421 = vmatpush.msrb.mxu3 %v14135_v22  ;;  %v6343_v22 = vadd.f32 %v6342_v17, %v6242_v57  ;;  %v14446_v57 = vand.u32 4294901760, %v7645_v49  ;;  %v7644_v17 = vld [vmem:[%s16700_s20 + $0x60] sm:$0xff] }
 0xde5   : > { %7399 = vmatpush.msrb.mxu2 %v7264_v24  ;;  %7423 = vmatpush.msrb.mxu3 %v14144_v23  ;;  %v6397_v50 = vadd.f32 %v6396_v21, %v6343_v22  ;;  %v6435_v23 = vpop.f32.mrf.mxu3  ;;  %v7643_v22 = vld [vmem:[%s16700_s20 + $0x58] sm:$0xff]  ;;  %v7642_v21 = vld [vmem:[%s16700_s20 + $0x50] sm:$0xff] }
 0xde6   : > { %7401 = vmatmul.f32.vlgmr.msrb.gmra.mxu2 %v16692_v41  ;;  %7701 = vmatpush.msra.mxu0 %v14446_v57 }
 0xde7   : > { %7425 = vmatpush.msrb.mxu3 %v14179_v32  ;;  %v6436_v30 = vadd.f32 %v6435_v23, %v6397_v50  ;;  %v6504_v12 = vpop.f32.mrf.mxu0  ;;  %v14457_v50 = vand.u32 4294901760, %v7644_v17  ;;  %v14459_v23 = vand.u32 4294901760, %v7643_v22 }
 0xde9   : > { %7427 = vmatpush.msrb.mxu3 %v14194_v2  ;;  %v6505_v55 = vadd.f32 %v6504_v12, %v6436_v30  ;;  %v14461_v30 = vand.u32 4294901760, %v7642_v21  ;;  %v7641_v12 = vld [vmem:[%s16700_s20 + $0x48] sm:$0xff]  ;;  %7703 = vmatpush.msra.mxu0 %v14457_v50 }
 0xdeb   : > { %7429 = vmatpush.msrb.mxu3 %v14207_v47  ;;  %7705 = vmatpush.msra.mxu0 %v14459_v23 }
 0xded   : > { %7431 = vmatpush.msrb.mxu3 %v14223_v18  ;;  %7707 = vmatpush.msra.mxu0 %v14461_v30 }
 0xdee   : > { %7433 = vmatmul.f32.vlgmr.msrb.gmra.mxu3 %v16692_v41 }
 0xdef   : > { %v6541_v32 = vpop.f32.mrf.mxu1  ;;  %7893 = vmatpush.msra.mxu3 %v14442_v61 }
 0xdf0   : > { %v6542_v2 = vadd.f32 %v6541_v32, %v6505_v55  ;;  %v14468_v55 = vsub.f32 %v7647_v19, %v14442_v61  ;;  %v14471_v32 = vsub.f32 %v7646_v51, %v14444_v35 }
 0xdf1   : > { %7895 = vmatpush.msra.mxu3 %v14444_v35 }
 0xdf2   : > { %7840 = vmatpush.msra.mxu2 %v14468_v55 }
 0xdf3   : > { %7897 = vmatpush.msra.mxu3 %v14446_v57 }
 0xdf4   : > { %7843 = vmatpush.msra.mxu2 %v14471_v32 }
 0xdf5   : > { %7899 = vmatpush.msra.mxu3 %v14457_v50 }
 0xdf7   : > { %7901 = vmatpush.msra.mxu3 %v14459_v23 }
 0xdf9   : > { %7903 = vmatpush.msra.mxu3 %v14461_v30 }
 0xe04   : > { %v6577_v59 = vpop.f32.mrf.mxu2 }
 0xe05   : > { %v6578_v47 = vadd.f32 %v6577_v59, %v6542_v2  ;;  %v14474_v59 = vsub.f32 %v7645_v49, %v14446_v57  ;;  %v14476_v2 = vand.u32 4294901760, %v7641_v12 }
 0xe07   : > { %v6653_v4 = vpop.f32.mrf.mxu3  ;;  %7846 = vmatpush.msra.mxu2 %v14474_v59  ;;  %7709 = vmatpush.msra.mxu0 %v14476_v2 }
 0xe08   : > { %v6654_v18 = vadd.f32 %v6653_v4, %v6578_v47  ;;  %v14480_v4 = vsub.f32 %v7644_v17, %v14457_v50  ;;  %v14483_v47 = vsub.f32 %v7643_v22, %v14459_v23  ;;  %v7636_v17 = vld [vmem:[%s16700_s20 + $0x20] sm:$0xff]  ;;  %v7635_v22 = vld [vmem:[%s16700_s20 + $0x18] sm:$0xff]  ;;  %7905 = vmatpush.msra.mxu3 %v14476_v2 }
 0xe0a   : > { %7849 = vmatpush.msra.mxu2 %v14480_v4 }
 0xe0c   : > { %7852 = vmatpush.msra.mxu2 %v14483_v47 }
 0xe0e   : > { %v6697_v15 = vpop.f32.mrf.mxu2 }
 0xe0f   : > { %v6698_v24 = vadd.f32 %v6697_v15, %v6654_v18  ;;  %v7739_v15 = vand.u32 4294901760, %v14468_v55  ;;  %v7745_v18 = vand.u32 4294901760, %v14471_v32 }
 0xe16   : > { %v6731_v29 = vpop.f32.mrf.mxu3 }
 0xe17   : > { %v6732_v38 = vadd.f32 %v6731_v29, %v6698_v24  ;;  %v7751_v24 = vand.u32 4294901760, %v14474_v59  ;;  %v14490_v29 = vsub.f32 %v7642_v21, %v14461_v30  ;;  %v7634_v21 = vld [vmem:[%s16700_s20 + $0x10] sm:$0xff] }
 0xe19   : > { %v6785_v5 = vpop.f32.mrf.mxu0  ;;  %7855 = vmatpush.msra.mxu2 %v14490_v29 }
 0xe1a   : > { %v6786_v54 = vadd.f32 %v6785_v5, %v6732_v38  ;;  %v7757_v38 = vand.u32 4294901760, %v14480_v4  ;;  %v7763_v5 = vand.u32 4294901760, %v14483_v47 }
 0xe1c   : > { %v6817_v16 = vpop.f32.mrf.mxu1 }
 0xe1d   : > { %v14397_v36 = vadd.f32 %v6817_v16, %v6786_v54  ;;  %v14496_v54 = vsub.f32 %v7641_v12, %v14476_v2  ;;  %v7740_v16 = vsub.f32 %v14468_v55, %v7739_v15  ;;  %v14721_v55 = vld [vmem:[#allocation2 + $0x28] sm:$0xff] }
 0xe1f   : > { %v16121_v40 = vmax.f32 %v14397_v36, 0.0  ;;  %7858 = vmatpush.msra.mxu2 %v14496_v54 }
 0xe21   : > { %7449 = vrot.lane.b32.xlu1 %v16121_v40, %s16677_s25 }
 0xe2a   : > { %v7448_v3 = vpop.permute.xlu2 %7447 }
 0xe30   : > { %v6858_v48 = vpop.f32.mrf.mxu2 }
 0xe31   : > { %v6859_v6 = vadd.f32 %v6858_v48, %v14201_v28  ;;  %v7758_v48 = vsub.f32 %v14480_v4, %v7757_v38 }
 0xe37   : > { %v7013_v20 = vpop.f32.mrf.mxu0 }
 0xe38   : > { %v6959_v9 = vpop.f32.mrf.mxu3 }
 0xe39   : > { %v6960_v34 = vadd.f32 %v6959_v9, %v6859_v6  ;;  %v7769_v9 = vand.u32 4294901760, %v14490_v29  ;;  %v7640_v6 = vld [vmem:[%s16700_s20 + $0x40] sm:$0xff] }
 0xe3b   : > { %v7014_v39 = vadd.f32 %v7013_v20, %v6960_v34  ;;  %v7639_v34 = vld [vmem:[%s16700_s20 + $0x38] sm:$0xff]  ;;  %v7638_v20 = vld [vmem:[%s16700_s20 + $0x30] sm:$0xff] }
 0xe3d   : > { %v7446_v45 = vpop.permute.xlu1 %7445 }
 0xe3e   : > { %v7453_v33 = vsel %vm305_vm1, %v7446_v45, %v7448_v3  ;;  %7461 = vst.msk [vmem:[#allocation2] sm:$0xff] %vm16699_vm15, %v7446_v45  ;;  %v7052_v14 = vpop.f32.mrf.mxu1  ;;  %v7752_v45 = vsub.f32 %v14474_v59, %v7751_v24  ;;  %vm16728_vm15 = vmmov %vm16607_vm4 }
 0xe3f   : > { %7462 = vst [vmem:[#allocation2 + $0x8] sm:$0xff] %v7453_v33  ;;  %7478 = vrot.lane.b32.xlu1 %v7453_v33, %s16252_s26  ;;  %v7053_v52 = vadd.f32 %v7052_v14, %v7014_v39  ;;  %v7764_v39 = vsub.f32 %v14483_v47, %v7763_v5  ;;  %v7775_v14 = vand.u32 4294901760, %v14496_v54  ;;  %v7661_v47 = vld [vmem:[%s16700_s20 + $0xe8] sm:$0xff] }
 0xe45   : > { %v7466_v27 = vld [vmem:[#allocation2] sm:$0xff] }
 0xe46   : > { %7476 = vrot.lane.b32.xlu0 %v7466_v27, %s16252_s26 }
 0xe47   : > { %7520 = vrot.lane.b32.xlu1 %v7466_v27, %s16366_s15 }
 0xe4e   : > { %7500 = vrot.lane.b32.xlu0 %v7453_v33, %s16292_s29 }
 0xe4f   : > { %7544 = vrot.lane.b32.xlu1 %v7453_v33, %s16166_s14 }
 0xe50   : > { %v7194_v8 = vpop.f32.mrf.mxu0 }
 0xe52   : > { %v7121_v53 = vpop.f32.mrf.mxu2  ;;  %v7270_v13 = vpop.f32.mrf.mxu1 }
 0xe53   : > { %v7122_v10 = vadd.f32 %v7121_v53, %v7053_v52  ;;  %v14530_v53 = vand.u32 4294901760, %v7640_v6  ;;  %v7637_v52 = vld [vmem:[%s16700_s20 + $0x28] sm:$0xff] }
 0xe55   : > { %7711 = vmatpush.msra.mxu0 %v14530_v53  ;;  %7907 = vmatpush.msra.mxu3 %v14530_v53 }
 0xe57   : > { %7566 = vrot.lane.b32.xlu1 %v7453_v33, %s16165_s22 }
 0xe59   : > { %v7314_v0 = vpop.f32.mrf.mxu0 }
 0xe5b   : > { %v7158_v46 = vpop.f32.mrf.mxu3  ;;  %v7348_v62 = vpop.f32.mrf.mxu1 }
 0xe5c   : > { %v7159_v44 = vadd.f32 %v7158_v46, %v7122_v10  ;;  %v7753_v46 = vand.u32 4294901760, %v7752_v45  ;;  %v14537_v10 = vand.u32 4294901760, %v7639_v34  ;;  %v14601_v45 = vand.u32 4294901760, %v7634_v21 }
 0xe5e   : > { %v7195_v7 = vadd.f32 %v7194_v8, %v7159_v44  ;;  %v14539_v8 = vand.u32 4294901760, %v7638_v20  ;;  %v14541_v44 = vand.u32 4294901760, %v7637_v52  ;;  %7713 = vmatpush.msra.mxu0 %v14537_v10  ;;  %7909 = vmatpush.msra.mxu3 %v14537_v10 }
 0xe5f   : > { %7588 = vrot.lane.b32.xlu1 %v7453_v33, %s16170_s16 }
 0xe60   : > { %v7271_v1 = vadd.f32 %v7270_v13, %v7195_v7  ;;  %v14544_v13 = vsub.f32 %v7640_v6, %v14530_v53  ;;  %v7759_v7 = vand.u32 4294901760, %v7758_v48  ;;  %v14572_v19 = vsub.f32 %v7637_v52, %v14541_v44  ;;  %7715 = vmatpush.msra.mxu0 %v14539_v8  ;;  %7911 = vmatpush.msra.mxu3 %v14539_v8 }
 0xe62   : > { %v7315_v28 = vadd.f32 %v7314_v0, %v7271_v1  ;;  %v7770_v1 = vsub.f32 %v14490_v29, %v7769_v9  ;;  %v14553_v0 = vsub.f32 %v7639_v34, %v14537_v10  ;;  %v7799_v6 = vand.u32 4294901760, %v14572_v19  ;;  %7861 = vmatpush.msra.mxu2 %v14544_v13  ;;  %7717 = vmatpush.msra.mxu0 %v14541_v44 }
 0xe63   : > { %7913 = vmatpush.msra.mxu3 %v14541_v44 }
 0xe64   : > { %v7349_v63 = vadd.f32 %v7348_v62, %v7315_v28  ;;  %v14556_v28 = vsub.f32 %v7638_v20, %v14539_v8  ;;  %7864 = vmatpush.msra.mxu2 %v14553_v0 }
 0xe66   : > { %v7793_v49 = vand.u32 4294901760, %v14556_v28  ;;  %7867 = vmatpush.msra.mxu2 %v14556_v28 }
 0xe67   : > { %7610 = vrot.lane.b32.xlu1 %v7453_v33, %s16262_s3 }
 0xe68   : > { %7870 = vmatpush.msra.mxu2 %v14572_v19 }
 0xe69   : > { %v7402_v56 = vpop.f32.mrf.mxu2 }
 0xe6a   : > { %v7403_v42 = vadd.f32 %v7402_v56, %v7349_v63  ;;  %v7776_v56 = vsub.f32 %v14496_v54, %v7775_v14  ;;  %v7781_v63 = vand.u32 4294901760, %v14544_v13  ;;  %v7660_v54 = vld [vmem:[%s16700_s20 + $0xe0] sm:$0xff] }
 0xe6c   : > { %v7782_v51 = vsub.f32 %v14544_v13, %v7781_v63 }
 0xe6e   : > { %v7783_v52 = vand.u32 4294901760, %v7782_v51 }
 0xe71   : > { %v7434_v58 = vpop.f32.mrf.mxu3 }
 0xe72   : > { %v14414_v25 = vadd.f32 %v7434_v58, %v7403_v42  ;;  %v7765_v58 = vand.u32 4294901760, %v7764_v39 }
 0xe74   : > { %v16120_v41 = vmax.f32 %v14414_v25, 0.0 }
 0xe76   : > { %7451 = vrot.lane.b32.xlu2 %v16120_v41, %s16677_s25 }
 0xe7e   : > { %7498 = vrot.lane.b32.xlu2 %v7466_v27, %s16292_s29 }
 0xe86   : > { %7522 = vrot.lane.b32.xlu2 %v7453_v33, %s16366_s15  ;;  %v7741_v33 = vand.u32 4294901760, %v7740_v16  ;;  %v14597_v16 = vand.u32 4294901760, %v7636_v17 }
 0xe88   : > { %7742 = vmatpush.msra.mxu1 %v7741_v33  ;;  %v7633_v33 = vld [vmem:[%s16700_s20 + $0x8] sm:$0xff]  ;;  %v14616_v20 = vsub.f32 %v7636_v17, %v14597_v16  ;;  %7719 = vmatpush.msra.mxu0 %v14597_v16 }
 0xe89   : > { %v14611_v34 = vand.u32 4294901760, %v7633_v33  ;;  %7915 = vmatpush.msra.mxu3 %v14597_v16 }
 0xe8a   : > { %7873 = vmatpush.msra.mxu2 %v14616_v20 }
 0xe93   : > { %v14422_v31 = vpop.permute.xlu1 %7449 }
 0xe94   : > { %v7454_v26 = vsel %vm305_vm1, %v7448_v3, %v14422_v31  ;;  %v7746_v3 = vsub.f32 %v14471_v32, %v7745_v18  ;;  %v7662_v32 = vld [vmem:[%s16700_s20 + $0xf0] sm:$0xff] }
 0xe95   : > { %7463 = vst [vmem:[#allocation2 + $0x10] sm:$0xff] %v7454_v26  ;;  %7546 = vrot.lane.b32.xlu2 %v7454_v26, %s16166_s14  ;;  %7480 = vrot.lane.b32.xlu0 %v7454_v26, %s16252_s26  ;;  %v14744_v4 = vand.u32 4294901760, %v7662_v32 }
 0xe96   : > { %v7747_v27 = vand.u32 4294901760, %v7746_v3  ;;  %v14599_v3 = vand.u32 4294901760, %v7635_v22 }
 0xe98   : > { %7748 = vmatpush.msra.mxu1 %v7747_v27  ;;  %v7777_v27 = vand.u32 4294901760, %v7776_v56  ;;  %v14619_v39 = vsub.f32 %v7635_v22, %v14599_v3  ;;  %v7800_v56 = vsub.f32 %v14572_v19, %v7799_v6  ;;  %7721 = vmatpush.msra.mxu0 %v14599_v3 }
 0xe99   : > { %7917 = vmatpush.msra.mxu3 %v14599_v3 }
 0xe9a   : > { %7754 = vmatpush.msra.mxu1 %v7753_v46  ;;  %v7794_v46 = vsub.f32 %v14556_v28, %v7793_v49  ;;  %7723 = vmatpush.msra.mxu0 %v14601_v45 }
 0xe9b   : > { %7876 = vmatpush.msra.mxu2 %v14619_v39  ;;  %7919 = vmatpush.msra.mxu3 %v14601_v45 }
 0xe9c   : > { %7760 = vmatpush.msra.mxu1 %v7759_v7  ;;  %v14626_v7 = vsub.f32 %v7634_v21, %v14601_v45  ;;  %v7795_v51 = vand.u32 4294901760, %v7794_v46  ;;  %v7632_v21 = vld [vmem:[%s16700_s20] sm:$0xff]  ;;  %7725 = vmatpush.msra.mxu0 %v14611_v34 }
 0xe9d   : > { %7568 = vrot.lane.b32.xlu2 %v7454_v26, %s16165_s22  ;;  %7502 = vrot.lane.b32.xlu0 %v7454_v26, %s16292_s29 }
 0xe9e   : > { %7766 = vmatpush.msra.mxu1 %v7765_v58  ;;  %v16123_v58 = vand.u32 4294901760, %v14619_v39  ;;  %v7817_v22 = vand.u32 4294901760, %v14626_v7  ;;  %7879 = vmatpush.msra.mxu2 %v14626_v7 }
 0xe9f   : > { %7921 = vmatpush.msra.mxu3 %v14611_v34 }
 0xea5   : > { %7590 = vrot.lane.b32.xlu2 %v7454_v26, %s16170_s16  ;;  %7524 = vrot.lane.b32.xlu0 %v7454_v26, %s16366_s15 }
 0xead   : > { %7612 = vrot.lane.b32.xlu2 %v7454_v26, %s16262_s3  ;;  %v7787_v26 = vand.u32 4294901760, %v14553_v0 }
 0xeaf   : > { %v7788_v48 = vsub.f32 %v14553_v0, %v7787_v26 }
 0xeb1   : > { %v14594_v12 = vpop.permute.xlu1 %7478 }
 0xeb9   : > { %v14664_v41 = vpop.permute.xlu1 %7520 }
 0xed0   : > { %v7452_v62 = vpop.permute.xlu2 %7451 }
 0xed1   : > { %v14566_v42 = vsel %vm305_vm1, %v14422_v31, %v7452_v62  ;;  %7465 = vst.msk [vmem:[#allocation2 + $0x20] sm:$0xff] %vm305_vm1, %v7452_v62  ;;  %v7771_v31 = vand.u32 4294901760, %v7770_v1  ;;  %v7805_v1 = vand.u32 4294901760, %v14616_v20  ;;  %v7789_v62 = vand.u32 4294901760, %v7788_v48 }
 0xed2   : > { %7464 = vst [vmem:[#allocation2 + $0x18] sm:$0xff] %v14566_v42  ;;  %7592 = vrot.lane.b32.xlu1 %v14566_v42, %s16170_s16  ;;  %7614 = vrot.lane.b32.xlu2 %v14566_v42, %s16262_s3  ;;  %v7801_v48 = vand.u32 4294901760, %v7800_v56  ;;  %v7818_v56 = vsub.f32 %v14626_v7, %v7817_v22  ;;  %vm16701_vm1 = vcmask 441344  }
 0xed3   : > { %7548 = vrot.lane.b32.xlu0 %v14566_v42, %s16166_s14  ;;  %7772 = vmatpush.msra.mxu1 %v7771_v31  ;;  %v14637_v31 = vsub.f32 %v7633_v33, %v14611_v34  ;;  %v7806_v17 = vsub.f32 %v14616_v20, %v7805_v1  ;;  %v14654_v33 = vand.u32 4294901760, %v7632_v21  ;;  %vm16708_vm13 = vmmov %vm16701_vm1 }
 0xed4   : > { %vm16722_vm6 = vmmov %vm16701_vm1 }
 0xed5   : > { %7778 = vmatpush.msra.mxu1 %v7777_v27  ;;  %v16124_v46 = vand.u32 4294901760, %v14637_v31  ;;  %v14668_v40 = vsub.f32 %v7632_v21, %v14654_v33  ;;  %7727 = vmatpush.msra.mxu0 %v14654_v33 }
 0xed6   : > { %7882 = vmatpush.msra.mxu2 %v14637_v31  ;;  %7923 = vmatpush.msra.mxu3 %v14654_v33 }
 0xed7   : > { %7784 = vmatpush.msra.mxu1 %v7783_v52  ;;  %v7812_v52 = vsub.f32 %v14619_v39, %v16123_v58  ;;  %v7829_v60 = vand.u32 4294901760, %v14668_v40  ;;  %7934 = vmatpush.msrb.mxu0 %v7739_v15 }
 0xed8   : > { %v14657_v27 = vpop.permute.xlu2 %7498  ;;  %v14678_v58 = vld [vmem:[#allocation2 + $0x20] sm:$0xff]  ;;  %7885 = vmatpush.msra.mxu2 %v14668_v40 }
 0xed9   : > { %7790 = vmatpush.msra.mxu1 %v7789_v62  ;;  %v7807_v62 = vand.u32 4294901760, %v7806_v17  ;;  %v7813_v21 = vand.u32 4294901760, %v7812_v52  ;;  %v7819_v17 = vand.u32 4294901760, %v7818_v56  ;;  %7938 = vmatpush.msrb.mxu0 %v7745_v18  ;;  %v14770_v56 = vand.u32 4294901760, %v7661_v47 }
 0xeda   : > { %7504 = vrot.lane.b32.xlu1 %v14566_v42, %s16292_s29  ;;  %7526 = vrot.lane.b32.xlu2 %v14566_v42, %s16366_s15 }
 0xedb   : > { %7570 = vrot.lane.b32.xlu0 %v14566_v42, %s16165_s22  ;;  %7796 = vmatpush.msra.mxu1 %v7795_v51  ;;  %v7824_v51 = vsub.f32 %v14637_v31, %v16124_v46 }
 0xedc   : > { %7942 = vmatpush.msrb.mxu0 %v7751_v24  ;;  %v14755_v24 = vsub.f32 %v7662_v32, %v14744_v4 }
 0xedd   : > { %7802 = vmatpush.msra.mxu1 %v7801_v48  ;;  %v7830_v48 = vsub.f32 %v14668_v40, %v7829_v60  ;;  %v7825_v52 = vand.u32 4294901760, %v7824_v51 }
 0xede   : > { %7946 = vmatpush.msrb.mxu0 %v7757_v38 }
 0xedf   : > { %7808 = vmatpush.msra.mxu1 %v7807_v62  ;;  %v14701_v62 = vpop.permute.xlu1 %7544 }
 0xee0   : > { %v14698_v46 = vpop.permute.xlu2 %7522  ;;  %7950 = vmatpush.msrb.mxu0 %v7763_v5 }
 0xee1   : > { %7814 = vmatpush.msra.mxu1 %v7813_v21 }
 0xee2   : > { %7572 = vrot.lane.b32.xlu1 %v14678_v58, %s16165_s22  ;;  %7594 = vrot.lane.b32.xlu2 %v14678_v58, %s16170_s16 }
 0xee3   : > { %7482 = vrot.lane.b32.xlu0 %v14566_v42, %s16252_s26  ;;  %7820 = vmatpush.msra.mxu1 %v7819_v17  ;;  %v7831_v42 = vand.u32 4294901760, %v7830_v48  ;;  %v7659_v17 = vld [vmem:[%s16700_s20 + $0xd8] sm:$0xff] }
 0xee4   : > { %7954 = vmatpush.msrb.mxu0 %v7769_v9 }
 0xee5   : > { %7826 = vmatpush.msra.mxu1 %v7825_v52 }
 0xee6   : > { %7958 = vmatpush.msrb.mxu0 %v7775_v14 }
 0xee7   : > { %7832 = vmatpush.msra.mxu1 %v7831_v42  ;;  %v14736_v59 = vpop.permute.xlu1 %7566 }
 0xee8   : > { %7962 = vmatpush.msrb.mxu0 %v7781_v63  ;;  %v14808_v63 = vand.u32 4294901760, %v7659_v17 }
 0xee9   : > { %8001 = vmatpush.msrb.mxu1 %v14442_v61  ;;  %v7477_v61 = vpop.permute.xlu0 %7476 }
 0xeea   : > { %7484 = vrot.lane.b32.xlu1 %v14678_v58, %s16252_s26  ;;  %7506 = vrot.lane.b32.xlu2 %v14678_v58, %s16292_s29  ;;  %v7486_v9 = vsel %vm16701_vm1, %v7477_v61, %v14594_v12  ;;  %vm16729_vm1 = vmmov %vm16705_vm0 }
 0xeeb   : > { %7550 = vrot.lane.b32.xlu0 %v14678_v58, %s16166_s14  ;;  %8003 = vmatpush.msrb.mxu1 %v14444_v35  ;;  %v7663_v35 = vld [vmem:[%s16700_s20 + $0xf8] sm:$0xff]  ;;  %v7494_v52 = vmax.f32 %v7437_v37, %v7486_v9  ;;  %v14828_v37 = vsub.f32 %v7659_v17, %v14808_v63 }
 0xeec   : > { %7966 = vmatpush.msrb.mxu0 %v7787_v26 }
 0xeed   : > { %8005 = vmatpush.msrb.mxu1 %v14446_v57  ;;  %v14742_v57 = vand.u32 4294901760, %v7663_v35 }
 0xeee   : > { %7970 = vmatpush.msrb.mxu0 %v7793_v49 }
 0xeef   : > { %v14723_v15 = vpop.permute.xlu2 %7546  ;;  %8007 = vmatpush.msrb.mxu1 %v14457_v50  ;;  %v14752_v18 = vsub.f32 %v7663_v35, %v14742_v57  ;;  %8038 = vmatpush.msrb.mxu2 %v14742_v57  ;;  %v8086_v50 = vand.u32 4294901760, %v14755_v24  ;;  %v7589_v42 = vpop.permute.xlu1 %7588 }
 0xef0   : > { %7974 = vmatpush.msrb.mxu0 %v7799_v6 }
 0xef1   : > { %8009 = vmatpush.msrb.mxu1 %v14459_v23  ;;  %v8080_v38 = vand.u32 4294901760, %v14752_v18  ;;  %8040 = vmatpush.msrb.mxu2 %v14744_v4  ;;  %v8087_v29 = vsub.f32 %v14755_v24, %v8086_v50  ;;  %v14790_v14 = vpop.permute.xlu0 %7500 }
 0xef2   : > { %7552 = vrot.lane.b32.xlu1 %v14721_v55, %s16166_s14  ;;  %7574 = vrot.lane.b32.xlu2 %v14721_v55, %s16165_s22  ;;  %v7508_v48 = vsel %vm16702_vm10, %v14657_v27, %v14790_v14  ;;  %v7554_v27 = vsel %vm16704_vm12, %v14701_v62, %v14723_v15  ;;  %vm16736_vm10 = vmmov %vm16722_vm6 }
 0xef3   : > { %7616 = vrot.lane.b32.xlu0 %v14678_v58, %s16262_s3  ;;  %8011 = vmatpush.msrb.mxu1 %v14461_v30  ;;  %v8081_v23 = vsub.f32 %v14752_v18, %v8080_v38  ;;  %v14784_v30 = vsub.f32 %v7661_v47, %v14770_v56  ;;  %v8088_v51 = vand.u32 4294901760, %v8087_v29  ;;  %v7516_v26 = vmax.f32 %v7494_v52, %v7508_v48  ;;  %vm16739_vm12 = vmmov %vm16711_vm3 }
 0xef4   : > { %8042 = vmatpush.msrb.mxu2 %v14770_v56  ;;  %v8104_v47 = vand.u32 4294901760, %v14828_v37  ;;  %7978 = vmatpush.msrb.mxu0 %v7805_v1 }
 0xef5   : > { %8013 = vmatpush.msrb.mxu1 %v14476_v2  ;;  %v8082_v21 = vand.u32 4294901760, %v8081_v23  ;;  %v14796_v2 = vand.u32 4294901760, %v7660_v54  ;;  %v8092_v13 = vand.u32 4294901760, %v14784_v30 }
 0xef6   : > { %v8105_v19 = vsub.f32 %v14828_v37, %v8104_v47 }
 0xef7   : > { %v14767_v5 = vpop.permute.xlu2 %7568  ;;  %8015 = vmatpush.msrb.mxu1 %v14530_v53  ;;  %8083 = vmatpush.msrb.mxu3 %v8082_v21  ;;  %v14815_v61 = vsub.f32 %v7660_v54, %v14796_v2  ;;  %v7530_v53 = vsel %vm16703_vm14, %v14664_v41, %v14698_v46  ;;  %v8093_v11 = vsub.f32 %v14784_v30, %v8092_v13  ;;  %vm16738_vm14 = vmmov %vm16724_vm8 }
 0xef8   : > { %8044 = vmatpush.msrb.mxu2 %v14796_v2  ;;  %v7538_v28 = vmax.f32 %v7516_v26, %v7530_v53  ;;  %v7576_v29 = vsel %vm16705_vm0, %v14736_v59, %v14767_v5  ;;  %v8106_v17 = vand.u32 4294901760, %v8105_v19  ;;  %v7611_v26 = vpop.permute.xlu1 %7610  ;;  %v16707_v19 = vand.u32 4294901760, %v14637_v31  ;;  %vm16740_vm0 = vmmov %vm16607_vm4 }
 0xef9   : > { %8017 = vmatpush.msrb.mxu1 %v14537_v10  ;;  %8089 = vmatpush.msrb.mxu3 %v8088_v51  ;;  %v8098_v41 = vand.u32 4294901760, %v14815_v61  ;;  %v7657_v10 = vld [vmem:[%s16700_s20 + $0xc8] sm:$0xff]  ;;  %v8094_v32 = vand.u32 4294901760, %v8093_v11 }
 0xefa   : > { %7618 = vrot.lane.b32.xlu1 %v14721_v55, %s16262_s3  ;;  %v14849_v62 = vand.u32 4294901760, %v7657_v10  ;;  %8046 = vmatpush.msrb.mxu2 %v14808_v63  ;;  %v7562_v54 = vmax.f32 %v7538_v28, %v7554_v27  ;;  %s16743_s3 = sld [smem:[#allocation11_spill]] }
 0xefb   : > { %7528 = vrot.lane.b32.xlu0 %v14678_v58, %s16366_s15  ;;  %v7658_v58 = vld [vmem:[%s16700_s20 + $0xd0] sm:$0xff]  ;;  %8019 = vmatpush.msrb.mxu1 %v14539_v8  ;;  %v8099_v49 = vsub.f32 %v14815_v61, %v8098_v41  ;;  %v7656_v8 = vld [vmem:[%s16700_s20 + $0xc0] sm:$0xff]  ;;  %s9140_s15 = sshll.u32 %s269_s1, 3 }
 0xefc   : > { %v14830_v0 = vand.u32 4294901760, %v7658_v58  ;;  %8095 = vmatpush.msrb.mxu3 %v8094_v32  ;;  %v14869_v9 = vsub.f32 %v7657_v10, %v14849_v62  ;;  %v14875_v51 = vand.u32 4294901760, %v7656_v8  ;;  %v7584_v52 = vmax.f32 %v7562_v54, %v7576_v29  ;;  %v7653_v10 = vld [vmem:[%s16700_s20 + $0xa8] sm:$0xff]  ;;  %s271_s28 = scalar_lea.vmem [#allocation4], %s9140_s15 }
 0xefd   : > { %8021 = vmatpush.msrb.mxu1 %v14541_v44  ;;  %v8100_v59 = vand.u32 4294901760, %v8099_v49  ;;  %v7655_v44 = vld [vmem:[%s16700_s20 + $0xb8] sm:$0xff]  ;;  %v14923_v7 = vand.u32 4294901760, %v7653_v10  ;;  %s9074_s12 = sshll.u32 %s271_s28, 4  ;;  %s9075_s12 = int_to_ptr.vmem [resolvable:$true] %s9074_s12 }
 0xefe   : > { %v14847_v23 = vsub.f32 %v7658_v58, %v14830_v0  ;;  %8048 = vmatpush.msrb.mxu2 %v14830_v0  ;;  %v8116_v1 = vand.u32 4294901760, %v14869_v9  ;;  %v14888_v48 = vand.u32 4294901760, %v7655_v44  ;;  %v14893_v58 = vsub.f32 %v7656_v8, %v14875_v51 }
 0xeff   : > { %v14842_v35 = vpop.permute.xlu2 %7590  ;;  %8023 = vmatpush.msrb.mxu1 %v14597_v16  ;;  %8101 = vmatpush.msrb.mxu3 %v8100_v59  ;;  %v7654_v16 = vld [vmem:[%s16700_s20 + $0xb0] sm:$0xff] }
 0xf00   : > { %v8110_v6 = vand.u32 4294901760, %v14847_v23  ;;  %v7598_v21 = vsel %vm784_vm2, %v7589_v42, %v14842_v35  ;;  %v16706_v42 = vand.u32 4294901760, %v14619_v39  ;;  %v8117_v53 = vsub.f32 %v14869_v9, %v8116_v1  ;;  %8050 = vmatpush.msrb.mxu2 %v14849_v62  ;;  %s9196_s2 = sshll.u32 %s16743_s3, 3 }
 0xf01   : > { %8025 = vmatpush.msrb.mxu1 %v14599_v3  ;;  %v14903_v11 = vsub.f32 %v7655_v44, %v14888_v48  ;;  %v14905_v39 = vand.u32 4294901760, %v7654_v16  ;;  %v7606_v27 = vmax.f32 %v7584_v52, %v7598_v21  ;;  %8107 = vmatpush.msrb.mxu3 %v8106_v17  ;;  %v16135_v3 = vand.u32 4294901760, %v14893_v58  ;;  %s9072_s25 = scalar_lea.hbm %s16744_s6, %s9196_s2 }
 0xf02   : > { %v8111_v20 = vsub.f32 %v14847_v23, %v8110_v6  ;;  %7982 = vmatpush.msrb.mxu0 %v16706_v42  ;;  %v8118_v49 = vand.u32 4294901760, %v8117_v53  ;;  %8052 = vmatpush.msrb.mxu2 %v14875_v51  ;;  %v14942_v44 = vsub.f32 %v7653_v10, %v14923_v7  ;;  %v7652_v42 = vld [vmem:[%s16700_s20 + $0xa0] sm:$0xff]  ;;  %v7649_v10 = vld [vmem:[%s16700_s20 + $0x88] sm:$0xff]  ;;  %s9076_s17 = sshll.u32 %s9072_s25, 4  ;;  %s9077_s17 = int_to_ptr.hbm [resolvable:$true] %s9076_s17 }
 0xf03   : > { %7596 = vrot.lane.b32.xlu0 %v14721_v55, %s16170_s16  ;;  %8027 = vmatpush.msrb.mxu1 %v14601_v45  ;;  %v16132_v8 = vand.u32 4294901760, %v14903_v11  ;;  %v14921_v29 = vsub.f32 %v7654_v16, %v14905_v39  ;;  %v8123_v45 = vsub.f32 %v14893_v58, %v16135_v3  ;;  %v7650_v16 = vld [vmem:[%s16700_s20 + $0x90] sm:$0xff]  ;;  %v14968_v53 = vand.u32 4294901760, %v7652_v42  ;;  %s9316_s23 = sshra.s32 %s9077_s17, 4  ;;  %s9317_s23 = int_to_ptr.hbm [resolvable:$true] %s9316_s23 }
 0xf04   : > { %v8112_v55 = vand.u32 4294901760, %v8111_v20  ;;  %7986 = vmatpush.msrb.mxu0 %v7817_v22  ;;  %8054 = vmatpush.msrb.mxu2 %v14888_v48  ;;  %v16125_v40 = vand.u32 4294901760, %v14942_v44  ;;  %s9318_s7 = scalar_lea.hbm %s9317_s23, 8  ;;  %p9323_p0 = scmp.lt.s32.totalorder %s9317_s23, %s16744_s6 }
 0xf05   : > { %8029 = vmatpush.msrb.mxu1 %v14611_v34  ;;  %v8129_v21 = vsub.f32 %v14903_v11, %v16132_v8  ;;  %v16129_v59 = vand.u32 4294901760, %v14921_v29  ;;  %v8124_v31 = vand.u32 4294901760, %v8123_v45  ;;  %v7675_v8 = vld [vmem:[%s16700_s20 + $0x158] sm:$0xff]  ;;  %p9319_p11 = scmp.ne.s32.totalorder %s9317_s23, %s9318_s7  ;;  %p9324_p1 = scmp.lt.s32.totalorder %s9322_s10, %s9318_s7 }
 0xf06   : > { %7990 = vmatpush.msrb.mxu0 %v16707_v19  ;;  %8113 = vmatpush.msrb.mxu3 %v8112_v55  ;;  %v8141_v55 = vsub.f32 %v14942_v44, %v16125_v40  ;;  %v14979_v19 = vand.u32 4294901760, %v7649_v10 }
 0xf07   : > { %v14914_v32 = vpop.permute.xlu2 %7612  ;;  %v14916_v28 = vpop.permute.xlu0 %7480  ;;  %8031 = vmatpush.msrb.mxu1 %v14654_v33  ;;  %v8130_v34 = vand.u32 4294901760, %v8129_v21  ;;  %v8135_v20 = vsub.f32 %v14921_v29, %v16129_v59  ;;  %8056 = vmatpush.msrb.mxu2 %v14905_v39  ;;  %v7651_v33 = vld [vmem:[%s16700_s20 + $0x98] sm:$0xff]  ;;  %p9320_p12 = pnand %p9319_p11, %p9479_p5  ;;  %p9325_p2 = por %p9324_p1, %p9323_p0 }
 0xf08   : > { %v7620_v22 = vsel %vm845_vm11, %v7611_v26, %v14914_v32  ;;  %7994 = vmatpush.msrb.mxu0 %v7829_v60  ;;  %8119 = vmatpush.msrb.mxu3 %v8118_v49  ;;  %v14970_v26 = vand.u32 4294901760, %v7651_v33  ;;  %v8142_v45 = vand.u32 4294901760, %v8141_v55  ;;  %v7487_v40 = vsel %vm16708_vm13, %v14594_v12, %v14916_v28  ;;  %vm16741_vm13 = vmmov %vm16729_vm1 }
 0xf09   : > { %v7628_v54 = vmax.f32 %v7606_v27, %v7620_v22  ;;  %v8136_v52 = vand.u32 4294901760, %v8135_v20  ;;  %8058 = vmatpush.msrb.mxu2 %v14923_v7  ;;  %v14972_v27 = vand.u32 4294901760, %v7650_v16  ;;  %v14992_v20 = vsub.f32 %v7649_v10, %v14979_v19  ;;  %p9321_p13 = pneg %p9320_p12 }
 0xf0a   : > { %8125 = vmatpush.msrb.mxu3 %v8124_v31  ;;  %v14986_v21 = vsub.f32 %v7651_v33, %v14970_v26 }
 0xf0b   : > { %v14944_v17 = vand.u32 4294901760, %v7628_v54  ;;  %8060 = vmatpush.msrb.mxu2 %v14968_v53  ;;  %p9326_p3 = pnand %p9325_p2, %p9321_p13 }
 0xf0c   : > { %8131 = vmatpush.msrb.mxu3 %v8130_v34  ;;  %v14989_v34 = vsub.f32 %v7650_v16, %v14972_v27  ;;  %v16130_v16 = vand.u32 4294901760, %v14992_v20 }
 0xf0d   : > { %v7729_v60 = vsub.f32 %v7628_v54, %v14944_v17  ;;  %7834 = vmatmul.f32.vlgmr.msra.gmra.mxu1 %v14944_v17  ;;  %v14983_v54 = vsub.f32 %v7652_v42, %v14968_v53  ;;  %v16127_v42 = vand.u32 4294901760, %v14986_v21  ;;  %8062 = vmatpush.msrb.mxu2 %v14970_v26 }
 0xf0e   : > { %8234 = vmatpush.msra.mxu1 %v14742_v57  ;;  %8137 = vmatpush.msrb.mxu3 %v8136_v52 }
 0xf0f   : > { %v14977_v49 = vpop.permute.xlu0 %7502  ;;  %7888 = vmatmul.f32.vlgmr.msra.gmra.mxu2 %v7729_v60  ;;  %v7730_v22 = vand.u32 4294901760, %v7729_v60  ;;  %v16126_v52 = vand.u32 4294901760, %v14983_v54  ;;  %v8153_v10 = vsub.f32 %v14986_v21, %v16127_v42 }
 0xf10   : > { %8236 = vmatpush.msra.mxu1 %v14744_v4  ;;  %8143 = vmatpush.msrb.mxu3 %v8142_v45  ;;  %v7509_v55 = vsel %vm16709_vm9, %v14790_v14, %v14977_v49 }
 0xf11   : > { %7927 = vmatmul.f32.vlgmr.msra.gmra.mxu3 %v7730_v22  ;;  %v7731_v31 = vsub.f32 %v7729_v60, %v7730_v22  ;;  %v16128_v60 = vand.u32 4294901760, %v14989_v34  ;;  %v8147_v12 = vsub.f32 %v14983_v54, %v16126_v52  ;;  %v16710_v22 = vmax.f32 %v14321_v43, 0.0  ;;  %v7679_v43 = vld [vmem:[%s16700_s20 + $0x178] sm:$0xff]  ;;  %8064 = vmatpush.msrb.mxu2 %v14972_v27 }
 0xf12   : > { %8238 = vmatpush.msra.mxu1 %v14770_v56 }
 0xf13   : > { %v7732_v33 = vand.u32 4294901760, %v7731_v31  ;;  %v7495_v45 = vmax.f32 %v16710_v22, %v7487_v40  ;;  %v8159_v14 = vsub.f32 %v14989_v34, %v16128_v60  ;;  %v7648_v31 = vld [vmem:[%s16700_s20 + $0x80] sm:$0xff]  ;;  %v8148_v52 = vand.u32 4294901760, %v8147_v12  ;;  %8066 = vmatpush.msrb.mxu2 %v14979_v19 }
 0xf14   : > { %8240 = vmatpush.msra.mxu1 %v14796_v2  ;;  %v15024_v42 = vand.u32 4294901760, %v7648_v31  ;;  %v8154_v22 = vand.u32 4294901760, %v8153_v10  ;;  %v8165_v60 = vsub.f32 %v14992_v20, %v16130_v16 }
 0xf15   : > { %7733 = vmatmul.f32.vlgmr.msra.gmra.mxu0 %v7732_v33  ;;  %8033 = vmatmul.f32.vlgmr.msrb.gmra.mxu1 %v14944_v17  ;;  %v7517_v40 = vmax.f32 %v7495_v45, %v7509_v55  ;;  %v8160_v10 = vand.u32 4294901760, %v8159_v14  ;;  %v15046_v45 = vand.u32 4294901760, %v7679_v43  ;;  %v7678_v14 = vld [vmem:[%s16700_s20 + $0x170] sm:$0xff] }
 0xf16   : > { %8181 = vmatpush.msra.mxu0 %v14752_v18  ;;  %8242 = vmatpush.msra.mxu1 %v14808_v63  ;;  %v15041_v59 = vsub.f32 %v7648_v31, %v15024_v42  ;;  %v8166_v16 = vand.u32 4294901760, %v8165_v60  ;;  %v7677_v31 = vld [vmem:[%s16700_s20 + $0x168] sm:$0xff]  ;;  %v7676_v60 = vld [vmem:[%s16700_s20 + $0x160] sm:$0xff] }
 0xf17   : > { %v15029_v33 = vpop.permute.xlu0 %7524  ;;  %8149 = vmatpush.msrb.mxu3 %v8148_v52  ;;  %8068 = vmatpush.msrb.mxu2 %v15024_v42 }
 0xf18   : > { %v7531_v12 = vsel %vm16711_vm3, %v14698_v46, %v15029_v33  ;;  %8184 = vmatpush.msra.mxu0 %v14755_v24  ;;  %8244 = vmatpush.msra.mxu1 %v14830_v0  ;;  %v16131_v46 = vand.u32 4294901760, %v15041_v59 }
 0xf19   : > { %v15043_v55 = vmax.f32 %v7517_v40, %v7531_v12  ;;  %8155 = vmatpush.msrb.mxu3 %v8154_v22  ;;  %v15068_v40 = vsub.f32 %v7679_v43, %v15046_v45  ;;  %v15070_v22 = vand.u32 4294901760, %v7678_v14  ;;  %v15072_v12 = vand.u32 4294901760, %v7677_v31  ;;  %8275 = vmatpush.msra.mxu2 %v8080_v38 }
 0xf1a   : > { %8187 = vmatpush.msra.mxu0 %v14784_v30  ;;  %8246 = vmatpush.msra.mxu1 %v14849_v62  ;;  %v8171_v52 = vsub.f32 %v15041_v59, %v16131_v46  ;;  %v15083_v43 = vand.u32 4294901760, %v7676_v60  ;;  %v7673_v30 = vld [vmem:[%s16700_s20 + $0x148] sm:$0xff] }
 0xf1b   : > { %8161 = vmatpush.msrb.mxu3 %v8160_v10  ;;  %v16134_v10 = vand.u32 4294901760, %v15068_v40  ;;  %8279 = vmatpush.msra.mxu2 %v8086_v50  ;;  %v7674_v50 = vld [vmem:[%s16700_s20 + $0x150] sm:$0xff] }
 0xf1c   : > { %8190 = vmatpush.msra.mxu0 %v14815_v61  ;;  %8248 = vmatpush.msra.mxu1 %v14875_v51  ;;  %v8172_v46 = vand.u32 4294901760, %v8171_v52  ;;  %v15091_v52 = vsub.f32 %v7677_v31, %v15072_v12  ;;  %v7671_v61 = vld [vmem:[%s16700_s20 + $0x138] sm:$0xff] }
 0xf1d   : > { %7996 = vmatmul.f32.vlgmr.msrb.gmra.mxu0 %v14944_v17  ;;  %8167 = vmatpush.msrb.mxu3 %v8166_v16  ;;  %v15080_v17 = vsub.f32 %v7678_v14, %v15070_v22  ;;  %v15093_v16 = vand.u32 4294901760, %v7675_v8  ;;  %v8422_v18 = vsub.f32 %v15068_v40, %v16134_v10  ;;  %v15152_v10 = vand.u32 4294901760, %v7671_v61 }
 0xf1e   : > { %8193 = vmatpush.msra.mxu0 %v14828_v37  ;;  %8250 = vmatpush.msra.mxu1 %v14888_v48 }
 0xf1f   : > { %8173 = vmatpush.msrb.mxu3 %v8172_v46  ;;  %v16133_v14 = vand.u32 4294901760, %v15080_v17  ;;  %v15102_v46 = vsub.f32 %v7676_v60, %v15083_v43  ;;  %8283 = vmatpush.msra.mxu2 %v8092_v13  ;;  %v15114_v24 = vsub.f32 %v7675_v8, %v15093_v16  ;;  %v15136_v13 = vand.u32 4294901760, %v7674_v50 }
 0xf20   : > { %8196 = vmatpush.msra.mxu0 %v14847_v23  ;;  %8252 = vmatpush.msra.mxu1 %v14905_v39  ;;  %v15138_v8 = vand.u32 4294901760, %v7673_v30 }
 0xf21   : > { %8342 = vmatpush.msra.mxu3 %v14742_v57  ;;  %v8433_v57 = vand.u32 4294901760, %v15091_v52  ;;  %v8439_v38 = vand.u32 4294901760, %v15102_v46  ;;  %8287 = vmatpush.msra.mxu2 %v8098_v41  ;;  %v8423_v41 = vand.u32 4294901760, %v8422_v18  ;;  %v15157_v3 = vsub.f32 %v7674_v50, %v15136_v13 }
 0xf22   : > { %8199 = vmatpush.msra.mxu0 %v14869_v9  ;;  %8254 = vmatpush.msra.mxu1 %v14923_v7 }
 0xf23   : > { %8344 = vmatpush.msra.mxu3 %v14744_v4  ;;  %v8428_v4 = vsub.f32 %v15080_v17, %v16133_v14  ;;  %v8434_v60 = vsub.f32 %v15091_v52, %v8433_v57  ;;  %v8445_v14 = vand.u32 4294901760, %v15114_v24  ;;  %8291 = vmatpush.msra.mxu2 %v8104_v47  ;;  %v8440_v37 = vsub.f32 %v15102_v46, %v8439_v38 }
 0xf24   : > { %8202 = vmatpush.msra.mxu0 %v14893_v58  ;;  %8256 = vmatpush.msra.mxu1 %v14968_v53  ;;  %v8451_v50 = vand.u32 4294901760, %v15157_v3 }
 0xf25   : > { %8346 = vmatpush.msra.mxu3 %v14770_v56  ;;  %v7672_v56 = vld [vmem:[%s16700_s20 + $0x140] sm:$0xff]  ;;  %v8429_v18 = vand.u32 4294901760, %v8428_v4  ;;  %8295 = vmatpush.msra.mxu2 %v8110_v6  ;;  %v8435_v4 = vand.u32 4294901760, %v8434_v60  ;;  %v15180_v6 = vsub.f32 %v7671_v61, %v15152_v10  ;;  %v16712_v61 = vand.u32 4294901760, %v14893_v58 }
 0xf26   : > { %8205 = vmatpush.msra.mxu0 %v14903_v11  ;;  %8258 = vmatpush.msra.mxu1 %v14970_v26  ;;  %v15140_v31 = vand.u32 4294901760, %v7672_v56 }
 0xf27   : > { %8348 = vmatpush.msra.mxu3 %v14796_v2  ;;  %v15160_v2 = vsub.f32 %v7673_v30, %v15138_v8  ;;  %8299 = vmatpush.msra.mxu2 %v8116_v1  ;;  %v8441_v30 = vand.u32 4294901760, %v8440_v37  ;;  %v16713_v1 = vand.u32 4294901760, %v14903_v11  ;;  %v7668_v11 = vld [vmem:[%s16700_s20 + $0x120] sm:$0xff] }
 0xf28   : > { %8208 = vmatpush.msra.mxu0 %v14921_v29  ;;  %8260 = vmatpush.msra.mxu1 %v14972_v27  ;;  %v15169_v47 = vsub.f32 %v7672_v56, %v15140_v31 }
 0xf29   : > { %8350 = vmatpush.msra.mxu3 %v14808_v63  ;;  %v8446_v63 = vsub.f32 %v15114_v24, %v8445_v14  ;;  %v16138_v23 = vand.u32 4294901760, %v15160_v2  ;;  %8303 = vmatpush.msra.mxu2 %v16712_v61 }
 0xf2a   : > { %8211 = vmatpush.msra.mxu0 %v14942_v44  ;;  %8262 = vmatpush.msra.mxu1 %v14979_v19  ;;  %v16136_v56 = vand.u32 4294901760, %v15169_v47 }
 0xf2b   : > { %8352 = vmatpush.msra.mxu3 %v14830_v0  ;;  %v8452_v0 = vsub.f32 %v15157_v3, %v8451_v50  ;;  %v8458_v9 = vsub.f32 %v15160_v2, %v16138_v23  ;;  %8307 = vmatpush.msra.mxu2 %v16713_v1 }
 0xf2c   : > { %8214 = vmatpush.msra.mxu0 %v14983_v54  ;;  %8264 = vmatpush.msra.mxu1 %v15024_v42  ;;  %v8464_v58 = vsub.f32 %v15169_v47, %v16136_v56 }
 0xf2d   : > { %8354 = vmatpush.msra.mxu3 %v14849_v62  ;;  %v16137_v62 = vand.u32 4294901760, %v15180_v6  ;;  %v8453_v60 = vand.u32 4294901760, %v8452_v0  ;;  %v8459_v0 = vand.u32 4294901760, %v8458_v9 }
 0xf2e   : > { %8424 = vmatpush.msrb.mxu1 %v8423_v41  ;;  %8217 = vmatpush.msra.mxu0 %v14986_v21  ;;  %v8447_v41 = vand.u32 4294901760, %v8446_v63  ;;  %v16714_v63 = vand.u32 4294901760, %v14921_v29  ;;  %v8465_v9 = vand.u32 4294901760, %v8464_v58  ;;  %v7666_v58 = vld [vmem:[%s16700_s20 + $0x110] sm:$0xff] }
 0xf2f   : > { %8356 = vmatpush.msra.mxu3 %v14875_v51  ;;  %v7670_v51 = vld [vmem:[%s16700_s20 + $0x130] sm:$0xff]  ;;  %v8470_v61 = vsub.f32 %v15180_v6, %v16137_v62 }
 0xf30   : > { %8430 = vmatpush.msrb.mxu1 %v8429_v18  ;;  %8220 = vmatpush.msra.mxu0 %v14989_v34  ;;  %v7669_v18 = vld [vmem:[%s16700_s20 + $0x128] sm:$0xff]  ;;  %v15215_v37 = vand.u32 4294901760, %v7670_v51 }
 0xf31   : > { %8358 = vmatpush.msra.mxu3 %v14888_v48  ;;  %v15217_v48 = vand.u32 4294901760, %v7669_v18  ;;  %8311 = vmatpush.msra.mxu2 %v16714_v63 }
 0xf32   : > { %8436 = vmatpush.msrb.mxu1 %v8435_v4  ;;  %8223 = vmatpush.msra.mxu0 %v14992_v20  ;;  %v15219_v4 = vand.u32 4294901760, %v7668_v11  ;;  %v15234_v56 = vsub.f32 %v7670_v51, %v15215_v37 }
 0xf33   : > { %8360 = vmatpush.msra.mxu3 %v14905_v39  ;;  %v15237_v29 = vsub.f32 %v7669_v18, %v15217_v48 }
 0xf34   : > { %8442 = vmatpush.msrb.mxu1 %v8441_v30  ;;  %8226 = vmatpush.msra.mxu0 %v15041_v59  ;;  %v7667_v30 = vld [vmem:[%s16700_s20 + $0x118] sm:$0xff]  ;;  %v15240_v63 = vsub.f32 %v7668_v11, %v15219_v4  ;;  %v16139_v39 = vand.u32 4294901760, %v15234_v56  ;;  %v16716_v11 = vand.u32 4294901760, %v14983_v54 }
 0xf35   : > { %v15230_v1 = vand.u32 4294901760, %v7667_v30  ;;  %8362 = vmatpush.msra.mxu3 %v14923_v7  ;;  %v16140_v51 = vand.u32 4294901760, %v15237_v29  ;;  %v7665_v7 = vld [vmem:[%s16700_s20 + $0x108] sm:$0xff] }
 0xf36   : > { %8379 = vmatpush.msrb.mxu0 %v15046_v45  ;;  %8448 = vmatpush.msrb.mxu1 %v8447_v41  ;;  %v16715_v41 = vand.u32 4294901760, %v14942_v44  ;;  %v16141_v18 = vand.u32 4294901760, %v15240_v63  ;;  %v8471_v44 = vand.u32 4294901760, %v8470_v61  ;;  %v8476_v54 = vsub.f32 %v15234_v56, %v16139_v39 }
 0xf37   : > { %v15246_v62 = vsub.f32 %v7667_v30, %v15230_v1  ;;  %v7664_v30 = vld [vmem:[%s16700_s20 + $0x100] sm:$0xff]  ;;  %8364 = vmatpush.msra.mxu3 %v14968_v53  ;;  %v15272_v61 = vand.u32 4294901760, %v7666_v58 }
 0xf38   : > { %8315 = vmatpush.msra.mxu2 %v16715_v41  ;;  %8381 = vmatpush.msrb.mxu0 %v15070_v22  ;;  %v16717_v41 = vand.u32 4294901760, %v14986_v21  ;;  %v8488_v53 = vsub.f32 %v15240_v63, %v16141_v18  ;;  %v15282_v23 = vand.u32 4294901760, %v7664_v30  ;;  %v8477_v39 = vand.u32 4294901760, %v8476_v54 }
 0xf39   : > { %8454 = vmatpush.msrb.mxu1 %v8453_v60  ;;  %v8493_v60 = vand.u32 4294901760, %v15246_v62  ;;  %8366 = vmatpush.msra.mxu3 %v14970_v26  ;;  %v16718_v21 = vand.u32 4294901760, %v14989_v34  ;;  %v16719_v34 = vand.u32 4294901760, %v14992_v20 }
 0xf3a   : > { %8319 = vmatpush.msra.mxu2 %v16716_v11  ;;  %8383 = vmatpush.msrb.mxu0 %v15072_v12  ;;  %v15280_v11 = vand.u32 4294901760, %v7665_v7  ;;  %v15298_v54 = vsub.f32 %v7664_v30, %v15282_v23 }
 0xf3b   : > { %8460 = vmatpush.msrb.mxu1 %v8459_v0  ;;  %v8482_v0 = vsub.f32 %v15237_v29, %v16140_v51  ;;  %v15286_v51 = vsub.f32 %v7666_v58, %v15272_v61  ;;  %8368 = vmatpush.msra.mxu3 %v14972_v27  ;;  %v16720_v27 = vand.u32 4294901760, %v15041_v59 }
 0xf3c   : > { %8323 = vmatpush.msra.mxu2 %v16717_v41  ;;  %8385 = vmatpush.msrb.mxu0 %v15083_v43  ;;  %v8494_v41 = vsub.f32 %v15246_v62, %v8493_v60  ;;  %v15295_v18 = vsub.f32 %v7665_v7, %v15280_v11 }
 0xf3d   : > { %8466 = vmatpush.msrb.mxu1 %v8465_v9  ;;  %v8483_v9 = vand.u32 4294901760, %v8482_v0  ;;  %v8499_v26 = vand.u32 4294901760, %v15286_v51  ;;  %v8511_v0 = vand.u32 4294901760, %v15298_v54  ;;  %8370 = vmatpush.msra.mxu3 %v14979_v19 }
 0xf3e   : > { %8327 = vmatpush.msra.mxu2 %v16718_v21  ;;  %8387 = vmatpush.msrb.mxu0 %v15093_v16  ;;  %v8505_v58 = vand.u32 4294901760, %v15295_v18  ;;  %v8495_v20 = vand.u32 4294901760, %v8494_v41 }
 0xf3f   : > { %8472 = vmatpush.msrb.mxu1 %v8471_v44  ;;  %v8489_v44 = vand.u32 4294901760, %v8488_v53  ;;  %v8500_v7 = vsub.f32 %v15286_v51, %v8499_v26  ;;  %8372 = vmatpush.msra.mxu3 %v15024_v42  ;;  %v8512_v30 = vsub.f32 %v15298_v54, %v8511_v0 }
 0xf40   : > { %8331 = vmatpush.msra.mxu2 %v16719_v34  ;;  %8389 = vmatpush.msrb.mxu0 %v15136_v13 }
 0xf41   : > { %8478 = vmatpush.msrb.mxu1 %v8477_v39  ;;  %v8506_v39 = vsub.f32 %v15295_v18, %v8505_v58  ;;  %v8501_v19 = vand.u32 4294901760, %v8500_v7  ;;  %v8513_v21 = vand.u32 4294901760, %v8512_v30  ;;  %v7615_v7 = vpop.permute.xlu2 %7614 }
 0xf42   : > { %8335 = vmatpush.msra.mxu2 %v16720_v27  ;;  %8391 = vmatpush.msrb.mxu0 %v15138_v8 }
 0xf43   : > { %8484 = vmatpush.msrb.mxu1 %v8483_v9  ;;  %v8507_v53 = vand.u32 4294901760, %v8506_v39 }
 0xf44   : > { %8393 = vmatpush.msrb.mxu0 %v15140_v31  ;;  %v15324_v9 = vpop.permute.xlu1 %7592 }
 0xf45   : > { %8490 = vmatpush.msrb.mxu1 %v8489_v44  ;;  %v7549_v59 = vpop.permute.xlu0 %7548 }
 0xf46   : > { %8395 = vmatpush.msrb.mxu0 %v15152_v10  ;;  %v7555_v42 = vsel %vm16607_vm4, %v14723_v15, %v7549_v59 }
 0xf47   : > { %8496 = vmatpush.msrb.mxu1 %v8495_v20  ;;  %v7563_v41 = vmax.f32 %v15043_v55, %v7555_v42  ;;  %v7599_v20 = vsel %vm784_vm2, %v14842_v35, %v15324_v9  ;;  %v7621_v55 = vsel %vm845_vm11, %v14914_v32, %v7615_v7  ;;  %v16723_v35 = vmax.f32 %v14397_v36, 0.0 }
 0xf48   : > { %8397 = vmatpush.msrb.mxu0 %v15215_v37 }
 0xf49   : > { %8502 = vmatpush.msrb.mxu1 %v8501_v19 }
 0xf4a   : > { %8399 = vmatpush.msrb.mxu0 %v15217_v48 }
 0xf4b   : > { %8508 = vmatpush.msrb.mxu1 %v8507_v53 }
 0xf4c   : > { %8401 = vmatpush.msrb.mxu0 %v15219_v4  ;;  %v15341_v19 = vpop.permute.xlu1 %7504 }
 0xf4d   : > { %8514 = vmatpush.msrb.mxu1 %v8513_v21  ;;  %v7571_v34 = vpop.permute.xlu0 %7570  ;;  %v7510_v32 = vsel %vm16724_vm8, %v14977_v49, %v15341_v19 }
 0xf4e   : > { %8403 = vmatpush.msrb.mxu0 %v15230_v1  ;;  %v7577_v44 = vsel %vm16721_vm7, %v14767_v5, %v7571_v34 }
 0xf4f   : > { %v7585_v27 = vmax.f32 %v7563_v41, %v7577_v44  ;;  %v15355_v41 = vpop.permute.xlu2 %7526 }
 0xf50   : > { %8405 = vmatpush.msrb.mxu0 %v15272_v61 }
 0xf51   : > { %v7607_v15 = vmax.f32 %v7585_v27, %v7599_v20  ;;  %v7532_v20 = vsel %vm16726_vm5, %v15029_v33, %v15355_v41 }
 0xf52   : > { %8407 = vmatpush.msrb.mxu0 %v15280_v11 }
 0xf53   : > { %v7629_v39 = vmax.f32 %v7607_v15, %v7621_v55  ;;  %v16727_v15 = vand.u32 4294901760, %v15080_v17 }
 0xf54   : > { %8409 = vmatpush.msrb.mxu0 %v15282_v23  ;;  %v15365_v49 = vpop.permute.xlu1 %7572 }
 0xf55   : > { %v15344_v5 = vpop.permute.xlu0 %7482  ;;  %v8069_v30 = vand.u32 4294901760, %v7629_v39 }
 0xf56   : > { %v7488_v53 = vsel %vm16722_vm6, %v14916_v28, %v15344_v5  ;;  %v16725_v28 = vand.u32 4294901760, %v15068_v40 }
 0xf57   : > { %v7496_v21 = vmax.f32 %v16723_v35, %v7488_v53  ;;  %8175 = vmatmul.f32.vlgmr.msrb.gmra.mxu3 %v8069_v30  ;;  %v8070_v42 = vsub.f32 %v7629_v39, %v8069_v30 }
 0xf58   : > { %8575 = vmatpush.msrb.mxu3 %v15046_v45 }
 0xf59   : > { %v7518_v44 = vmax.f32 %v7496_v21, %v7510_v32  ;;  %8229 = vmatmul.f32.vlgmr.msra.gmra.mxu0 %v8070_v42  ;;  %v8071_v27 = vand.u32 4294901760, %v8070_v42 }
 0xf5a   : > { %8577 = vmatpush.msrb.mxu3 %v15070_v22  ;;  %8616 = vmatpush.msra.mxu0 %v16725_v28  ;;  %v7690_v28 = vld [vmem:[%s16700_s20 + $0x1d0] sm:$0xff] }
 0xf5b   : > { %8268 = vmatmul.f32.vlgmr.msra.gmra.mxu1 %v8071_v27  ;;  %v8072_v36 = vsub.f32 %v8070_v42, %v8071_v27  ;;  %v7540_v39 = vmax.f32 %v7518_v44, %v7532_v20  ;;  %v16733_v44 = vand.u32 4294901760, %v15234_v56  ;;  %v16734_v20 = vand.u32 4294901760, %v15237_v29 }
 0xf5c   : > { %8579 = vmatpush.msrb.mxu3 %v15072_v12  ;;  %8683 = vmatpush.msra.mxu1 %v15046_v45  ;;  %v7578_v45 = vsel %vm16729_vm1, %v7571_v34, %v15365_v49  ;;  %v7692_v34 = vld [vmem:[%s16700_s20 + $0x1e0] sm:$0xff] }
 0xf5d   : > { %8620 = vmatpush.msra.mxu0 %v16727_v15  ;;  %v15369_v55 = vpop.permute.xlu0 %7550  ;;  %v8073_v53 = vand.u32 4294901760, %v8072_v36  ;;  %v15450_v32 = vand.u32 4294901760, %v7692_v34 }
 0xf5e   : > { %v7556_v35 = vsel %vm16728_vm15, %v7549_v59, %v15369_v55  ;;  %8581 = vmatpush.msrb.mxu3 %v15083_v43  ;;  %8685 = vmatpush.msra.mxu1 %v15070_v22  ;;  %v15385_v22 = vpop.permute.xlu2 %7594 }
 0xf5f   : > { %v7564_v33 = vmax.f32 %v7540_v39, %v7556_v35  ;;  %8624 = vmatpush.msra.mxu0 %v8433_v57  ;;  %8074 = vmatmul.f32.vlgmr.msrb.gmra.mxu2 %v8073_v53  ;;  %v7600_v57 = vsel %vm784_vm2, %v15324_v9, %v15385_v22  ;;  %v15480_v15 = vsub.f32 %v7692_v34, %v15450_v32  ;;  %v15487_v53 = vand.u32 4294901760, %v7690_v28  ;;  %v7688_v35 = vld [vmem:[%s16700_s20 + $0x1c0] sm:$0xff] }
 0xf60   : > { %8374 = vmatmul.f32.vlgmr.msra.gmra.mxu3 %v8069_v30  ;;  %8522 = vmatpush.msrb.mxu2 %v15068_v40  ;;  %v7695_v40 = vld [vmem:[%s16700_s20 + $0x1f8] sm:$0xff] }
 0xf61   : > { %v7586_v21 = vmax.f32 %v7564_v33, %v7578_v45  ;;  %8583 = vmatpush.msrb.mxu3 %v15093_v16  ;;  %8687 = vmatpush.msra.mxu1 %v15072_v12  ;;  %v7485_v33 = vpop.permute.xlu1 %7484 }
 0xf62   : > { %8628 = vmatpush.msra.mxu0 %v8439_v38  ;;  %8525 = vmatpush.msrb.mxu2 %v15080_v17 }
 0xf63   : > { %8585 = vmatpush.msrb.mxu3 %v15136_v13  ;;  %8689 = vmatpush.msra.mxu1 %v15083_v43  ;;  %v7608_v17 = vmax.f32 %v7586_v21, %v7600_v57  ;;  %v7694_v43 = vld [vmem:[%s16700_s20 + $0x1f0] sm:$0xff]  ;;  %v15510_v57 = vand.u32 4294901760, %v7688_v35 }
 0xf64   : > { %8632 = vmatpush.msra.mxu0 %v8445_v14  ;;  %8528 = vmatpush.msrb.mxu2 %v15091_v52  ;;  %v15410_v52 = vand.u32 4294901760, %v7695_v40  ;;  %v15416_v59 = vand.u32 4294901760, %v7694_v43 }
 0xf65   : > { %8587 = vmatpush.msrb.mxu3 %v15138_v8  ;;  %8691 = vmatpush.msra.mxu1 %v15093_v16  ;;  %v15400_v12 = vpop.permute.xlu0 %7616  ;;  %v16730_v16 = vand.u32 4294901760, %v15160_v2 }
 0xf66   : > { %8636 = vmatpush.msra.mxu0 %v8451_v50  ;;  %v7622_v38 = vsel %vm845_vm11, %v7615_v7, %v15400_v12  ;;  %8531 = vmatpush.msrb.mxu2 %v15102_v46  ;;  %v7693_v50 = vld [vmem:[%s16700_s20 + $0x1e8] sm:$0xff]  ;;  %v16731_v46 = vand.u32 4294901760, %v15169_v47 }
 0xf67   : > { %v7630_v14 = vmax.f32 %v7608_v17, %v7622_v38  ;;  %8589 = vmatpush.msrb.mxu3 %v15140_v31  ;;  %8693 = vmatpush.msra.mxu1 %v15136_v13  ;;  %v15429_v13 = vsub.f32 %v7695_v40, %v15410_v52  ;;  %v7489_v17 = vsel %vm16736_vm10, %v15344_v5, %v7485_v33 }
 0xf68   : > { %8640 = vmatpush.msra.mxu0 %v16730_v16  ;;  %8337 = vmatmul.f32.vlgmr.msra.gmra.mxu2 %v8069_v30  ;;  %v15445_v30 = vsub.f32 %v7694_v43, %v15416_v59  ;;  %v15519_v38 = vsub.f32 %v7690_v28, %v15487_v53  ;;  %v7684_v28 = vld [vmem:[%s16700_s20 + $0x1a0] sm:$0xff] }
 0xf69   : > { %v15421_v9 = vand.u32 4294901760, %v7630_v14  ;;  %8534 = vmatpush.msrb.mxu2 %v15114_v24  ;;  %8591 = vmatpush.msrb.mxu3 %v15152_v10  ;;  %v15439_v24 = vand.u32 4294901760, %v7693_v50 }
 0xf6a   : > { %8695 = vmatpush.msra.mxu1 %v15138_v8  ;;  %8644 = vmatpush.msra.mxu0 %v16731_v46  ;;  %v16732_v8 = vand.u32 4294901760, %v15180_v6 }
 0xf6b   : > { %v15435_v7 = vsub.f32 %v7630_v14, %v15421_v9  ;;  %8537 = vmatpush.msrb.mxu2 %v15157_v3  ;;  %8593 = vmatpush.msrb.mxu3 %v15215_v37  ;;  %v7691_v3 = vld [vmem:[%s16700_s20 + $0x1d8] sm:$0xff] }
 0xf6c   : > { %8697 = vmatpush.msra.mxu1 %v15140_v31  ;;  %8648 = vmatpush.msra.mxu0 %v16732_v8  ;;  %v8762_v31 = vand.u32 4294901760, %v15429_v13  ;;  %v15471_v36 = vand.u32 4294901760, %v7691_v3 }
 0xf6d   : > { %v8412_v42 = vand.u32 4294901760, %v15435_v7  ;;  %8516 = vmatmul.f32.vlgmr.msrb.gmra.mxu1 %v15421_v9  ;;  %8540 = vmatpush.msrb.mxu2 %v15160_v2  ;;  %v15463_v2 = vsub.f32 %v7693_v50, %v15439_v24 }
 0xf6e   : > { %8595 = vmatpush.msrb.mxu3 %v15217_v48  ;;  %8699 = vmatpush.msra.mxu1 %v15152_v10  ;;  %v8768_v10 = vand.u32 4294901760, %v15445_v30  ;;  %v8763_v39 = vsub.f32 %v15429_v13, %v8762_v31  ;;  %v15504_v40 = vsub.f32 %v7691_v3, %v15471_v36  ;;  %v7685_v3 = vld [vmem:[%s16700_s20 + $0x1a8] sm:$0xff] }
 0xf6f   : > { %8652 = vmatpush.msra.mxu0 %v16733_v44  ;;  %8543 = vmatpush.msrb.mxu2 %v15169_v47  ;;  %v8413_v27 = vsub.f32 %v15435_v7, %v8412_v42  ;;  %v7689_v47 = vld [vmem:[%s16700_s20 + $0x1c8] sm:$0xff]  ;;  %v8774_v45 = vand.u32 4294901760, %v15463_v2  ;;  %v7507_v44 = vpop.permute.xlu2 %7506 }
 0xf70   : > { %8597 = vmatpush.msrb.mxu3 %v15219_v4  ;;  %8701 = vmatpush.msra.mxu1 %v15215_v37  ;;  %v8769_v21 = vsub.f32 %v15445_v30, %v8768_v10  ;;  %v8764_v43 = vand.u32 4294901760, %v8763_v39  ;;  %v8786_v16 = vand.u32 4294901760, %v15504_v40  ;;  %v15589_v39 = vand.u32 4294901760, %v7684_v28 }
 0xf71   : > { %8656 = vmatpush.msra.mxu0 %v16734_v20  ;;  %8546 = vmatpush.msrb.mxu2 %v15180_v6  ;;  %v8414_v37 = vand.u32 4294901760, %v8413_v27  ;;  %v16735_v6 = vand.u32 4294901760, %v15240_v63 }
 0xf72   : > { %8599 = vmatpush.msrb.mxu3 %v15230_v1  ;;  %8703 = vmatpush.msra.mxu1 %v15217_v48  ;;  %v15496_v48 = vand.u32 4294901760, %v7689_v47  ;;  %v8770_v14 = vand.u32 4294901760, %v8769_v21 }
 0xf73   : > { %8660 = vmatpush.msra.mxu0 %v16735_v6  ;;  %8549 = vmatpush.msrb.mxu2 %v15234_v56  ;;  %v8780_v56 = vand.u32 4294901760, %v15480_v15  ;;  %v7682_v6 = vld [vmem:[%s16700_s20 + $0x190] sm:$0xff] }
 0xf74   : > { %8601 = vmatpush.msrb.mxu3 %v15272_v61  ;;  %8705 = vmatpush.msra.mxu1 %v15219_v4  ;;  %v7687_v4 = vld [vmem:[%s16700_s20 + $0x1b8] sm:$0xff]  ;;  %v15531_v5 = vsub.f32 %v7689_v47, %v15496_v48 }
 0xf75   : > { %8664 = vmatpush.msra.mxu0 %v8493_v60  ;;  %8552 = vmatpush.msrb.mxu2 %v15237_v29  ;;  %v7686_v29 = vld [vmem:[%s16700_s20 + $0x1b0] sm:$0xff]  ;;  %v8775_v60 = vsub.f32 %v15463_v2, %v8774_v45  ;;  %v15536_v50 = vand.u32 4294901760, %v7687_v4  ;;  %v8781_v34 = vsub.f32 %v15480_v15, %v8780_v56 }
 0xf76   : > { %8415 = vmatmul.f32.vlgmr.msrb.gmra.mxu0 %v8414_v37  ;;  %8603 = vmatpush.msrb.mxu3 %v15280_v11  ;;  %v15547_v8 = vand.u32 4294901760, %v7686_v29  ;;  %v8798_v27 = vand.u32 4294901760, %v15531_v5  ;;  %v7683_v37 = vld [vmem:[%s16700_s20 + $0x198] sm:$0xff] }
 0xf77   : > { %8707 = vmatpush.msra.mxu1 %v15230_v1  ;;  %8668 = vmatpush.msra.mxu0 %v8499_v26  ;;  %v16737_v1 = vmax.f32 %v14414_v25, 0.0  ;;  %v7529_v26 = vpop.permute.xlu0 %7528  ;;  %v8792_v25 = vand.u32 4294901760, %v15519_v38  ;;  %v8782_v20 = vand.u32 4294901760, %v8781_v34 }
 0xf78   : > { %8555 = vmatpush.msrb.mxu2 %v15240_v63  ;;  %8605 = vmatpush.msrb.mxu3 %v15282_v23  ;;  %v15545_v63 = vsub.f32 %v7688_v35, %v15510_v57  ;;  %v8799_v33 = vsub.f32 %v15531_v5, %v8798_v27 }
 0xf79   : > { %v7497_v46 = vmax.f32 %v16737_v1, %v7489_v17  ;;  %8709 = vmatpush.msra.mxu1 %v15272_v61  ;;  %8609 = vmatmul.f32.vlgmr.msrb.gmra.mxu3 %v8412_v42  ;;  %v7511_v61 = vsel %vm16738_vm14, %v15341_v19, %v7507_v44  ;;  %v8776_v42 = vand.u32 4294901760, %v8775_v60  ;;  %v15573_v19 = vand.u32 4294901760, %v7685_v3 }
 0xf7a   : > { %8672 = vmatpush.msra.mxu0 %v8505_v58  ;;  %8765 = vmatpush.msra.mxu3 %v8764_v43  ;;  %v7533_v58 = vsel %vm16739_vm12, %v15355_v41, %v7529_v26  ;;  %v8804_v41 = vand.u32 4294901760, %v15545_v63  ;;  %v15604_v43 = vand.u32 4294901760, %v7683_v37  ;;  %v15621_v26 = vand.u32 4294901760, %v7682_v6 }
 0xf7b   : > { %8558 = vmatpush.msrb.mxu2 %v15246_v62  ;;  %8711 = vmatpush.msra.mxu1 %v15280_v11  ;;  %v8787_v62 = vsub.f32 %v15504_v40, %v8786_v16  ;;  %v15571_v11 = vsub.f32 %v7687_v4, %v15536_v50  ;;  %v7519_v47 = vmax.f32 %v7497_v46, %v7511_v61  ;;  %v8800_v44 = vand.u32 4294901760, %v8799_v33 }
 0xf7c   : > { %8676 = vmatpush.msra.mxu0 %v8511_v0  ;;  %8771 = vmatpush.msra.mxu3 %v8770_v14  ;;  %v15579_v0 = vsub.f32 %v7686_v29, %v15547_v8  ;;  %v15602_v17 = vsub.f32 %v7685_v3, %v15573_v19  ;;  %v8805_v29 = vsub.f32 %v15545_v63, %v8804_v41 }
 0xf7d   : > { %8561 = vmatpush.msrb.mxu2 %v15286_v51  ;;  %8713 = vmatpush.msra.mxu1 %v15282_v23  ;;  %v8793_v51 = vsub.f32 %v15519_v38, %v8792_v25  ;;  %v7553_v23 = vpop.permute.xlu1 %7552  ;;  %v7541_v35 = vmax.f32 %v7519_v47, %v7533_v58  ;;  %v8788_v21 = vand.u32 4294901760, %v8787_v62  ;;  %v8810_v4 = vand.u32 4294901760, %v15571_v11 }
 0xf7e   : > { %8863 = vmatpush.msrb.mxu0 %v15429_v13  ;;  %8715 = vmatmul.f32.vlgmr.msra.gmra.mxu1 %v15421_v9  ;;  %v8816_v60 = vand.u32 4294901760, %v15579_v0  ;;  %v7557_v14 = vsel %vm16740_vm0, %v15369_v55, %v7553_v23  ;;  %v15619_v46 = vsub.f32 %v7684_v28, %v15589_v39  ;;  %v7680_v55 = vld [vmem:[%s16700_s20 + $0x180] sm:$0xff]  ;;  %v8822_v61 = vand.u32 4294901760, %v15602_v17 }
 0xf7f   : > { %8777 = vmatpush.msra.mxu3 %v8776_v42  ;;  %8916 = vmatpush.msrb.mxu1 %v15410_v52  ;;  %v8794_v1 = vand.u32 4294901760, %v8793_v51  ;;  %v7565_v34 = vmax.f32 %v7541_v35, %v7557_v14  ;;  %v7597_v3 = vpop.permute.xlu0 %7596  ;;  %v15634_v42 = vsub.f32 %v7683_v37, %v15604_v43  ;;  %v8806_v58 = vand.u32 4294901760, %v8805_v29 }
 0xf80   : > { %8564 = vmatpush.msrb.mxu2 %v15295_v18  ;;  %8678 = vmatmul.f32.vlgmr.msra.gmra.mxu0 %v15421_v9  ;;  %v7681_v18 = vld [vmem:[%s16700_s20 + $0x188] sm:$0xff]  ;;  %v7575_v9 = vpop.permute.xlu2 %7574  ;;  %v8817_v62 = vsub.f32 %v15579_v0, %v8816_v60  ;;  %v7601_v47 = vsel %vm784_vm2, %v15385_v22, %v7597_v3  ;;  %v15650_v37 = vsub.f32 %v7682_v6, %v15621_v26 }
 0xf81   : > { %8866 = vmatpush.msrb.mxu0 %v15445_v30  ;;  %8783 = vmatpush.msra.mxu3 %v8782_v20  ;;  %v15636_v28 = vand.u32 4294901760, %v7681_v18  ;;  %v8828_v20 = vand.u32 4294901760, %v15619_v46  ;;  %v8823_v22 = vsub.f32 %v15602_v17, %v8822_v61  ;;  %v8834_v35 = vand.u32 4294901760, %v15634_v42 }
 0xf82   : > { %8918 = vmatpush.msrb.mxu1 %v15416_v59  ;;  %8567 = vmatpush.msrb.mxu2 %v15298_v54  ;;  %v8811_v54 = vsub.f32 %v15571_v11, %v8810_v4  ;;  %v8818_v29 = vand.u32 4294901760, %v8817_v62  ;;  %v8840_v14 = vand.u32 4294901760, %v15650_v37 }
 0xf83   : > { %8869 = vmatpush.msrb.mxu0 %v15463_v2  ;;  %8570 = vmatmul.f32.vlgmr.msrb.gmra.mxu2 %v15435_v7  ;;  %v7579_v7 = vsel %vm16741_vm13, %v15365_v49, %v7575_v9  ;;  %v15652_v49 = vand.u32 4294901760, %v7680_v55  ;;  %v15662_v33 = vsub.f32 %v7681_v18, %v15636_v28  ;;  %v8829_v9 = vsub.f32 %v15619_v46, %v8828_v20 }
 0xf84   : > { %8720 = vmatpush.msra.mxu2 %v15410_v52  ;;  %8789 = vmatpush.msra.mxu3 %v8788_v21  ;;  %v7587_v51 = vmax.f32 %v7565_v34, %v7579_v7  ;;  %v8812_v23 = vand.u32 4294901760, %v8811_v54  ;;  %v8824_v18 = vand.u32 4294901760, %v8823_v22  ;;  %v8835_v34 = vsub.f32 %v15634_v42, %v8834_v35 }
 0xf85   : > { %8920 = vmatpush.msrb.mxu1 %v15439_v24  ;;  %8872 = vmatpush.msrb.mxu0 %v15480_v15  ;;  %v7619_v21 = vpop.permute.xlu1 %7618  ;;  %v8846_v3 = vand.u32 4294901760, %v15662_v33  ;;  %v8830_v54 = vand.u32 4294901760, %v8829_v9  ;;  %v8841_v7 = vsub.f32 %v15650_v37, %v8840_v14 }
 0xf86   : > { %8722 = vmatpush.msra.mxu2 %v15416_v59  ;;  %8795 = vmatpush.msra.mxu3 %v8794_v1  ;;  %v7609_v6 = vmax.f32 %v7587_v51, %v7601_v47  ;;  %v15672_v1 = vsub.f32 %v7680_v55, %v15652_v49 }
 0xf87   : > { %8922 = vmatpush.msrb.mxu1 %v15450_v32  ;;  %8875 = vmatpush.msrb.mxu0 %v15504_v40  ;;  %v8847_v62 = vsub.f32 %v15662_v33, %v8846_v3  ;;  %v8842_v51 = vand.u32 4294901760, %v8841_v7 }
 0xf88   : > { %8724 = vmatpush.msra.mxu2 %v15439_v24  ;;  %8801 = vmatpush.msra.mxu3 %v8800_v44  ;;  %v7623_v44 = vsel %vm845_vm11, %v15400_v12, %v7619_v21  ;;  %v8836_v12 = vand.u32 4294901760, %v8835_v34  ;;  %vm16746_vm11 = vcmask 523264  }
 0xf89   : > { %8924 = vmatpush.msrb.mxu1 %v15471_v36  ;;  %8878 = vmatpush.msrb.mxu0 %v15519_v38  ;;  %v7631_v55 = vmax.f32 %v7609_v6, %v7623_v44  ;;  %v8848_v22 = vand.u32 4294901760, %v8847_v62 }
 0xf8a   : > { %8726 = vmatpush.msra.mxu2 %v15450_v32  ;;  %8807 = vmatpush.msra.mxu3 %v8806_v58  ;;  %v8852_v58 = vand.u32 4294901760, %v15672_v1  ;;  %v7835_v13 = vpop.f32.mrf.mxu1 }
 0xf8b   : > { %8926 = vmatpush.msrb.mxu1 %v15487_v53  ;;  %8881 = vmatpush.msrb.mxu0 %v15531_v5  ;;  %v15698_v47 = vand.u32 4294901760, %v7631_v55 }
 0xf8c   : > { %8728 = vmatpush.msra.mxu2 %v15471_v36  ;;  %8813 = vmatpush.msra.mxu3 %v8812_v23  ;;  %v8853_v23 = vsub.f32 %v15672_v1, %v8852_v58 }
 0xf8d   : > { %8928 = vmatpush.msrb.mxu1 %v15496_v48  ;;  %8884 = vmatpush.msrb.mxu0 %v15545_v63  ;;  %v8752_v6 = vsub.f32 %v7631_v55, %v15698_v47 }
 0xf8e   : > { %8730 = vmatpush.msra.mxu2 %v15487_v53  ;;  %8819 = vmatpush.msra.mxu3 %v8818_v29  ;;  %v8854_v21 = vand.u32 4294901760, %v8853_v23 }
 0xf8f   : > { %8930 = vmatpush.msrb.mxu1 %v15510_v57  ;;  %8887 = vmatpush.msrb.mxu0 %v15571_v11  ;;  %v8753_v29 = vand.u32 4294901760, %v8752_v6 }
 0xf90   : > { %8732 = vmatpush.msra.mxu2 %v15496_v48  ;;  %8825 = vmatpush.msra.mxu3 %v8824_v18 }
 0xf91   : > { %8932 = vmatpush.msrb.mxu1 %v15536_v50  ;;  %8890 = vmatpush.msrb.mxu0 %v15579_v0  ;;  %v8754_v9 = vsub.f32 %v8752_v6, %v8753_v29 }
 0xf92   : > { %8734 = vmatpush.msra.mxu2 %v15510_v57  ;;  %8831 = vmatpush.msra.mxu3 %v8830_v54  ;;  %v7889_v30 = vpop.f32.mrf.mxu2  ;;  %v8034_v15 = vpop.f32.mrf.mxu1 }
 0xf93   : > { %8934 = vmatpush.msrb.mxu1 %v15547_v8  ;;  %8893 = vmatpush.msrb.mxu0 %v15602_v17 }
 0xf94   : > { %8736 = vmatpush.msra.mxu2 %v15536_v50  ;;  %8837 = vmatpush.msra.mxu3 %v8836_v12 }
 0xf95   : > { %8936 = vmatpush.msrb.mxu1 %v15573_v19  ;;  %8896 = vmatpush.msrb.mxu0 %v15619_v46 }
 0xf96   : > { %8738 = vmatpush.msra.mxu2 %v15547_v8  ;;  %8843 = vmatpush.msra.mxu3 %v8842_v51 }
 0xf97   : > { %8938 = vmatpush.msrb.mxu1 %v15589_v39  ;;  %8899 = vmatpush.msrb.mxu0 %v15634_v42 }
 0xf98   : > { %8740 = vmatpush.msra.mxu2 %v15573_v19  ;;  %8849 = vmatpush.msra.mxu3 %v8848_v22 }
 0xf99   : > { %8940 = vmatpush.msrb.mxu1 %v15604_v43  ;;  %8902 = vmatpush.msrb.mxu0 %v15650_v37 }
 0xf9a   : > { %8742 = vmatpush.msra.mxu2 %v15589_v39  ;;  %8855 = vmatpush.msra.mxu3 %v8854_v21 }
 0xf9b   : > { %8942 = vmatpush.msrb.mxu1 %v15621_v26  ;;  %8857 = vmatmul.f32.vlgmr.msra.gmra.mxu3 %v15698_v47 }
 0xf9c   : > { %8905 = vmatpush.msrb.mxu0 %v15662_v33  ;;  %9024 = vmatpush.msrb.mxu3 %v15410_v52  ;;  %v8755_v52 = vand.u32 4294901760, %v8754_v9 }
 0xf9d   : > { %8744 = vmatpush.msra.mxu2 %v15604_v43  ;;  %8944 = vmatpush.msrb.mxu1 %v15636_v28 }
 0xf9e   : > { %8908 = vmatpush.msrb.mxu0 %v15672_v1  ;;  %9026 = vmatpush.msrb.mxu3 %v15416_v59  ;;  %v7734_v59 = vpop.f32.mrf.mxu0 }
 0xf9f   : > { %8746 = vmatpush.msra.mxu2 %v15621_v26  ;;  %8911 = vmatmul.f32.vlgmr.msrb.gmra.mxu0 %v8752_v6 }
 0xfa0   : > { %8946 = vmatpush.msrb.mxu1 %v15652_v49  ;;  %9028 = vmatpush.msrb.mxu3 %v15439_v24  ;;  %v7836_v24 = vadd.f32 %v7835_v13, %v7734_v59 }
 0xfa1   : > { %8950 = vmatmul.f32.vlgmr.msrb.gmra.mxu1 %v8753_v29  ;;  %8748 = vmatpush.msra.mxu2 %v15636_v28 }
 0xfa2   : > { %9030 = vmatpush.msrb.mxu3 %v15450_v32  ;;  %v7890_v32 = vadd.f32 %v7889_v30, %v7836_v24 }
 0xfa3   : > { %8750 = vmatpush.msra.mxu2 %v15652_v49 }
 0xfa4   : > { %8756 = vmatmul.f32.vlgmr.msra.gmra.mxu2 %v8755_v52  ;;  %9032 = vmatpush.msrb.mxu3 %v15471_v36 }
 0xfa5   : > { %8957 = vmatpush.msrb.mxu2 %v8762_v31  ;;  %v7928_v31 = vpop.f32.mrf.mxu3 }
 0xfa6   : > { %9034 = vmatpush.msrb.mxu3 %v15487_v53  ;;  %v7997_v2 = vpop.f32.mrf.mxu0 }
 0xfa7   : > { %8961 = vmatpush.msrb.mxu2 %v8768_v10  ;;  %v7929_v10 = vadd.f32 %v7928_v31, %v7890_v32 }
 0xfa8   : > { %9036 = vmatpush.msrb.mxu3 %v15496_v48 }
 0xfa9   : > { %8965 = vmatpush.msrb.mxu2 %v8774_v45  ;;  %v7998_v36 = vadd.f32 %v7997_v2, %v7929_v10 }
 0xfaa   : > { %9038 = vmatpush.msrb.mxu3 %v15510_v57 }
 0xfab   : > { %8969 = vmatpush.msrb.mxu2 %v8780_v56  ;;  %v8035_v45 = vadd.f32 %v8034_v15, %v7998_v36 }
 0xfac   : > { %9040 = vmatpush.msrb.mxu3 %v15536_v50 }
 0xfad   : > { %8973 = vmatpush.msrb.mxu2 %v8786_v16 }
 0xfae   : > { %9042 = vmatpush.msrb.mxu3 %v15547_v8 }
 0xfaf   : > { %8977 = vmatpush.msrb.mxu2 %v8792_v25 }
 0xfb0   : > { %9044 = vmatpush.msrb.mxu3 %v15573_v19 }
 0xfb1   : > { %8981 = vmatpush.msrb.mxu2 %v8798_v27 }
 0xfb2   : > { %9046 = vmatpush.msrb.mxu3 %v15589_v39 }
 0xfb3   : > { %8985 = vmatpush.msrb.mxu2 %v8804_v41 }
 0xfb4   : > { %9048 = vmatpush.msrb.mxu3 %v15604_v43 }
 0xfb5   : > { %8989 = vmatpush.msrb.mxu2 %v8810_v4 }
 0xfb6   : > { %9050 = vmatpush.msrb.mxu3 %v15621_v26 }
 0xfb7   : > { %8993 = vmatpush.msrb.mxu2 %v8816_v60 }
 0xfb8   : > { %9052 = vmatpush.msrb.mxu3 %v15636_v28 }
 0xfb9   : > { %8997 = vmatpush.msrb.mxu2 %v8822_v61 }
 0xfba   : > { %9054 = vmatpush.msrb.mxu3 %v15652_v49 }
 0xfbb   : > { %9001 = vmatpush.msrb.mxu2 %v8828_v20  ;;  %9056 = vmatmul.f32.vlgmr.msrb.gmra.mxu3 %v15698_v47 }
 0xfbd   : > { %9005 = vmatpush.msrb.mxu2 %v8834_v35 }
 0xfbf   : > { %9009 = vmatpush.msrb.mxu2 %v8840_v14 }
 0xfc1   : > { %9013 = vmatpush.msrb.mxu2 %v8846_v3 }
 0xfc3   : > { %9017 = vmatpush.msrb.mxu2 %v8852_v58 }
 0xfc4   : > { %9019 = vmatmul.f32.vlgmr.msrb.gmra.mxu2 %v15698_v47 }
 0xfd6   : > { %v8230_v57 = vpop.f32.mrf.mxu0 }
 0xfd8   : > { %v8269_v5 = vpop.f32.mrf.mxu1 }
 0xfda   : > { %v8176_v40 = vpop.f32.mrf.mxu3 }
 0xfe2   : > { %v8075_v53 = vpop.f32.mrf.mxu2 }
 0xfe3   : > { %v8076_v48 = vadd.f32 %v8075_v53, %v8035_v45  ;;  %v8375_v8 = vpop.f32.mrf.mxu3 }
 0xfe5   : > { %v8177_v56 = vadd.f32 %v8176_v40, %v8076_v48 }
 0xfe7   : > { %v8231_v38 = vadd.f32 %v8230_v57, %v8177_v56 }
 0xfe9   : > { %v8270_v16 = vadd.f32 %v8269_v5, %v8231_v38 }
 0xfea   : > { %v8517_v19 = vpop.f32.mrf.mxu1 }
 0xfeb   : > { %v8338_v50 = vpop.f32.mrf.mxu2 }
 0xfec   : > { %v8339_v63 = vadd.f32 %v8338_v50, %v8270_v16 }
 0xfee   : > { %v8376_v27 = vadd.f32 %v8375_v8, %v8339_v63 }
 0xff3   : > { %v8416_v25 = vpop.f32.mrf.mxu0 }
 0xff4   : > { %v8417_v11 = vadd.f32 %v8416_v25, %v8376_v27 }
 0xff6   : > { %v8518_v0 = vadd.f32 %v8517_v19, %v8417_v11 }
 0xffb   : > { %v8716_v46 = vpop.f32.mrf.mxu1 }
 0xffc   : > { %v8610_v4 = vpop.f32.mrf.mxu3 }
 0xffd   : > { %v8679_v43 = vpop.f32.mrf.mxu0 }
0x1006   : > { %v8571_v41 = vpop.f32.mrf.mxu2 }
0x1007   : > { %v8572_v39 = vadd.f32 %v8571_v41, %v8518_v0 }
0x1009   : > { %v8611_v17 = vadd.f32 %v8610_v4, %v8572_v39 }
0x100b   : > { %v8680_v60 = vadd.f32 %v8679_v43, %v8611_v17 }
0x100d   : > { %v8717_v61 = vadd.f32 %v8716_v46, %v8680_v60 }
0x101c   : > { %v8912_v37 = vpop.f32.mrf.mxu0 }
0x101e   : > { %v8858_v28 = vpop.f32.mrf.mxu3  ;;  %v8951_v35 = vpop.f32.mrf.mxu1 }
0x1027   : > { %v8757_v26 = vpop.f32.mrf.mxu2 }
0x1028   : > { %v8758_v42 = vadd.f32 %v8757_v26, %v8717_v61 }
0x102a   : > { %v8859_v20 = vadd.f32 %v8858_v28, %v8758_v42 }
0x102c   : > { %v8913_v49 = vadd.f32 %v8912_v37, %v8859_v20 }
0x102e   : > { %v8952_v33 = vadd.f32 %v8951_v35, %v8913_v49 }
0x103e   : > { %v9057_v18 = vpop.f32.mrf.mxu3 }
0x1047   : > { %v9020_v14 = vpop.f32.mrf.mxu2 }
0x1048   : > { %v9021_v1 = vadd.f32 %v9020_v14, %v8952_v33 }
0x104a   : > { %v9058_v34 = vadd.f32 %v9057_v18, %v9021_v1 }
0x104c   : > { %9060 = vst.msk [vmem:[%s271_s28] sm:$0xff] %vm16746_vm11, %v9058_v34 }
0x104d   : > { %9329 = shalt.err (!%p9326_p3)
}
0x104e   : > { %9200 = dma.vmem_to_hbm [thread:$0]  (%p9479_p5), %s9075_s12, 128, %s9077_s17, %s9062_s9  }
0x104f PF: > { %s16747_s26 = sld [smem:[#allocation10_spill]] }
0x1050   : > { %s16748_s8 = sld [smem:[#allocation7_spill]] }
0x1055   : > { %p9206_p4 = scmp.ge.s32.totalorder %s16747_s26, 2 }
0x1056   : > { %s9088_s22 = sand.u32 1, %s16748_s8  }
0x1057   : > { %p9203_p7 = pnand %p9206_p4, %p9483_p6  ;;  %s9089_s14 = scalar_lea.sflag [#allocation5], %s9088_s22 }
0x1059   : > { %p9204_p8 = pneg %p9203_p7 }
0x105b   : > { %9347 = dma.done.wait (%p9204_p8), %s9089_s14, 128  }
0x105c   : > { %9349 = vsyncadd (%p9204_p8), %s9089_s14, 4294967168  ;;  %s16750_s27 = sld [smem:[#allocation12_spill]] }
0x105d   : > { %s16751_s24 = sld [smem:[#allocation8_spill]] }
0x105e   : > { %s16752_s25 = sld [smem:[#allocation9_spill]] }
0x105f   : > { %s16753_s26 = sld [smem:[#allocation13_spill]] }
0x1062   : > { %p17_p9 = scmp.ge.s32.totalorder %s16750_s27, 4  }
0x1064   :  { %19 = sbr.rel (!%p17_p9) target bundleno = 12 (0xc), region = 110 }
0x1069   :  { %9095 = vsyncpa [#allocation5], 1 }
0x106a   :  { %9097 = vsyncpa [#allocation5 + $0x1], 1 }

</bundles_post_ra>
